<compile_context>
chip_gen: v5e
topology: v5e:2x2
jax: 0.10.0
libtpu: 0.0.40
codegen_flags: <defaults>
</compile_context>

<pallas_src>
import functools

import numpy as np
import jax
import jax.numpy as jnp
from jax.experimental import pallas as pl
from jax.experimental.pallas import tpu as pltpu


# ----------------------------- Pallas kernel --------------------------------

def tfsep_kernel(x_ref,       # (Cin, L)     compute dtype; L = Bblk * F * T (lane axis)
                 wt_ref,      # (Cout, Cin)  compute dtype; transition 1x1 (shuffle folded)
                 cvec_ref,    # (Cout, 5)    f32; cols = [trans_b, tap0, tap1, tap2, dw_b]
                 wpw_ref,     # (Cout, Cout) compute dtype; block-diag pointwise, BN folded
                 bpw_ref,     # (Cout, W)    f32; pointwise bias, -1e30 on off-diag blocks
                 smean_ref,   # (L, 3*W)     compute dtype; fused depthwise+mean 0/1 selection
                 bcast_ref,   # (W, L)       compute dtype; 0/1 broadcast-back selection
                 o_ref):      # (Cout, L)    f32
    f32 = jnp.float32
    cdt = smean_ref.dtype
    W = bpw_ref.shape[1]

    # 1) transition 1x1 conv: (Cout, Cin) @ (Cin, L) on the MXU; bias add in f32 (VPU).
    xt = jnp.dot(wt_ref[...], x_ref[...], preferred_element_type=f32) + cvec_ref[:, 0:1]

    # 2) fused depthwise(3-tap) conv + mean: one matmul against three shifted 0/1
    #    column groups, then a per-channel 3-tap weighted sum (f32 VPU).  The
    #    cross-branch (off-diagonal) halves of `m` are garbage; step 3 zeroes them.
    s = jnp.dot(xt.astype(cdt), smean_ref[...], preferred_element_type=f32)     # (Cout, 3W)
    m = (cvec_ref[:, 1:2] * s[:, 0:W]
         + cvec_ref[:, 2:3] * s[:, W:2 * W]
         + cvec_ref[:, 3:4] * s[:, 2 * W:3 * W]
         + cvec_ref[:, 4:5])                                                     # (Cout, W)

    # 3) block-diagonal pointwise 1x1 conv + folded BatchNorm + ReLU.  The -1e30
    #    bias on the off-diagonal blocks makes them exactly zero after the ReLU,
    #    so no masks / concats are needed in-kernel.
    z = jnp.maximum(
        jnp.dot(wpw_ref[...], m.astype(cdt), preferred_element_type=f32) + bpw_ref[...],
        0.0)                                                                     # (Cout, W)

    # 4) broadcast back over F / T (0/1 matmul) + identity add; one full-tile store.
    out = jnp.dot(z.astype(cdt), bcast_ref[...], preferred_element_type=f32) + xt
    o_ref[...] = out.astype(o_ref.dtype)


# ------------------------- host-side constant builders -----------------------

@functools.lru_cache(maxsize=None)
def _build_geometry(F, T, Bblk):
    """0/1 selection matrices for the fused depthwise+mean and the broadcast-back.

    Lane layout inside one grid step: l = b*F*T + f*T + t,  b in [0, Bblk).
    smean columns: three tap groups (prev, center, next), each [freq | temp] and
    block-diagonal over the local batch.  bcast maps the (Bblk*T + Bblk*F) reduced
    lanes back onto the full L lanes.
    """
    FT = F * T
    L = Bblk * FT
    BT, BF = Bblk * T, Bblk * F
    lane = np.arange(L)
    b = lane // FT
    f = (lane % FT) // T
    t = lane % T
    col_f = b * T + t          # freq-branch reduced column for each lane
    col_t = b * F + f          # temp-branch reduced column for each lane

    def sel(cols, ncols, valid):
        S = np.zeros((L, ncols), np.float32)
        S[lane[valid], cols[valid]] = 1.0
        return S

    taps = []
    for fv, tv in ((f <= F - 2, t <= T - 2),                  # "prev" tap sums
                   (np.ones(L, bool), np.ones(L, bool)),      # center tap sums
                   (f >= 1, t >= 1)):                         # "next" tap sums
        taps.append(np.concatenate([sel(col_f, BT, fv), sel(col_t, BF, tv)], axis=1))
    smean = np.concatenate(taps, axis=1)                       # (L, 3*(BT+BF))

    bcast = np.zeros((BT + BF, L), np.float32)
    bcast[col_f, lane] = 1.0                                   # broadcast over F (freq rows)
    bcast[BT + col_t, lane] = 1.0                              # broadcast over T (temp rows)
    return smean, bcast


def _shuffle_perm(channels, group):
    """Output-channel permutation equivalent to ShuffleLayer (applied post-transition)."""
    assert channels % group == 0, "ShuffleLayer requires channels % group == 0"
    gc = channels // group
    j = np.arange(channels)
    return (j % gc) * group + (j // gc)


# ------------------------------ forward factory -------------------------------

def make_tfsep_fn(params, F, T, *, shuffle=False, shuffle_groups=10,
                  compute_dtype=jnp.bfloat16, block_batch=None, eps=1e-5):
    """Fold parameters + geometry once; return a jitted forward (B,Cin,F,T)->(B,Cout,F,T)."""
    f32 = jnp.float32
    Cout, Cin = params["trans_w"].shape[:2]
    assert Cout % 2 == 0
    Ch = Cout // 2
    FT = F * T

    # ---- transition conv (identity when in_channels == out_channels); shuffle folded in
    if Cin != Cout:
        trans_w = params["trans_w"][:, :, 0, 0]
        trans_b = params["trans_b"]
    else:
        trans_w = jnp.eye(Cout, dtype=f32)
        trans_b = jnp.zeros((Cout,), f32)
    if shuffle:
        perm = _shuffle_perm(Cout, shuffle_groups)
        trans_w = trans_w[perm]
        trans_b = trans_b[perm]

    # ---- per-channel vector slab (f32, used on the VPU): [trans_b, tap0, tap1, tap2, dw_b]
    fdw = params["fdw_w"][:, 0, :, 0]                          # (Ch, 3) taps along F
    tdw = params["tdw_w"][:, 0, 0, :]                          # (Ch, 3) taps along T
    wtap = jnp.concatenate([fdw / F, tdw / T], axis=0)         # fold the 1/F, 1/T of the mean
    bdw = jnp.concatenate([params["fdw_b"], params["tdw_b"]])
    cvec = jnp.stack([trans_b, wtap[:, 0], wtap[:, 1], wtap[:, 2], bdw], axis=1).astype(f32)

    # ---- block-diagonal pointwise conv with eval-mode BatchNorm folded in
    f_scale = params["f_gamma"] / jnp.sqrt(params["f_var"] + eps)
    f_shift = params["f_beta"] - params["f_mean"] * f_scale
    t_scale = params["t_gamma"] / jnp.sqrt(params["t_var"] + eps)
    t_shift = params["t_beta"] - params["t_mean"] * t_scale
    fpw = params["fpw_w"][:, :, 0, 0] * f_scale[:, None]
    tpw = params["tpw_w"][:, :, 0, 0] * t_scale[:, None]
    zer = jnp.zeros((Ch, Ch), f32)
    wpw = jnp.block([[fpw, zer], [zer, tpw]])                  # (Cout, Cout)

    # ---- geometry (built once per (F, T, Bblk); Bblk chosen so Bblk*max(F,T) ~= 128)
    if block_batch is None:
        block_batch = min(16, max(1, 128 // max(F, T)))        # VMEM-capped (v7x: 64 MiB)
    Bblk = int(block_batch)
    BT, BF = Bblk * T, Bblk * F
    W = BT + BF
    L = Bblk * FT
    smean_np, bcast_np = _build_geometry(F, T, Bblk)

    # pointwise bias with -1e30 on the off-diagonal (cross-branch) blocks: ReLU turns
    # those blocks into exact zeros, replacing explicit masks / concats in the kernel.
    blkmask = np.zeros((Cout, W), bool)
    blkmask[:Ch, :BT] = True
    blkmask[Ch:, BT:] = True
    bias_rows = jnp.concatenate([f_shift, t_shift])[:, None]
    bpw = jnp.where(jnp.asarray(blkmask), bias_rows, jnp.float32(-1e30)).astype(f32)

    cdt = compute_dtype
    wt_c = trans_w.astype(cdt)
    wpw_c = wpw.astype(cdt)
    smean_c = jnp.asarray(smean_np, cdt)                       # 0/1 entries -> exact in bf16
    bcast_c = jnp.asarray(bcast_np, cdt)

    @jax.jit
    def fwd(x_nchw):
        B = x_nchw.shape[0]
        n_steps = -(-B // Bblk)
        Bpad = n_steps * Bblk
        x = x_nchw.reshape(B, Cin, FT)
        if Bpad != B:
            x = jnp.pad(x, ((0, Bpad - B), (0, 0), (0, 0)))
        # (B, Cin, FT) -> (Cin, Bpad*FT): small HBM transpose keeps the kernel lane-dense.
        x_flat = jnp.transpose(x, (1, 0, 2)).reshape(Cin, Bpad * FT).astype(cdt)

        const = lambda shp: pl.BlockSpec(shp, lambda i: (0, 0))
        out_flat = pl.pallas_call(
            tfsep_kernel,
            out_shape=jax.ShapeDtypeStruct((Cout, Bpad * FT), jnp.float32),
            grid=(n_steps,),
            in_specs=[
                pl.BlockSpec((Cin, L), lambda i: (0, i)),       # x batch-block
                const((Cout, Cin)),                             # transition weight
                const((Cout, 5)),                               # packed per-channel vectors
                const((Cout, Cout)),                            # block-diag pointwise weight
                const((Cout, W)),                               # pointwise bias (+ -1e30 mask)
                const((L, 3 * W)),                              # fused depthwise+mean selection
                const((W, L)),                                  # broadcast-back selection
            ],
            out_specs=pl.BlockSpec((Cout, L), lambda i: (0, i)),
            compiler_params=pltpu.CompilerParams(
                dimension_semantics=("parallel",),              # v7x: batch blocks across both TCs
                vmem_limit_bytes=40 * 1024 * 1024),
        )(x_flat, wt_c, cvec, wpw_c, bpw, smean_c, bcast_c)

        out = out_flat.reshape(Cout, Bpad, FT).transpose(1, 0, 2)[:B]
        return out.reshape(B, Cout, F, T)

    return fwd


# -------------------------- parameters / reference ---------------------------

def init_params(key, in_channels, out_channels):
    """Deterministic synthetic parameters, PyTorch weight layouts (OIHW)."""
    Ch = out_channels // 2
    ks = jax.random.split(key, 12)
    n = lambda k, shp: 0.1 * jax.random.normal(k, shp, jnp.float32)
    return {
        "trans_w": n(ks[0], (out_channels, in_channels, 1, 1)),
        "trans_b": n(ks[1], (out_channels,)),
        "fdw_w": n(ks[2], (Ch, 1, 3, 1)),
        "fdw_b": n(ks[3], (Ch,)),
        "tdw_w": n(ks[4], (Ch, 1, 1, 3)),
        "tdw_b": n(ks[5], (Ch,)),
        "fpw_w": n(ks[6], (Ch, Ch, 1, 1)),
        "tpw_w": n(ks[7], (Ch, Ch, 1, 1)),
        # BatchNorm params (eval-mode running stats)
        "f_gamma": 1.0 + n(ks[8], (Ch,)), "f_beta": n(ks[9], (Ch,)),
        "f_mean": n(ks[10], (Ch,)), "f_var": 0.5 + jnp.abs(n(ks[11], (Ch,))),
        "t_gamma": 1.0 - n(ks[8], (Ch,)), "t_beta": -n(ks[9], (Ch,)),
        "t_mean": -n(ks[10], (Ch,)), "t_var": 0.75 + jnp.abs(n(ks[11], (Ch,))),
    }


def _conv2d(x, w, b=None, padding=((0, 0), (0, 0)), groups=1):
    y = jax.lax.conv_general_dilated(
        x, w, (1, 1), padding,
        dimension_numbers=("NCHW", "OIHW", "NCHW"),
        feature_group_count=groups)
    if b is not None:
        y = y + b.reshape(1, -1, 1, 1)
    return y


def _bn_eval(x, gamma, beta, mean, var, eps=1e-5):
    return (x - mean.reshape(1, -1, 1, 1)) / jnp.sqrt(var.reshape(1, -1, 1, 1) + eps) \
        * gamma.reshape(1, -1, 1, 1) + beta.reshape(1, -1, 1, 1)


def ref_forward(x, p):
    """Pure-JAX (lax.conv) reference with PyTorch eval-mode semantics, NCHW."""
    x = _conv2d(x, p["trans_w"], p["trans_b"])
    Ch = x.shape[1] // 2
    x1, x2 = x[:, :Ch], x[:, Ch:]
    id1, id2 = x1, x2

    x1 = _conv2d(x1, p["fdw_w"], p["fdw_b"], padding=((1, 1), (0, 0)), groups=Ch)
    x1 = x1.mean(axis=2, keepdims=True)
    x1 = _conv2d(x1, p["fpw_w"])
    x1 = jax.nn.relu(_bn_eval(x1, p["f_gamma"], p["f_beta"], p["f_mean"], p["f_var"]))
    x1 = x1 + id1

    x2 = _conv2d(x2, p["tdw_w"], p["tdw_b"], padding=((0, 0), (1, 1)), groups=Ch)
    x2 = x2.mean(axis=3, keepdims=True)
    x2 = _conv2d(x2, p["tpw_w"])
    x2 = jax.nn.relu(_bn_eval(x2, p["t_gamma"], p["t_beta"], p["t_mean"], p["t_var"]))
    x2 = x2 + id2

    return jnp.concatenate([x1, x2], axis=1)


# ----------------------------------- main ------------------------------------

if __name__ == "__main__":
    # transition=True (Cin != Cout), shuffle=False.  B=16 -> 2 grid steps of Bblk=8
    # (Bblk*T = 128 lane-full intermediates; both v7x TensorCores get a step).
    B, Cin, Cout, F, T = 16, 8, 16, 16, 16
    key = jax.random.PRNGKey(0)
    kx, kparam = jax.random.split(key)

    x_nchw = jax.random.normal(kx, (B, Cin, F, T), jnp.float32)
    params = init_params(kparam, Cin, Cout)
    ref = jax.block_until_ready(ref_forward(x_nchw, params))

    # Strict correctness check with f32 MXU operands.
    fwd_f32 = make_tfsep_fn(params, F, T, compute_dtype=jnp.float32)
    out32 = jax.block_until_ready(fwd_f32(x_nchw))
    assert out32.shape == (B, Cout, F, T), out32.shape
    err32 = float(jnp.max(jnp.abs(out32 - ref)))
    assert err32 < 1e-4, f"f32 mismatch vs reference: {err32}"

    # Performance mode: bf16 MXU operands (selection/broadcast matrices are exact 0/1).
    fwd_bf16 = make_tfsep_fn(params, F, T, compute_dtype=jnp.bfloat16)
    out16 = jax.block_until_ready(fwd_bf16(x_nchw))
    err16 = float(jnp.max(jnp.abs(out16 - ref)))
    assert err16 < 5e-2, f"bf16 mismatch vs reference: {err16}"

    print("KERNEL_OK")
</pallas_src>

<mosaic_0001>
module attributes {stable_mosaic.version = 11 : i64} {
  func.func @tfsep_kernel(%arg0: i32, %arg1: memref<8x2048xf32, #tpu.memory_space<vmem>>, %arg2: memref<16x8xf32, #tpu.memory_space<vmem>>, %arg3: memref<16x5xf32, #tpu.memory_space<vmem>>, %arg4: memref<16x16xf32, #tpu.memory_space<vmem>>, %arg5: memref<16x256xf32, #tpu.memory_space<vmem>>, %arg6: memref<2048x768xf32, #tpu.memory_space<vmem>>, %arg7: memref<256x2048xf32, #tpu.memory_space<vmem>>, %arg8: memref<16x2048xf32, #tpu.memory_space<vmem>>) attributes {dimension_semantics = [#tpu.dimension_semantics<parallel>], iteration_bounds = array<i64: 2>, scalar_prefetch = 0 : i64, scratch_operands = 0 : i64, tpu.core_type = #tpu.core_type<tc>, window_params = [{transform_indices = @transform_0, window_bounds = array<i64: 8, 2048>}, {pipeline_mode = #tpu.pipeline_mode<synchronous>, transform_indices = @transform_1, window_bounds = array<i64: 16, 8>}, {pipeline_mode = #tpu.pipeline_mode<synchronous>, transform_indices = @transform_2, window_bounds = array<i64: 16, 5>}, {pipeline_mode = #tpu.pipeline_mode<synchronous>, transform_indices = @transform_3, window_bounds = array<i64: 16, 16>}, {pipeline_mode = #tpu.pipeline_mode<synchronous>, transform_indices = @transform_4, window_bounds = array<i64: 16, 256>}, {pipeline_mode = #tpu.pipeline_mode<synchronous>, transform_indices = @transform_5, window_bounds = array<i64: 2048, 768>}, {pipeline_mode = #tpu.pipeline_mode<synchronous>, transform_indices = @transform_6, window_bounds = array<i64: 256, 2048>}, {transform_indices = @transform_7, window_bounds = array<i64: 16, 2048>}]} {
    %c0 = arith.constant 0 : index
    %c0_0 = arith.constant 0 : index
    %0 = vector.load %arg2[%c0, %c0_0] : memref<16x8xf32, #tpu.memory_space<vmem>>, vector<16x8xf32>
    %c0_1 = arith.constant 0 : index
    %c0_2 = arith.constant 0 : index
    %1 = vector.load %arg1[%c0_1, %c0_2] : memref<8x2048xf32, #tpu.memory_space<vmem>>, vector<8x2048xf32>
    %cst = arith.constant dense<0.000000e+00> : vector<16x2048xf32>
    %2 = tpu.matmul %0, %1, %cst {dimension_numbers = #tpu.dot_dimension_numbers<[1], [0], [0], [1], [0, 0, 1, 1], [], []>} : vector<16x8xf32>, vector<8x2048xf32>, vector<16x2048xf32> -> vector<16x2048xf32>
    %c0_3 = arith.constant 0 : index
    %c0_4 = arith.constant 0 : index
    %3 = vector.load %arg3[%c0_3, %c0_4] : memref<16x5xf32, #tpu.memory_space<vmem>>, vector<16x1xf32>
    %4 = vector.broadcast %3 : vector<16x1xf32> to vector<16x2048xf32>
    %5 = arith.addf %2, %4 : vector<16x2048xf32>
    %c0_5 = arith.constant 0 : index
    %c0_6 = arith.constant 0 : index
    %6 = vector.load %arg6[%c0_5, %c0_6] : memref<2048x768xf32, #tpu.memory_space<vmem>>, vector<2048x768xf32>
    %cst_7 = arith.constant dense<0.000000e+00> : vector<16x768xf32>
    %7 = tpu.matmul %5, %6, %cst_7 {dimension_numbers = #tpu.dot_dimension_numbers<[1], [0], [0], [1], [0, 0, 1, 1], [], []>} : vector<16x2048xf32>, vector<2048x768xf32>, vector<16x768xf32> -> vector<16x768xf32>
    %c0_8 = arith.constant 0 : index
    %c1 = arith.constant 1 : index
    %8 = vector.load %arg3[%c0_8, %c1] : memref<16x5xf32, #tpu.memory_space<vmem>>, vector<16x1xf32>
    %9 = vector.extract_strided_slice %7 {offsets = [0, 0], sizes = [16, 256], strides = [1, 1]} : vector<16x768xf32> to vector<16x256xf32>
    %10 = vector.broadcast %8 : vector<16x1xf32> to vector<16x256xf32>
    %11 = arith.mulf %10, %9 : vector<16x256xf32>
    %c0_9 = arith.constant 0 : index
    %c2 = arith.constant 2 : index
    %12 = vector.load %arg3[%c0_9, %c2] : memref<16x5xf32, #tpu.memory_space<vmem>>, vector<16x1xf32>
    %13 = vector.extract_strided_slice %7 {offsets = [0, 256], sizes = [16, 256], strides = [1, 1]} : vector<16x768xf32> to vector<16x256xf32>
    %14 = vector.broadcast %12 : vector<16x1xf32> to vector<16x256xf32>
    %15 = arith.mulf %14, %13 : vector<16x256xf32>
    %16 = arith.addf %11, %15 : vector<16x256xf32>
    %c0_10 = arith.constant 0 : index
    %c3 = arith.constant 3 : index
    %17 = vector.load %arg3[%c0_10, %c3] : memref<16x5xf32, #tpu.memory_space<vmem>>, vector<16x1xf32>
    %18 = vector.extract_strided_slice %7 {offsets = [0, 512], sizes = [16, 256], strides = [1, 1]} : vector<16x768xf32> to vector<16x256xf32>
    %19 = vector.broadcast %17 : vector<16x1xf32> to vector<16x256xf32>
    %20 = arith.mulf %19, %18 : vector<16x256xf32>
    %21 = arith.addf %16, %20 : vector<16x256xf32>
    %c0_11 = arith.constant 0 : index
    %c4 = arith.constant 4 : index
    %22 = vector.load %arg3[%c0_11, %c4] : memref<16x5xf32, #tpu.memory_space<vmem>>, vector<16x1xf32>
    %23 = vector.broadcast %22 : vector<16x1xf32> to vector<16x256xf32>
    %24 = arith.addf %21, %23 : vector<16x256xf32>
    %c0_12 = arith.constant 0 : index
    %c0_13 = arith.constant 0 : index
    %25 = vector.load %arg4[%c0_12, %c0_13] : memref<16x16xf32, #tpu.memory_space<vmem>>, vector<16x16xf32>
    %cst_14 = arith.constant dense<0.000000e+00> : vector<16x256xf32>
    %26 = tpu.matmul %25, %24, %cst_14 {dimension_numbers = #tpu.dot_dimension_numbers<[1], [0], [0], [1], [0, 0, 1, 1], [], []>} : vector<16x16xf32>, vector<16x256xf32>, vector<16x256xf32> -> vector<16x256xf32>
    %c0_15 = arith.constant 0 : index
    %c0_16 = arith.constant 0 : index
    %27 = vector.load %arg5[%c0_15, %c0_16] : memref<16x256xf32, #tpu.memory_space<vmem>>, vector<16x256xf32>
    %28 = arith.addf %26, %27 : vector<16x256xf32>
    %cst_17 = arith.constant 0.000000e+00 : f32
    %29 = vector.broadcast %cst_17 : f32 to vector<16x256xf32>
    %30 = arith.maximumf %28, %29 : vector<16x256xf32>
    %c0_18 = arith.constant 0 : index
    %c0_19 = arith.constant 0 : index
    %31 = vector.load %arg7[%c0_18, %c0_19] : memref<256x2048xf32, #tpu.memory_space<vmem>>, vector<256x2048xf32>
    %cst_20 = arith.constant dense<0.000000e+00> : vector<16x2048xf32>
    %32 = tpu.matmul %30, %31, %cst_20 {dimension_numbers = #tpu.dot_dimension_numbers<[1], [0], [0], [1], [0, 0, 1, 1], [], []>} : vector<16x256xf32>, vector<256x2048xf32>, vector<16x2048xf32> -> vector<16x2048xf32>
    %33 = arith.addf %32, %5 : vector<16x2048xf32>
    %c0_21 = arith.constant 0 : index
    %c0_22 = arith.constant 0 : index
    %34 = vector.load %arg8[%c0_21, %c0_22] : memref<16x2048xf32, #tpu.memory_space<vmem>>, vector<16x2048xf32>
    tpu.vector_store %arg8[%c0_21, %c0_22], %33 {strides = array<i32>} : memref<16x2048xf32, #tpu.memory_space<vmem>>, vector<16x2048xf32>,
    return
  }
  func.func @transform_0(%arg0: i32) -> (i32, i32) {
    %c0_i32 = arith.constant 0 : i32
    %c0_i32_0 = arith.constant 0 : i32
    return %c0_i32, %arg0 : i32, i32
  }
  func.func @transform_1(%arg0: i32) -> (i32, i32) {
    %c0_i32 = arith.constant 0 : i32
    %c0_i32_0 = arith.constant 0 : i32
    %c0_i32_1 = arith.constant 0 : i32
    return %c0_i32, %c0_i32_0 : i32, i32
  }
  func.func @transform_2(%arg0: i32) -> (i32, i32) {
    %c0_i32 = arith.constant 0 : i32
    %c0_i32_0 = arith.constant 0 : i32
    %c0_i32_1 = arith.constant 0 : i32
    return %c0_i32, %c0_i32_0 : i32, i32
  }
  func.func @transform_3(%arg0: i32) -> (i32, i32) {
    %c0_i32 = arith.constant 0 : i32
    %c0_i32_0 = arith.constant 0 : i32
    %c0_i32_1 = arith.constant 0 : i32
    return %c0_i32, %c0_i32_0 : i32, i32
  }
  func.func @transform_4(%arg0: i32) -> (i32, i32) {
    %c0_i32 = arith.constant 0 : i32
    %c0_i32_0 = arith.constant 0 : i32
    %c0_i32_1 = arith.constant 0 : i32
    return %c0_i32, %c0_i32_0 : i32, i32
  }
  func.func @transform_5(%arg0: i32) -> (i32, i32) {
    %c0_i32 = arith.constant 0 : i32
    %c0_i32_0 = arith.constant 0 : i32
    %c0_i32_1 = arith.constant 0 : i32
    return %c0_i32, %c0_i32_0 : i32, i32
  }
  func.func @transform_6(%arg0: i32) -> (i32, i32) {
    %c0_i32 = arith.constant 0 : i32
    %c0_i32_0 = arith.constant 0 : i32
    %c0_i32_1 = arith.constant 0 : i32
    return %c0_i32, %c0_i32_0 : i32, i32
  }
  func.func @transform_7(%arg0: i32) -> (i32, i32) {
    %c0_i32 = arith.constant 0 : i32
    %c0_i32_0 = arith.constant 0 : i32
    return %c0_i32, %arg0 : i32, i32
  }
}

</mosaic_0001>

<bundles_post_ra>
// kernel: fwd.1
= control target key start
LH: loop header
LB: loop body
LE: loop exit
PB: predicated region body
PF: predicated region fallthrough
CT: control target
= control target key end

     0   :  { %s7821_s0 = inlined_call_operand.vmem [shape: f32[8,4096], index: 0, kind: input, shape index: {}]   ;;  %s7822_s1 = inlined_call_operand.hbm [shape: f32[16,8], index: 1, kind: input, shape index: {}]   ;;  %s7823_s2 = inlined_call_operand.hbm [shape: f32[16,5], index: 2, kind: input, shape index: {}]   ;;  %s7824_s3 = inlined_call_operand.hbm [shape: f32[16,16], index: 3, kind: input, shape index: {}]   ;;  %s7825_s4 = inlined_call_operand.hbm [shape: f32[16,256], index: 4, kind: input, shape index: {}]   ;;  %s7826_s5 = inlined_call_operand.hbm [shape: f32[2048,768], index: 5, kind: input, shape index: {}]   ;;  %s7827_s6 = inlined_call_operand.hbm [shape: f32[256,2048], index: 6, kind: input, shape index: {}]   ;;  %s7828_s7 = inlined_call_operand.vmem [shape: f32[16,4096], index: 7, kind: output, shape index: {}]  }
   0x1   :  { %7863 = sst [smem:[#allocation141_spill]] %s7823_s2 }
   0x2   :  { %12 = vsyncpa [#allocation3], 0 }
   0x3   :  { %13 = vsyncpa [#allocation5], 0 }
   0x4   :  { %14 = vsyncpa [#allocation8], 0 }
   0x5   :  { %15 = vsyncpa [#allocation11], 0  ;;  %s6578_s24 = smov 0   ;;  %s6580_s25 = smov 0  }
   0x6   :  { %s6582_s26 = smov 0  }
   0x7 LB: > { %s6591_s27 = sadd.s32 4294967295, %s6518_s26   ;;  %s6593_s28 = sadd.s32 1, %s6518_s26   ;;  %s6518_s26 = sphi %s6582_s26, %s8120_s26   ;;  %s6514_s25 = sphi %s6580_s25, %s8119_s25   ;;  %s6510_s24 = sphi %s6578_s24, %s8118_s24  }
   0x8   : > { %s177_s29 = ssub.s32 %s6518_s26, %s6593_s28  ;;  %s180_s30 = sadd.s32 1, %s6514_s25 }
   0x9   : > { %p178_p0 = scmp.eq.s32.totalorder %s177_s29, 0  ;;  %p190_p1 = scmp.ne.s32.totalorder %s6514_s25, %s6510_s24 }
   0xa   : > { %p191_p2 = scmp.eq.s32.totalorder %s6591_s27, 1  ;;  %p6125_p3 = scmp.ge.s32.totalorder %s6518_s26, 1 }
   0xb   : > { %s6601_s8 = scalar_select %p178_p0, %s6514_s25, %s180_s30  }
   0xc   : > { %p6603_p4 = por %p191_p2, %p190_p1  ;;  %p204_p5 = scmp.lt.s32.totalorder %s6518_s26, 3 }
   0xd   : > { %p6230_p6 = scmp.eq.s32.totalorder %s6591_s27, 0  ;;  %s7866_s2 = sld [smem:[#allocation141_spill]] }
   0xe   : > { %p6608_p7 = pnand %p6125_p3, %p204_p5  ;;  %s257_s16 = sshll.u32 %s7825_s4, 4  ;;  %s258_s16 = int_to_ptr.hbm [resolvable:$true] %s257_s16 }
   0xf   : > { %s6520_s18 = smov [#allocation4]   ;;  %s6521_s20 = smov 128  }
  0x10   : > { %p6211_p8 = pneg %p6608_p7  ;;  %s231_s19 = sshll.u32 %s6520_s18, 4  ;;  %s232_s19 = int_to_ptr.vmem [resolvable:$true] %s231_s19 }
  0x11   : > { %s6522_s21 = smov 8   ;;  %s6523_s22 = smov [#allocation7]  }
  0x12   : > { %p6622_p9 = pnand %p6230_p6, %p6211_p8  ;;  %s259_s23 = sshll.u32 %s6523_s22, 4  ;;  %s260_s23 = int_to_ptr.vmem [resolvable:$true] %s259_s23 }
  0x13   : > { %s229_s13 = sshll.u32 %s7866_s2, 4  ;;  %s6524_s26 = smov 256   ;;  %s230_s13 = int_to_ptr.hbm [resolvable:$true] %s229_s13 }
  0x14   : > { %6217 = dma.hbm_to_vmem [thread:$0]  (!%p6622_p9), %s230_s13, 256, %s232_s19, [#allocation5], %s6521_s20, %s6521_s20, %s6522_s21  }
  0x15   : > { %s6525_s29 = smov 16   ;;  %s215_s12 = sshll.u32 %s7822_s1, 4  ;;  %s216_s12 = int_to_ptr.hbm [resolvable:$true] %s215_s12 }
  0x16   : > { %6223 = dma.hbm_to_vmem [thread:$0]  (!%p6622_p9), %s258_s16, 512, %s260_s23, [#allocation8], %s6524_s26, %s6524_s26, %s6525_s29  }
  0x17   : > { %s6526_s14 = smov [#allocation2]   ;;  %s243_s13 = sshll.u32 %s7824_s3, 4  ;;  %s244_s13 = int_to_ptr.hbm [resolvable:$true] %s243_s13 }
  0x18   : > { %s217_s15 = sshll.u32 %s6526_s14, 4  ;;  %s6527_s19 = smov [#allocation6]   ;;  %s218_s15 = int_to_ptr.vmem [resolvable:$true] %s217_s15 }
  0x19   : > { %6214 = dma.hbm_to_vmem [thread:$0]  (!%p6622_p9), %s216_s12, 256, %s218_s15, [#allocation3], %s6521_s20, %s6521_s20, %s6522_s21  }
  0x1a   : > { %s245_s16 = sshll.u32 %s6527_s19, 4  ;;  %s271_s26 = sshll.u32 %s7826_s5, 4  ;;  %s246_s16 = int_to_ptr.vmem [resolvable:$true] %s245_s16  ;;  %s272_s26 = int_to_ptr.hbm [resolvable:$true] %s271_s26 }
  0x1b   : > { %6220 = dma.hbm_to_vmem [thread:$0]  (!%p6622_p9), %s244_s13, 256, %s246_s16, [#allocation5], %s6521_s20, %s6521_s20, %s6522_s21  }
  0x1c   : > { %s6528_s2 = smov [#allocation9]   ;;  %s285_s12 = sshll.u32 %s7827_s6, 4  ;;  %s286_s12 = int_to_ptr.hbm [resolvable:$true] %s285_s12 }
  0x1d   : > { %s273_s29 = sshll.u32 %s6528_s2, 4  ;;  %s6529_s14 = smov 768   ;;  %s274_s29 = int_to_ptr.vmem [resolvable:$true] %s273_s29 }
  0x1e   : > { %s6530_s15 = smov 48   ;;  %s6531_s18 = smov [#allocation10]  }
  0x1f   : > { %6226 = dma.hbm_to_vmem [thread:$0]  (!%p6622_p9), %s272_s26, 196608, %s274_s29, [#allocation8], %s6529_s14, %s6529_s14, %s6530_s15  }
  0x20   : > { %s287_s19 = sshll.u32 %s6531_s18, 4  ;;  %s6532_s22 = smov 2048   ;;  %s288_s19 = int_to_ptr.vmem [resolvable:$true] %s287_s19 }
  0x21   : > { %6229 = dma.hbm_to_vmem [thread:$0]  (!%p6622_p9), %s286_s12, 65536, %s288_s19, [#allocation11], %s6532_s22, %s6532_s22, %s6521_s20  }
  0x22   : > { %312 = sbr.rel (%p6608_p7) target bundleno = 1632 (0x660), region = 48 }
  0x27   : > { %6493 = dma.done.wait (%p6230_p6), [#allocation3], 256  }
  0x28   : > { %6495 = vsyncadd (%p6230_p6), [#allocation3], 4294967040 }
  0x29   : > { %6497 = dma.done.wait (%p6230_p6), [#allocation5], 512  }
  0x2a   : > { %6499 = vsyncadd (%p6230_p6), [#allocation5], 4294966784 }
  0x2b   : > { %6501 = dma.done.wait (%p6230_p6), [#allocation8], 197120  }
  0x2c   : > { %6503 = vsyncadd (%p6230_p6), [#allocation8], 4294770176 }
  0x2d   : > { %6505 = dma.done.wait (%p6230_p6), [#allocation11], 65536  }
  0x2e   : > { %6507 = vsyncadd (%p6230_p6), [#allocation11], 4294901760  ;;  %s6141_s10 = sshll.u32 %s6591_s27, 4  ;;  %v6533_v0 = vmov 0   ;;  %v6683_v3 = vld [vmem:[#allocation2] sm:$0xff]  ;;  %vm406_vm0 = vcmask 64512  }
  0x2f   : > { %p370_p10 = scmp.lt.s32.totalorder %s6141_s10, 31  ;;  %6284 = vset.pattern.permute.xlu0 %v6533_v0  ;;  %v6685_v4 = vld [vmem:[#allocation2 + $0x8] sm:$0xff]  ;;  %v394_v9 = vld [vmem:[#allocation4] sm:$0xff]  ;;  %v395_v18 = vld [vmem:[#allocation4 + $0x8] sm:$0xff]  ;;  %vm4587_vm1 = vcmask 130048   ;;  %s366_s16 = sand.u32 1, %s6510_s24  }
  0x30   : > { %398 = vperm.xlu0 %6284, %v394_v9   ;;  %v871_v21 = vld [vmem:[#allocation9 + $0x2d0] sm:$0xff]  ;;  %v865_v23 = vld [vmem:[#allocation9 + $0x2a0] sm:$0xff]  ;;  %s6140_s23 = sshll.u32 %s366_s16, 8  ;;  %s6184_s26 = sshll.u32 (%p6603_p4), %s6591_s27, 7 }
  0x31   : > { %s8122_s10 = smov (!%p370_p10, %s6141_s10), 31  ;;  %v967_v22 = vld [vmem:[#allocation9 + $0x5d0] sm:$0xff]  ;;  %v961_v24 = vld [vmem:[#allocation9 + $0x5a0] sm:$0xff]  ;;  %s7662_s24 = scalar_lea.vmem [#allocation12], %s6140_s23 }
  0x32   : > { %s6142_s17 = sshll.u32 %s8122_s10, 3  ;;  %v859_v25 = vld [vmem:[#allocation9 + $0x270] sm:$0xff]  ;;  %v853_v27 = vld [vmem:[#allocation9 + $0x240] sm:$0xff]  ;;  %s7747_s30 = scalar_lea.vmem (%p6603_p4), %s7828_s7, %s6184_s26 }
  0x33   : > { %s6679_s13 = scalar_lea.vmem %s7821_s0, %s6142_s17  ;;  %v955_v26 = vld [vmem:[#allocation9 + $0x570] sm:$0xff]  ;;  %v949_v28 = vld [vmem:[#allocation9 + $0x540] sm:$0xff] }
  0x34   : > { %v378_v1 = vld [vmem:[%s6679_s13] sm:$0xff]  ;;  %v379_v2 = vld [vmem:[%s6679_s13 + $0x8] sm:$0xff]  ;;  %v380_v5 = vld [vmem:[%s6679_s13 + $0x10] sm:$0xff] }
  0x35   : > { %428 = vmatpush.msra.mxu0 %v378_v1  ;;  %6185 = vmatpush.msra.mxu2 %v378_v1  ;;  %v381_v6 = vld [vmem:[%s6679_s13 + $0x18] sm:$0xff]  ;;  %v382_v7 = vld [vmem:[%s6679_s13 + $0x20] sm:$0xff]  ;;  %v383_v8 = vld [vmem:[%s6679_s13 + $0x28] sm:$0xff] }
  0x36   : > { %451 = vmatpush.msra.mxu1 %v379_v2  ;;  %6186 = vmatpush.msra.mxu3 %v379_v2  ;;  %v384_v10 = vld [vmem:[%s6679_s13 + $0x30] sm:$0xff]  ;;  %v385_v11 = vld [vmem:[%s6679_s13 + $0x38] sm:$0xff]  ;;  %v386_v12 = vld [vmem:[%s6679_s13 + $0x40] sm:$0xff] }
  0x37   : > { %6143 = vmatmul.msk.f32.vlgmr.msra.gmra.mxu0 %vm406_vm0, %v6683_v3  ;;  %6144 = vmatmul.msk.f32.vlgmr.msra.gmra.mxu2 %vm406_vm0, %v6685_v4  ;;  %v387_v13 = vld [vmem:[%s6679_s13 + $0x48] sm:$0xff]  ;;  %v388_v14 = vld [vmem:[%s6679_s13 + $0x50] sm:$0xff]  ;;  %v389_v15 = vld [vmem:[%s6679_s13 + $0x58] sm:$0xff] }
  0x38   : > { %6145 = vmatmul.msk.f32.vlgmr.msra.gmra.mxu1 %vm406_vm0, %v6683_v3  ;;  %6146 = vmatmul.msk.f32.vlgmr.msra.gmra.mxu3 %vm406_vm0, %v6685_v4  ;;  %v390_v16 = vld [vmem:[%s6679_s13 + $0x60] sm:$0xff]  ;;  %v391_v17 = vld [vmem:[%s6679_s13 + $0x68] sm:$0xff]  ;;  %v392_v19 = vld [vmem:[%s6679_s13 + $0x70] sm:$0xff] }
  0x39   : > { %474 = vmatpush.msrb.mxu2 %v380_v5  ;;  %497 = vmatpush.msrb.mxu3 %v381_v6  ;;  %v393_v20 = vld [vmem:[%s6679_s13 + $0x78] sm:$0xff]  ;;  %v1063_v29 = vld [vmem:[#allocation9 + $0x8d0] sm:$0xff]  ;;  %v1057_v33 = vld [vmem:[#allocation9 + $0x8a0] sm:$0xff] }
  0x3a   : > { %520 = vmatpush.msrb.mxu0 %v382_v7  ;;  %543 = vmatpush.msrb.mxu1 %v383_v8  ;;  %v1159_v30 = vld [vmem:[#allocation9 + $0xbd0] sm:$0xff]  ;;  %v1153_v34 = vld [vmem:[#allocation9 + $0xba0] sm:$0xff] }
  0x3b   : > { %566 = vmatpush.msra.mxu2 %v384_v10  ;;  %589 = vmatpush.msra.mxu3 %v385_v11  ;;  %v847_v31 = vld [vmem:[#allocation9 + $0x210] sm:$0xff]  ;;  %v841_v35 = vld [vmem:[#allocation9 + $0x1e0] sm:$0xff] }
  0x3c   : > { %612 = vmatpush.msra.mxu0 %v386_v12  ;;  %635 = vmatpush.msra.mxu1 %v387_v13  ;;  %v943_v32 = vld [vmem:[#allocation9 + $0x510] sm:$0xff]  ;;  %v937_v36 = vld [vmem:[#allocation9 + $0x4e0] sm:$0xff] }
  0x3d   : > { %403 = vperm.xlu0 %6284, %v395_v18   ;;  %v1051_v37 = vld [vmem:[#allocation9 + $0x870] sm:$0xff]  ;;  %v1045_v41 = vld [vmem:[#allocation9 + $0x840] sm:$0xff] }
  0x3e   : > { %v1147_v38 = vld [vmem:[#allocation9 + $0xb70] sm:$0xff]  ;;  %v1141_v42 = vld [vmem:[#allocation9 + $0xb40] sm:$0xff] }
  0x3f   : > { %6147 = vmatmul.msk.f32.vlgmr.msrb.gmra.mxu2 %vm406_vm0, %v6683_v3  ;;  %6151 = vmatmul.msk.f32.vlgmr.msrb.gmra.mxu0 %vm406_vm0, %v6683_v3  ;;  %v835_v39 = vld [vmem:[#allocation9 + $0x1b0] sm:$0xff]  ;;  %v829_v43 = vld [vmem:[#allocation9 + $0x180] sm:$0xff] }
  0x40   : > { %6149 = vmatmul.msk.f32.vlgmr.msrb.gmra.mxu3 %vm406_vm0, %v6683_v3  ;;  %6153 = vmatmul.msk.f32.vlgmr.msrb.gmra.mxu1 %vm406_vm0, %v6683_v3  ;;  %v931_v40 = vld [vmem:[#allocation9 + $0x4b0] sm:$0xff]  ;;  %v925_v44 = vld [vmem:[#allocation9 + $0x480] sm:$0xff] }
  0x41   : > { %658 = vmatpush.msrb.mxu2 %v388_v14  ;;  %681 = vmatpush.msrb.mxu3 %v389_v15  ;;  %v1039_v45 = vld [vmem:[#allocation9 + $0x810] sm:$0xff]  ;;  %v1033_v49 = vld [vmem:[#allocation9 + $0x7e0] sm:$0xff] }
  0x42   : > { %704 = vmatpush.msrb.mxu0 %v390_v16  ;;  %727 = vmatpush.msrb.mxu1 %v391_v17  ;;  %v1135_v46 = vld [vmem:[#allocation9 + $0xb10] sm:$0xff]  ;;  %v1129_v50 = vld [vmem:[#allocation9 + $0xae0] sm:$0xff] }
  0x43   : > { %v823_v47 = vld [vmem:[#allocation9 + $0x150] sm:$0xff]  ;;  %v817_v51 = vld [vmem:[#allocation9 + $0x120] sm:$0xff] }
  0x44   : > { %v919_v48 = vld [vmem:[#allocation9 + $0x450] sm:$0xff]  ;;  %v913_v52 = vld [vmem:[#allocation9 + $0x420] sm:$0xff] }
  0x45   : > { %v811_v53 = vld [vmem:[#allocation9 + $0xf0] sm:$0xff]  ;;  %v805_v57 = vld [vmem:[#allocation9 + $0xc0] sm:$0xff] }
  0x46   : > { %v1027_v54 = vld [vmem:[#allocation9 + $0x7b0] sm:$0xff]  ;;  %v1021_v58 = vld [vmem:[#allocation9 + $0x780] sm:$0xff] }
  0x47   : > { %6148 = vmatmul.msk.f32.gmra.mxu2 %vm406_vm0, %v6685_v4  ;;  %6152 = vmatmul.msk.f32.gmra.mxu0 %vm406_vm0, %v6685_v4  ;;  %v907_v55 = vld [vmem:[#allocation9 + $0x3f0] sm:$0xff]  ;;  %v901_v59 = vld [vmem:[#allocation9 + $0x3c0] sm:$0xff] }
  0x48   : > { %6150 = vmatmul.msk.f32.gmra.mxu3 %vm406_vm0, %v6685_v4  ;;  %6154 = vmatmul.msk.f32.gmra.mxu1 %vm406_vm0, %v6685_v4  ;;  %v1123_v56 = vld [vmem:[#allocation9 + $0xab0] sm:$0xff]  ;;  %v1117_v60 = vld [vmem:[#allocation9 + $0xa80] sm:$0xff] }
  0x49   : > { %v799_v61 = vld [vmem:[#allocation9 + $0x90] sm:$0xff]  ;;  %v793_v1 = vld [vmem:[#allocation9 + $0x60] sm:$0xff] }
  0x4a   : > { %v1015_v62 = vld [vmem:[#allocation9 + $0x750] sm:$0xff]  ;;  %v889_v2 = vld [vmem:[#allocation9 + $0x360] sm:$0xff] }
  0x4b   : > { %v895_v63 = vld [vmem:[#allocation9 + $0x390] sm:$0xff]  ;;  %v1009_v5 = vld [vmem:[#allocation9 + $0x720] sm:$0xff] }
  0x4c   : > { %v1111_v0 = vld [vmem:[#allocation9 + $0xa50] sm:$0xff]  ;;  %v1105_v7 = vld [vmem:[#allocation9 + $0xa20] sm:$0xff] }
  0x4d   : > { %v883_v6 = vld [vmem:[#allocation9 + $0x330] sm:$0xff]  ;;  %v781_v8 = vld [vmem:[#allocation9] sm:$0xff] }
  0x4e   : > { %v1003_v9 = vld [vmem:[#allocation9 + $0x6f0] sm:$0xff]  ;;  %v877_v10 = vld [vmem:[#allocation9 + $0x300] sm:$0xff] }
  0x4f   : > { %6155 = vmatmul.msk.f32.vlgmr.msra.gmra.mxu2 %vm406_vm0, %v6683_v3  ;;  %6159 = vmatmul.msk.f32.vlgmr.msra.gmra.mxu0 %vm406_vm0, %v6683_v3  ;;  %v1255_v11 = vld [vmem:[#allocation9 + $0xed0] sm:$0xff]  ;;  %v1249_v14 = vld [vmem:[#allocation9 + $0xea0] sm:$0xff] }
  0x50   : > { %6157 = vmatmul.msk.f32.vlgmr.msra.gmra.mxu3 %vm406_vm0, %v6683_v3  ;;  %6161 = vmatmul.msk.f32.vlgmr.msra.gmra.mxu1 %vm406_vm0, %v6683_v3  ;;  %v1351_v12 = vld [vmem:[#allocation9 + $0x11d0] sm:$0xff]  ;;  %v997_v15 = vld [vmem:[#allocation9 + $0x6c0] sm:$0xff] }
  0x51   : > { %750 = vmatpush.msra.mxu2 %v392_v19  ;;  %773 = vmatpush.msra.mxu3 %v393_v20  ;;  %v1099_v13 = vld [vmem:[#allocation9 + $0x9f0] sm:$0xff]  ;;  %v1345_v16 = vld [vmem:[#allocation9 + $0x11a0] sm:$0xff] }
  0x52   : > { %2317 = vmatpush.msra.mxu0 %v871_v21  ;;  %2340 = vmatpush.msra.mxu1 %v967_v22  ;;  %v1093_v17 = vld [vmem:[#allocation9 + $0x9c0] sm:$0xff]  ;;  %v991_v18 = vld [vmem:[#allocation9 + $0x690] sm:$0xff] }
  0x53   : > { %v1339_v19 = vld [vmem:[#allocation9 + $0x1170] sm:$0xff]  ;;  %v1237_v21 = vld [vmem:[#allocation9 + $0xe40] sm:$0xff] }
  0x54   : > { %2318 = vmatpush.msra.mxu0 %v865_v23  ;;  %2341 = vmatpush.msra.mxu1 %v961_v24  ;;  %v1087_v20 = vld [vmem:[#allocation9 + $0x990] sm:$0xff]  ;;  %v985_v22 = vld [vmem:[#allocation9 + $0x660] sm:$0xff] }
  0x55   : > { %v1333_v23 = vld [vmem:[#allocation9 + $0x1140] sm:$0xff] }
  0x56   : > { %2319 = vmatpush.msra.mxu0 %v859_v25  ;;  %2342 = vmatpush.msra.mxu1 %v955_v26  ;;  %v1081_v24 = vld [vmem:[#allocation9 + $0x960] sm:$0xff]  ;;  %v1231_v25 = vld [vmem:[#allocation9 + $0xe10] sm:$0xff] }
  0x57   : > { %6156 = vmatmul.msk.f32.gmra.mxu2 %vm406_vm0, %v6685_v4  ;;  %6160 = vmatmul.msk.f32.gmra.mxu0 %vm406_vm0, %v6685_v4  ;;  %v979_v26 = vld [vmem:[#allocation9 + $0x630] sm:$0xff] }
  0x58   : > { %6158 = vmatmul.msk.f32.gmra.mxu3 %vm406_vm0, %v6685_v4  ;;  %6162 = vmatmul.msk.f32.gmra.mxu1 %vm406_vm0, %v6685_v4 }
  0x59   : > { %2320 = vmatpush.msra.mxu0 %v853_v27  ;;  %2343 = vmatpush.msra.mxu1 %v949_v28  ;;  %v1327_v27 = vld [vmem:[#allocation9 + $0x1110] sm:$0xff] }
  0x5a   : > { %v1075_v28 = vld [vmem:[#allocation9 + $0x930] sm:$0xff] }
  0x5b   : > { %2321 = vmatpush.msra.mxu0 %v847_v31  ;;  %2344 = vmatpush.msra.mxu1 %v943_v32  ;;  %v1321_v31 = vld [vmem:[#allocation9 + $0x10e0] sm:$0xff] }
  0x5c   : > { %v1069_v32 = vld [vmem:[#allocation9 + $0x900] sm:$0xff] }
  0x5d   : > { %2322 = vmatpush.msra.mxu0 %v841_v35  ;;  %2345 = vmatpush.msra.mxu1 %v937_v36  ;;  %v1315_v35 = vld [vmem:[#allocation9 + $0x10b0] sm:$0xff] }
  0x5e   : > { %v1543_v36 = vld [vmem:[#allocation9 + $0x17d0] sm:$0xff] }
  0x5f   : > { %6163 = vmatmul.msk.f32.vlgmr.msrb.gmra.mxu2 %vm406_vm0, %v6683_v3  ;;  %6167 = vmatmul.msk.f32.vlgmr.msrb.gmra.mxu0 %vm406_vm0, %v6683_v3 }
  0x60   : > { %6165 = vmatmul.msk.f32.vlgmr.msrb.gmra.mxu3 %vm406_vm0, %v6683_v3  ;;  %6169 = vmatmul.msk.f32.vlgmr.msrb.gmra.mxu1 %vm406_vm0, %v6683_v3 }
  0x61   : > { %2363 = vmatpush.msrb.mxu2 %v1063_v29  ;;  %2386 = vmatpush.msrb.mxu3 %v1159_v30  ;;  %v1225_v29 = vld [vmem:[#allocation9 + $0xde0] sm:$0xff] }
  0x62   : > { %2323 = vmatpush.msra.mxu0 %v835_v39  ;;  %2346 = vmatpush.msra.mxu1 %v931_v40  ;;  %v973_v30 = vld [vmem:[#allocation9 + $0x600] sm:$0xff] }
  0x63   : > { %2364 = vmatpush.msrb.mxu2 %v1057_v33  ;;  %2387 = vmatpush.msrb.mxu3 %v1153_v34  ;;  %v1219_v33 = vld [vmem:[#allocation9 + $0xdb0] sm:$0xff]  ;;  %v1309_v39 = vld [vmem:[#allocation9 + $0x1080] sm:$0xff] }
  0x64   : > { %2324 = vmatpush.msra.mxu0 %v829_v43  ;;  %2347 = vmatpush.msra.mxu1 %v925_v44  ;;  %v1447_v34 = vld [vmem:[#allocation9 + $0x14d0] sm:$0xff]  ;;  %v1537_v40 = vld [vmem:[#allocation9 + $0x17a0] sm:$0xff] }
  0x65   : > { %2365 = vmatpush.msrb.mxu2 %v1051_v37  ;;  %2388 = vmatpush.msrb.mxu3 %v1147_v38  ;;  %v1213_v37 = vld [vmem:[#allocation9 + $0xd80] sm:$0xff]  ;;  %v1303_v43 = vld [vmem:[#allocation9 + $0x1050] sm:$0xff] }
  0x66   : > { %2325 = vmatpush.msra.mxu0 %v823_v47  ;;  %2348 = vmatpush.msra.mxu1 %v919_v48  ;;  %v1441_v38 = vld [vmem:[#allocation9 + $0x14a0] sm:$0xff]  ;;  %v1531_v44 = vld [vmem:[#allocation9 + $0x1770] sm:$0xff] }
  0x67   : > { %6164 = vmatmul.msk.f32.gmra.mxu2 %vm406_vm0, %v6685_v4  ;;  %6168 = vmatmul.msk.f32.gmra.mxu0 %vm406_vm0, %v6685_v4  ;;  %v1297_v47 = vld [vmem:[#allocation9 + $0x1020] sm:$0xff] }
  0x68   : > { %6166 = vmatmul.msk.f32.gmra.mxu3 %vm406_vm0, %v6685_v4  ;;  %6170 = vmatmul.msk.f32.gmra.mxu1 %vm406_vm0, %v6685_v4  ;;  %v1525_v48 = vld [vmem:[#allocation9 + $0x1740] sm:$0xff] }
  0x69   : > { %2366 = vmatpush.msrb.mxu2 %v1045_v41  ;;  %2389 = vmatpush.msrb.mxu3 %v1141_v42  ;;  %v1207_v41 = vld [vmem:[#allocation9 + $0xd50] sm:$0xff] }
  0x6a   : > { %2326 = vmatpush.msra.mxu0 %v817_v51  ;;  %2349 = vmatpush.msra.mxu1 %v913_v52  ;;  %v1435_v42 = vld [vmem:[#allocation9 + $0x1470] sm:$0xff] }
  0x6b   : > { %2367 = vmatpush.msrb.mxu2 %v1039_v45  ;;  %2390 = vmatpush.msrb.mxu3 %v1135_v46  ;;  %v1201_v45 = vld [vmem:[#allocation9 + $0xd20] sm:$0xff]  ;;  %v1291_v51 = vld [vmem:[#allocation9 + $0xff0] sm:$0xff] }
  0x6c   : > { %2327 = vmatpush.msra.mxu0 %v811_v53  ;;  %2350 = vmatpush.msra.mxu1 %v907_v55  ;;  %v1429_v46 = vld [vmem:[#allocation9 + $0x1440] sm:$0xff]  ;;  %v1519_v52 = vld [vmem:[#allocation9 + $0x1710] sm:$0xff] }
  0x6d   : > { %2368 = vmatpush.msrb.mxu2 %v1033_v49  ;;  %2391 = vmatpush.msrb.mxu3 %v1129_v50  ;;  %v1195_v49 = vld [vmem:[#allocation9 + $0xcf0] sm:$0xff]  ;;  %v1189_v53 = vld [vmem:[#allocation9 + $0xcc0] sm:$0xff] }
  0x6e   : > { %2328 = vmatpush.msra.mxu0 %v805_v57  ;;  %2351 = vmatpush.msra.mxu1 %v901_v59  ;;  %v1423_v50 = vld [vmem:[#allocation9 + $0x1410] sm:$0xff]  ;;  %v1285_v55 = vld [vmem:[#allocation9 + $0xfc0] sm:$0xff] }
  0x6f   : > { %6171 = vmatmul.msk.f32.vlgmr.msra.gmra.mxu2 %vm406_vm0, %v6683_v3  ;;  %2392 = vmatpush.msrb.mxu3 %v1123_v56  ;;  %v1513_v56 = vld [vmem:[#allocation9 + $0x16e0] sm:$0xff]  ;;  %v1183_v57 = vld [vmem:[#allocation9 + $0xc90] sm:$0xff] }
  0x70   : > { %6173 = vmatmul.msk.f32.vlgmr.msra.gmra.mxu3 %vm406_vm0, %v6683_v3  ;;  %2369 = vmatpush.msrb.mxu2 %v1027_v54  ;;  %v787_v3 = vld [vmem:[#allocation9 + $0x30] sm:$0xff]  ;;  %v1417_v54 = vld [vmem:[#allocation9 + $0x13e0] sm:$0xff] }
  0x71   : > { %2393 = vmatpush.msrb.mxu3 %v1117_v60  ;;  %2329 = vmatpush.msra.mxu0 %v799_v61  ;;  %v1279_v59 = vld [vmem:[#allocation9 + $0xf90] sm:$0xff]  ;;  %v1177_v61 = vld [vmem:[#allocation9 + $0xc60] sm:$0xff] }
  0x72   : > { %2370 = vmatpush.msrb.mxu2 %v1021_v58  ;;  %2352 = vmatpush.msra.mxu1 %v895_v63  ;;  %v1411_v58 = vld [vmem:[#allocation9 + $0x13b0] sm:$0xff]  ;;  %v1405_v63 = vld [vmem:[#allocation9 + $0x1380] sm:$0xff] }
  0x73   : > { %2394 = vmatpush.msrb.mxu3 %v1111_v0  ;;  %2330 = vmatpush.msra.mxu0 %v793_v1  ;;  %v1507_v60 = vld [vmem:[#allocation9 + $0x16b0] sm:$0xff]  ;;  %v1501_v1 = vld [vmem:[#allocation9 + $0x1680] sm:$0xff] }
  0x74   : > { %2371 = vmatpush.msrb.mxu2 %v1015_v62  ;;  %2353 = vmatpush.msra.mxu1 %v889_v2  ;;  %v1273_v62 = vld [vmem:[#allocation9 + $0xf60] sm:$0xff]  ;;  %v1171_v0 = vld [vmem:[#allocation9 + $0xc30] sm:$0xff] }
  0x75   : > { %2331 = vmatpush.msra.mxu0 %v787_v3  ;;  %2395 = vmatpush.msrb.mxu3 %v1105_v7  ;;  %v1267_v2 = vld [vmem:[#allocation9 + $0xf30] sm:$0xff]  ;;  %v1261_v7 = vld [vmem:[#allocation9 + $0xf00] sm:$0xff] }
  0x76   : > { %2372 = vmatpush.msrb.mxu2 %v1009_v5  ;;  %2354 = vmatpush.msra.mxu1 %v883_v6  ;;  %v1399_v3 = vld [vmem:[#allocation9 + $0x1350] sm:$0xff]  ;;  %v1165_v5 = vld [vmem:[#allocation9 + $0xc00] sm:$0xff] }
  0x77   : > { %6172 = vmatmul.msk.f32.gmra.mxu2 %vm406_vm0, %v6685_v4  ;;  %2332 = vmatpush.msra.mxu0 %v781_v8  ;;  %v1495_v6 = vld [vmem:[#allocation9 + $0x1650] sm:$0xff]  ;;  %v1393_v8 = vld [vmem:[#allocation9 + $0x1320] sm:$0xff] }
  0x78   : > { %6174 = vmatmul.msk.f32.gmra.mxu3 %vm406_vm0, %v6685_v4  ;;  %2373 = vmatpush.msrb.mxu2 %v1003_v9  ;;  %v1243_v4 = vld [vmem:[#allocation9 + $0xe70] sm:$0xff]  ;;  %v1489_v9 = vld [vmem:[#allocation9 + $0x1620] sm:$0xff] }
  0x79   : > { %2355 = vmatpush.msra.mxu1 %v877_v10  ;;  %2409 = vmatpush.msrb.mxu0 %v1255_v11  ;;  %v1387_v10 = vld [vmem:[#allocation9 + $0x12f0] sm:$0xff] }
  0x7a   : > { %2396 = vmatpush.msrb.mxu3 %v1099_v13  ;;  %2374 = vmatpush.msrb.mxu2 %v997_v15  ;;  %v1483_v11 = vld [vmem:[#allocation9 + $0x15f0] sm:$0xff]  ;;  %v1477_v13 = vld [vmem:[#allocation9 + $0x15c0] sm:$0xff] }
  0x7b   : > { %2432 = vmatpush.msrb.mxu1 %v1351_v12  ;;  %2410 = vmatpush.msrb.mxu0 %v1249_v14  ;;  %v1381_v12 = vld [vmem:[#allocation9 + $0x12c0] sm:$0xff]  ;;  %v1375_v14 = vld [vmem:[#allocation9 + $0x1290] sm:$0xff] }
  0x7c   : > { %2397 = vmatpush.msrb.mxu3 %v1093_v17  ;;  %2375 = vmatpush.msrb.mxu2 %v991_v18  ;;  %v1471_v15 = vld [vmem:[#allocation9 + $0x1590] sm:$0xff]  ;;  %v1465_v17 = vld [vmem:[#allocation9 + $0x1560] sm:$0xff] }
  0x7d   : > { %2433 = vmatpush.msrb.mxu1 %v1345_v16  ;;  %2411 = vmatpush.msrb.mxu0 %v1243_v4  ;;  %v1369_v16 = vld [vmem:[#allocation9 + $0x1260] sm:$0xff]  ;;  %v1363_v4 = vld [vmem:[#allocation9 + $0x1230] sm:$0xff] }
  0x7e   : > { %2398 = vmatpush.msrb.mxu3 %v1087_v20  ;;  %2376 = vmatpush.msrb.mxu2 %v985_v22  ;;  %v1459_v18 = vld [vmem:[#allocation9 + $0x1530] sm:$0xff]  ;;  %v1453_v20 = vld [vmem:[#allocation9 + $0x1500] sm:$0xff] }
  0x7f   : > { %2434 = vmatpush.msrb.mxu1 %v1339_v19  ;;  %2412 = vmatpush.msrb.mxu0 %v1237_v21  ;;  %v1357_v19 = vld [vmem:[#allocation9 + $0x1200] sm:$0xff] }
  0x80   : > { %2399 = vmatpush.msrb.mxu3 %v1081_v24  ;;  %2377 = vmatpush.msrb.mxu2 %v979_v26 }
  0x81   : > { %2435 = vmatpush.msrb.mxu1 %v1333_v23  ;;  %2413 = vmatpush.msrb.mxu0 %v1231_v25  ;;  %v1639_v25 = vld [vmem:[#allocation9 + $0x1ad0] sm:$0xff] }
  0x82   : > { %2400 = vmatpush.msrb.mxu3 %v1075_v28  ;;  %2378 = vmatpush.msrb.mxu2 %v973_v30  ;;  %v1633_v28 = vld [vmem:[#allocation9 + $0x1aa0] sm:$0xff]  ;;  %v1627_v30 = vld [vmem:[#allocation9 + $0x1a70] sm:$0xff] }
  0x83   : > { %2436 = vmatpush.msrb.mxu1 %v1327_v27  ;;  %2414 = vmatpush.msrb.mxu0 %v1225_v29  ;;  %v1735_v27 = vld [vmem:[#allocation9 + $0x1dd0] sm:$0xff]  ;;  %v1729_v29 = vld [vmem:[#allocation9 + $0x1da0] sm:$0xff] }
  0x84   : > { %2401 = vmatpush.msrb.mxu3 %v1069_v32  ;;  %2455 = vmatpush.msra.mxu2 %v1447_v34 }
  0x85   : > { %2437 = vmatpush.msrb.mxu1 %v1321_v31  ;;  %2415 = vmatpush.msrb.mxu0 %v1219_v33  ;;  %v1723_v33 = vld [vmem:[#allocation9 + $0x1d70] sm:$0xff] }
  0x86   : > { %2478 = vmatpush.msra.mxu3 %v1543_v36  ;;  %2456 = vmatpush.msra.mxu2 %v1441_v38 }
  0x87   : > { %2438 = vmatpush.msrb.mxu1 %v1315_v35  ;;  %2416 = vmatpush.msrb.mxu0 %v1213_v37  ;;  %v1621_v35 = vld [vmem:[#allocation9 + $0x1a40] sm:$0xff] }
  0x88   : > { %2479 = vmatpush.msra.mxu3 %v1537_v40  ;;  %2457 = vmatpush.msra.mxu2 %v1435_v42  ;;  %v1717_v37 = vld [vmem:[#allocation9 + $0x1d40] sm:$0xff]  ;;  %v1711_v40 = vld [vmem:[#allocation9 + $0x1d10] sm:$0xff] }
  0x89   : > { %2439 = vmatpush.msrb.mxu1 %v1309_v39  ;;  %2417 = vmatpush.msrb.mxu0 %v1207_v41  ;;  %v1615_v39 = vld [vmem:[#allocation9 + $0x1a10] sm:$0xff]  ;;  %v1609_v41 = vld [vmem:[#allocation9 + $0x19e0] sm:$0xff] }
  0x8a   : > { %2480 = vmatpush.msra.mxu3 %v1531_v44  ;;  %2458 = vmatpush.msra.mxu2 %v1429_v46  ;;  %v1705_v42 = vld [vmem:[#allocation9 + $0x1ce0] sm:$0xff] }
  0x8b   : > { %2440 = vmatpush.msrb.mxu1 %v1303_v43  ;;  %2418 = vmatpush.msrb.mxu0 %v1201_v45  ;;  %v1603_v43 = vld [vmem:[#allocation9 + $0x19b0] sm:$0xff] }
  0x8c   : > { %2481 = vmatpush.msra.mxu3 %v1525_v48  ;;  %2459 = vmatpush.msra.mxu2 %v1423_v50  ;;  %v1699_v45 = vld [vmem:[#allocation9 + $0x1cb0] sm:$0xff] }
  0x8d   : > { %2441 = vmatpush.msrb.mxu1 %v1297_v47  ;;  %2419 = vmatpush.msrb.mxu0 %v1195_v49  ;;  %v1597_v49 = vld [vmem:[#allocation9 + $0x1980] sm:$0xff] }
  0x8e   : > { %2482 = vmatpush.msra.mxu3 %v1519_v52  ;;  %2460 = vmatpush.msra.mxu2 %v1417_v54  ;;  %v1693_v52 = vld [vmem:[#allocation9 + $0x1c80] sm:$0xff]  ;;  %v1927_v54 = vld [vmem:[#allocation9 + $0x23d0] sm:$0xff] }
  0x8f   : > { %2442 = vmatpush.msrb.mxu1 %v1291_v51  ;;  %2420 = vmatpush.msrb.mxu0 %v1189_v53  ;;  %v1831_v53 = vld [vmem:[#allocation9 + $0x20d0] sm:$0xff] }
  0x90   : > { %2483 = vmatpush.msra.mxu3 %v1513_v56  ;;  %2461 = vmatpush.msra.mxu2 %v1411_v58  ;;  %v1591_v56 = vld [vmem:[#allocation9 + $0x1950] sm:$0xff] }
  0x91   : > { %2443 = vmatpush.msrb.mxu1 %v1285_v55  ;;  %2421 = vmatpush.msrb.mxu0 %v1183_v57  ;;  %v1687_v58 = vld [vmem:[#allocation9 + $0x1c50] sm:$0xff] }
  0x92   : > { %2484 = vmatpush.msra.mxu3 %v1507_v60  ;;  %2462 = vmatpush.msra.mxu2 %v1405_v63  ;;  %v1921_v60 = vld [vmem:[#allocation9 + $0x23a0] sm:$0xff]  ;;  %v1819_v63 = vld [vmem:[#allocation9 + $0x2070] sm:$0xff] }
  0x93   : > { %2444 = vmatpush.msrb.mxu1 %v1279_v59  ;;  %2422 = vmatpush.msrb.mxu0 %v1177_v61  ;;  %v1825_v59 = vld [vmem:[#allocation9 + $0x20a0] sm:$0xff] }
  0x94   : > { %2485 = vmatpush.msra.mxu3 %v1501_v1  ;;  %2463 = vmatpush.msra.mxu2 %v1399_v3  ;;  %v1585_v61 = vld [vmem:[#allocation9 + $0x1920] sm:$0xff] }
  0x95   : > { %2445 = vmatpush.msrb.mxu1 %v1273_v62  ;;  %2423 = vmatpush.msrb.mxu0 %v1171_v0  ;;  %v1681_v62 = vld [vmem:[#allocation9 + $0x1c20] sm:$0xff]  ;;  %v1915_v0 = vld [vmem:[#allocation9 + $0x2370] sm:$0xff] }
  0x96   : > { %2486 = vmatpush.msra.mxu3 %v1495_v6  ;;  %2464 = vmatpush.msra.mxu2 %v1393_v8  ;;  %v1675_v6 = vld [vmem:[#allocation9 + $0x1bf0] sm:$0xff] }
  0x97   : > { %2446 = vmatpush.msrb.mxu1 %v1267_v2  ;;  %2424 = vmatpush.msrb.mxu0 %v1165_v5  ;;  %v1579_v2 = vld [vmem:[#allocation9 + $0x18f0] sm:$0xff] }
  0x98   : > { %2487 = vmatpush.msra.mxu3 %v1489_v9  ;;  %2465 = vmatpush.msra.mxu2 %v1387_v10  ;;  %v1909_v9 = vld [vmem:[#allocation9 + $0x2340] sm:$0xff] }
  0x99   : > { %2447 = vmatpush.msrb.mxu1 %v1261_v7  ;;  %v1813_v7 = vld [vmem:[#allocation9 + $0x2040] sm:$0xff] }
  0x9a   : > { %2488 = vmatpush.msra.mxu3 %v1483_v11  ;;  %2466 = vmatpush.msra.mxu2 %v1381_v12  ;;  %v1573_v11 = vld [vmem:[#allocation9 + $0x18c0] sm:$0xff] }
  0x9c   : > { %2489 = vmatpush.msra.mxu3 %v1477_v13  ;;  %2467 = vmatpush.msra.mxu2 %v1375_v14  ;;  %v1669_v13 = vld [vmem:[#allocation9 + $0x1bc0] sm:$0xff]  ;;  %v1807_v14 = vld [vmem:[#allocation9 + $0x2010] sm:$0xff] }
  0x9e   : > { %2490 = vmatpush.msra.mxu3 %v1471_v15  ;;  %2468 = vmatpush.msra.mxu2 %v1369_v16  ;;  %v1903_v15 = vld [vmem:[#allocation9 + $0x2310] sm:$0xff] }
  0xa0   : > { %2491 = vmatpush.msra.mxu3 %v1465_v17  ;;  %2469 = vmatpush.msra.mxu2 %v1363_v4  ;;  %v1567_v17 = vld [vmem:[#allocation9 + $0x1890] sm:$0xff] }
  0xa2   : > { %2492 = vmatpush.msra.mxu3 %v1459_v18  ;;  %2470 = vmatpush.msra.mxu2 %v1357_v19  ;;  %v6765_v21 = vpop.permute.xlu0 %398  ;;  %v1663_v18 = vld [vmem:[#allocation9 + $0x1b90] sm:$0xff]  ;;  %v1801_v19 = vld [vmem:[#allocation9 + $0x1fe0] sm:$0xff] }
  0xa4   : > { %2493 = vmatpush.msra.mxu3 %v1453_v20  ;;  %v1897_v20 = vld [vmem:[#allocation9 + $0x22e0] sm:$0xff] }
  0xaf   : > { %v6775_v31 = vpop.permute.xlu0 %403 }
  0xb4   : > { %v430_v22 = vpop.f32.mrf.mxu0 }
  0xb5   : > { %v6768_v23 = vadd.f32 %v430_v22, %v6765_v21  ;;  %v453_v24 = vpop.f32.mrf.mxu1  ;;  %v1561_v22 = vld [vmem:[#allocation9 + $0x1860] sm:$0xff] }
  0xb6   : > { %v6771_v26 = vadd.f32 %v453_v24, %v6765_v21 }
  0xb7   : > { %7868 = vst [vmem:[#allocation17_spill] sm:$0xff] %v6768_v23  ;;  %2333 = vmatmul.f32.vlgmr.msra.gmra.mxu0 %v6768_v23 }
  0xb8   : > { %7869 = vst [vmem:[#allocation18_spill] sm:$0xff] %v6771_v26  ;;  %2356 = vmatmul.f32.vlgmr.msra.gmra.mxu1 %v6771_v26  ;;  %2501 = vmatpush.msra.mxu0 %v1639_v25  ;;  %v1657_v25 = vld [vmem:[#allocation9 + $0x1b60] sm:$0xff] }
  0xb9   : > { %2524 = vmatpush.msra.mxu1 %v1735_v27  ;;  %v1795_v27 = vld [vmem:[#allocation9 + $0x1fb0] sm:$0xff] }
  0xba   : > { %2502 = vmatpush.msra.mxu0 %v1633_v28  ;;  %v433_v32 = vpop.f32.mrf.mxu2 }
  0xbb   : > { %2525 = vmatpush.msra.mxu1 %v1729_v29  ;;  %v456_v34 = vpop.f32.mrf.mxu3  ;;  %v6781_v38 = vadd.f32 %v433_v32, %v6775_v31  ;;  %v1891_v29 = vld [vmem:[#allocation9 + $0x22b0] sm:$0xff] }
  0xbc   : > { %v6778_v36 = vadd.f32 %v456_v34, %v6775_v31  ;;  %2503 = vmatpush.msra.mxu0 %v1627_v30  ;;  %v522_v46 = vpop.f32.mrf.mxu0  ;;  %v1555_v30 = vld [vmem:[#allocation9 + $0x1830] sm:$0xff]  ;;  %v1789_v34 = vld [vmem:[#allocation9 + $0x1f80] sm:$0xff] }
  0xbd   : > { %7871 = vst [vmem:[#allocation20_spill] sm:$0xff] %v6781_v38  ;;  %2526 = vmatpush.msra.mxu1 %v1723_v33  ;;  %v545_v50 = vpop.f32.mrf.mxu1  ;;  %v6793_v55 = vadd.f32 %v522_v46, %v6765_v21  ;;  %v1651_v33 = vld [vmem:[#allocation9 + $0x1b30] sm:$0xff] }
  0xbe   : > { %7870 = vst [vmem:[#allocation19_spill] sm:$0xff] %v6778_v36  ;;  %2504 = vmatpush.msra.mxu0 %v1621_v35  ;;  %v6797_v57 = vadd.f32 %v545_v50, %v6765_v21  ;;  %v2119_v46 = vld [vmem:[#allocation9 + $0x29d0] sm:$0xff] }
  0xbf   : > { %2527 = vmatpush.msra.mxu1 %v1717_v37  ;;  %2336 = vmatmul.f32.gmra.mxu0 %v6781_v38  ;;  %7874 = vst [vmem:[#allocation23_spill] sm:$0xff] %v6793_v55  ;;  %v1885_v37 = vld [vmem:[#allocation9 + $0x2280] sm:$0xff] }
  0xc0   : > { %2359 = vmatmul.f32.gmra.mxu1 %v6778_v36  ;;  %2505 = vmatpush.msra.mxu0 %v1615_v39  ;;  %7875 = vst [vmem:[#allocation24_spill] sm:$0xff] %v6797_v57  ;;  %v1549_v39 = vld [vmem:[#allocation9 + $0x1800] sm:$0xff] }
  0xc1   : > { %2528 = vmatpush.msra.mxu1 %v1711_v40 }
  0xc2   : > { %2506 = vmatpush.msra.mxu0 %v1609_v41  ;;  %v476_v44 = vpop.f32.mrf.mxu2  ;;  %v1645_v41 = vld [vmem:[#allocation9 + $0x1b00] sm:$0xff] }
  0xc3   : > { %2529 = vmatpush.msra.mxu1 %v1705_v42  ;;  %v6786_v47 = vadd.f32 %v476_v44, %v6765_v21  ;;  %v499_v48 = vpop.f32.mrf.mxu3  ;;  %v1783_v42 = vld [vmem:[#allocation9 + $0x1f50] sm:$0xff] }
  0xc4   : > { %v6789_v51 = vadd.f32 %v499_v48, %v6765_v21  ;;  %2507 = vmatpush.msra.mxu0 %v1603_v43  ;;  %v525_v10 = vpop.f32.mrf.mxu0  ;;  %v1879_v44 = vld [vmem:[#allocation9 + $0x2250] sm:$0xff] }
  0xc5   : > { %7872 = vst [vmem:[#allocation21_spill] sm:$0xff] %v6786_v47  ;;  %2530 = vmatpush.msra.mxu1 %v1699_v45  ;;  %2379 = vmatmul.f32.vlgmr.msrb.gmra.mxu2 %v6786_v47  ;;  %v548_v12 = vpop.f32.mrf.mxu1  ;;  %v6809_v16 = vadd.f32 %v525_v10, %v6775_v31  ;;  %v2023_v45 = vld [vmem:[#allocation9 + $0x26d0] sm:$0xff] }
  0xc6   : > { %7873 = vst [vmem:[#allocation22_spill] sm:$0xff] %v6789_v51  ;;  %2402 = vmatmul.f32.vlgmr.msrb.gmra.mxu3 %v6789_v51  ;;  %2508 = vmatpush.msra.mxu0 %v1597_v49  ;;  %v6813_v4 = vadd.f32 %v548_v12, %v6775_v31  ;;  %v1777_v49 = vld [vmem:[#allocation9 + $0x1f20] sm:$0xff]  ;;  %v1999_v12 = vld [vmem:[#allocation9 + $0x2610] sm:$0xff] }
  0xc7   : > { %2531 = vmatpush.msra.mxu1 %v1693_v52  ;;  %2547 = vmatpush.msrb.mxu2 %v1831_v53  ;;  %7878 = vst [vmem:[#allocation27_spill] sm:$0xff] %v6809_v16  ;;  %v1873_v52 = vld [vmem:[#allocation9 + $0x2220] sm:$0xff] }
  0xc8   : > { %2570 = vmatpush.msrb.mxu3 %v1927_v54  ;;  %2425 = vmatmul.f32.vlgmr.msrb.gmra.mxu0 %v6793_v55  ;;  %7879 = vst [vmem:[#allocation28_spill] sm:$0xff] %v6813_v4  ;;  %v2017_v53 = vld [vmem:[#allocation9 + $0x26a0] sm:$0xff] }
  0xc9   : > { %2448 = vmatmul.f32.vlgmr.msrb.gmra.mxu1 %v6797_v57  ;;  %2509 = vmatpush.msra.mxu0 %v1591_v56  ;;  %v2113_v54 = vld [vmem:[#allocation9 + $0x29a0] sm:$0xff]  ;;  %v1771_v56 = vld [vmem:[#allocation9 + $0x1ef0] sm:$0xff] }
  0xca   : > { %2532 = vmatpush.msra.mxu1 %v1687_v58  ;;  %2548 = vmatpush.msrb.mxu2 %v1825_v59  ;;  %v479_v1 = vpop.f32.mrf.mxu2  ;;  %v1867_v59 = vld [vmem:[#allocation9 + $0x21f0] sm:$0xff] }
  0xcb   : > { %2571 = vmatpush.msrb.mxu3 %v1921_v60  ;;  %2510 = vmatpush.msra.mxu0 %v1585_v61  ;;  %v6802_v3 = vadd.f32 %v479_v1, %v6775_v31  ;;  %v502_v5 = vpop.f32.mrf.mxu3  ;;  %v2011_v61 = vld [vmem:[#allocation9 + $0x2670] sm:$0xff]  ;;  %v1861_v1 = vld [vmem:[#allocation9 + $0x21c0] sm:$0xff] }
  0xcc   : > { %2533 = vmatpush.msra.mxu1 %v1681_v62  ;;  %2549 = vmatpush.msrb.mxu2 %v1819_v63  ;;  %v6805_v8 = vadd.f32 %v502_v5, %v6775_v31  ;;  %v614_v40 = vpop.f32.mrf.mxu0  ;;  %v2107_v62 = vld [vmem:[#allocation9 + $0x2970] sm:$0xff]  ;;  %v1765_v63 = vld [vmem:[#allocation9 + $0x1ec0] sm:$0xff] }
  0xcd   : > { %7876 = vst [vmem:[#allocation25_spill] sm:$0xff] %v6802_v3  ;;  %2572 = vmatpush.msrb.mxu3 %v1915_v0  ;;  %2511 = vmatpush.msra.mxu0 %v1579_v2  ;;  %v637_v43 = vpop.f32.mrf.mxu1  ;;  %v6826_v48 = vadd.f32 %v614_v40, %v6765_v21  ;;  %v2005_v2 = vld [vmem:[#allocation9 + $0x2640] sm:$0xff]  ;;  %v2215_v40 = vld [vmem:[#allocation9 + $0x2cd0] sm:$0xff] }
  0xce   : > { %7877 = vst [vmem:[#allocation26_spill] sm:$0xff] %v6805_v8  ;;  %2534 = vmatpush.msra.mxu1 %v1675_v6  ;;  %2550 = vmatpush.msrb.mxu2 %v1813_v7  ;;  %v6829_v50 = vadd.f32 %v637_v43, %v6765_v21  ;;  %v2101_v6 = vld [vmem:[#allocation9 + $0x2940] sm:$0xff]  ;;  %v1975_v43 = vld [vmem:[#allocation9 + $0x2550] sm:$0xff] }
  0xcf   : > { %2573 = vmatpush.msrb.mxu3 %v1909_v9  ;;  %2382 = vmatmul.f32.gmra.mxu2 %v6802_v3  ;;  %7882 = vst [vmem:[#allocation31_spill] sm:$0xff] %v6826_v48  ;;  %v1759_v9 = vld [vmem:[#allocation9 + $0x1e90] sm:$0xff] }
  0xd0   : > { %2405 = vmatmul.f32.gmra.mxu3 %v6805_v8  ;;  %2512 = vmatpush.msra.mxu0 %v1573_v11  ;;  %7883 = vst [vmem:[#allocation32_spill] sm:$0xff] %v6829_v50  ;;  %v1855_v11 = vld [vmem:[#allocation9 + $0x2190] sm:$0xff] }
  0xd1   : > { %2535 = vmatpush.msra.mxu1 %v1669_v13  ;;  %2551 = vmatpush.msrb.mxu2 %v1807_v14  ;;  %v2095_v13 = vld [vmem:[#allocation9 + $0x2910] sm:$0xff] }
  0xd2   : > { %2574 = vmatpush.msrb.mxu3 %v1903_v15  ;;  %2428 = vmatmul.f32.gmra.mxu0 %v6809_v16  ;;  %v568_v24 = vpop.f32.mrf.mxu2  ;;  %v1753_v15 = vld [vmem:[#allocation9 + $0x1e60] sm:$0xff] }
  0xd3   : > { %2451 = vmatmul.f32.gmra.mxu1 %v6813_v4  ;;  %2513 = vmatpush.msra.mxu0 %v1567_v17  ;;  %v591_v28 = vpop.f32.mrf.mxu3  ;;  %v6818_v32 = vadd.f32 %v568_v24, %v6765_v21 }
  0xd4   : > { %2536 = vmatpush.msra.mxu1 %v1663_v18  ;;  %2552 = vmatpush.msrb.mxu2 %v1801_v19  ;;  %v6821_v35 = vadd.f32 %v591_v28, %v6765_v21  ;;  %v617_v7 = vpop.f32.mrf.mxu0  ;;  %v1849_v18 = vld [vmem:[#allocation9 + $0x2160] sm:$0xff]  ;;  %v1987_v28 = vld [vmem:[#allocation9 + $0x25b0] sm:$0xff] }
  0xd5   : > { %2575 = vmatpush.msrb.mxu3 %v1897_v20  ;;  %2514 = vmatpush.msra.mxu0 %v1561_v22  ;;  %7880 = vst [vmem:[#allocation29_spill] sm:$0xff] %v6818_v32  ;;  %v640_v10 = vpop.f32.mrf.mxu1  ;;  %v6841_v14 = vadd.f32 %v617_v7, %v6775_v31  ;;  %v1993_v19 = vld [vmem:[#allocation9 + $0x25e0] sm:$0xff]  ;;  %v1747_v22 = vld [vmem:[#allocation9 + $0x1e30] sm:$0xff] }
  0xd6   : > { %2537 = vmatpush.msra.mxu1 %v1657_v25  ;;  %2553 = vmatpush.msrb.mxu2 %v1795_v27  ;;  %7881 = vst [vmem:[#allocation30_spill] sm:$0xff] %v6821_v35  ;;  %v6845_v17 = vadd.f32 %v640_v10, %v6775_v31  ;;  %v2089_v20 = vld [vmem:[#allocation9 + $0x28e0] sm:$0xff]  ;;  %v1843_v25 = vld [vmem:[#allocation9 + $0x2130] sm:$0xff] }
  0xd7   : > { %2576 = vmatpush.msrb.mxu3 %v1891_v29  ;;  %2515 = vmatpush.msra.mxu0 %v1555_v30  ;;  %v2083_v29 = vld [vmem:[#allocation9 + $0x28b0] sm:$0xff]  ;;  %v1741_v30 = vld [vmem:[#allocation9 + $0x1e00] sm:$0xff] }
  0xd8   : > { %2538 = vmatpush.msra.mxu1 %v1651_v33  ;;  %2554 = vmatpush.msrb.mxu2 %v1789_v34  ;;  %v1837_v33 = vld [vmem:[#allocation9 + $0x2100] sm:$0xff]  ;;  %v1951_v10 = vld [vmem:[#allocation9 + $0x2490] sm:$0xff] }
  0xd9   : > { %2577 = vmatpush.msrb.mxu3 %v1885_v37  ;;  %2471 = vmatmul.f32.vlgmr.msra.gmra.mxu2 %v6818_v32  ;;  %v1981_v34 = vld [vmem:[#allocation9 + $0x2580] sm:$0xff] }
  0xda   : > { %2494 = vmatmul.f32.vlgmr.msra.gmra.mxu3 %v6821_v35  ;;  %2516 = vmatpush.msra.mxu0 %v1549_v39  ;;  %v571_v58 = vpop.f32.mrf.mxu2  ;;  %v2077_v39 = vld [vmem:[#allocation9 + $0x2880] sm:$0xff] }
  0xdb   : > { %2539 = vmatpush.msra.mxu1 %v1645_v41  ;;  %2555 = vmatpush.msrb.mxu2 %v1783_v42  ;;  %v594_v60 = vpop.f32.mrf.mxu3  ;;  %v6834_v0 = vadd.f32 %v571_v58, %v6775_v31  ;;  %v2311_v42 = vld [vmem:[#allocation9 + $0x2fd0] sm:$0xff] }
  0xdc   : > { %2578 = vmatpush.msrb.mxu3 %v1879_v44  ;;  %2593 = vmatpush.msrb.mxu0 %v2023_v45  ;;  %v6837_v5 = vadd.f32 %v594_v60, %v6775_v31  ;;  %v2071_v44 = vld [vmem:[#allocation9 + $0x2850] sm:$0xff]  ;;  %v2209_v45 = vld [vmem:[#allocation9 + $0x2ca0] sm:$0xff] }
  0xdd   : > { %2616 = vmatpush.msrb.mxu1 %v2119_v46  ;;  %2517 = vmatmul.f32.vlgmr.msra.gmra.mxu0 %v6826_v48  ;;  %7884 = vst [vmem:[#allocation33_spill] sm:$0xff] %v6834_v0  ;;  %v2305_v46 = vld [vmem:[#allocation9 + $0x2fa0] sm:$0xff]  ;;  %v1963_v58 = vld [vmem:[#allocation9 + $0x24f0] sm:$0xff] }
  0xde   : > { %2540 = vmatmul.f32.vlgmr.msra.gmra.mxu1 %v6829_v50  ;;  %2556 = vmatpush.msrb.mxu2 %v1777_v49  ;;  %7885 = vst [vmem:[#allocation34_spill] sm:$0xff] %v6837_v5  ;;  %v1969_v49 = vld [vmem:[#allocation9 + $0x2520] sm:$0xff]  ;;  %v2059_v60 = vld [vmem:[#allocation9 + $0x27f0] sm:$0xff] }
  0xdf   : > { %2579 = vmatpush.msrb.mxu3 %v1873_v52  ;;  %2594 = vmatpush.msrb.mxu0 %v2017_v53  ;;  %v2065_v52 = vld [vmem:[#allocation9 + $0x2820] sm:$0xff]  ;;  %v2203_v53 = vld [vmem:[#allocation9 + $0x2c70] sm:$0xff] }
  0xe0   : > { %2617 = vmatpush.msrb.mxu1 %v2113_v54  ;;  %2557 = vmatpush.msrb.mxu2 %v1771_v56  ;;  %v2299_v54 = vld [vmem:[#allocation9 + $0x2f70] sm:$0xff] }
  0xe1   : > { %2580 = vmatpush.msrb.mxu3 %v1867_v59  ;;  %2595 = vmatpush.msrb.mxu0 %v2011_v61  ;;  %v2197_v61 = vld [vmem:[#allocation9 + $0x2c40] sm:$0xff] }
  0xe2   : > { %2618 = vmatpush.msrb.mxu1 %v2107_v62  ;;  %2558 = vmatpush.msrb.mxu2 %v1765_v63  ;;  %v660_v24 = vpop.f32.mrf.mxu2  ;;  %v2293_v62 = vld [vmem:[#allocation9 + $0x2f40] sm:$0xff] }
  0xe3   : > { %2581 = vmatpush.msrb.mxu3 %v1861_v1  ;;  %2596 = vmatpush.msrb.mxu0 %v2005_v2  ;;  %v683_v27 = vpop.f32.mrf.mxu3  ;;  %v6850_v37 = vadd.f32 %v660_v24, %v6765_v21  ;;  %v1957_v63 = vld [vmem:[#allocation9 + $0x24c0] sm:$0xff]  ;;  %v706_v24 = vpop.f32.mrf.mxu0 }
  0xe4   : > { %2619 = vmatpush.msrb.mxu1 %v2101_v6  ;;  %2474 = vmatmul.f32.gmra.mxu2 %v6834_v0  ;;  %v6853_v41 = vadd.f32 %v683_v27, %v6765_v21  ;;  %v2053_v2 = vld [vmem:[#allocation9 + $0x27c0] sm:$0xff]  ;;  %v2191_v6 = vld [vmem:[#allocation9 + $0x2c10] sm:$0xff] }
  0xe5   : > { %2497 = vmatmul.f32.gmra.mxu3 %v6837_v5  ;;  %2559 = vmatpush.msrb.mxu2 %v1759_v9  ;;  %v2287_v9 = vld [vmem:[#allocation9 + $0x2f10] sm:$0xff]  ;;  %v2173_v27 = vld [vmem:[#allocation9 + $0x2b80] sm:$0xff] }
  0xe6   : > { %2582 = vmatpush.msrb.mxu3 %v1855_v11  ;;  %2597 = vmatpush.msrb.mxu0 %v1999_v12  ;;  %v2047_v11 = vld [vmem:[#allocation9 + $0x2790] sm:$0xff]  ;;  %v2185_v12 = vld [vmem:[#allocation9 + $0x2be0] sm:$0xff] }
  0xe7   : > { %2620 = vmatpush.msrb.mxu1 %v2095_v13  ;;  %2520 = vmatmul.f32.gmra.mxu0 %v6841_v14  ;;  %v2281_v13 = vld [vmem:[#allocation9 + $0x2ee0] sm:$0xff] }
  0xe8   : > { %2543 = vmatmul.f32.gmra.mxu1 %v6845_v17  ;;  %2560 = vmatpush.msrb.mxu2 %v1753_v15  ;;  %v1945_v15 = vld [vmem:[#allocation9 + $0x2460] sm:$0xff] }
  0xe9   : > { %2583 = vmatpush.msrb.mxu3 %v1849_v18  ;;  %2598 = vmatpush.msrb.mxu0 %v1993_v19  ;;  %v2041_v18 = vld [vmem:[#allocation9 + $0x2760] sm:$0xff]  ;;  %v2179_v19 = vld [vmem:[#allocation9 + $0x2bb0] sm:$0xff] }
  0xea   : > { %2621 = vmatpush.msrb.mxu1 %v2089_v20  ;;  %2561 = vmatpush.msrb.mxu2 %v1747_v22  ;;  %v663_v56 = vpop.f32.mrf.mxu2  ;;  %v2275_v20 = vld [vmem:[#allocation9 + $0x2eb0] sm:$0xff] }
  0xeb   : > { %2584 = vmatpush.msrb.mxu3 %v1843_v25  ;;  %2599 = vmatpush.msrb.mxu0 %v1987_v28  ;;  %v686_v59 = vpop.f32.mrf.mxu3  ;;  %v6858_v1 = vadd.f32 %v663_v56, %v6775_v31  ;;  %v1939_v22 = vld [vmem:[#allocation9 + $0x2430] sm:$0xff]  ;;  %v729_v28 = vpop.f32.mrf.mxu1  ;;  %v860_v56 = vld [vmem:[#allocation9 + $0x278] sm:$0xff] }
  0xec   : > { %2622 = vmatpush.msrb.mxu1 %v2083_v29  ;;  %2562 = vmatpush.msrb.mxu2 %v1741_v30  ;;  %v6861_v7 = vadd.f32 %v686_v59, %v6775_v31  ;;  %v2035_v25 = vld [vmem:[#allocation9 + $0x2730] sm:$0xff]  ;;  %v2269_v29 = vld [vmem:[#allocation9 + $0x2e80] sm:$0xff] }
  0xed   : > { %2585 = vmatpush.msrb.mxu3 %v1837_v33  ;;  %2600 = vmatpush.msrb.mxu0 %v1981_v34  ;;  %v1933_v30 = vld [vmem:[#allocation9 + $0x2400] sm:$0xff]  ;;  %v2167_v34 = vld [vmem:[#allocation9 + $0x2b50] sm:$0xff] }
  0xee   : > { %2623 = vmatpush.msrb.mxu1 %v2077_v39  ;;  %2639 = vmatpush.msra.mxu2 %v2215_v40  ;;  %7886 = vst [vmem:[#allocation35_spill] sm:$0xff] %v6861_v7  ;;  %v2029_v33 = vld [vmem:[#allocation9 + $0x2700] sm:$0xff]  ;;  %v2263_v39 = vld [vmem:[#allocation9 + $0x2e50] sm:$0xff]  ;;  %v6866_v40 = vadd.f32 %v706_v24, %v6765_v21 }
  0xef   : > { %2662 = vmatpush.msra.mxu3 %v2311_v42  ;;  %2563 = vmatmul.f32.vlgmr.msrb.gmra.mxu2 %v6850_v37  ;;  %v872_v42 = vld [vmem:[#allocation9 + $0x2d8] sm:$0xff]  ;;  %v2149_v59 = vld [vmem:[#allocation9 + $0x2ac0] sm:$0xff]  ;;  %v2131_v24 = vld [vmem:[#allocation9 + $0x2a30] sm:$0xff] }
  0xf0   : > { %2586 = vmatmul.f32.vlgmr.msrb.gmra.mxu3 %v6853_v41  ;;  %2601 = vmatpush.msrb.mxu0 %v1975_v43  ;;  %v6869_v43 = vadd.f32 %v729_v28, %v6765_v21  ;;  %v836_v28 = vld [vmem:[#allocation9 + $0x1b8] sm:$0xff] }
  0xf1   : > { %2624 = vmatpush.msrb.mxu1 %v2071_v44  ;;  %2640 = vmatpush.msra.mxu2 %v2209_v45  ;;  %v968_v44 = vld [vmem:[#allocation9 + $0x5d8] sm:$0xff]  ;;  %v2161_v45 = vld [vmem:[#allocation9 + $0x2b20] sm:$0xff] }
  0xf2   : > { %2663 = vmatpush.msra.mxu3 %v2305_v46  ;;  %2602 = vmatpush.msrb.mxu0 %v1969_v49  ;;  %7887 = vst [vmem:[#allocation36_spill] sm:$0xff] %v6869_v43  ;;  %v2257_v46 = vld [vmem:[#allocation9 + $0x2e20] sm:$0xff]  ;;  %v866_v49 = vld [vmem:[#allocation9 + $0x2a8] sm:$0xff] }
  0xf3   : > { %2625 = vmatpush.msrb.mxu1 %v2065_v52  ;;  %2641 = vmatpush.msra.mxu2 %v2203_v53  ;;  %v962_v52 = vld [vmem:[#allocation9 + $0x5a8] sm:$0xff]  ;;  %v2155_v53 = vld [vmem:[#allocation9 + $0x2af0] sm:$0xff] }
  0xf4   : > { %2664 = vmatpush.msra.mxu3 %v2299_v54  ;;  %2603 = vmatpush.msrb.mxu0 %v1963_v58  ;;  %v2251_v54 = vld [vmem:[#allocation9 + $0x2df0] sm:$0xff]  ;;  %v956_v58 = vld [vmem:[#allocation9 + $0x578] sm:$0xff] }
  0xf5   : > { %2626 = vmatpush.msrb.mxu1 %v2059_v60  ;;  %2642 = vmatpush.msra.mxu2 %v2197_v61  ;;  %v709_v60 = vpop.f32.mrf.mxu0  ;;  %v2245_v61 = vld [vmem:[#allocation9 + $0x2dc0] sm:$0xff] }
  0xf6   : > { %2665 = vmatpush.msra.mxu3 %v2293_v62  ;;  %2604 = vmatpush.msrb.mxu0 %v1957_v63  ;;  %v854_v62 = vld [vmem:[#allocation9 + $0x248] sm:$0xff]  ;;  %v732_v63 = vpop.f32.mrf.mxu1 }
  0xf7   : > { %2627 = vmatpush.msrb.mxu1 %v2053_v2  ;;  %2643 = vmatpush.msra.mxu2 %v2191_v6  ;;  %v950_v2 = vld [vmem:[#allocation9 + $0x548] sm:$0xff]  ;;  %v2143_v6 = vld [vmem:[#allocation9 + $0x2a90] sm:$0xff] }
  0xf8   : > { %2666 = vmatpush.msra.mxu3 %v2287_v9  ;;  %2566 = vmatmul.f32.gmra.mxu2 %v6858_v1  ;;  %v2239_v9 = vld [vmem:[#allocation9 + $0x2d90] sm:$0xff] }
  0xf9   : > { %2589 = vmatmul.f32.gmra.mxu3 %v6861_v7  ;;  %2605 = vmatpush.msrb.mxu0 %v1951_v10  ;;  %v6874_v10 = vadd.f32 %v709_v60, %v6775_v31  ;;  %v1148_v60 = vld [vmem:[#allocation9 + $0xb78] sm:$0xff] }
  0xfa   : > { %2628 = vmatpush.msrb.mxu1 %v2047_v11  ;;  %2644 = vmatpush.msra.mxu2 %v2185_v12  ;;  %v848_v11 = vld [vmem:[#allocation9 + $0x218] sm:$0xff]  ;;  %v6877_v12 = vadd.f32 %v732_v63, %v6775_v31 }
  0xfb   : > { %2667 = vmatpush.msra.mxu3 %v2281_v13  ;;  %2606 = vmatpush.msrb.mxu0 %v1945_v15  ;;  %v944_v13 = vld [vmem:[#allocation9 + $0x518] sm:$0xff]  ;;  %v2137_v15 = vld [vmem:[#allocation9 + $0x2a60] sm:$0xff] }
  0xfc   : > { %2629 = vmatpush.msrb.mxu1 %v2041_v18  ;;  %2645 = vmatpush.msra.mxu2 %v2179_v19  ;;  %7888 = vst [vmem:[#allocation37_spill] sm:$0xff] %v6877_v12  ;;  %v2233_v18 = vld [vmem:[#allocation9 + $0x2d60] sm:$0xff]  ;;  %v842_v19 = vld [vmem:[#allocation9 + $0x1e8] sm:$0xff]  ;;  %v908_v63 = vld [vmem:[#allocation9 + $0x3f8] sm:$0xff] }
  0xfd   : > { %2668 = vmatpush.msra.mxu3 %v2275_v20  ;;  %2607 = vmatpush.msrb.mxu0 %v1939_v22  ;;  %v752_v20 = vpop.f32.mrf.mxu2  ;;  %v938_v22 = vld [vmem:[#allocation9 + $0x4e8] sm:$0xff] }
  0xfe   : > { %2630 = vmatpush.msrb.mxu1 %v2035_v25  ;;  %2646 = vmatpush.msra.mxu2 %v2173_v27  ;;  %v775_v25 = vpop.f32.mrf.mxu3  ;;  %v2227_v27 = vld [vmem:[#allocation9 + $0x2d30] sm:$0xff] }
  0xff   : > { %2669 = vmatpush.msra.mxu3 %v2269_v29  ;;  %2608 = vmatpush.msrb.mxu0 %v1933_v30  ;;  %v932_v29 = vld [vmem:[#allocation9 + $0x4b8] sm:$0xff]  ;;  %v2125_v30 = vld [vmem:[#allocation9 + $0x2a00] sm:$0xff] }
 0x100   : > { %2631 = vmatpush.msrb.mxu1 %v2029_v33  ;;  %2647 = vmatpush.msra.mxu2 %v2167_v34  ;;  %v2221_v33 = vld [vmem:[#allocation9 + $0x2d00] sm:$0xff]  ;;  %v6882_v34 = vadd.f32 %v752_v20, %v6765_v21  ;;  %v800_v20 = vld [vmem:[#allocation9 + $0x98] sm:$0xff] }
 0x101   : > { %2670 = vmatpush.msra.mxu3 %v2263_v39  ;;  %2609 = vmatmul.f32.vlgmr.msrb.gmra.mxu0 %v6866_v40  ;;  %v830_v39 = vld [vmem:[#allocation9 + $0x188] sm:$0xff] }
 0x102   : > { %2632 = vmatmul.f32.vlgmr.msrb.gmra.mxu1 %v6869_v43  ;;  %2685 = vmatpush.msra.mxu0 %v872_v42  ;;  %7889 = vst [vmem:[#allocation38_spill] sm:$0xff] %v6882_v34  ;;  %v6885_v42 = vadd.f32 %v775_v25, %v6765_v21  ;;  %v914_v21 = vld [vmem:[#allocation9 + $0x428] sm:$0xff] }
 0x103   : > { %2708 = vmatpush.msra.mxu1 %v968_v44  ;;  %2648 = vmatpush.msra.mxu2 %v2161_v45  ;;  %v926_v44 = vld [vmem:[#allocation9 + $0x488] sm:$0xff]  ;;  %v1064_v45 = vld [vmem:[#allocation9 + $0x8d8] sm:$0xff] }
 0x104   : > { %2671 = vmatpush.msra.mxu3 %v2257_v46  ;;  %2686 = vmatpush.msra.mxu0 %v866_v49  ;;  %7890 = vst [vmem:[#allocation39_spill] sm:$0xff] %v6885_v42  ;;  %v1160_v46 = vld [vmem:[#allocation9 + $0xbd8] sm:$0xff]  ;;  %v1130_v25 = vld [vmem:[#allocation9 + $0xae8] sm:$0xff] }
 0x105   : > { %2709 = vmatpush.msra.mxu1 %v962_v52  ;;  %2649 = vmatpush.msra.mxu2 %v2155_v53  ;;  %v824_v49 = vld [vmem:[#allocation9 + $0x158] sm:$0xff]  ;;  %v1058_v53 = vld [vmem:[#allocation9 + $0x8a8] sm:$0xff] }
 0x106   : > { %2672 = vmatpush.msra.mxu3 %v2251_v54  ;;  %2687 = vmatpush.msra.mxu0 %v860_v56  ;;  %v920_v52 = vld [vmem:[#allocation9 + $0x458] sm:$0xff]  ;;  %v1154_v54 = vld [vmem:[#allocation9 + $0xba8] sm:$0xff] }
 0x107   : > { %2710 = vmatpush.msra.mxu1 %v956_v58  ;;  %2650 = vmatpush.msra.mxu2 %v2149_v59  ;;  %v818_v56 = vld [vmem:[#allocation9 + $0x128] sm:$0xff]  ;;  %v1052_v58 = vld [vmem:[#allocation9 + $0x878] sm:$0xff]  ;;  %v755_v59 = vpop.f32.mrf.mxu2 }
 0x108   : > { %2673 = vmatpush.msra.mxu3 %v2245_v61  ;;  %2688 = vmatpush.msra.mxu0 %v854_v62  ;;  %v812_v61 = vld [vmem:[#allocation9 + $0xf8] sm:$0xff]  ;;  %v778_v62 = vpop.f32.mrf.mxu3 }
 0x109   : > { %2711 = vmatpush.msra.mxu1 %v950_v2  ;;  %2651 = vmatpush.msra.mxu2 %v2143_v6  ;;  %v1046_v2 = vld [vmem:[#allocation9 + $0x848] sm:$0xff] }
 0x10a   : > { %2674 = vmatpush.msra.mxu3 %v2239_v9  ;;  %2612 = vmatmul.f32.gmra.mxu0 %v6874_v10  ;;  %v1142_v6 = vld [vmem:[#allocation9 + $0xb48] sm:$0xff]  ;;  %v6890_v9 = vadd.f32 %v755_v59, %v6775_v31 }
 0x10b   : > { %2635 = vmatmul.f32.gmra.mxu1 %v6877_v12  ;;  %2689 = vmatpush.msra.mxu0 %v848_v11  ;;  %v806_v11 = vld [vmem:[#allocation9 + $0xc8] sm:$0xff] }
 0x10c   : > { %2712 = vmatpush.msra.mxu1 %v944_v13  ;;  %2652 = vmatpush.msra.mxu2 %v2137_v15  ;;  %7891 = vst [vmem:[#allocation40_spill] sm:$0xff] %v6890_v9  ;;  %v6893_v13 = vadd.f32 %v778_v62, %v6775_v31  ;;  %v902_v15 = vld [vmem:[#allocation9 + $0x3c8] sm:$0xff]  ;;  %v1244_v62 = vld [vmem:[#allocation9 + $0xe78] sm:$0xff] }
 0x10d   : > { %2675 = vmatpush.msra.mxu3 %v2233_v18  ;;  %2690 = vmatpush.msra.mxu0 %v842_v19  ;;  %v1040_v18 = vld [vmem:[#allocation9 + $0x818] sm:$0xff]  ;;  %v890_v31 = vld [vmem:[#allocation9 + $0x368] sm:$0xff] }
 0x10e   : > { %2713 = vmatpush.msra.mxu1 %v938_v22  ;;  %2653 = vmatpush.msra.mxu2 %v2131_v24  ;;  %7892 = vst [vmem:[#allocation41_spill] sm:$0xff] %v6893_v13  ;;  %v1136_v19 = vld [vmem:[#allocation9 + $0xb18] sm:$0xff]  ;;  %v1034_v24 = vld [vmem:[#allocation9 + $0x7e8] sm:$0xff] }
 0x10f   : > { %2676 = vmatpush.msra.mxu3 %v2227_v27  ;;  %2691 = vmatpush.msra.mxu0 %v836_v28  ;;  %v896_v22 = vld [vmem:[#allocation9 + $0x398] sm:$0xff]  ;;  %v794_v27 = vld [vmem:[#allocation9 + $0x68] sm:$0xff] }
 0x110   : > { %2714 = vmatpush.msra.mxu1 %v932_v29  ;;  %2654 = vmatpush.msra.mxu2 %v2125_v30  ;;  %v1028_v28 = vld [vmem:[#allocation9 + $0x7b8] sm:$0xff]  ;;  %v1346_v59 = vld [vmem:[#allocation9 + $0x11a8] sm:$0xff] }
 0x111   : > { %2677 = vmatpush.msra.mxu3 %v2221_v33  ;;  %2655 = vmatmul.f32.vlgmr.msra.gmra.mxu2 %v6882_v34  ;;  %v1124_v29 = vld [vmem:[#allocation9 + $0xab8] sm:$0xff] }
 0x112   : > { %2678 = vmatmul.f32.vlgmr.msra.gmra.mxu3 %v6885_v42  ;;  %2692 = vmatpush.msra.mxu0 %v830_v39  ;;  %v788_v30 = vld [vmem:[#allocation9 + $0x38] sm:$0xff]  ;;  %v1022_v39 = vld [vmem:[#allocation9 + $0x788] sm:$0xff] }
 0x113   : > { %2715 = vmatpush.msra.mxu1 %v926_v44  ;;  %2731 = vmatpush.msrb.mxu2 %v1064_v45  ;;  %v884_v33 = vld [vmem:[#allocation9 + $0x338] sm:$0xff]  ;;  %v1118_v44 = vld [vmem:[#allocation9 + $0xa88] sm:$0xff] }
 0x114   : > { %2754 = vmatpush.msrb.mxu3 %v1160_v46  ;;  %2693 = vmatpush.msra.mxu0 %v824_v49  ;;  %v782_v45 = vld [vmem:[#allocation9 + $0x8] sm:$0xff]  ;;  %v1016_v49 = vld [vmem:[#allocation9 + $0x758] sm:$0xff] }
 0x115   : > { %2716 = vmatpush.msra.mxu1 %v920_v52  ;;  %2732 = vmatpush.msrb.mxu2 %v1058_v53  ;;  %v878_v46 = vld [vmem:[#allocation9 + $0x308] sm:$0xff]  ;;  %v1112_v52 = vld [vmem:[#allocation9 + $0xa58] sm:$0xff] }
 0x116   : > { %2755 = vmatpush.msrb.mxu3 %v1154_v54  ;;  %2694 = vmatpush.msra.mxu0 %v818_v56  ;;  %v1256_v53 = vld [vmem:[#allocation9 + $0xed8] sm:$0xff]  ;;  %v1010_v56 = vld [vmem:[#allocation9 + $0x728] sm:$0xff] }
 0x117   : > { %2717 = vmatpush.msra.mxu1 %v914_v21  ;;  %2733 = vmatpush.msrb.mxu2 %v1052_v58  ;;  %v1352_v54 = vld [vmem:[#allocation9 + $0x11d8] sm:$0xff]  ;;  %v1106_v21 = vld [vmem:[#allocation9 + $0xa28] sm:$0xff] }
 0x118   : > { %2756 = vmatpush.msrb.mxu3 %v1148_v60  ;;  %2695 = vmatpush.msra.mxu0 %v812_v61  ;;  %v1250_v58 = vld [vmem:[#allocation9 + $0xea8] sm:$0xff]  ;;  %v1004_v60 = vld [vmem:[#allocation9 + $0x6f8] sm:$0xff] }
 0x119   : > { %2718 = vmatpush.msra.mxu1 %v908_v63  ;;  %2734 = vmatpush.msrb.mxu2 %v1046_v2  ;;  %v1100_v61 = vld [vmem:[#allocation9 + $0x9f8] sm:$0xff]  ;;  %v998_v2 = vld [vmem:[#allocation9 + $0x6c8] sm:$0xff] }
 0x11a   : > { %2757 = vmatpush.msrb.mxu3 %v1142_v6  ;;  %2658 = vmatmul.f32.gmra.mxu2 %v6890_v9  ;;  %v1340_v63 = vld [vmem:[#allocation9 + $0x1178] sm:$0xff]  ;;  %v1094_v6 = vld [vmem:[#allocation9 + $0x9c8] sm:$0xff] }
 0x11b   : > { %2681 = vmatmul.f32.gmra.mxu3 %v6893_v13  ;;  %2696 = vmatpush.msra.mxu0 %v806_v11  ;;  %v1238_v11 = vld [vmem:[#allocation9 + $0xe48] sm:$0xff] }
 0x11c   : > { %2719 = vmatpush.msra.mxu1 %v902_v15  ;;  %2735 = vmatpush.msrb.mxu2 %v1040_v18  ;;  %v1334_v15 = vld [vmem:[#allocation9 + $0x1148] sm:$0xff]  ;;  %v992_v18 = vld [vmem:[#allocation9 + $0x698] sm:$0xff] }
 0x11d   : > { %2758 = vmatpush.msrb.mxu3 %v1136_v19  ;;  %2697 = vmatpush.msra.mxu0 %v800_v20  ;;  %v1088_v19 = vld [vmem:[#allocation9 + $0x998] sm:$0xff] }
 0x11e   : > { %2720 = vmatpush.msra.mxu1 %v896_v22  ;;  %2736 = vmatpush.msrb.mxu2 %v1034_v24  ;;  %v1232_v20 = vld [vmem:[#allocation9 + $0xe18] sm:$0xff]  ;;  %v986_v24 = vld [vmem:[#allocation9 + $0x668] sm:$0xff] }
 0x11f   : > { %2759 = vmatpush.msrb.mxu3 %v1130_v25  ;;  %2698 = vmatpush.msra.mxu0 %v794_v27  ;;  %v1328_v22 = vld [vmem:[#allocation9 + $0x1118] sm:$0xff]  ;;  %v1082_v25 = vld [vmem:[#allocation9 + $0x968] sm:$0xff] }
 0x120   : > { %2721 = vmatpush.msra.mxu1 %v890_v31  ;;  %2737 = vmatpush.msrb.mxu2 %v1028_v28  ;;  %v1226_v27 = vld [vmem:[#allocation9 + $0xde8] sm:$0xff]  ;;  %v980_v28 = vld [vmem:[#allocation9 + $0x638] sm:$0xff] }
 0x121   : > { %2760 = vmatpush.msrb.mxu3 %v1124_v29  ;;  %2699 = vmatpush.msra.mxu0 %v788_v30  ;;  %v1322_v31 = vld [vmem:[#allocation9 + $0x10e8] sm:$0xff]  ;;  %v1076_v29 = vld [vmem:[#allocation9 + $0x938] sm:$0xff] }
 0x122   : > { %2722 = vmatpush.msra.mxu1 %v884_v33  ;;  %2738 = vmatpush.msrb.mxu2 %v1022_v39  ;;  %v1220_v30 = vld [vmem:[#allocation9 + $0xdb8] sm:$0xff]  ;;  %v6534_v33 = vmov 1  }
 0x123   : > { %2761 = vmatpush.msrb.mxu3 %v1118_v44  ;;  %2700 = vmatpush.msra.mxu0 %v782_v45  ;;  %v1316_v39 = vld [vmem:[#allocation9 + $0x10b8] sm:$0xff]  ;;  %v974_v44 = vld [vmem:[#allocation9 + $0x608] sm:$0xff] }
 0x124   : > { %2723 = vmatpush.msra.mxu1 %v878_v46  ;;  %2739 = vmatpush.msrb.mxu2 %v1016_v49  ;;  %v1070_v45 = vld [vmem:[#allocation9 + $0x908] sm:$0xff] }
 0x125   : > { %2762 = vmatpush.msrb.mxu3 %v1112_v52  ;;  %2701 = vmatmul.f32.vlgmr.msra.gmra.mxu0 %v6768_v23  ;;  %v6294_v46 = vld [vmem:[#allocation4 + $0x8] sm:$0xff] }
 0x126   : > { %2724 = vmatmul.f32.vlgmr.msra.gmra.mxu1 %v6771_v26  ;;  %2777 = vmatpush.msrb.mxu0 %v1256_v53  ;;  %v1214_v49 = vld [vmem:[#allocation9 + $0xd88] sm:$0xff]  ;;  %v1448_v53 = vld [vmem:[#allocation9 + $0x14d8] sm:$0xff] }
 0x127   : > { %2800 = vmatpush.msrb.mxu1 %v1352_v54  ;;  %2740 = vmatpush.msrb.mxu2 %v1010_v56  ;;  %v1310_v52 = vld [vmem:[#allocation9 + $0x1088] sm:$0xff]  ;;  %v1544_v54 = vld [vmem:[#allocation9 + $0x17d8] sm:$0xff] }
 0x128   : > { %2763 = vmatpush.msrb.mxu3 %v1106_v21  ;;  %2778 = vmatpush.msrb.mxu0 %v1250_v58  ;;  %v1208_v56 = vld [vmem:[#allocation9 + $0xd58] sm:$0xff]  ;;  %v1442_v58 = vld [vmem:[#allocation9 + $0x14a8] sm:$0xff] }
 0x129   : > { %2801 = vmatpush.msrb.mxu1 %v1346_v59  ;;  %2741 = vmatpush.msrb.mxu2 %v1004_v60  ;;  %v1304_v21 = vld [vmem:[#allocation9 + $0x1058] sm:$0xff]  ;;  %v1538_v59 = vld [vmem:[#allocation9 + $0x17a8] sm:$0xff] }
 0x12a   : > { %2764 = vmatpush.msrb.mxu3 %v1100_v61  ;;  %2779 = vmatpush.msrb.mxu0 %v1244_v62  ;;  %v1202_v60 = vld [vmem:[#allocation9 + $0xd28] sm:$0xff]  ;;  %v1436_v62 = vld [vmem:[#allocation9 + $0x1478] sm:$0xff] }
 0x12b   : > { %2802 = vmatpush.msrb.mxu1 %v1340_v63  ;;  %2742 = vmatpush.msrb.mxu2 %v998_v2  ;;  %v1298_v61 = vld [vmem:[#allocation9 + $0x1028] sm:$0xff]  ;;  %v1532_v63 = vld [vmem:[#allocation9 + $0x1778] sm:$0xff] }
 0x12c   : > { %2765 = vmatpush.msrb.mxu3 %v1094_v6  ;;  %2780 = vmatpush.msrb.mxu0 %v1238_v11  ;;  %v1196_v2 = vld [vmem:[#allocation9 + $0xcf8] sm:$0xff]  ;;  %v1430_v11 = vld [vmem:[#allocation9 + $0x1448] sm:$0xff] }
 0x12d   : > { %2803 = vmatpush.msrb.mxu1 %v1334_v15  ;;  %2743 = vmatpush.msrb.mxu2 %v992_v18  ;;  %v1292_v6 = vld [vmem:[#allocation9 + $0xff8] sm:$0xff]  ;;  %v1526_v15 = vld [vmem:[#allocation9 + $0x1748] sm:$0xff] }
 0x12e   : > { %2766 = vmatpush.msrb.mxu3 %v1088_v19  ;;  %2704 = vmatmul.f32.gmra.mxu0 %v6781_v38  ;;  %v1190_v18 = vld [vmem:[#allocation9 + $0xcc8] sm:$0xff] }
 0x12f   : > { %2727 = vmatmul.f32.gmra.mxu1 %v6778_v36  ;;  %2781 = vmatpush.msrb.mxu0 %v1232_v20  ;;  %v1286_v19 = vld [vmem:[#allocation9 + $0xfc8] sm:$0xff]  ;;  %v1424_v20 = vld [vmem:[#allocation9 + $0x1418] sm:$0xff] }
 0x130   : > { %2804 = vmatpush.msrb.mxu1 %v1328_v22  ;;  %2744 = vmatpush.msrb.mxu2 %v986_v24  ;;  %v1520_v22 = vld [vmem:[#allocation9 + $0x1718] sm:$0xff] }
 0x131   : > { %2767 = vmatpush.msrb.mxu3 %v1082_v25  ;;  %2782 = vmatpush.msrb.mxu0 %v1226_v27  ;;  %v1184_v24 = vld [vmem:[#allocation9 + $0xc98] sm:$0xff]  ;;  %v1418_v27 = vld [vmem:[#allocation9 + $0x13e8] sm:$0xff] }
 0x132   : > { %2805 = vmatpush.msrb.mxu1 %v1322_v31  ;;  %6285 = vset.pattern.permute.xlu1 %v6534_v33  ;;  %v1280_v25 = vld [vmem:[#allocation9 + $0xf98] sm:$0xff]  ;;  %v1514_v31 = vld [vmem:[#allocation9 + $0x16e8] sm:$0xff] }
 0x133   : > { %2745 = vmatpush.msrb.mxu2 %v980_v28  ;;  %2768 = vmatpush.msrb.mxu3 %v1076_v29  ;;  %v1178_v28 = vld [vmem:[#allocation9 + $0xc68] sm:$0xff] }
 0x134   : > { %4530 = vperm.xlu1 %6285, %v6294_v46   ;;  %2783 = vmatpush.msrb.mxu0 %v1220_v30  ;;  %v1274_v29 = vld [vmem:[#allocation9 + $0xf68] sm:$0xff]  ;;  %v1412_v30 = vld [vmem:[#allocation9 + $0x13b8] sm:$0xff] }
 0x135   : > { %2806 = vmatpush.msrb.mxu1 %v1316_v39  ;;  %2746 = vmatpush.msrb.mxu2 %v974_v44  ;;  %v1508_v39 = vld [vmem:[#allocation9 + $0x16b8] sm:$0xff]  ;;  %v1406_v46 = vld [vmem:[#allocation9 + $0x1388] sm:$0xff] }
 0x136   : > { %2769 = vmatpush.msrb.mxu3 %v1070_v45  ;;  %2747 = vmatmul.f32.vlgmr.msrb.gmra.mxu2 %v6786_v47  ;;  %v1172_v44 = vld [vmem:[#allocation9 + $0xc38] sm:$0xff] }
 0x137   : > { %2770 = vmatmul.f32.vlgmr.msrb.gmra.mxu3 %v6789_v51  ;;  %2784 = vmatpush.msrb.mxu0 %v1214_v49  ;;  %v1268_v45 = vld [vmem:[#allocation9 + $0xf38] sm:$0xff]  ;;  %v1502_v49 = vld [vmem:[#allocation9 + $0x1688] sm:$0xff] }
 0x138   : > { %2807 = vmatpush.msrb.mxu1 %v1310_v52  ;;  %2823 = vmatpush.msra.mxu2 %v1448_v53  ;;  %v1166_v52 = vld [vmem:[#allocation9 + $0xc08] sm:$0xff]  ;;  %v6295_v53 = vld [vmem:[#allocation4] sm:$0xff] }
 0x139   : > { %2846 = vmatpush.msra.mxu3 %v1544_v54  ;;  %2785 = vmatpush.msrb.mxu0 %v1208_v56  ;;  %v1262_v54 = vld [vmem:[#allocation9 + $0xf08] sm:$0xff]  ;;  %v1400_v56 = vld [vmem:[#allocation9 + $0x1358] sm:$0xff] }
 0x13a   : > { %2808 = vmatpush.msrb.mxu1 %v1304_v21  ;;  %2824 = vmatpush.msra.mxu2 %v1442_v58  ;;  %v1496_v21 = vld [vmem:[#allocation9 + $0x1658] sm:$0xff] }
 0x13b   : > { %2847 = vmatpush.msra.mxu3 %v1538_v59  ;;  %2786 = vmatpush.msrb.mxu0 %v1202_v60  ;;  %v1640_v58 = vld [vmem:[#allocation9 + $0x1ad8] sm:$0xff]  ;;  %v1394_v60 = vld [vmem:[#allocation9 + $0x1328] sm:$0xff] }
 0x13c   : > { %2809 = vmatpush.msrb.mxu1 %v1298_v61  ;;  %2825 = vmatpush.msra.mxu2 %v1436_v62  ;;  %v1736_v59 = vld [vmem:[#allocation9 + $0x1dd8] sm:$0xff]  ;;  %v1634_v61 = vld [vmem:[#allocation9 + $0x1aa8] sm:$0xff] }
 0x13d   : > { %2848 = vmatpush.msra.mxu3 %v1532_v63  ;;  %2787 = vmatpush.msrb.mxu0 %v1196_v2  ;;  %v1730_v62 = vld [vmem:[#allocation9 + $0x1da8] sm:$0xff]  ;;  %v1388_v63 = vld [vmem:[#allocation9 + $0x12f8] sm:$0xff] }
 0x13e   : > { %2810 = vmatpush.msrb.mxu1 %v1292_v6  ;;  %2826 = vmatpush.msra.mxu2 %v1430_v11  ;;  %v1484_v2 = vld [vmem:[#allocation9 + $0x15f8] sm:$0xff] }
 0x13f   : > { %2849 = vmatpush.msra.mxu3 %v1526_v15  ;;  %2750 = vmatmul.f32.gmra.mxu2 %v6802_v3  ;;  %v1628_v6 = vld [vmem:[#allocation9 + $0x1a78] sm:$0xff]  ;;  %v1382_v15 = vld [vmem:[#allocation9 + $0x12c8] sm:$0xff] }
 0x140   : > { %2773 = vmatmul.f32.gmra.mxu3 %v6805_v8  ;;  %2788 = vmatpush.msrb.mxu0 %v1190_v18  ;;  %v1724_v11 = vld [vmem:[#allocation9 + $0x1d78] sm:$0xff]  ;;  %v1478_v18 = vld [vmem:[#allocation9 + $0x15c8] sm:$0xff] }
 0x141   : > { %2811 = vmatpush.msrb.mxu1 %v1286_v19  ;;  %2827 = vmatpush.msra.mxu2 %v1424_v20  ;;  %v1622_v19 = vld [vmem:[#allocation9 + $0x1a48] sm:$0xff] }
 0x142   : > { %2850 = vmatpush.msra.mxu3 %v1520_v22  ;;  %2789 = vmatpush.msrb.mxu0 %v1184_v24  ;;  %v1718_v20 = vld [vmem:[#allocation9 + $0x1d48] sm:$0xff]  ;;  %v1376_v22 = vld [vmem:[#allocation9 + $0x1298] sm:$0xff] }
 0x143   : > { %2812 = vmatpush.msrb.mxu1 %v1280_v25  ;;  %2828 = vmatpush.msra.mxu2 %v1418_v27  ;;  %v1472_v24 = vld [vmem:[#allocation9 + $0x1598] sm:$0xff] }
 0x144   : > { %2851 = vmatpush.msra.mxu3 %v1514_v31  ;;  %2790 = vmatpush.msrb.mxu0 %v1178_v28  ;;  %v1616_v25 = vld [vmem:[#allocation9 + $0x1a18] sm:$0xff]  ;;  %v1370_v31 = vld [vmem:[#allocation9 + $0x1268] sm:$0xff] }
 0x145   : > { %2813 = vmatpush.msrb.mxu1 %v1274_v29  ;;  %2829 = vmatpush.msra.mxu2 %v1412_v30  ;;  %v1712_v27 = vld [vmem:[#allocation9 + $0x1d18] sm:$0xff]  ;;  %v1466_v28 = vld [vmem:[#allocation9 + $0x1568] sm:$0xff] }
 0x146   : > { %2852 = vmatpush.msra.mxu3 %v1508_v39  ;;  %6287 = vset.pattern.permute.xlu2 %v6534_v33  ;;  %v1490_v33 = vld [vmem:[#allocation9 + $0x1628] sm:$0xff]  ;;  %v1364_v39 = vld [vmem:[#allocation9 + $0x1238] sm:$0xff] }
 0x147   : > { %4526 = vperm.xlu2 %6287, %v6295_v53   ;;  %2791 = vmatpush.msrb.mxu0 %v1172_v44  ;;  %v1610_v29 = vld [vmem:[#allocation9 + $0x19e8] sm:$0xff]  ;;  %v1460_v44 = vld [vmem:[#allocation9 + $0x1538] sm:$0xff] }
 0x148   : > { %2814 = vmatpush.msrb.mxu1 %v1268_v45  ;;  %2830 = vmatpush.msra.mxu2 %v1406_v46  ;;  %v1706_v30 = vld [vmem:[#allocation9 + $0x1ce8] sm:$0xff]  ;;  %v1604_v45 = vld [vmem:[#allocation9 + $0x19b8] sm:$0xff] }
 0x149   : > { %2853 = vmatpush.msra.mxu3 %v1502_v49  ;;  %2792 = vmatpush.msrb.mxu0 %v1166_v52  ;;  %v1700_v46 = vld [vmem:[#allocation9 + $0x1cb8] sm:$0xff]  ;;  %v1358_v49 = vld [vmem:[#allocation9 + $0x1208] sm:$0xff] }
 0x14a   : > { %2815 = vmatpush.msrb.mxu1 %v1262_v54  ;;  %2831 = vmatpush.msra.mxu2 %v1400_v56  ;;  %v1454_v52 = vld [vmem:[#allocation9 + $0x1508] sm:$0xff]  ;;  %v1832_v56 = vld [vmem:[#allocation9 + $0x20d8] sm:$0xff] }
 0x14b   : > { %2854 = vmatpush.msra.mxu3 %v1496_v21  ;;  %2793 = vmatmul.f32.vlgmr.msrb.gmra.mxu0 %v6793_v55  ;;  %v1598_v53 = vld [vmem:[#allocation9 + $0x1988] sm:$0xff]  ;;  %v1928_v21 = vld [vmem:[#allocation9 + $0x23d8] sm:$0xff] }
 0x14c   : > { %2816 = vmatmul.f32.vlgmr.msrb.gmra.mxu1 %v6797_v57  ;;  %2869 = vmatpush.msra.mxu0 %v1640_v58  ;;  %v1694_v54 = vld [vmem:[#allocation9 + $0x1c88] sm:$0xff]  ;;  %v1592_v58 = vld [vmem:[#allocation9 + $0x1958] sm:$0xff] }
 0x14d   : > { %2892 = vmatpush.msra.mxu1 %v1736_v59  ;;  %2832 = vmatpush.msra.mxu2 %v1394_v60  ;;  %v1688_v59 = vld [vmem:[#allocation9 + $0x1c58] sm:$0xff]  ;;  %v1826_v60 = vld [vmem:[#allocation9 + $0x20a8] sm:$0xff] }
 0x14e   : > { %2855 = vmatpush.msra.mxu3 %v1490_v33  ;;  %2870 = vmatpush.msra.mxu0 %v1634_v61  ;;  %v1922_v33 = vld [vmem:[#allocation9 + $0x23a8] sm:$0xff] }
 0x14f   : > { %2893 = vmatpush.msra.mxu1 %v1730_v62  ;;  %2833 = vmatpush.msra.mxu2 %v1388_v63  ;;  %v1586_v61 = vld [vmem:[#allocation9 + $0x1928] sm:$0xff]  ;;  %v1820_v63 = vld [vmem:[#allocation9 + $0x2078] sm:$0xff] }
 0x150   : > { %2856 = vmatpush.msra.mxu3 %v1484_v2  ;;  %2871 = vmatpush.msra.mxu0 %v1628_v6  ;;  %v1682_v62 = vld [vmem:[#allocation9 + $0x1c28] sm:$0xff]  ;;  %v1916_v2 = vld [vmem:[#allocation9 + $0x2378] sm:$0xff] }
 0x151   : > { %2894 = vmatpush.msra.mxu1 %v1724_v11  ;;  %2834 = vmatpush.msra.mxu2 %v1382_v15  ;;  %v1580_v6 = vld [vmem:[#allocation9 + $0x18f8] sm:$0xff]  ;;  %v1814_v15 = vld [vmem:[#allocation9 + $0x2048] sm:$0xff] }
 0x152   : > { %2857 = vmatpush.msra.mxu3 %v1478_v18  ;;  %2872 = vmatpush.msra.mxu0 %v1622_v19  ;;  %v1676_v11 = vld [vmem:[#allocation9 + $0x1bf8] sm:$0xff]  ;;  %v1910_v18 = vld [vmem:[#allocation9 + $0x2348] sm:$0xff] }
 0x153   : > { %2895 = vmatpush.msra.mxu1 %v1718_v20  ;;  %2835 = vmatpush.msra.mxu2 %v1376_v22  ;;  %v1574_v19 = vld [vmem:[#allocation9 + $0x18c8] sm:$0xff]  ;;  %v1808_v22 = vld [vmem:[#allocation9 + $0x2018] sm:$0xff] }
 0x154   : > { %2858 = vmatpush.msra.mxu3 %v1472_v24  ;;  %2796 = vmatmul.f32.gmra.mxu0 %v6809_v16  ;;  %v1670_v20 = vld [vmem:[#allocation9 + $0x1bc8] sm:$0xff]  ;;  %v1904_v24 = vld [vmem:[#allocation9 + $0x2318] sm:$0xff] }
 0x155   : > { %2819 = vmatmul.f32.gmra.mxu1 %v6813_v4  ;;  %2873 = vmatpush.msra.mxu0 %v1616_v25  ;;  %v1568_v25 = vld [vmem:[#allocation9 + $0x1898] sm:$0xff] }
 0x156   : > { %2896 = vmatpush.msra.mxu1 %v1712_v27  ;;  %2836 = vmatpush.msra.mxu2 %v1370_v31  ;;  %v1664_v27 = vld [vmem:[#allocation9 + $0x1b98] sm:$0xff]  ;;  %v1802_v31 = vld [vmem:[#allocation9 + $0x1fe8] sm:$0xff] }
 0x157   : > { %2859 = vmatpush.msra.mxu3 %v1466_v28  ;;  %2874 = vmatpush.msra.mxu0 %v1610_v29  ;;  %v1898_v28 = vld [vmem:[#allocation9 + $0x22e8] sm:$0xff] }
 0x158   : > { %2897 = vmatpush.msra.mxu1 %v1706_v30  ;;  %2837 = vmatpush.msra.mxu2 %v1364_v39  ;;  %v1562_v29 = vld [vmem:[#allocation9 + $0x1868] sm:$0xff]  ;;  %v1796_v39 = vld [vmem:[#allocation9 + $0x1fb8] sm:$0xff] }
 0x159   : > { %2860 = vmatpush.msra.mxu3 %v1460_v44  ;;  %2875 = vmatpush.msra.mxu0 %v1604_v45  ;;  %v1658_v30 = vld [vmem:[#allocation9 + $0x1b68] sm:$0xff]  ;;  %v1892_v44 = vld [vmem:[#allocation9 + $0x22b8] sm:$0xff] }
 0x15a   : > { %2898 = vmatpush.msra.mxu1 %v1700_v46  ;;  %2838 = vmatpush.msra.mxu2 %v1358_v49  ;;  %v1556_v45 = vld [vmem:[#allocation9 + $0x1838] sm:$0xff]  ;;  %v1790_v49 = vld [vmem:[#allocation9 + $0x1f88] sm:$0xff] }
 0x15b   : > { %2861 = vmatpush.msra.mxu3 %v1454_v52  ;;  %2839 = vmatmul.f32.vlgmr.msra.gmra.mxu2 %v6818_v32  ;;  %v1652_v46 = vld [vmem:[#allocation9 + $0x1b38] sm:$0xff]  ;;  %v1886_v52 = vld [vmem:[#allocation9 + $0x2288] sm:$0xff] }
 0x15c   : > { %2862 = vmatmul.f32.vlgmr.msra.gmra.mxu3 %v6821_v35  ;;  %2876 = vmatpush.msra.mxu0 %v1598_v53  ;;  %v1550_v53 = vld [vmem:[#allocation9 + $0x1808] sm:$0xff] }
 0x15d   : > { %2899 = vmatpush.msra.mxu1 %v1694_v54  ;;  %2915 = vmatpush.msrb.mxu2 %v1832_v56  ;;  %v1646_v54 = vld [vmem:[#allocation9 + $0x1b08] sm:$0xff]  ;;  %v1784_v56 = vld [vmem:[#allocation9 + $0x1f58] sm:$0xff] }
 0x15e   : > { %2938 = vmatpush.msrb.mxu3 %v1928_v21  ;;  %2877 = vmatpush.msra.mxu0 %v1592_v58  ;;  %v1880_v21 = vld [vmem:[#allocation9 + $0x2258] sm:$0xff] }
 0x15f   : > { %2900 = vmatpush.msra.mxu1 %v1688_v59  ;;  %2916 = vmatpush.msrb.mxu2 %v1826_v60  ;;  %v2024_v58 = vld [vmem:[#allocation9 + $0x26d8] sm:$0xff]  ;;  %v1778_v60 = vld [vmem:[#allocation9 + $0x1f28] sm:$0xff] }
 0x160   : > { %2939 = vmatpush.msrb.mxu3 %v1922_v33  ;;  %2878 = vmatpush.msra.mxu0 %v1586_v61  ;;  %v2120_v59 = vld [vmem:[#allocation9 + $0x29d8] sm:$0xff]  ;;  %v1874_v33 = vld [vmem:[#allocation9 + $0x2228] sm:$0xff] }
 0x161   : > { %2901 = vmatpush.msra.mxu1 %v1682_v62  ;;  %2917 = vmatpush.msrb.mxu2 %v1820_v63  ;;  %v2018_v61 = vld [vmem:[#allocation9 + $0x26a8] sm:$0xff]  ;;  %v1772_v63 = vld [vmem:[#allocation9 + $0x1ef8] sm:$0xff] }
 0x162   : > { %2940 = vmatpush.msrb.mxu3 %v1916_v2  ;;  %2879 = vmatpush.msra.mxu0 %v1580_v6  ;;  %v2114_v62 = vld [vmem:[#allocation9 + $0x29a8] sm:$0xff]  ;;  %v1868_v2 = vld [vmem:[#allocation9 + $0x21f8] sm:$0xff] }
 0x163   : > { %2902 = vmatpush.msra.mxu1 %v1676_v11  ;;  %2918 = vmatpush.msrb.mxu2 %v1814_v15  ;;  %v2012_v6 = vld [vmem:[#allocation9 + $0x2678] sm:$0xff]  ;;  %v1766_v15 = vld [vmem:[#allocation9 + $0x1ec8] sm:$0xff] }
 0x164   : > { %2941 = vmatpush.msrb.mxu3 %v1910_v18  ;;  %2842 = vmatmul.f32.gmra.mxu2 %v6834_v0  ;;  %v2108_v11 = vld [vmem:[#allocation9 + $0x2978] sm:$0xff]  ;;  %v1862_v18 = vld [vmem:[#allocation9 + $0x21c8] sm:$0xff] }
 0x165   : > { %2865 = vmatmul.f32.gmra.mxu3 %v6837_v5  ;;  %2880 = vmatpush.msra.mxu0 %v1574_v19  ;;  %v2006_v19 = vld [vmem:[#allocation9 + $0x2648] sm:$0xff] }
 0x166   : > { %2903 = vmatpush.msra.mxu1 %v1670_v20  ;;  %2919 = vmatpush.msrb.mxu2 %v1808_v22  ;;  %v2102_v20 = vld [vmem:[#allocation9 + $0x2948] sm:$0xff]  ;;  %v1760_v22 = vld [vmem:[#allocation9 + $0x1e98] sm:$0xff] }
 0x167   : > { %2942 = vmatpush.msrb.mxu3 %v1904_v24  ;;  %2881 = vmatpush.msra.mxu0 %v1568_v25  ;;  %v1856_v24 = vld [vmem:[#allocation9 + $0x2198] sm:$0xff] }
 0x168   : > { %2904 = vmatpush.msra.mxu1 %v1664_v27  ;;  %2920 = vmatpush.msrb.mxu2 %v1802_v31  ;;  %v2000_v25 = vld [vmem:[#allocation9 + $0x2618] sm:$0xff]  ;;  %v1754_v31 = vld [vmem:[#allocation9 + $0x1e68] sm:$0xff] }
 0x169   : > { %2943 = vmatpush.msrb.mxu3 %v1898_v28  ;;  %2882 = vmatpush.msra.mxu0 %v1562_v29  ;;  %v2096_v27 = vld [vmem:[#allocation9 + $0x2918] sm:$0xff]  ;;  %v1850_v28 = vld [vmem:[#allocation9 + $0x2168] sm:$0xff] }
 0x16a   : > { %2905 = vmatpush.msra.mxu1 %v1658_v30  ;;  %2921 = vmatpush.msrb.mxu2 %v1796_v39  ;;  %v1994_v29 = vld [vmem:[#allocation9 + $0x25e8] sm:$0xff]  ;;  %v1748_v39 = vld [vmem:[#allocation9 + $0x1e38] sm:$0xff] }
 0x16b   : > { %2944 = vmatpush.msrb.mxu3 %v1892_v44  ;;  %2883 = vmatpush.msra.mxu0 %v1556_v45  ;;  %v2090_v30 = vld [vmem:[#allocation9 + $0x28e8] sm:$0xff]  ;;  %v1844_v44 = vld [vmem:[#allocation9 + $0x2138] sm:$0xff] }
 0x16c   : > { %2906 = vmatpush.msra.mxu1 %v1652_v46  ;;  %2922 = vmatpush.msrb.mxu2 %v1790_v49  ;;  %v1988_v45 = vld [vmem:[#allocation9 + $0x25b8] sm:$0xff]  ;;  %v1742_v49 = vld [vmem:[#allocation9 + $0x1e08] sm:$0xff] }
 0x16d   : > { %2945 = vmatpush.msrb.mxu3 %v1886_v52  ;;  %2884 = vmatpush.msra.mxu0 %v1550_v53  ;;  %v2084_v46 = vld [vmem:[#allocation9 + $0x28b8] sm:$0xff]  ;;  %v1838_v52 = vld [vmem:[#allocation9 + $0x2108] sm:$0xff] }
 0x16e   : > { %2907 = vmatpush.msra.mxu1 %v1646_v54  ;;  %2923 = vmatpush.msrb.mxu2 %v1784_v56  ;;  %v1982_v53 = vld [vmem:[#allocation9 + $0x2588] sm:$0xff]  ;;  %v2216_v56 = vld [vmem:[#allocation9 + $0x2cd8] sm:$0xff] }
 0x16f   : > { %2946 = vmatpush.msrb.mxu3 %v1880_v21  ;;  %2885 = vmatmul.f32.vlgmr.msra.gmra.mxu0 %v6826_v48  ;;  %v2078_v54 = vld [vmem:[#allocation9 + $0x2888] sm:$0xff]  ;;  %v2312_v21 = vld [vmem:[#allocation9 + $0x2fd8] sm:$0xff] }
 0x170   : > { %2908 = vmatmul.f32.vlgmr.msra.gmra.mxu1 %v6829_v50  ;;  %2961 = vmatpush.msrb.mxu0 %v2024_v58  ;;  %v1976_v58 = vld [vmem:[#allocation9 + $0x2558] sm:$0xff] }
 0x171   : > { %2984 = vmatpush.msrb.mxu1 %v2120_v59  ;;  %2924 = vmatpush.msrb.mxu2 %v1778_v60  ;;  %v2072_v59 = vld [vmem:[#allocation9 + $0x2858] sm:$0xff]  ;;  %v2210_v60 = vld [vmem:[#allocation9 + $0x2ca8] sm:$0xff] }
 0x172   : > { %2947 = vmatpush.msrb.mxu3 %v1874_v33  ;;  %2962 = vmatpush.msrb.mxu0 %v2018_v61  ;;  %v2306_v33 = vld [vmem:[#allocation9 + $0x2fa8] sm:$0xff] }
 0x173   : > { %2985 = vmatpush.msrb.mxu1 %v2114_v62  ;;  %2925 = vmatpush.msrb.mxu2 %v1772_v63  ;;  %v1970_v61 = vld [vmem:[#allocation9 + $0x2528] sm:$0xff]  ;;  %v2204_v63 = vld [vmem:[#allocation9 + $0x2c78] sm:$0xff] }
 0x174   : > { %2948 = vmatpush.msrb.mxu3 %v1868_v2  ;;  %2963 = vmatpush.msrb.mxu0 %v2012_v6  ;;  %v2066_v62 = vld [vmem:[#allocation9 + $0x2828] sm:$0xff]  ;;  %v2300_v2 = vld [vmem:[#allocation9 + $0x2f78] sm:$0xff] }
 0x175   : > { %2986 = vmatpush.msrb.mxu1 %v2108_v11  ;;  %2926 = vmatpush.msrb.mxu2 %v1766_v15  ;;  %v1964_v6 = vld [vmem:[#allocation9 + $0x24f8] sm:$0xff]  ;;  %v2198_v15 = vld [vmem:[#allocation9 + $0x2c48] sm:$0xff] }
 0x176   : > { %2949 = vmatpush.msrb.mxu3 %v1862_v18  ;;  %2964 = vmatpush.msrb.mxu0 %v2006_v19  ;;  %v2060_v11 = vld [vmem:[#allocation9 + $0x27f8] sm:$0xff]  ;;  %v2294_v18 = vld [vmem:[#allocation9 + $0x2f48] sm:$0xff] }
 0x177   : > { %2987 = vmatpush.msrb.mxu1 %v2102_v20  ;;  %2927 = vmatpush.msrb.mxu2 %v1760_v22  ;;  %v1958_v19 = vld [vmem:[#allocation9 + $0x24c8] sm:$0xff]  ;;  %v2192_v22 = vld [vmem:[#allocation9 + $0x2c18] sm:$0xff] }
 0x178   : > { %2950 = vmatpush.msrb.mxu3 %v1856_v24  ;;  %2888 = vmatmul.f32.gmra.mxu0 %v6841_v14  ;;  %v2054_v20 = vld [vmem:[#allocation9 + $0x27c8] sm:$0xff]  ;;  %v2288_v24 = vld [vmem:[#allocation9 + $0x2f18] sm:$0xff] }
 0x179   : > { %2911 = vmatmul.f32.gmra.mxu1 %v6845_v17  ;;  %2965 = vmatpush.msrb.mxu0 %v2000_v25  ;;  %v1952_v25 = vld [vmem:[#allocation9 + $0x2498] sm:$0xff] }
 0x17a   : > { %2988 = vmatpush.msrb.mxu1 %v2096_v27  ;;  %2928 = vmatpush.msrb.mxu2 %v1754_v31  ;;  %v2048_v27 = vld [vmem:[#allocation9 + $0x2798] sm:$0xff]  ;;  %v2186_v31 = vld [vmem:[#allocation9 + $0x2be8] sm:$0xff] }
 0x17b   : > { %2951 = vmatpush.msrb.mxu3 %v1850_v28  ;;  %2966 = vmatpush.msrb.mxu0 %v1994_v29  ;;  %v2282_v28 = vld [vmem:[#allocation9 + $0x2ee8] sm:$0xff] }
 0x17c   : > { %2989 = vmatpush.msrb.mxu1 %v2090_v30  ;;  %2929 = vmatpush.msrb.mxu2 %v1748_v39  ;;  %v1946_v29 = vld [vmem:[#allocation9 + $0x2468] sm:$0xff]  ;;  %v2180_v39 = vld [vmem:[#allocation9 + $0x2bb8] sm:$0xff] }
 0x17d   : > { %2952 = vmatpush.msrb.mxu3 %v1844_v44  ;;  %2967 = vmatpush.msrb.mxu0 %v1988_v45  ;;  %v2042_v30 = vld [vmem:[#allocation9 + $0x2768] sm:$0xff]  ;;  %v2276_v44 = vld [vmem:[#allocation9 + $0x2eb8] sm:$0xff] }
 0x17e   : > { %2990 = vmatpush.msrb.mxu1 %v2084_v46  ;;  %2930 = vmatpush.msrb.mxu2 %v1742_v49  ;;  %v1940_v45 = vld [vmem:[#allocation9 + $0x2438] sm:$0xff]  ;;  %v2174_v49 = vld [vmem:[#allocation9 + $0x2b88] sm:$0xff] }
 0x17f   : > { %2953 = vmatpush.msrb.mxu3 %v1838_v52  ;;  %2931 = vmatmul.f32.vlgmr.msrb.gmra.mxu2 %v6850_v37  ;;  %v2036_v46 = vld [vmem:[#allocation9 + $0x2738] sm:$0xff]  ;;  %v2270_v52 = vld [vmem:[#allocation9 + $0x2e88] sm:$0xff] }
 0x180   : > { %2954 = vmatmul.f32.vlgmr.msrb.gmra.mxu3 %v6853_v41  ;;  %2968 = vmatpush.msrb.mxu0 %v1982_v53  ;;  %v1934_v53 = vld [vmem:[#allocation9 + $0x2408] sm:$0xff] }
 0x181   : > { %2991 = vmatpush.msrb.mxu1 %v2078_v54  ;;  %3007 = vmatpush.msra.mxu2 %v2216_v56  ;;  %v2030_v54 = vld [vmem:[#allocation9 + $0x2708] sm:$0xff]  ;;  %v2168_v56 = vld [vmem:[#allocation9 + $0x2b58] sm:$0xff] }
 0x182   : > { %3030 = vmatpush.msra.mxu3 %v2312_v21  ;;  %2969 = vmatpush.msrb.mxu0 %v1976_v58  ;;  %v2264_v21 = vld [vmem:[#allocation9 + $0x2e58] sm:$0xff]  ;;  %v873_v58 = vld [vmem:[#allocation9 + $0x2e0] sm:$0xff] }
 0x183   : > { %2992 = vmatpush.msrb.mxu1 %v2072_v59  ;;  %3008 = vmatpush.msra.mxu2 %v2210_v60  ;;  %v969_v59 = vld [vmem:[#allocation9 + $0x5e0] sm:$0xff]  ;;  %v2162_v60 = vld [vmem:[#allocation9 + $0x2b28] sm:$0xff] }
 0x184   : > { %3031 = vmatpush.msra.mxu3 %v2306_v33  ;;  %2970 = vmatpush.msrb.mxu0 %v1970_v61  ;;  %v2258_v33 = vld [vmem:[#allocation9 + $0x2e28] sm:$0xff]  ;;  %v867_v61 = vld [vmem:[#allocation9 + $0x2b0] sm:$0xff] }
 0x185   : > { %2993 = vmatpush.msrb.mxu1 %v2066_v62  ;;  %3009 = vmatpush.msra.mxu2 %v2204_v63  ;;  %v963_v62 = vld [vmem:[#allocation9 + $0x5b0] sm:$0xff]  ;;  %v2156_v63 = vld [vmem:[#allocation9 + $0x2af8] sm:$0xff] }
 0x186   : > { %3032 = vmatpush.msra.mxu3 %v2300_v2  ;;  %2971 = vmatpush.msrb.mxu0 %v1964_v6  ;;  %v2252_v2 = vld [vmem:[#allocation9 + $0x2df8] sm:$0xff]  ;;  %v861_v6 = vld [vmem:[#allocation9 + $0x280] sm:$0xff] }
 0x187   : > { %2994 = vmatpush.msrb.mxu1 %v2060_v11  ;;  %3010 = vmatpush.msra.mxu2 %v2198_v15  ;;  %v957_v11 = vld [vmem:[#allocation9 + $0x580] sm:$0xff]  ;;  %v2150_v15 = vld [vmem:[#allocation9 + $0x2ac8] sm:$0xff] }
 0x188   : > { %3033 = vmatpush.msra.mxu3 %v2294_v18  ;;  %2934 = vmatmul.f32.gmra.mxu2 %v6858_v1  ;;  %v2246_v18 = vld [vmem:[#allocation9 + $0x2dc8] sm:$0xff] }
 0x189   : > { %2957 = vmatmul.f32.gmra.mxu3 %v6861_v7  ;;  %2972 = vmatpush.msrb.mxu0 %v1958_v19  ;;  %v855_v19 = vld [vmem:[#allocation9 + $0x250] sm:$0xff] }
 0x18a   : > { %2995 = vmatpush.msrb.mxu1 %v2054_v20  ;;  %3011 = vmatpush.msra.mxu2 %v2192_v22  ;;  %v951_v20 = vld [vmem:[#allocation9 + $0x550] sm:$0xff]  ;;  %v2144_v22 = vld [vmem:[#allocation9 + $0x2a98] sm:$0xff] }
 0x18b   : > { %3034 = vmatpush.msra.mxu3 %v2288_v24  ;;  %2973 = vmatpush.msrb.mxu0 %v1952_v25  ;;  %v2240_v24 = vld [vmem:[#allocation9 + $0x2d98] sm:$0xff]  ;;  %v849_v25 = vld [vmem:[#allocation9 + $0x220] sm:$0xff] }
 0x18c   : > { %2996 = vmatpush.msrb.mxu1 %v2048_v27  ;;  %3012 = vmatpush.msra.mxu2 %v2186_v31  ;;  %v945_v27 = vld [vmem:[#allocation9 + $0x520] sm:$0xff]  ;;  %v2138_v31 = vld [vmem:[#allocation9 + $0x2a68] sm:$0xff] }
 0x18d   : > { %3035 = vmatpush.msra.mxu3 %v2282_v28  ;;  %2974 = vmatpush.msrb.mxu0 %v1946_v29  ;;  %v2234_v28 = vld [vmem:[#allocation9 + $0x2d68] sm:$0xff]  ;;  %v843_v29 = vld [vmem:[#allocation9 + $0x1f0] sm:$0xff] }
 0x18e   : > { %2997 = vmatpush.msrb.mxu1 %v2042_v30  ;;  %3013 = vmatpush.msra.mxu2 %v2180_v39  ;;  %v939_v30 = vld [vmem:[#allocation9 + $0x4f0] sm:$0xff]  ;;  %v2132_v39 = vld [vmem:[#allocation9 + $0x2a38] sm:$0xff] }
 0x18f   : > { %3036 = vmatpush.msra.mxu3 %v2276_v44  ;;  %2975 = vmatpush.msrb.mxu0 %v1940_v45  ;;  %v2228_v44 = vld [vmem:[#allocation9 + $0x2d38] sm:$0xff]  ;;  %v837_v45 = vld [vmem:[#allocation9 + $0x1c0] sm:$0xff] }
 0x190   : > { %2998 = vmatpush.msrb.mxu1 %v2036_v46  ;;  %3014 = vmatpush.msra.mxu2 %v2174_v49  ;;  %v933_v46 = vld [vmem:[#allocation9 + $0x4c0] sm:$0xff]  ;;  %v2126_v49 = vld [vmem:[#allocation9 + $0x2a08] sm:$0xff] }
 0x191   : > { %3037 = vmatpush.msra.mxu3 %v2270_v52  ;;  %2976 = vmatpush.msrb.mxu0 %v1934_v53  ;;  %v2222_v52 = vld [vmem:[#allocation9 + $0x2d08] sm:$0xff]  ;;  %v831_v53 = vld [vmem:[#allocation9 + $0x190] sm:$0xff] }
 0x192   : > { %2999 = vmatpush.msrb.mxu1 %v2030_v54  ;;  %3015 = vmatpush.msra.mxu2 %v2168_v56  ;;  %v927_v54 = vld [vmem:[#allocation9 + $0x490] sm:$0xff]  ;;  %v1065_v56 = vld [vmem:[#allocation9 + $0x8e0] sm:$0xff] }
 0x193   : > { %3038 = vmatpush.msra.mxu3 %v2264_v21  ;;  %2977 = vmatmul.f32.vlgmr.msrb.gmra.mxu0 %v6866_v40  ;;  %v1161_v21 = vld [vmem:[#allocation9 + $0xbe0] sm:$0xff] }
 0x194   : > { %3000 = vmatmul.f32.vlgmr.msrb.gmra.mxu1 %v6869_v43  ;;  %3053 = vmatpush.msra.mxu0 %v873_v58  ;;  %v825_v58 = vld [vmem:[#allocation9 + $0x160] sm:$0xff] }
 0x195   : > { %3076 = vmatpush.msra.mxu1 %v969_v59  ;;  %3016 = vmatpush.msra.mxu2 %v2162_v60  ;;  %v921_v59 = vld [vmem:[#allocation9 + $0x460] sm:$0xff]  ;;  %v1059_v60 = vld [vmem:[#allocation9 + $0x8b0] sm:$0xff] }
 0x196   : > { %3039 = vmatpush.msra.mxu3 %v2258_v33  ;;  %3054 = vmatpush.msra.mxu0 %v867_v61  ;;  %v1155_v33 = vld [vmem:[#allocation9 + $0xbb0] sm:$0xff] }
 0x197   : > { %3077 = vmatpush.msra.mxu1 %v963_v62  ;;  %3017 = vmatpush.msra.mxu2 %v2156_v63  ;;  %v819_v61 = vld [vmem:[#allocation9 + $0x130] sm:$0xff]  ;;  %v1053_v63 = vld [vmem:[#allocation9 + $0x880] sm:$0xff] }
 0x198   : > { %3040 = vmatpush.msra.mxu3 %v2252_v2  ;;  %3055 = vmatpush.msra.mxu0 %v861_v6  ;;  %v915_v62 = vld [vmem:[#allocation9 + $0x430] sm:$0xff]  ;;  %v1149_v2 = vld [vmem:[#allocation9 + $0xb80] sm:$0xff] }
 0x199   : > { %3078 = vmatpush.msra.mxu1 %v957_v11  ;;  %3018 = vmatpush.msra.mxu2 %v2150_v15  ;;  %v813_v6 = vld [vmem:[#allocation9 + $0x100] sm:$0xff]  ;;  %v1047_v15 = vld [vmem:[#allocation9 + $0x850] sm:$0xff] }
 0x19a   : > { %3041 = vmatpush.msra.mxu3 %v2246_v18  ;;  %3056 = vmatpush.msra.mxu0 %v855_v19  ;;  %v909_v11 = vld [vmem:[#allocation9 + $0x400] sm:$0xff]  ;;  %v1143_v18 = vld [vmem:[#allocation9 + $0xb50] sm:$0xff] }
 0x19b   : > { %3079 = vmatpush.msra.mxu1 %v951_v20  ;;  %3019 = vmatpush.msra.mxu2 %v2144_v22  ;;  %v807_v19 = vld [vmem:[#allocation9 + $0xd0] sm:$0xff]  ;;  %v1041_v22 = vld [vmem:[#allocation9 + $0x820] sm:$0xff] }
 0x19c   : > { %3042 = vmatpush.msra.mxu3 %v2240_v24  ;;  %2980 = vmatmul.f32.gmra.mxu0 %v6874_v10  ;;  %v903_v20 = vld [vmem:[#allocation9 + $0x3d0] sm:$0xff]  ;;  %v1137_v24 = vld [vmem:[#allocation9 + $0xb20] sm:$0xff] }
 0x19d   : > { %3003 = vmatmul.f32.gmra.mxu1 %v6877_v12  ;;  %3057 = vmatpush.msra.mxu0 %v849_v25  ;;  %v801_v25 = vld [vmem:[#allocation9 + $0xa0] sm:$0xff] }
 0x19e   : > { %3080 = vmatpush.msra.mxu1 %v945_v27  ;;  %3020 = vmatpush.msra.mxu2 %v2138_v31  ;;  %v897_v27 = vld [vmem:[#allocation9 + $0x3a0] sm:$0xff]  ;;  %v1035_v31 = vld [vmem:[#allocation9 + $0x7f0] sm:$0xff] }
 0x19f   : > { %3043 = vmatpush.msra.mxu3 %v2234_v28  ;;  %3058 = vmatpush.msra.mxu0 %v843_v29  ;;  %v1131_v28 = vld [vmem:[#allocation9 + $0xaf0] sm:$0xff] }
 0x1a0   : > { %3081 = vmatpush.msra.mxu1 %v939_v30  ;;  %3021 = vmatpush.msra.mxu2 %v2132_v39  ;;  %v795_v29 = vld [vmem:[#allocation9 + $0x70] sm:$0xff]  ;;  %v1029_v39 = vld [vmem:[#allocation9 + $0x7c0] sm:$0xff] }
 0x1a1   : > { %3044 = vmatpush.msra.mxu3 %v2228_v44  ;;  %3059 = vmatpush.msra.mxu0 %v837_v45  ;;  %v891_v30 = vld [vmem:[#allocation9 + $0x370] sm:$0xff]  ;;  %v1125_v44 = vld [vmem:[#allocation9 + $0xac0] sm:$0xff] }
 0x1a2   : > { %3082 = vmatpush.msra.mxu1 %v933_v46  ;;  %3022 = vmatpush.msra.mxu2 %v2126_v49  ;;  %v789_v45 = vld [vmem:[#allocation9 + $0x40] sm:$0xff]  ;;  %v1023_v49 = vld [vmem:[#allocation9 + $0x790] sm:$0xff] }
 0x1a3   : > { %3045 = vmatpush.msra.mxu3 %v2222_v52  ;;  %3023 = vmatmul.f32.vlgmr.msra.gmra.mxu2 %v6882_v34  ;;  %v885_v46 = vld [vmem:[#allocation9 + $0x340] sm:$0xff]  ;;  %v1119_v52 = vld [vmem:[#allocation9 + $0xa90] sm:$0xff] }
 0x1a4   : > { %3046 = vmatmul.f32.vlgmr.msra.gmra.mxu3 %v6885_v42  ;;  %3060 = vmatpush.msra.mxu0 %v831_v53  ;;  %v783_v53 = vld [vmem:[#allocation9 + $0x10] sm:$0xff] }
 0x1a5   : > { %3083 = vmatpush.msra.mxu1 %v927_v54  ;;  %3099 = vmatpush.msrb.mxu2 %v1065_v56  ;;  %v879_v54 = vld [vmem:[#allocation9 + $0x310] sm:$0xff]  ;;  %v1017_v56 = vld [vmem:[#allocation9 + $0x760] sm:$0xff] }
 0x1a6   : > { %3122 = vmatpush.msrb.mxu3 %v1161_v21  ;;  %3061 = vmatpush.msra.mxu0 %v825_v58  ;;  %v1113_v21 = vld [vmem:[#allocation9 + $0xa60] sm:$0xff] }
 0x1a7   : > { %3084 = vmatpush.msra.mxu1 %v921_v59  ;;  %3100 = vmatpush.msrb.mxu2 %v1059_v60  ;;  %v1257_v58 = vld [vmem:[#allocation9 + $0xee0] sm:$0xff]  ;;  %v1011_v60 = vld [vmem:[#allocation9 + $0x730] sm:$0xff] }
 0x1a8   : > { %3123 = vmatpush.msrb.mxu3 %v1155_v33  ;;  %3062 = vmatpush.msra.mxu0 %v819_v61  ;;  %v1353_v59 = vld [vmem:[#allocation9 + $0x11e0] sm:$0xff]  ;;  %v1107_v33 = vld [vmem:[#allocation9 + $0xa30] sm:$0xff] }
 0x1a9   : > { %3085 = vmatpush.msra.mxu1 %v915_v62  ;;  %3101 = vmatpush.msrb.mxu2 %v1053_v63  ;;  %v1251_v61 = vld [vmem:[#allocation9 + $0xeb0] sm:$0xff]  ;;  %v1005_v63 = vld [vmem:[#allocation9 + $0x700] sm:$0xff] }
 0x1aa   : > { %3124 = vmatpush.msrb.mxu3 %v1149_v2  ;;  %3063 = vmatpush.msra.mxu0 %v813_v6  ;;  %v1347_v62 = vld [vmem:[#allocation9 + $0x11b0] sm:$0xff]  ;;  %v1101_v2 = vld [vmem:[#allocation9 + $0xa00] sm:$0xff] }
 0x1ab   : > { %3086 = vmatpush.msra.mxu1 %v909_v11  ;;  %3102 = vmatpush.msrb.mxu2 %v1047_v15  ;;  %v1245_v6 = vld [vmem:[#allocation9 + $0xe80] sm:$0xff]  ;;  %v999_v15 = vld [vmem:[#allocation9 + $0x6d0] sm:$0xff] }
 0x1ac   : > { %3125 = vmatpush.msrb.mxu3 %v1143_v18  ;;  %3026 = vmatmul.f32.gmra.mxu2 %v6890_v9  ;;  %v1341_v11 = vld [vmem:[#allocation9 + $0x1180] sm:$0xff]  ;;  %v1095_v18 = vld [vmem:[#allocation9 + $0x9d0] sm:$0xff] }
 0x1ad   : > { %3049 = vmatmul.f32.gmra.mxu3 %v6893_v13  ;;  %3064 = vmatpush.msra.mxu0 %v807_v19  ;;  %v1239_v19 = vld [vmem:[#allocation9 + $0xe50] sm:$0xff] }
 0x1ae   : > { %3087 = vmatpush.msra.mxu1 %v903_v20  ;;  %3103 = vmatpush.msrb.mxu2 %v1041_v22  ;;  %v1335_v20 = vld [vmem:[#allocation9 + $0x1150] sm:$0xff]  ;;  %v993_v22 = vld [vmem:[#allocation9 + $0x6a0] sm:$0xff] }
 0x1af   : > { %3126 = vmatpush.msrb.mxu3 %v1137_v24  ;;  %3065 = vmatpush.msra.mxu0 %v801_v25  ;;  %v1089_v24 = vld [vmem:[#allocation9 + $0x9a0] sm:$0xff] }
 0x1b0   : > { %3088 = vmatpush.msra.mxu1 %v897_v27  ;;  %3104 = vmatpush.msrb.mxu2 %v1035_v31  ;;  %v1233_v25 = vld [vmem:[#allocation9 + $0xe20] sm:$0xff]  ;;  %v987_v31 = vld [vmem:[#allocation9 + $0x670] sm:$0xff] }
 0x1b1   : > { %3127 = vmatpush.msrb.mxu3 %v1131_v28  ;;  %3066 = vmatpush.msra.mxu0 %v795_v29  ;;  %v1329_v27 = vld [vmem:[#allocation9 + $0x1120] sm:$0xff]  ;;  %v1083_v28 = vld [vmem:[#allocation9 + $0x970] sm:$0xff] }
 0x1b2   : > { %3089 = vmatpush.msra.mxu1 %v891_v30  ;;  %3105 = vmatpush.msrb.mxu2 %v1029_v39  ;;  %v1227_v29 = vld [vmem:[#allocation9 + $0xdf0] sm:$0xff]  ;;  %v981_v39 = vld [vmem:[#allocation9 + $0x640] sm:$0xff] }
 0x1b3   : > { %3128 = vmatpush.msrb.mxu3 %v1125_v44  ;;  %3067 = vmatpush.msra.mxu0 %v789_v45  ;;  %v1323_v30 = vld [vmem:[#allocation9 + $0x10f0] sm:$0xff]  ;;  %v1077_v44 = vld [vmem:[#allocation9 + $0x940] sm:$0xff] }
 0x1b4   : > { %3090 = vmatpush.msra.mxu1 %v885_v46  ;;  %3106 = vmatpush.msrb.mxu2 %v1023_v49  ;;  %v1221_v45 = vld [vmem:[#allocation9 + $0xdc0] sm:$0xff]  ;;  %v975_v49 = vld [vmem:[#allocation9 + $0x610] sm:$0xff] }
 0x1b5   : > { %3129 = vmatpush.msrb.mxu3 %v1119_v52  ;;  %3068 = vmatpush.msra.mxu0 %v783_v53  ;;  %v1317_v46 = vld [vmem:[#allocation9 + $0x10c0] sm:$0xff]  ;;  %v1071_v52 = vld [vmem:[#allocation9 + $0x910] sm:$0xff] }
 0x1b6   : > { %3091 = vmatpush.msra.mxu1 %v879_v54  ;;  %3107 = vmatpush.msrb.mxu2 %v1017_v56  ;;  %v1215_v53 = vld [vmem:[#allocation9 + $0xd90] sm:$0xff]  ;;  %v1449_v56 = vld [vmem:[#allocation9 + $0x14e0] sm:$0xff] }
 0x1b7   : > { %3130 = vmatpush.msrb.mxu3 %v1113_v21  ;;  %3069 = vmatmul.f32.vlgmr.msra.gmra.mxu0 %v6768_v23  ;;  %v1311_v54 = vld [vmem:[#allocation9 + $0x1090] sm:$0xff]  ;;  %v1545_v21 = vld [vmem:[#allocation9 + $0x17e0] sm:$0xff] }
 0x1b8   : > { %3092 = vmatmul.f32.vlgmr.msra.gmra.mxu1 %v6771_v26  ;;  %3145 = vmatpush.msrb.mxu0 %v1257_v58  ;;  %v1209_v58 = vld [vmem:[#allocation9 + $0xd60] sm:$0xff] }
 0x1b9   : > { %3168 = vmatpush.msrb.mxu1 %v1353_v59  ;;  %3108 = vmatpush.msrb.mxu2 %v1011_v60  ;;  %v1305_v59 = vld [vmem:[#allocation9 + $0x1060] sm:$0xff]  ;;  %v1443_v60 = vld [vmem:[#allocation9 + $0x14b0] sm:$0xff] }
 0x1ba   : > { %3131 = vmatpush.msrb.mxu3 %v1107_v33  ;;  %3146 = vmatpush.msrb.mxu0 %v1251_v61  ;;  %v1539_v33 = vld [vmem:[#allocation9 + $0x17b0] sm:$0xff] }
 0x1bb   : > { %3169 = vmatpush.msrb.mxu1 %v1347_v62  ;;  %3109 = vmatpush.msrb.mxu2 %v1005_v63  ;;  %v1203_v61 = vld [vmem:[#allocation9 + $0xd30] sm:$0xff]  ;;  %v1437_v63 = vld [vmem:[#allocation9 + $0x1480] sm:$0xff] }
 0x1bc   : > { %3132 = vmatpush.msrb.mxu3 %v1101_v2  ;;  %3147 = vmatpush.msrb.mxu0 %v1245_v6  ;;  %v1299_v62 = vld [vmem:[#allocation9 + $0x1030] sm:$0xff]  ;;  %v1533_v2 = vld [vmem:[#allocation9 + $0x1780] sm:$0xff] }
 0x1bd   : > { %3170 = vmatpush.msrb.mxu1 %v1341_v11  ;;  %3110 = vmatpush.msrb.mxu2 %v999_v15  ;;  %v1197_v6 = vld [vmem:[#allocation9 + $0xd00] sm:$0xff]  ;;  %v1431_v15 = vld [vmem:[#allocation9 + $0x1450] sm:$0xff] }
 0x1be   : > { %3133 = vmatpush.msrb.mxu3 %v1095_v18  ;;  %3148 = vmatpush.msrb.mxu0 %v1239_v19  ;;  %v1293_v11 = vld [vmem:[#allocation9 + $0x1000] sm:$0xff]  ;;  %v1527_v18 = vld [vmem:[#allocation9 + $0x1750] sm:$0xff] }
 0x1bf   : > { %3171 = vmatpush.msrb.mxu1 %v1335_v20  ;;  %3111 = vmatpush.msrb.mxu2 %v993_v22  ;;  %v1191_v19 = vld [vmem:[#allocation9 + $0xcd0] sm:$0xff]  ;;  %v1425_v22 = vld [vmem:[#allocation9 + $0x1420] sm:$0xff] }
 0x1c0   : > { %3134 = vmatpush.msrb.mxu3 %v1089_v24  ;;  %3072 = vmatmul.f32.gmra.mxu0 %v6781_v38  ;;  %v1287_v20 = vld [vmem:[#allocation9 + $0xfd0] sm:$0xff]  ;;  %v1521_v24 = vld [vmem:[#allocation9 + $0x1720] sm:$0xff] }
 0x1c1   : > { %3095 = vmatmul.f32.gmra.mxu1 %v6778_v36  ;;  %3149 = vmatpush.msrb.mxu0 %v1233_v25  ;;  %v1185_v25 = vld [vmem:[#allocation9 + $0xca0] sm:$0xff] }
 0x1c2   : > { %3172 = vmatpush.msrb.mxu1 %v1329_v27  ;;  %3112 = vmatpush.msrb.mxu2 %v987_v31  ;;  %v1281_v27 = vld [vmem:[#allocation9 + $0xfa0] sm:$0xff]  ;;  %v1419_v31 = vld [vmem:[#allocation9 + $0x13f0] sm:$0xff] }
 0x1c3   : > { %3135 = vmatpush.msrb.mxu3 %v1083_v28  ;;  %3150 = vmatpush.msrb.mxu0 %v1227_v29  ;;  %v1515_v28 = vld [vmem:[#allocation9 + $0x16f0] sm:$0xff] }
 0x1c4   : > { %3173 = vmatpush.msrb.mxu1 %v1323_v30  ;;  %3113 = vmatpush.msrb.mxu2 %v981_v39  ;;  %v1179_v29 = vld [vmem:[#allocation9 + $0xc70] sm:$0xff]  ;;  %v1413_v39 = vld [vmem:[#allocation9 + $0x13c0] sm:$0xff] }
 0x1c5   : > { %3136 = vmatpush.msrb.mxu3 %v1077_v44  ;;  %3151 = vmatpush.msrb.mxu0 %v1221_v45  ;;  %v1275_v30 = vld [vmem:[#allocation9 + $0xf70] sm:$0xff]  ;;  %v1509_v44 = vld [vmem:[#allocation9 + $0x16c0] sm:$0xff] }
 0x1c6   : > { %3174 = vmatpush.msrb.mxu1 %v1317_v46  ;;  %3114 = vmatpush.msrb.mxu2 %v975_v49  ;;  %v1173_v45 = vld [vmem:[#allocation9 + $0xc40] sm:$0xff]  ;;  %v1407_v49 = vld [vmem:[#allocation9 + $0x1390] sm:$0xff] }
 0x1c7   : > { %3137 = vmatpush.msrb.mxu3 %v1071_v52  ;;  %3115 = vmatmul.f32.vlgmr.msrb.gmra.mxu2 %v6786_v47  ;;  %v1269_v46 = vld [vmem:[#allocation9 + $0xf40] sm:$0xff]  ;;  %v1503_v52 = vld [vmem:[#allocation9 + $0x1690] sm:$0xff] }
 0x1c8   : > { %3138 = vmatmul.f32.vlgmr.msrb.gmra.mxu3 %v6789_v51  ;;  %3152 = vmatpush.msrb.mxu0 %v1215_v53  ;;  %v1167_v53 = vld [vmem:[#allocation9 + $0xc10] sm:$0xff] }
 0x1c9   : > { %3175 = vmatpush.msrb.mxu1 %v1311_v54  ;;  %3191 = vmatpush.msra.mxu2 %v1449_v56  ;;  %v1263_v54 = vld [vmem:[#allocation9 + $0xf10] sm:$0xff]  ;;  %v1401_v56 = vld [vmem:[#allocation9 + $0x1360] sm:$0xff] }
 0x1ca   : > { %3214 = vmatpush.msra.mxu3 %v1545_v21  ;;  %3153 = vmatpush.msrb.mxu0 %v1209_v58  ;;  %v1497_v21 = vld [vmem:[#allocation9 + $0x1660] sm:$0xff] }
 0x1cb   : > { %3176 = vmatpush.msrb.mxu1 %v1305_v59  ;;  %3192 = vmatpush.msra.mxu2 %v1443_v60  ;;  %v1641_v58 = vld [vmem:[#allocation9 + $0x1ae0] sm:$0xff]  ;;  %v1395_v60 = vld [vmem:[#allocation9 + $0x1330] sm:$0xff] }
 0x1cc   : > { %3215 = vmatpush.msra.mxu3 %v1539_v33  ;;  %3154 = vmatpush.msrb.mxu0 %v1203_v61  ;;  %v1737_v59 = vld [vmem:[#allocation9 + $0x1de0] sm:$0xff]  ;;  %v1491_v33 = vld [vmem:[#allocation9 + $0x1630] sm:$0xff] }
 0x1cd   : > { %3177 = vmatpush.msrb.mxu1 %v1299_v62  ;;  %3193 = vmatpush.msra.mxu2 %v1437_v63  ;;  %v1635_v61 = vld [vmem:[#allocation9 + $0x1ab0] sm:$0xff]  ;;  %v1389_v63 = vld [vmem:[#allocation9 + $0x1300] sm:$0xff] }
 0x1ce   : > { %3216 = vmatpush.msra.mxu3 %v1533_v2  ;;  %3155 = vmatpush.msrb.mxu0 %v1197_v6  ;;  %v1731_v62 = vld [vmem:[#allocation9 + $0x1db0] sm:$0xff]  ;;  %v1485_v2 = vld [vmem:[#allocation9 + $0x1600] sm:$0xff] }
 0x1cf   : > { %3178 = vmatpush.msrb.mxu1 %v1293_v11  ;;  %3194 = vmatpush.msra.mxu2 %v1431_v15  ;;  %v1629_v6 = vld [vmem:[#allocation9 + $0x1a80] sm:$0xff]  ;;  %v1383_v15 = vld [vmem:[#allocation9 + $0x12d0] sm:$0xff] }
 0x1d0   : > { %3217 = vmatpush.msra.mxu3 %v1527_v18  ;;  %3118 = vmatmul.f32.gmra.mxu2 %v6802_v3  ;;  %v1725_v11 = vld [vmem:[#allocation9 + $0x1d80] sm:$0xff]  ;;  %v1479_v18 = vld [vmem:[#allocation9 + $0x15d0] sm:$0xff] }
 0x1d1   : > { %3141 = vmatmul.f32.gmra.mxu3 %v6805_v8  ;;  %3156 = vmatpush.msrb.mxu0 %v1191_v19  ;;  %v1623_v19 = vld [vmem:[#allocation9 + $0x1a50] sm:$0xff] }
 0x1d2   : > { %3179 = vmatpush.msrb.mxu1 %v1287_v20  ;;  %3195 = vmatpush.msra.mxu2 %v1425_v22  ;;  %v1719_v20 = vld [vmem:[#allocation9 + $0x1d50] sm:$0xff]  ;;  %v1377_v22 = vld [vmem:[#allocation9 + $0x12a0] sm:$0xff] }
 0x1d3   : > { %3218 = vmatpush.msra.mxu3 %v1521_v24  ;;  %3157 = vmatpush.msrb.mxu0 %v1185_v25  ;;  %v1473_v24 = vld [vmem:[#allocation9 + $0x15a0] sm:$0xff] }
 0x1d4   : > { %3180 = vmatpush.msrb.mxu1 %v1281_v27  ;;  %3196 = vmatpush.msra.mxu2 %v1419_v31  ;;  %v1617_v25 = vld [vmem:[#allocation9 + $0x1a20] sm:$0xff]  ;;  %v1371_v31 = vld [vmem:[#allocation9 + $0x1270] sm:$0xff] }
 0x1d5   : > { %3219 = vmatpush.msra.mxu3 %v1515_v28  ;;  %3158 = vmatpush.msrb.mxu0 %v1179_v29  ;;  %v1713_v27 = vld [vmem:[#allocation9 + $0x1d20] sm:$0xff]  ;;  %v1467_v28 = vld [vmem:[#allocation9 + $0x1570] sm:$0xff] }
 0x1d6   : > { %3181 = vmatpush.msrb.mxu1 %v1275_v30  ;;  %3197 = vmatpush.msra.mxu2 %v1413_v39  ;;  %v1611_v29 = vld [vmem:[#allocation9 + $0x19f0] sm:$0xff]  ;;  %v1365_v39 = vld [vmem:[#allocation9 + $0x1240] sm:$0xff] }
 0x1d7   : > { %3220 = vmatpush.msra.mxu3 %v1509_v44  ;;  %3159 = vmatpush.msrb.mxu0 %v1173_v45  ;;  %v1707_v30 = vld [vmem:[#allocation9 + $0x1cf0] sm:$0xff]  ;;  %v1461_v44 = vld [vmem:[#allocation9 + $0x1540] sm:$0xff] }
 0x1d8   : > { %3182 = vmatpush.msrb.mxu1 %v1269_v46  ;;  %3198 = vmatpush.msra.mxu2 %v1407_v49  ;;  %v1605_v45 = vld [vmem:[#allocation9 + $0x19c0] sm:$0xff]  ;;  %v1359_v49 = vld [vmem:[#allocation9 + $0x1210] sm:$0xff] }
 0x1d9   : > { %3221 = vmatpush.msra.mxu3 %v1503_v52  ;;  %3160 = vmatpush.msrb.mxu0 %v1167_v53  ;;  %v1701_v46 = vld [vmem:[#allocation9 + $0x1cc0] sm:$0xff]  ;;  %v1455_v52 = vld [vmem:[#allocation9 + $0x1510] sm:$0xff] }
 0x1da   : > { %3183 = vmatpush.msrb.mxu1 %v1263_v54  ;;  %3199 = vmatpush.msra.mxu2 %v1401_v56  ;;  %v1599_v53 = vld [vmem:[#allocation9 + $0x1990] sm:$0xff]  ;;  %v1833_v56 = vld [vmem:[#allocation9 + $0x20e0] sm:$0xff] }
 0x1db   : > { %3222 = vmatpush.msra.mxu3 %v1497_v21  ;;  %3161 = vmatmul.f32.vlgmr.msrb.gmra.mxu0 %v6793_v55  ;;  %v1695_v54 = vld [vmem:[#allocation9 + $0x1c90] sm:$0xff]  ;;  %v1929_v21 = vld [vmem:[#allocation9 + $0x23e0] sm:$0xff] }
 0x1dc   : > { %3184 = vmatmul.f32.vlgmr.msrb.gmra.mxu1 %v6797_v57  ;;  %3237 = vmatpush.msra.mxu0 %v1641_v58  ;;  %v1593_v58 = vld [vmem:[#allocation9 + $0x1960] sm:$0xff] }
 0x1dd   : > { %3260 = vmatpush.msra.mxu1 %v1737_v59  ;;  %3200 = vmatpush.msra.mxu2 %v1395_v60  ;;  %v1689_v59 = vld [vmem:[#allocation9 + $0x1c60] sm:$0xff]  ;;  %v1827_v60 = vld [vmem:[#allocation9 + $0x20b0] sm:$0xff] }
 0x1de   : > { %3223 = vmatpush.msra.mxu3 %v1491_v33  ;;  %3238 = vmatpush.msra.mxu0 %v1635_v61  ;;  %v1923_v33 = vld [vmem:[#allocation9 + $0x23b0] sm:$0xff] }
 0x1df   : > { %3261 = vmatpush.msra.mxu1 %v1731_v62  ;;  %3201 = vmatpush.msra.mxu2 %v1389_v63  ;;  %v1587_v61 = vld [vmem:[#allocation9 + $0x1930] sm:$0xff]  ;;  %v1821_v63 = vld [vmem:[#allocation9 + $0x2080] sm:$0xff] }
 0x1e0   : > { %3224 = vmatpush.msra.mxu3 %v1485_v2  ;;  %3239 = vmatpush.msra.mxu0 %v1629_v6  ;;  %v1683_v62 = vld [vmem:[#allocation9 + $0x1c30] sm:$0xff]  ;;  %v1917_v2 = vld [vmem:[#allocation9 + $0x2380] sm:$0xff] }
 0x1e1   : > { %3262 = vmatpush.msra.mxu1 %v1725_v11  ;;  %3202 = vmatpush.msra.mxu2 %v1383_v15  ;;  %v1581_v6 = vld [vmem:[#allocation9 + $0x1900] sm:$0xff]  ;;  %v1815_v15 = vld [vmem:[#allocation9 + $0x2050] sm:$0xff] }
 0x1e2   : > { %3225 = vmatpush.msra.mxu3 %v1479_v18  ;;  %3240 = vmatpush.msra.mxu0 %v1623_v19  ;;  %v1677_v11 = vld [vmem:[#allocation9 + $0x1c00] sm:$0xff]  ;;  %v1911_v18 = vld [vmem:[#allocation9 + $0x2350] sm:$0xff] }
 0x1e3   : > { %3263 = vmatpush.msra.mxu1 %v1719_v20  ;;  %3203 = vmatpush.msra.mxu2 %v1377_v22  ;;  %v1575_v19 = vld [vmem:[#allocation9 + $0x18d0] sm:$0xff]  ;;  %v1809_v22 = vld [vmem:[#allocation9 + $0x2020] sm:$0xff] }
 0x1e4   : > { %3226 = vmatpush.msra.mxu3 %v1473_v24  ;;  %3164 = vmatmul.f32.gmra.mxu0 %v6809_v16  ;;  %v1671_v20 = vld [vmem:[#allocation9 + $0x1bd0] sm:$0xff]  ;;  %v1905_v24 = vld [vmem:[#allocation9 + $0x2320] sm:$0xff] }
 0x1e5   : > { %3187 = vmatmul.f32.gmra.mxu1 %v6813_v4  ;;  %3241 = vmatpush.msra.mxu0 %v1617_v25  ;;  %v1569_v25 = vld [vmem:[#allocation9 + $0x18a0] sm:$0xff] }
 0x1e6   : > { %3264 = vmatpush.msra.mxu1 %v1713_v27  ;;  %3204 = vmatpush.msra.mxu2 %v1371_v31  ;;  %v1665_v27 = vld [vmem:[#allocation9 + $0x1ba0] sm:$0xff]  ;;  %v1803_v31 = vld [vmem:[#allocation9 + $0x1ff0] sm:$0xff] }
 0x1e7   : > { %3227 = vmatpush.msra.mxu3 %v1467_v28  ;;  %3242 = vmatpush.msra.mxu0 %v1611_v29  ;;  %v1899_v28 = vld [vmem:[#allocation9 + $0x22f0] sm:$0xff] }
 0x1e8   : > { %3265 = vmatpush.msra.mxu1 %v1707_v30  ;;  %3205 = vmatpush.msra.mxu2 %v1365_v39  ;;  %v1563_v29 = vld [vmem:[#allocation9 + $0x1870] sm:$0xff]  ;;  %v1797_v39 = vld [vmem:[#allocation9 + $0x1fc0] sm:$0xff] }
 0x1e9   : > { %3228 = vmatpush.msra.mxu3 %v1461_v44  ;;  %3243 = vmatpush.msra.mxu0 %v1605_v45  ;;  %v1659_v30 = vld [vmem:[#allocation9 + $0x1b70] sm:$0xff]  ;;  %v1893_v44 = vld [vmem:[#allocation9 + $0x22c0] sm:$0xff] }
 0x1ea   : > { %3266 = vmatpush.msra.mxu1 %v1701_v46  ;;  %3206 = vmatpush.msra.mxu2 %v1359_v49  ;;  %v1557_v45 = vld [vmem:[#allocation9 + $0x1840] sm:$0xff]  ;;  %v1791_v49 = vld [vmem:[#allocation9 + $0x1f90] sm:$0xff] }
 0x1eb   : > { %3229 = vmatpush.msra.mxu3 %v1455_v52  ;;  %3207 = vmatmul.f32.vlgmr.msra.gmra.mxu2 %v6818_v32  ;;  %v1653_v46 = vld [vmem:[#allocation9 + $0x1b40] sm:$0xff]  ;;  %v1887_v52 = vld [vmem:[#allocation9 + $0x2290] sm:$0xff] }
 0x1ec   : > { %3230 = vmatmul.f32.vlgmr.msra.gmra.mxu3 %v6821_v35  ;;  %3244 = vmatpush.msra.mxu0 %v1599_v53  ;;  %v1551_v53 = vld [vmem:[#allocation9 + $0x1810] sm:$0xff] }
 0x1ed   : > { %3267 = vmatpush.msra.mxu1 %v1695_v54  ;;  %3283 = vmatpush.msrb.mxu2 %v1833_v56  ;;  %v1647_v54 = vld [vmem:[#allocation9 + $0x1b10] sm:$0xff]  ;;  %v1785_v56 = vld [vmem:[#allocation9 + $0x1f60] sm:$0xff] }
 0x1ee   : > { %3306 = vmatpush.msrb.mxu3 %v1929_v21  ;;  %3245 = vmatpush.msra.mxu0 %v1593_v58  ;;  %v1881_v21 = vld [vmem:[#allocation9 + $0x2260] sm:$0xff] }
 0x1ef   : > { %3268 = vmatpush.msra.mxu1 %v1689_v59  ;;  %3284 = vmatpush.msrb.mxu2 %v1827_v60  ;;  %v2025_v58 = vld [vmem:[#allocation9 + $0x26e0] sm:$0xff]  ;;  %v1779_v60 = vld [vmem:[#allocation9 + $0x1f30] sm:$0xff] }
 0x1f0   : > { %3307 = vmatpush.msrb.mxu3 %v1923_v33  ;;  %3246 = vmatpush.msra.mxu0 %v1587_v61  ;;  %v2121_v59 = vld [vmem:[#allocation9 + $0x29e0] sm:$0xff]  ;;  %v1875_v33 = vld [vmem:[#allocation9 + $0x2230] sm:$0xff] }
 0x1f1   : > { %3269 = vmatpush.msra.mxu1 %v1683_v62  ;;  %3285 = vmatpush.msrb.mxu2 %v1821_v63  ;;  %v2019_v61 = vld [vmem:[#allocation9 + $0x26b0] sm:$0xff]  ;;  %v1773_v63 = vld [vmem:[#allocation9 + $0x1f00] sm:$0xff] }
 0x1f2   : > { %3308 = vmatpush.msrb.mxu3 %v1917_v2  ;;  %3247 = vmatpush.msra.mxu0 %v1581_v6  ;;  %v2115_v62 = vld [vmem:[#allocation9 + $0x29b0] sm:$0xff]  ;;  %v1869_v2 = vld [vmem:[#allocation9 + $0x2200] sm:$0xff] }
 0x1f3   : > { %3270 = vmatpush.msra.mxu1 %v1677_v11  ;;  %3286 = vmatpush.msrb.mxu2 %v1815_v15  ;;  %v2013_v6 = vld [vmem:[#allocation9 + $0x2680] sm:$0xff]  ;;  %v1767_v15 = vld [vmem:[#allocation9 + $0x1ed0] sm:$0xff] }
 0x1f4   : > { %3309 = vmatpush.msrb.mxu3 %v1911_v18  ;;  %3210 = vmatmul.f32.gmra.mxu2 %v6834_v0  ;;  %v2109_v11 = vld [vmem:[#allocation9 + $0x2980] sm:$0xff]  ;;  %v1863_v18 = vld [vmem:[#allocation9 + $0x21d0] sm:$0xff] }
 0x1f5   : > { %3233 = vmatmul.f32.gmra.mxu3 %v6837_v5  ;;  %3248 = vmatpush.msra.mxu0 %v1575_v19  ;;  %v2007_v19 = vld [vmem:[#allocation9 + $0x2650] sm:$0xff] }
 0x1f6   : > { %3271 = vmatpush.msra.mxu1 %v1671_v20  ;;  %3287 = vmatpush.msrb.mxu2 %v1809_v22  ;;  %v2103_v20 = vld [vmem:[#allocation9 + $0x2950] sm:$0xff]  ;;  %v1761_v22 = vld [vmem:[#allocation9 + $0x1ea0] sm:$0xff] }
 0x1f7   : > { %3310 = vmatpush.msrb.mxu3 %v1905_v24  ;;  %3249 = vmatpush.msra.mxu0 %v1569_v25  ;;  %v1857_v24 = vld [vmem:[#allocation9 + $0x21a0] sm:$0xff] }
 0x1f8   : > { %3272 = vmatpush.msra.mxu1 %v1665_v27  ;;  %3288 = vmatpush.msrb.mxu2 %v1803_v31  ;;  %v2001_v25 = vld [vmem:[#allocation9 + $0x2620] sm:$0xff]  ;;  %v1755_v31 = vld [vmem:[#allocation9 + $0x1e70] sm:$0xff] }
 0x1f9   : > { %3311 = vmatpush.msrb.mxu3 %v1899_v28  ;;  %3250 = vmatpush.msra.mxu0 %v1563_v29  ;;  %v2097_v27 = vld [vmem:[#allocation9 + $0x2920] sm:$0xff]  ;;  %v1851_v28 = vld [vmem:[#allocation9 + $0x2170] sm:$0xff] }
 0x1fa   : > { %3273 = vmatpush.msra.mxu1 %v1659_v30  ;;  %3289 = vmatpush.msrb.mxu2 %v1797_v39  ;;  %v1995_v29 = vld [vmem:[#allocation9 + $0x25f0] sm:$0xff]  ;;  %v1749_v39 = vld [vmem:[#allocation9 + $0x1e40] sm:$0xff] }
 0x1fb   : > { %3312 = vmatpush.msrb.mxu3 %v1893_v44  ;;  %3251 = vmatpush.msra.mxu0 %v1557_v45  ;;  %v2091_v30 = vld [vmem:[#allocation9 + $0x28f0] sm:$0xff]  ;;  %v1845_v44 = vld [vmem:[#allocation9 + $0x2140] sm:$0xff] }
 0x1fc   : > { %3274 = vmatpush.msra.mxu1 %v1653_v46  ;;  %3290 = vmatpush.msrb.mxu2 %v1791_v49  ;;  %v1989_v45 = vld [vmem:[#allocation9 + $0x25c0] sm:$0xff]  ;;  %v1743_v49 = vld [vmem:[#allocation9 + $0x1e10] sm:$0xff] }
 0x1fd   : > { %3313 = vmatpush.msrb.mxu3 %v1887_v52  ;;  %3252 = vmatpush.msra.mxu0 %v1551_v53  ;;  %v2085_v46 = vld [vmem:[#allocation9 + $0x28c0] sm:$0xff]  ;;  %v1839_v52 = vld [vmem:[#allocation9 + $0x2110] sm:$0xff] }
 0x1fe   : > { %3275 = vmatpush.msra.mxu1 %v1647_v54  ;;  %3291 = vmatpush.msrb.mxu2 %v1785_v56  ;;  %v1983_v53 = vld [vmem:[#allocation9 + $0x2590] sm:$0xff]  ;;  %v2217_v56 = vld [vmem:[#allocation9 + $0x2ce0] sm:$0xff] }
 0x1ff   : > { %3314 = vmatpush.msrb.mxu3 %v1881_v21  ;;  %3253 = vmatmul.f32.vlgmr.msra.gmra.mxu0 %v6826_v48  ;;  %v2079_v54 = vld [vmem:[#allocation9 + $0x2890] sm:$0xff]  ;;  %v2313_v21 = vld [vmem:[#allocation9 + $0x2fe0] sm:$0xff] }
 0x200   : > { %3276 = vmatmul.f32.vlgmr.msra.gmra.mxu1 %v6829_v50  ;;  %3329 = vmatpush.msrb.mxu0 %v2025_v58  ;;  %v1977_v58 = vld [vmem:[#allocation9 + $0x2560] sm:$0xff] }
 0x201   : > { %3352 = vmatpush.msrb.mxu1 %v2121_v59  ;;  %3292 = vmatpush.msrb.mxu2 %v1779_v60  ;;  %v2073_v59 = vld [vmem:[#allocation9 + $0x2860] sm:$0xff]  ;;  %v2211_v60 = vld [vmem:[#allocation9 + $0x2cb0] sm:$0xff] }
 0x202   : > { %3315 = vmatpush.msrb.mxu3 %v1875_v33  ;;  %3330 = vmatpush.msrb.mxu0 %v2019_v61  ;;  %v2307_v33 = vld [vmem:[#allocation9 + $0x2fb0] sm:$0xff] }
 0x203   : > { %3353 = vmatpush.msrb.mxu1 %v2115_v62  ;;  %3293 = vmatpush.msrb.mxu2 %v1773_v63  ;;  %v1971_v61 = vld [vmem:[#allocation9 + $0x2530] sm:$0xff]  ;;  %v2205_v63 = vld [vmem:[#allocation9 + $0x2c80] sm:$0xff] }
 0x204   : > { %3316 = vmatpush.msrb.mxu3 %v1869_v2  ;;  %3331 = vmatpush.msrb.mxu0 %v2013_v6  ;;  %v2067_v62 = vld [vmem:[#allocation9 + $0x2830] sm:$0xff]  ;;  %v2301_v2 = vld [vmem:[#allocation9 + $0x2f80] sm:$0xff] }
 0x205   : > { %3354 = vmatpush.msrb.mxu1 %v2109_v11  ;;  %3294 = vmatpush.msrb.mxu2 %v1767_v15  ;;  %v1965_v6 = vld [vmem:[#allocation9 + $0x2500] sm:$0xff]  ;;  %v2199_v15 = vld [vmem:[#allocation9 + $0x2c50] sm:$0xff] }
 0x206   : > { %3317 = vmatpush.msrb.mxu3 %v1863_v18  ;;  %3332 = vmatpush.msrb.mxu0 %v2007_v19  ;;  %v2061_v11 = vld [vmem:[#allocation9 + $0x2800] sm:$0xff]  ;;  %v2295_v18 = vld [vmem:[#allocation9 + $0x2f50] sm:$0xff] }
 0x207   : > { %3355 = vmatpush.msrb.mxu1 %v2103_v20  ;;  %3295 = vmatpush.msrb.mxu2 %v1761_v22  ;;  %v1959_v19 = vld [vmem:[#allocation9 + $0x24d0] sm:$0xff]  ;;  %v2193_v22 = vld [vmem:[#allocation9 + $0x2c20] sm:$0xff] }
 0x208   : > { %3318 = vmatpush.msrb.mxu3 %v1857_v24  ;;  %3256 = vmatmul.f32.gmra.mxu0 %v6841_v14  ;;  %v2055_v20 = vld [vmem:[#allocation9 + $0x27d0] sm:$0xff]  ;;  %v2289_v24 = vld [vmem:[#allocation9 + $0x2f20] sm:$0xff] }
 0x209   : > { %3279 = vmatmul.f32.gmra.mxu1 %v6845_v17  ;;  %3333 = vmatpush.msrb.mxu0 %v2001_v25  ;;  %v1953_v25 = vld [vmem:[#allocation9 + $0x24a0] sm:$0xff] }
 0x20a   : > { %3356 = vmatpush.msrb.mxu1 %v2097_v27  ;;  %3296 = vmatpush.msrb.mxu2 %v1755_v31  ;;  %v2049_v27 = vld [vmem:[#allocation9 + $0x27a0] sm:$0xff]  ;;  %v2187_v31 = vld [vmem:[#allocation9 + $0x2bf0] sm:$0xff] }
 0x20b   : > { %3319 = vmatpush.msrb.mxu3 %v1851_v28  ;;  %3334 = vmatpush.msrb.mxu0 %v1995_v29  ;;  %v2283_v28 = vld [vmem:[#allocation9 + $0x2ef0] sm:$0xff] }
 0x20c   : > { %3357 = vmatpush.msrb.mxu1 %v2091_v30  ;;  %3297 = vmatpush.msrb.mxu2 %v1749_v39  ;;  %v1947_v29 = vld [vmem:[#allocation9 + $0x2470] sm:$0xff]  ;;  %v2181_v39 = vld [vmem:[#allocation9 + $0x2bc0] sm:$0xff] }
 0x20d   : > { %3320 = vmatpush.msrb.mxu3 %v1845_v44  ;;  %3335 = vmatpush.msrb.mxu0 %v1989_v45  ;;  %v2043_v30 = vld [vmem:[#allocation9 + $0x2770] sm:$0xff]  ;;  %v2277_v44 = vld [vmem:[#allocation9 + $0x2ec0] sm:$0xff] }
 0x20e   : > { %3358 = vmatpush.msrb.mxu1 %v2085_v46  ;;  %3298 = vmatpush.msrb.mxu2 %v1743_v49  ;;  %v1941_v45 = vld [vmem:[#allocation9 + $0x2440] sm:$0xff]  ;;  %v2175_v49 = vld [vmem:[#allocation9 + $0x2b90] sm:$0xff] }
 0x20f   : > { %3321 = vmatpush.msrb.mxu3 %v1839_v52  ;;  %3299 = vmatmul.f32.vlgmr.msrb.gmra.mxu2 %v6850_v37  ;;  %v2037_v46 = vld [vmem:[#allocation9 + $0x2740] sm:$0xff]  ;;  %v2271_v52 = vld [vmem:[#allocation9 + $0x2e90] sm:$0xff] }
 0x210   : > { %3322 = vmatmul.f32.vlgmr.msrb.gmra.mxu3 %v6853_v41  ;;  %3336 = vmatpush.msrb.mxu0 %v1983_v53  ;;  %v1935_v53 = vld [vmem:[#allocation9 + $0x2410] sm:$0xff] }
 0x211   : > { %3359 = vmatpush.msrb.mxu1 %v2079_v54  ;;  %3375 = vmatpush.msra.mxu2 %v2217_v56  ;;  %v2031_v54 = vld [vmem:[#allocation9 + $0x2710] sm:$0xff]  ;;  %v2169_v56 = vld [vmem:[#allocation9 + $0x2b60] sm:$0xff] }
 0x212   : > { %3398 = vmatpush.msra.mxu3 %v2313_v21  ;;  %3337 = vmatpush.msrb.mxu0 %v1977_v58  ;;  %v2265_v21 = vld [vmem:[#allocation9 + $0x2e60] sm:$0xff]  ;;  %v874_v58 = vld [vmem:[#allocation9 + $0x2e8] sm:$0xff] }
 0x213   : > { %3360 = vmatpush.msrb.mxu1 %v2073_v59  ;;  %3376 = vmatpush.msra.mxu2 %v2211_v60  ;;  %v970_v59 = vld [vmem:[#allocation9 + $0x5e8] sm:$0xff]  ;;  %v2163_v60 = vld [vmem:[#allocation9 + $0x2b30] sm:$0xff] }
 0x214   : > { %3399 = vmatpush.msra.mxu3 %v2307_v33  ;;  %3338 = vmatpush.msrb.mxu0 %v1971_v61  ;;  %v2259_v33 = vld [vmem:[#allocation9 + $0x2e30] sm:$0xff]  ;;  %v868_v61 = vld [vmem:[#allocation9 + $0x2b8] sm:$0xff] }
 0x215   : > { %3361 = vmatpush.msrb.mxu1 %v2067_v62  ;;  %3377 = vmatpush.msra.mxu2 %v2205_v63  ;;  %v964_v62 = vld [vmem:[#allocation9 + $0x5b8] sm:$0xff]  ;;  %v2157_v63 = vld [vmem:[#allocation9 + $0x2b00] sm:$0xff] }
 0x216   : > { %3400 = vmatpush.msra.mxu3 %v2301_v2  ;;  %3339 = vmatpush.msrb.mxu0 %v1965_v6  ;;  %v2253_v2 = vld [vmem:[#allocation9 + $0x2e00] sm:$0xff]  ;;  %v862_v6 = vld [vmem:[#allocation9 + $0x288] sm:$0xff] }
 0x217   : > { %3362 = vmatpush.msrb.mxu1 %v2061_v11  ;;  %3378 = vmatpush.msra.mxu2 %v2199_v15  ;;  %v958_v11 = vld [vmem:[#allocation9 + $0x588] sm:$0xff]  ;;  %v2151_v15 = vld [vmem:[#allocation9 + $0x2ad0] sm:$0xff] }
 0x218   : > { %3401 = vmatpush.msra.mxu3 %v2295_v18  ;;  %3302 = vmatmul.f32.gmra.mxu2 %v6858_v1  ;;  %v2247_v18 = vld [vmem:[#allocation9 + $0x2dd0] sm:$0xff] }
 0x219   : > { %3325 = vmatmul.f32.gmra.mxu3 %v6861_v7  ;;  %3340 = vmatpush.msrb.mxu0 %v1959_v19  ;;  %v856_v19 = vld [vmem:[#allocation9 + $0x258] sm:$0xff] }
 0x21a   : > { %3363 = vmatpush.msrb.mxu1 %v2055_v20  ;;  %3379 = vmatpush.msra.mxu2 %v2193_v22  ;;  %v952_v20 = vld [vmem:[#allocation9 + $0x558] sm:$0xff]  ;;  %v2145_v22 = vld [vmem:[#allocation9 + $0x2aa0] sm:$0xff] }
 0x21b   : > { %3402 = vmatpush.msra.mxu3 %v2289_v24  ;;  %3341 = vmatpush.msrb.mxu0 %v1953_v25  ;;  %v2241_v24 = vld [vmem:[#allocation9 + $0x2da0] sm:$0xff]  ;;  %v850_v25 = vld [vmem:[#allocation9 + $0x228] sm:$0xff] }
 0x21c   : > { %3364 = vmatpush.msrb.mxu1 %v2049_v27  ;;  %3380 = vmatpush.msra.mxu2 %v2187_v31  ;;  %v946_v27 = vld [vmem:[#allocation9 + $0x528] sm:$0xff]  ;;  %v2139_v31 = vld [vmem:[#allocation9 + $0x2a70] sm:$0xff] }
 0x21d   : > { %3403 = vmatpush.msra.mxu3 %v2283_v28  ;;  %3342 = vmatpush.msrb.mxu0 %v1947_v29  ;;  %v2235_v28 = vld [vmem:[#allocation9 + $0x2d70] sm:$0xff]  ;;  %v844_v29 = vld [vmem:[#allocation9 + $0x1f8] sm:$0xff] }
 0x21e   : > { %3365 = vmatpush.msrb.mxu1 %v2043_v30  ;;  %3381 = vmatpush.msra.mxu2 %v2181_v39  ;;  %v940_v30 = vld [vmem:[#allocation9 + $0x4f8] sm:$0xff]  ;;  %v2133_v39 = vld [vmem:[#allocation9 + $0x2a40] sm:$0xff] }
 0x21f   : > { %3404 = vmatpush.msra.mxu3 %v2277_v44  ;;  %3343 = vmatpush.msrb.mxu0 %v1941_v45  ;;  %v2229_v44 = vld [vmem:[#allocation9 + $0x2d40] sm:$0xff]  ;;  %v838_v45 = vld [vmem:[#allocation9 + $0x1c8] sm:$0xff] }
 0x220   : > { %3366 = vmatpush.msrb.mxu1 %v2037_v46  ;;  %3382 = vmatpush.msra.mxu2 %v2175_v49  ;;  %v934_v46 = vld [vmem:[#allocation9 + $0x4c8] sm:$0xff]  ;;  %v2127_v49 = vld [vmem:[#allocation9 + $0x2a10] sm:$0xff] }
 0x221   : > { %3405 = vmatpush.msra.mxu3 %v2271_v52  ;;  %3344 = vmatpush.msrb.mxu0 %v1935_v53  ;;  %v2223_v52 = vld [vmem:[#allocation9 + $0x2d10] sm:$0xff]  ;;  %v832_v53 = vld [vmem:[#allocation9 + $0x198] sm:$0xff] }
 0x222   : > { %3367 = vmatpush.msrb.mxu1 %v2031_v54  ;;  %3383 = vmatpush.msra.mxu2 %v2169_v56  ;;  %v928_v54 = vld [vmem:[#allocation9 + $0x498] sm:$0xff]  ;;  %v1066_v56 = vld [vmem:[#allocation9 + $0x8e8] sm:$0xff] }
 0x223   : > { %3406 = vmatpush.msra.mxu3 %v2265_v21  ;;  %3345 = vmatmul.f32.vlgmr.msrb.gmra.mxu0 %v6866_v40  ;;  %v1162_v21 = vld [vmem:[#allocation9 + $0xbe8] sm:$0xff] }
 0x224   : > { %3368 = vmatmul.f32.vlgmr.msrb.gmra.mxu1 %v6869_v43  ;;  %3421 = vmatpush.msra.mxu0 %v874_v58  ;;  %v826_v58 = vld [vmem:[#allocation9 + $0x168] sm:$0xff] }
 0x225   : > { %3444 = vmatpush.msra.mxu1 %v970_v59  ;;  %3384 = vmatpush.msra.mxu2 %v2163_v60  ;;  %v922_v59 = vld [vmem:[#allocation9 + $0x468] sm:$0xff]  ;;  %v1060_v60 = vld [vmem:[#allocation9 + $0x8b8] sm:$0xff] }
 0x226   : > { %3407 = vmatpush.msra.mxu3 %v2259_v33  ;;  %3422 = vmatpush.msra.mxu0 %v868_v61  ;;  %v1156_v33 = vld [vmem:[#allocation9 + $0xbb8] sm:$0xff] }
 0x227   : > { %3445 = vmatpush.msra.mxu1 %v964_v62  ;;  %3385 = vmatpush.msra.mxu2 %v2157_v63  ;;  %v820_v61 = vld [vmem:[#allocation9 + $0x138] sm:$0xff]  ;;  %v1054_v63 = vld [vmem:[#allocation9 + $0x888] sm:$0xff] }
 0x228   : > { %3408 = vmatpush.msra.mxu3 %v2253_v2  ;;  %3423 = vmatpush.msra.mxu0 %v862_v6  ;;  %v916_v62 = vld [vmem:[#allocation9 + $0x438] sm:$0xff]  ;;  %v1150_v2 = vld [vmem:[#allocation9 + $0xb88] sm:$0xff] }
 0x229   : > { %3446 = vmatpush.msra.mxu1 %v958_v11  ;;  %3386 = vmatpush.msra.mxu2 %v2151_v15  ;;  %v814_v6 = vld [vmem:[#allocation9 + $0x108] sm:$0xff]  ;;  %v1048_v15 = vld [vmem:[#allocation9 + $0x858] sm:$0xff] }
 0x22a   : > { %3409 = vmatpush.msra.mxu3 %v2247_v18  ;;  %3424 = vmatpush.msra.mxu0 %v856_v19  ;;  %v910_v11 = vld [vmem:[#allocation9 + $0x408] sm:$0xff]  ;;  %v1144_v18 = vld [vmem:[#allocation9 + $0xb58] sm:$0xff] }
 0x22b   : > { %3447 = vmatpush.msra.mxu1 %v952_v20  ;;  %3387 = vmatpush.msra.mxu2 %v2145_v22  ;;  %v808_v19 = vld [vmem:[#allocation9 + $0xd8] sm:$0xff]  ;;  %v1042_v22 = vld [vmem:[#allocation9 + $0x828] sm:$0xff] }
 0x22c   : > { %3410 = vmatpush.msra.mxu3 %v2241_v24  ;;  %3348 = vmatmul.f32.gmra.mxu0 %v6874_v10  ;;  %v904_v20 = vld [vmem:[#allocation9 + $0x3d8] sm:$0xff]  ;;  %v1138_v24 = vld [vmem:[#allocation9 + $0xb28] sm:$0xff] }
 0x22d   : > { %3371 = vmatmul.f32.gmra.mxu1 %v6877_v12  ;;  %3425 = vmatpush.msra.mxu0 %v850_v25  ;;  %v802_v25 = vld [vmem:[#allocation9 + $0xa8] sm:$0xff] }
 0x22e   : > { %3448 = vmatpush.msra.mxu1 %v946_v27  ;;  %3388 = vmatpush.msra.mxu2 %v2139_v31  ;;  %v898_v27 = vld [vmem:[#allocation9 + $0x3a8] sm:$0xff]  ;;  %v1036_v31 = vld [vmem:[#allocation9 + $0x7f8] sm:$0xff] }
 0x22f   : > { %3411 = vmatpush.msra.mxu3 %v2235_v28  ;;  %3426 = vmatpush.msra.mxu0 %v844_v29  ;;  %v1132_v28 = vld [vmem:[#allocation9 + $0xaf8] sm:$0xff] }
 0x230   : > { %3449 = vmatpush.msra.mxu1 %v940_v30  ;;  %3389 = vmatpush.msra.mxu2 %v2133_v39  ;;  %v796_v29 = vld [vmem:[#allocation9 + $0x78] sm:$0xff]  ;;  %v1030_v39 = vld [vmem:[#allocation9 + $0x7c8] sm:$0xff] }
 0x231   : > { %3412 = vmatpush.msra.mxu3 %v2229_v44  ;;  %3427 = vmatpush.msra.mxu0 %v838_v45  ;;  %v892_v30 = vld [vmem:[#allocation9 + $0x378] sm:$0xff]  ;;  %v1126_v44 = vld [vmem:[#allocation9 + $0xac8] sm:$0xff] }
 0x232   : > { %3450 = vmatpush.msra.mxu1 %v934_v46  ;;  %3390 = vmatpush.msra.mxu2 %v2127_v49  ;;  %v790_v45 = vld [vmem:[#allocation9 + $0x48] sm:$0xff]  ;;  %v1024_v49 = vld [vmem:[#allocation9 + $0x798] sm:$0xff] }
 0x233   : > { %3413 = vmatpush.msra.mxu3 %v2223_v52  ;;  %3391 = vmatmul.f32.vlgmr.msra.gmra.mxu2 %v6882_v34  ;;  %v886_v46 = vld [vmem:[#allocation9 + $0x348] sm:$0xff]  ;;  %v1120_v52 = vld [vmem:[#allocation9 + $0xa98] sm:$0xff] }
 0x234   : > { %3414 = vmatmul.f32.vlgmr.msra.gmra.mxu3 %v6885_v42  ;;  %3428 = vmatpush.msra.mxu0 %v832_v53  ;;  %v784_v53 = vld [vmem:[#allocation9 + $0x18] sm:$0xff] }
 0x235   : > { %3451 = vmatpush.msra.mxu1 %v928_v54  ;;  %3467 = vmatpush.msrb.mxu2 %v1066_v56  ;;  %v880_v54 = vld [vmem:[#allocation9 + $0x318] sm:$0xff]  ;;  %v1018_v56 = vld [vmem:[#allocation9 + $0x768] sm:$0xff] }
 0x236   : > { %3490 = vmatpush.msrb.mxu3 %v1162_v21  ;;  %3429 = vmatpush.msra.mxu0 %v826_v58  ;;  %v1114_v21 = vld [vmem:[#allocation9 + $0xa68] sm:$0xff] }
 0x237   : > { %3452 = vmatpush.msra.mxu1 %v922_v59  ;;  %3468 = vmatpush.msrb.mxu2 %v1060_v60  ;;  %v1258_v58 = vld [vmem:[#allocation9 + $0xee8] sm:$0xff]  ;;  %v6963_v59 = vpop.f32.mrf.mxu0 }
 0x238   : > { %3491 = vmatpush.msrb.mxu3 %v1156_v33  ;;  %3430 = vmatpush.msra.mxu0 %v820_v61  ;;  %v1354_v60 = vld [vmem:[#allocation9 + $0x11e8] sm:$0xff]  ;;  %v1012_v33 = vld [vmem:[#allocation9 + $0x738] sm:$0xff]  ;;  %v6965_v61 = vpop.f32.mrf.mxu1 }
 0x239   : > { %3453 = vmatpush.msra.mxu1 %v916_v62  ;;  %3469 = vmatpush.msrb.mxu2 %v1054_v63  ;;  %v1108_v62 = vld [vmem:[#allocation9 + $0xa38] sm:$0xff] }
 0x23a   : > { %3492 = vmatpush.msrb.mxu3 %v1150_v2  ;;  %3431 = vmatpush.msra.mxu0 %v814_v6  ;;  %v1252_v63 = vld [vmem:[#allocation9 + $0xeb8] sm:$0xff]  ;;  %v1006_v6 = vld [vmem:[#allocation9 + $0x708] sm:$0xff] }
 0x23b   : > { %3454 = vmatpush.msra.mxu1 %v910_v11  ;;  %3470 = vmatpush.msrb.mxu2 %v1048_v15  ;;  %v1348_v2 = vld [vmem:[#allocation9 + $0x11b8] sm:$0xff]  ;;  %v1102_v11 = vld [vmem:[#allocation9 + $0xa08] sm:$0xff] }
 0x23c   : > { %3493 = vmatpush.msrb.mxu3 %v1144_v18  ;;  %3394 = vmatmul.f32.gmra.mxu2 %v6890_v9  ;;  %v1246_v15 = vld [vmem:[#allocation9 + $0xe88] sm:$0xff] }
 0x23d   : > { %3417 = vmatmul.f32.gmra.mxu3 %v6893_v13  ;;  %3432 = vmatpush.msra.mxu0 %v808_v19  ;;  %v1342_v18 = vld [vmem:[#allocation9 + $0x1188] sm:$0xff]  ;;  %v1000_v19 = vld [vmem:[#allocation9 + $0x6d8] sm:$0xff] }
 0x23e   : > { %3455 = vmatpush.msra.mxu1 %v904_v20  ;;  %3471 = vmatpush.msrb.mxu2 %v1042_v22  ;;  %v1096_v20 = vld [vmem:[#allocation9 + $0x9d8] sm:$0xff] }
 0x23f   : > { %3494 = vmatpush.msrb.mxu3 %v1138_v24  ;;  %3433 = vmatpush.msra.mxu0 %v802_v25  ;;  %v1240_v22 = vld [vmem:[#allocation9 + $0xe58] sm:$0xff]  ;;  %v994_v25 = vld [vmem:[#allocation9 + $0x6a8] sm:$0xff] }
 0x240   : > { %3456 = vmatpush.msra.mxu1 %v898_v27  ;;  %3472 = vmatpush.msrb.mxu2 %v1036_v31  ;;  %v1336_v24 = vld [vmem:[#allocation9 + $0x1158] sm:$0xff]  ;;  %v1090_v27 = vld [vmem:[#allocation9 + $0x9a8] sm:$0xff] }
 0x241   : > { %3495 = vmatpush.msrb.mxu3 %v1132_v28  ;;  %3434 = vmatpush.msra.mxu0 %v796_v29  ;;  %v1234_v31 = vld [vmem:[#allocation9 + $0xe28] sm:$0xff]  ;;  %v988_v29 = vld [vmem:[#allocation9 + $0x678] sm:$0xff] }
 0x242   : > { %3457 = vmatpush.msra.mxu1 %v892_v30  ;;  %3473 = vmatpush.msrb.mxu2 %v1030_v39  ;;  %v1330_v28 = vld [vmem:[#allocation9 + $0x1128] sm:$0xff]  ;;  %v6969_v30 = vpop.f32.mrf.mxu0  ;;  %v1084_v39 = vld [vmem:[#allocation9 + $0x978] sm:$0xff] }
 0x243   : > { %3496 = vmatpush.msrb.mxu3 %v1126_v44  ;;  %3435 = vmatpush.msra.mxu0 %v790_v45  ;;  %v1228_v44 = vld [vmem:[#allocation9 + $0xdf8] sm:$0xff]  ;;  %v6972_v45 = vpop.f32.mrf.mxu1 }
 0x244   : > { %3458 = vmatpush.msra.mxu1 %v886_v46  ;;  %3474 = vmatpush.msrb.mxu2 %v1024_v49  ;;  %v1324_v46 = vld [vmem:[#allocation9 + $0x10f8] sm:$0xff]  ;;  %v982_v49 = vld [vmem:[#allocation9 + $0x648] sm:$0xff] }
 0x245   : > { %3497 = vmatpush.msrb.mxu3 %v1120_v52  ;;  %3436 = vmatpush.msra.mxu0 %v784_v53  ;;  %v1078_v52 = vld [vmem:[#allocation9 + $0x948] sm:$0xff] }
 0x246   : > { %3459 = vmatpush.msra.mxu1 %v880_v54  ;;  %3475 = vmatpush.msrb.mxu2 %v1018_v56  ;;  %v1222_v53 = vld [vmem:[#allocation9 + $0xdc8] sm:$0xff]  ;;  %v6535_v54 = vmov 2  }
 0x247   : > { %3498 = vmatpush.msrb.mxu3 %v1114_v21  ;;  %3437 = vmatmul.f32.vlgmr.msra.gmra.mxu0 %v6768_v23  ;;  %v1318_v56 = vld [vmem:[#allocation9 + $0x10c8] sm:$0xff]  ;;  %v976_v21 = vld [vmem:[#allocation9 + $0x618] sm:$0xff] }
 0x248   : > { %3460 = vmatmul.f32.vlgmr.msra.gmra.mxu1 %v6771_v26  ;;  %3513 = vmatpush.msrb.mxu0 %v1258_v58  ;;  %v1072_v58 = vld [vmem:[#allocation9 + $0x918] sm:$0xff] }
 0x249   : > { %3536 = vmatpush.msrb.mxu1 %v1354_v60  ;;  %3476 = vmatpush.msrb.mxu2 %v1012_v33  ;;  %v6296_v60 = vld [vmem:[#allocation4 + $0x8] sm:$0xff]  ;;  %v1216_v33 = vld [vmem:[#allocation9 + $0xd98] sm:$0xff] }
 0x24a   : > { %3499 = vmatpush.msrb.mxu3 %v1108_v62  ;;  %3514 = vmatpush.msrb.mxu0 %v1252_v63  ;;  %v6976_v62 = vpop.f32.mrf.mxu2  ;;  %v1312_v63 = vld [vmem:[#allocation9 + $0x1098] sm:$0xff] }
 0x24b   : > { %3537 = vmatpush.msrb.mxu1 %v1348_v2  ;;  %3477 = vmatpush.msrb.mxu2 %v1006_v6  ;;  %v1450_v2 = vld [vmem:[#allocation9 + $0x14e8] sm:$0xff]  ;;  %v6978_v6 = vpop.f32.mrf.mxu3 }
 0x24c   : > { %3500 = vmatpush.msrb.mxu3 %v1102_v11  ;;  %3515 = vmatpush.msrb.mxu0 %v1246_v15  ;;  %v1546_v11 = vld [vmem:[#allocation9 + $0x17e8] sm:$0xff] }
 0x24d   : > { %3538 = vmatpush.msrb.mxu1 %v1342_v18  ;;  %3478 = vmatpush.msrb.mxu2 %v1000_v19  ;;  %v1210_v15 = vld [vmem:[#allocation9 + $0xd68] sm:$0xff]  ;;  %v1444_v19 = vld [vmem:[#allocation9 + $0x14b8] sm:$0xff] }
 0x24e   : > { %3501 = vmatpush.msrb.mxu3 %v1096_v20  ;;  %3516 = vmatpush.msrb.mxu0 %v1240_v22  ;;  %v1306_v18 = vld [vmem:[#allocation9 + $0x1068] sm:$0xff]  ;;  %v1540_v20 = vld [vmem:[#allocation9 + $0x17b8] sm:$0xff] }
 0x24f   : > { %3539 = vmatpush.msrb.mxu1 %v1336_v24  ;;  %3479 = vmatpush.msrb.mxu2 %v994_v25  ;;  %v1204_v22 = vld [vmem:[#allocation9 + $0xd38] sm:$0xff]  ;;  %v1438_v25 = vld [vmem:[#allocation9 + $0x1488] sm:$0xff] }
 0x250   : > { %3502 = vmatpush.msrb.mxu3 %v1090_v27  ;;  %3440 = vmatmul.f32.gmra.mxu0 %v6781_v38  ;;  %v1300_v24 = vld [vmem:[#allocation9 + $0x1038] sm:$0xff]  ;;  %v1534_v27 = vld [vmem:[#allocation9 + $0x1788] sm:$0xff] }
 0x251   : > { %3463 = vmatmul.f32.gmra.mxu1 %v6778_v36  ;;  %3517 = vmatpush.msrb.mxu0 %v1234_v31  ;;  %v1198_v31 = vld [vmem:[#allocation9 + $0xd08] sm:$0xff] }
 0x252   : > { %3540 = vmatpush.msrb.mxu1 %v1330_v28  ;;  %3480 = vmatpush.msrb.mxu2 %v988_v29  ;;  %v1294_v28 = vld [vmem:[#allocation9 + $0x1008] sm:$0xff]  ;;  %v1432_v29 = vld [vmem:[#allocation9 + $0x1458] sm:$0xff] }
 0x253   : > { %3503 = vmatpush.msrb.mxu3 %v1084_v39  ;;  %3518 = vmatpush.msrb.mxu0 %v1228_v44  ;;  %v1528_v39 = vld [vmem:[#allocation9 + $0x1758] sm:$0xff] }
 0x254   : > { %3541 = vmatpush.msrb.mxu1 %v1324_v46  ;;  %6286 = vset.pattern.permute.xlu1 %v6535_v54  ;;  %v1192_v44 = vld [vmem:[#allocation9 + $0xcd8] sm:$0xff] }
 0x255   : > { %3481 = vmatpush.msrb.mxu2 %v982_v49  ;;  %3504 = vmatpush.msrb.mxu3 %v1078_v52  ;;  %v1288_v46 = vld [vmem:[#allocation9 + $0xfd8] sm:$0xff]  ;;  %v1426_v49 = vld [vmem:[#allocation9 + $0x1428] sm:$0xff]  ;;  %v6982_v52 = vpop.f32.mrf.mxu2 }
 0x256   : > { %4542 = vperm.xlu1 %6286, %v6296_v60   ;;  %3519 = vmatpush.msrb.mxu0 %v1222_v53  ;;  %v1522_v53 = vld [vmem:[#allocation9 + $0x1728] sm:$0xff]  ;;  %v1420_v60 = vld [vmem:[#allocation9 + $0x13f8] sm:$0xff] }
 0x257   : > { %3542 = vmatpush.msrb.mxu1 %v1318_v56  ;;  %3482 = vmatpush.msrb.mxu2 %v976_v21  ;;  %v1186_v56 = vld [vmem:[#allocation9 + $0xca8] sm:$0xff]  ;;  %v6985_v21 = vpop.f32.mrf.mxu3 }
 0x258   : > { %3505 = vmatpush.msrb.mxu3 %v1072_v58  ;;  %3483 = vmatmul.f32.vlgmr.msrb.gmra.mxu2 %v6786_v47  ;;  %v1282_v58 = vld [vmem:[#allocation9 + $0xfa8] sm:$0xff] }
 0x259   : > { %3506 = vmatmul.f32.vlgmr.msrb.gmra.mxu3 %v6789_v51  ;;  %3520 = vmatpush.msrb.mxu0 %v1216_v33  ;;  %v1516_v33 = vld [vmem:[#allocation9 + $0x16f8] sm:$0xff] }
 0x25a   : > { %3543 = vmatpush.msrb.mxu1 %v1312_v63  ;;  %3559 = vmatpush.msra.mxu2 %v1450_v2  ;;  %v1180_v63 = vld [vmem:[#allocation9 + $0xc78] sm:$0xff] }
 0x25b   : > { %3582 = vmatpush.msra.mxu3 %v1546_v11  ;;  %3521 = vmatpush.msrb.mxu0 %v1210_v15  ;;  %v1276_v2 = vld [vmem:[#allocation9 + $0xf78] sm:$0xff]  ;;  %v1414_v11 = vld [vmem:[#allocation9 + $0x13c8] sm:$0xff] }
 0x25c   : > { %3544 = vmatpush.msrb.mxu1 %v1306_v18  ;;  %3560 = vmatpush.msra.mxu2 %v1444_v19  ;;  %v1510_v15 = vld [vmem:[#allocation9 + $0x16c8] sm:$0xff] }
 0x25d   : > { %3583 = vmatpush.msra.mxu3 %v1540_v20  ;;  %3522 = vmatpush.msrb.mxu0 %v1204_v22  ;;  %v1174_v18 = vld [vmem:[#allocation9 + $0xc48] sm:$0xff]  ;;  %v1408_v20 = vld [vmem:[#allocation9 + $0x1398] sm:$0xff] }
 0x25e   : > { %3545 = vmatpush.msrb.mxu1 %v1300_v24  ;;  %3561 = vmatpush.msra.mxu2 %v1438_v25  ;;  %v1270_v19 = vld [vmem:[#allocation9 + $0xf48] sm:$0xff]  ;;  %v1504_v22 = vld [vmem:[#allocation9 + $0x1698] sm:$0xff]  ;;  %v6297_v25 = vld [vmem:[#allocation4] sm:$0xff] }
 0x25f   : > { %3584 = vmatpush.msra.mxu3 %v1534_v27  ;;  %3523 = vmatpush.msrb.mxu0 %v1198_v31  ;;  %v1168_v24 = vld [vmem:[#allocation9 + $0xc18] sm:$0xff]  ;;  %v1402_v31 = vld [vmem:[#allocation9 + $0x1368] sm:$0xff] }
 0x260   : > { %3546 = vmatpush.msrb.mxu1 %v1294_v28  ;;  %3562 = vmatpush.msra.mxu2 %v1432_v29  ;;  %v1264_v27 = vld [vmem:[#allocation9 + $0xf18] sm:$0xff]  ;;  %v1498_v28 = vld [vmem:[#allocation9 + $0x1668] sm:$0xff] }
 0x261   : > { %3585 = vmatpush.msra.mxu3 %v1528_v39  ;;  %3486 = vmatmul.f32.gmra.mxu2 %v6802_v3  ;;  %v1642_v29 = vld [vmem:[#allocation9 + $0x1ae8] sm:$0xff]  ;;  %v6989_v39 = vpop.f32.mrf.mxu0 }
 0x262   : > { %3509 = vmatmul.f32.gmra.mxu3 %v6805_v8  ;;  %3524 = vmatpush.msrb.mxu0 %v1192_v44  ;;  %7893 = vst [vmem:[#allocation42_spill] sm:$0xff] %v6989_v39  ;;  %v1738_v44 = vld [vmem:[#allocation9 + $0x1de8] sm:$0xff] }
 0x263   : > { %3547 = vmatpush.msrb.mxu1 %v1288_v46  ;;  %3563 = vmatpush.msra.mxu2 %v1426_v49  ;;  %v1396_v46 = vld [vmem:[#allocation9 + $0x1338] sm:$0xff] }
 0x264   : > { %3586 = vmatpush.msra.mxu3 %v1522_v53  ;;  %3525 = vmatpush.msrb.mxu0 %v1186_v56  ;;  %v1492_v49 = vld [vmem:[#allocation9 + $0x1638] sm:$0xff] }
 0x265   : > { %3548 = vmatpush.msrb.mxu1 %v1282_v58  ;;  %3564 = vmatpush.msra.mxu2 %v1420_v60  ;;  %v1636_v53 = vld [vmem:[#allocation9 + $0x1ab8] sm:$0xff]  ;;  %v1390_v58 = vld [vmem:[#allocation9 + $0x1308] sm:$0xff] }
 0x266   : > { %3587 = vmatpush.msra.mxu3 %v1516_v33  ;;  %3526 = vmatpush.msrb.mxu0 %v1180_v63  ;;  %v1732_v56 = vld [vmem:[#allocation9 + $0x1db8] sm:$0xff]  ;;  %v1486_v60 = vld [vmem:[#allocation9 + $0x1608] sm:$0xff] }
 0x267   : > { %3549 = vmatpush.msrb.mxu1 %v1276_v2  ;;  %3565 = vmatpush.msra.mxu2 %v1414_v11  ;;  %v1630_v33 = vld [vmem:[#allocation9 + $0x1a88] sm:$0xff]  ;;  %v1384_v2 = vld [vmem:[#allocation9 + $0x12d8] sm:$0xff] }
 0x268   : > { %3588 = vmatpush.msra.mxu3 %v1510_v15  ;;  %6288 = vset.pattern.permute.xlu2 %v6535_v54  ;;  %v6991_v54 = vpop.f32.mrf.mxu1  ;;  %v1726_v63 = vld [vmem:[#allocation9 + $0x1d88] sm:$0xff]  ;;  %v1480_v11 = vld [vmem:[#allocation9 + $0x15d8] sm:$0xff] }
 0x269   : > { %4538 = vperm.xlu2 %6288, %v6297_v25   ;;  %3527 = vmatpush.msrb.mxu0 %v1174_v18  ;;  %7894 = vst [vmem:[#allocation43_spill] sm:$0xff] %v6991_v54  ;;  %v1624_v15 = vld [vmem:[#allocation9 + $0x1a58] sm:$0xff] }
 0x26a   : > { %3550 = vmatpush.msrb.mxu1 %v1270_v19  ;;  %3566 = vmatpush.msra.mxu2 %v1408_v20  ;;  %v1720_v18 = vld [vmem:[#allocation9 + $0x1d58] sm:$0xff]  ;;  %v1378_v19 = vld [vmem:[#allocation9 + $0x12a8] sm:$0xff] }
 0x26b   : > { %3589 = vmatpush.msra.mxu3 %v1504_v22  ;;  %3528 = vmatpush.msrb.mxu0 %v1168_v24  ;;  %v1474_v20 = vld [vmem:[#allocation9 + $0x15a8] sm:$0xff]  ;;  %v1372_v25 = vld [vmem:[#allocation9 + $0x1278] sm:$0xff] }
 0x26c   : > { %3551 = vmatpush.msrb.mxu1 %v1264_v27  ;;  %3567 = vmatpush.msra.mxu2 %v1402_v31  ;;  %v1618_v22 = vld [vmem:[#allocation9 + $0x1a28] sm:$0xff]  ;;  %v6995_v27 = vpop.f32.mrf.mxu0  ;;  %v1468_v31 = vld [vmem:[#allocation9 + $0x1578] sm:$0xff] }
 0x26d   : > { %3590 = vmatpush.msra.mxu3 %v1498_v28  ;;  %3529 = vmatmul.f32.vlgmr.msrb.gmra.mxu0 %v6793_v55  ;;  %v1714_v24 = vld [vmem:[#allocation9 + $0x1d28] sm:$0xff]  ;;  %v1612_v28 = vld [vmem:[#allocation9 + $0x19f8] sm:$0xff] }
 0x26e   : > { %3552 = vmatmul.f32.vlgmr.msrb.gmra.mxu1 %v6797_v57  ;;  %3605 = vmatpush.msra.mxu0 %v1642_v29 }
 0x26f   : > { %3628 = vmatpush.msra.mxu1 %v1738_v44  ;;  %3568 = vmatpush.msra.mxu2 %v1396_v46  ;;  %v1708_v44 = vld [vmem:[#allocation9 + $0x1cf8] sm:$0xff]  ;;  %v1366_v46 = vld [vmem:[#allocation9 + $0x1248] sm:$0xff] }
 0x270   : > { %3591 = vmatpush.msra.mxu3 %v1492_v49  ;;  %3606 = vmatpush.msra.mxu0 %v1636_v53  ;;  %v6998_v29 = vpop.f32.mrf.mxu1  ;;  %v1462_v49 = vld [vmem:[#allocation9 + $0x1548] sm:$0xff] }
 0x271   : > { %3629 = vmatpush.msra.mxu1 %v1732_v56  ;;  %3569 = vmatpush.msra.mxu2 %v1390_v58  ;;  %7895 = vst [vmem:[#allocation44_spill] sm:$0xff] %v6998_v29  ;;  %v1606_v53 = vld [vmem:[#allocation9 + $0x19c8] sm:$0xff]  ;;  %v1360_v58 = vld [vmem:[#allocation9 + $0x1218] sm:$0xff]  ;;  %v2009_v29 = vld [vmem:[#allocation9 + $0x2660] sm:$0xff] }
 0x272   : > { %3592 = vmatpush.msra.mxu3 %v1486_v60  ;;  %3607 = vmatpush.msra.mxu0 %v1630_v33  ;;  %v1702_v56 = vld [vmem:[#allocation9 + $0x1cc8] sm:$0xff]  ;;  %v1456_v60 = vld [vmem:[#allocation9 + $0x1518] sm:$0xff] }
 0x273   : > { %3630 = vmatpush.msra.mxu1 %v1726_v63  ;;  %3570 = vmatpush.msra.mxu2 %v1384_v2  ;;  %v1600_v33 = vld [vmem:[#allocation9 + $0x1998] sm:$0xff]  ;;  %v7001_v63 = vpop.f32.mrf.mxu2 }
 0x274   : > { %3593 = vmatpush.msra.mxu3 %v1480_v11  ;;  %3608 = vmatpush.msra.mxu0 %v1624_v15  ;;  %7896 = vst [vmem:[#allocation45_spill] sm:$0xff] %v7001_v63  ;;  %v1696_v2 = vld [vmem:[#allocation9 + $0x1c98] sm:$0xff]  ;;  %v1834_v11 = vld [vmem:[#allocation9 + $0x20e8] sm:$0xff]  ;;  %v7003_v15 = vpop.f32.mrf.mxu3  ;;  %v1793_v63 = vld [vmem:[#allocation9 + $0x1fa0] sm:$0xff] }
 0x275   : > { %3631 = vmatpush.msra.mxu1 %v1720_v18  ;;  %3571 = vmatpush.msra.mxu2 %v1378_v19  ;;  %7897 = vst [vmem:[#allocation46_spill] sm:$0xff] %v7003_v15  ;;  %v1930_v18 = vld [vmem:[#allocation9 + $0x23e8] sm:$0xff] }
 0x276   : > { %3594 = vmatpush.msra.mxu3 %v1474_v20  ;;  %3532 = vmatmul.f32.gmra.mxu0 %v6809_v16  ;;  %v1594_v19 = vld [vmem:[#allocation9 + $0x1968] sm:$0xff] }
 0x277   : > { %3555 = vmatmul.f32.gmra.mxu1 %v6813_v4  ;;  %3609 = vmatpush.msra.mxu0 %v1618_v22  ;;  %v1690_v20 = vld [vmem:[#allocation9 + $0x1c68] sm:$0xff]  ;;  %v1828_v22 = vld [vmem:[#allocation9 + $0x20b8] sm:$0xff] }
 0x278   : > { %3632 = vmatpush.msra.mxu1 %v1714_v24  ;;  %3572 = vmatpush.msra.mxu2 %v1372_v25  ;;  %v1924_v24 = vld [vmem:[#allocation9 + $0x23b8] sm:$0xff] }
 0x279   : > { %3595 = vmatpush.msra.mxu3 %v1468_v31  ;;  %3610 = vmatpush.msra.mxu0 %v1612_v28  ;;  %v1588_v25 = vld [vmem:[#allocation9 + $0x1938] sm:$0xff]  ;;  %v1822_v28 = vld [vmem:[#allocation9 + $0x2088] sm:$0xff] }
 0x27a   : > { %3633 = vmatpush.msra.mxu1 %v1708_v44  ;;  %3573 = vmatpush.msra.mxu2 %v1366_v46  ;;  %v1684_v31 = vld [vmem:[#allocation9 + $0x1c38] sm:$0xff]  ;;  %v1918_v44 = vld [vmem:[#allocation9 + $0x2388] sm:$0xff] }
 0x27b   : > { %3596 = vmatpush.msra.mxu3 %v1462_v49  ;;  %3611 = vmatpush.msra.mxu0 %v1606_v53  ;;  %v1582_v46 = vld [vmem:[#allocation9 + $0x1908] sm:$0xff]  ;;  %v1816_v53 = vld [vmem:[#allocation9 + $0x2058] sm:$0xff] }
 0x27c   : > { %3634 = vmatpush.msra.mxu1 %v1702_v56  ;;  %3574 = vmatpush.msra.mxu2 %v1360_v58  ;;  %v1678_v49 = vld [vmem:[#allocation9 + $0x1c08] sm:$0xff]  ;;  %v1912_v56 = vld [vmem:[#allocation9 + $0x2358] sm:$0xff] }
 0x27d   : > { %3597 = vmatpush.msra.mxu3 %v1456_v60  ;;  %3575 = vmatmul.f32.vlgmr.msra.gmra.mxu2 %v6818_v32  ;;  %v1576_v58 = vld [vmem:[#allocation9 + $0x18d8] sm:$0xff] }
 0x27e   : > { %3598 = vmatmul.f32.vlgmr.msra.gmra.mxu3 %v6821_v35  ;;  %3612 = vmatpush.msra.mxu0 %v1600_v33  ;;  %v1672_v60 = vld [vmem:[#allocation9 + $0x1bd8] sm:$0xff]  ;;  %v1810_v33 = vld [vmem:[#allocation9 + $0x2028] sm:$0xff] }
 0x27f   : > { %3635 = vmatpush.msra.mxu1 %v1696_v2  ;;  %3651 = vmatpush.msrb.mxu2 %v1834_v11  ;;  %v7007_v2 = vpop.f32.mrf.mxu2  ;;  %v1906_v11 = vld [vmem:[#allocation9 + $0x2328] sm:$0xff] }
 0x280   : > { %3674 = vmatpush.msrb.mxu3 %v1930_v18  ;;  %3613 = vmatpush.msra.mxu0 %v1594_v19  ;;  %7898 = vst [vmem:[#allocation47_spill] sm:$0xff] %v7007_v2  ;;  %v1570_v18 = vld [vmem:[#allocation9 + $0x18a8] sm:$0xff]  ;;  %v7010_v19 = vpop.f32.mrf.mxu3 }
 0x281   : > { %3636 = vmatpush.msra.mxu1 %v1690_v20  ;;  %3652 = vmatpush.msrb.mxu2 %v1828_v22  ;;  %7899 = vst [vmem:[#allocation48_spill] sm:$0xff] %v7010_v19  ;;  %v1666_v20 = vld [vmem:[#allocation9 + $0x1ba8] sm:$0xff]  ;;  %v1804_v22 = vld [vmem:[#allocation9 + $0x1ff8] sm:$0xff]  ;;  %v1559_v19 = vld [vmem:[#allocation9 + $0x1850] sm:$0xff] }
 0x282   : > { %3675 = vmatpush.msrb.mxu3 %v1924_v24  ;;  %3614 = vmatpush.msra.mxu0 %v1588_v25  ;;  %v1900_v24 = vld [vmem:[#allocation9 + $0x22f8] sm:$0xff] }
 0x283   : > { %3637 = vmatpush.msra.mxu1 %v1684_v31  ;;  %3653 = vmatpush.msrb.mxu2 %v1822_v28  ;;  %v1564_v25 = vld [vmem:[#allocation9 + $0x1878] sm:$0xff]  ;;  %v1798_v28 = vld [vmem:[#allocation9 + $0x1fc8] sm:$0xff] }
 0x284   : > { %3676 = vmatpush.msrb.mxu3 %v1918_v44  ;;  %3615 = vmatpush.msra.mxu0 %v1582_v46  ;;  %v1660_v31 = vld [vmem:[#allocation9 + $0x1b78] sm:$0xff]  ;;  %v1894_v44 = vld [vmem:[#allocation9 + $0x22c8] sm:$0xff] }
 0x285   : > { %3638 = vmatpush.msra.mxu1 %v1678_v49  ;;  %3654 = vmatpush.msrb.mxu2 %v1816_v53  ;;  %v1558_v46 = vld [vmem:[#allocation9 + $0x1848] sm:$0xff]  ;;  %v1792_v53 = vld [vmem:[#allocation9 + $0x1f98] sm:$0xff] }
 0x286   : > { %3677 = vmatpush.msrb.mxu3 %v1912_v56  ;;  %3578 = vmatmul.f32.gmra.mxu2 %v6834_v0  ;;  %v1654_v49 = vld [vmem:[#allocation9 + $0x1b48] sm:$0xff]  ;;  %v1888_v56 = vld [vmem:[#allocation9 + $0x2298] sm:$0xff] }
 0x287   : > { %3601 = vmatmul.f32.gmra.mxu3 %v6837_v5  ;;  %3616 = vmatpush.msra.mxu0 %v1576_v58  ;;  %v1552_v58 = vld [vmem:[#allocation9 + $0x1818] sm:$0xff] }
 0x288   : > { %3639 = vmatpush.msra.mxu1 %v1672_v60  ;;  %3655 = vmatpush.msrb.mxu2 %v1810_v33  ;;  %v1648_v60 = vld [vmem:[#allocation9 + $0x1b18] sm:$0xff]  ;;  %v1786_v33 = vld [vmem:[#allocation9 + $0x1f68] sm:$0xff] }
 0x289   : > { %3678 = vmatpush.msrb.mxu3 %v1906_v11  ;;  %3617 = vmatpush.msra.mxu0 %v1570_v18  ;;  %v1882_v11 = vld [vmem:[#allocation9 + $0x2268] sm:$0xff] }
 0x28a   : > { %3640 = vmatpush.msra.mxu1 %v1666_v20  ;;  %3656 = vmatpush.msrb.mxu2 %v1804_v22  ;;  %v2026_v18 = vld [vmem:[#allocation9 + $0x26e8] sm:$0xff]  ;;  %v7013_v20 = vpop.f32.mrf.mxu0 }
 0x28b   : > { %3679 = vmatpush.msrb.mxu3 %v1900_v24  ;;  %3618 = vmatpush.msra.mxu0 %v1564_v25  ;;  %7900 = vst [vmem:[#allocation49_spill] sm:$0xff] %v7013_v20  ;;  %v2122_v22 = vld [vmem:[#allocation9 + $0x29e8] sm:$0xff]  ;;  %v1780_v24 = vld [vmem:[#allocation9 + $0x1f38] sm:$0xff]  ;;  %v7015_v25 = vpop.f32.mrf.mxu1 }
 0x28c   : > { %3641 = vmatpush.msra.mxu1 %v1660_v31  ;;  %3657 = vmatpush.msrb.mxu2 %v1798_v28  ;;  %7901 = vst [vmem:[#allocation50_spill] sm:$0xff] %v7015_v25  ;;  %v1876_v31 = vld [vmem:[#allocation9 + $0x2238] sm:$0xff]  ;;  %v1762_v25 = vld [vmem:[#allocation9 + $0x1ea8] sm:$0xff] }
 0x28d   : > { %3680 = vmatpush.msrb.mxu3 %v1894_v44  ;;  %3619 = vmatpush.msra.mxu0 %v1558_v46  ;;  %v2020_v28 = vld [vmem:[#allocation9 + $0x26b8] sm:$0xff]  ;;  %v1774_v46 = vld [vmem:[#allocation9 + $0x1f08] sm:$0xff] }
 0x28e   : > { %3642 = vmatpush.msra.mxu1 %v1654_v49  ;;  %3658 = vmatpush.msrb.mxu2 %v1792_v53  ;;  %v2116_v44 = vld [vmem:[#allocation9 + $0x29b8] sm:$0xff]  ;;  %v1870_v49 = vld [vmem:[#allocation9 + $0x2208] sm:$0xff] }
 0x28f   : > { %3681 = vmatpush.msrb.mxu3 %v1888_v56  ;;  %3620 = vmatpush.msra.mxu0 %v1552_v58  ;;  %v2014_v53 = vld [vmem:[#allocation9 + $0x2688] sm:$0xff]  ;;  %v1768_v58 = vld [vmem:[#allocation9 + $0x1ed8] sm:$0xff] }
 0x290   : > { %3643 = vmatpush.msra.mxu1 %v1648_v60  ;;  %3659 = vmatpush.msrb.mxu2 %v1786_v33  ;;  %v2110_v56 = vld [vmem:[#allocation9 + $0x2988] sm:$0xff]  ;;  %v1864_v60 = vld [vmem:[#allocation9 + $0x21d8] sm:$0xff] }
 0x291   : > { %3682 = vmatpush.msrb.mxu3 %v1882_v11  ;;  %3621 = vmatmul.f32.vlgmr.msra.gmra.mxu0 %v6826_v48  ;;  %v2008_v33 = vld [vmem:[#allocation9 + $0x2658] sm:$0xff]  ;;  %v2218_v20 = vld [vmem:[#allocation9 + $0x2ce8] sm:$0xff] }
 0x292   : > { %3644 = vmatmul.f32.vlgmr.msra.gmra.mxu1 %v6829_v50  ;;  %3697 = vmatpush.msrb.mxu0 %v2026_v18  ;;  %v2104_v11 = vld [vmem:[#allocation9 + $0x2958] sm:$0xff]  ;;  %v1858_v18 = vld [vmem:[#allocation9 + $0x21a8] sm:$0xff] }
 0x293   : > { %3720 = vmatpush.msrb.mxu1 %v2122_v22  ;;  %3660 = vmatpush.msrb.mxu2 %v1780_v24  ;;  %v2002_v22 = vld [vmem:[#allocation9 + $0x2628] sm:$0xff] }
 0x294   : > { %3683 = vmatpush.msrb.mxu3 %v1876_v31  ;;  %3698 = vmatpush.msrb.mxu0 %v2020_v28  ;;  %v2098_v24 = vld [vmem:[#allocation9 + $0x2928] sm:$0xff]  ;;  %v1756_v31 = vld [vmem:[#allocation9 + $0x1e78] sm:$0xff]  ;;  %v7019_v28 = vpop.f32.mrf.mxu0 }
 0x295   : > { %3721 = vmatpush.msrb.mxu1 %v2116_v44  ;;  %3661 = vmatpush.msrb.mxu2 %v1774_v46  ;;  %7902 = vst [vmem:[#allocation51_spill] sm:$0xff] %v7019_v28  ;;  %v1852_v44 = vld [vmem:[#allocation9 + $0x2178] sm:$0xff] }
 0x296   : > { %3684 = vmatpush.msrb.mxu3 %v1870_v49  ;;  %3699 = vmatpush.msrb.mxu0 %v2014_v53  ;;  %v1996_v46 = vld [vmem:[#allocation9 + $0x25f8] sm:$0xff]  ;;  %v7022_v49 = vpop.f32.mrf.mxu1 }
 0x297   : > { %3722 = vmatpush.msrb.mxu1 %v2110_v56  ;;  %3662 = vmatpush.msrb.mxu2 %v1768_v58  ;;  %7903 = vst [vmem:[#allocation52_spill] sm:$0xff] %v7022_v49  ;;  %v2092_v53 = vld [vmem:[#allocation9 + $0x28f8] sm:$0xff]  ;;  %v1750_v56 = vld [vmem:[#allocation9 + $0x1e48] sm:$0xff]  ;;  %v7025_v49 = vpop.f32.mrf.mxu2 }
 0x298   : > { %3685 = vmatpush.msrb.mxu3 %v1864_v60  ;;  %3700 = vmatpush.msrb.mxu0 %v2008_v33  ;;  %v1846_v58 = vld [vmem:[#allocation9 + $0x2148] sm:$0xff]  ;;  %v1744_v33 = vld [vmem:[#allocation9 + $0x1e18] sm:$0xff]  ;;  %7904 = vst [vmem:[#allocation53_spill] sm:$0xff] %v7025_v49 }
 0x299   : > { %3723 = vmatpush.msrb.mxu1 %v2104_v11  ;;  %3663 = vmatpush.msrb.mxu2 %v1762_v25  ;;  %v1990_v25 = vld [vmem:[#allocation9 + $0x25c8] sm:$0xff]  ;;  %v1840_v11 = vld [vmem:[#allocation9 + $0x2118] sm:$0xff] }
 0x29a   : > { %3686 = vmatpush.msrb.mxu3 %v1858_v18  ;;  %3624 = vmatmul.f32.gmra.mxu0 %v6841_v14  ;;  %v2086_v60 = vld [vmem:[#allocation9 + $0x28c8] sm:$0xff]  ;;  %v1984_v18 = vld [vmem:[#allocation9 + $0x2598] sm:$0xff] }
 0x29b   : > { %3647 = vmatmul.f32.gmra.mxu1 %v6845_v17  ;;  %3701 = vmatpush.msrb.mxu0 %v2002_v22  ;;  %v2080_v22 = vld [vmem:[#allocation9 + $0x2898] sm:$0xff] }
 0x29c   : > { %3724 = vmatpush.msrb.mxu1 %v2098_v24  ;;  %3664 = vmatpush.msrb.mxu2 %v1756_v31  ;;  %v7027_v24 = vpop.f32.mrf.mxu3  ;;  %v2314_v31 = vld [vmem:[#allocation9 + $0x2fe8] sm:$0xff]  ;;  %v2200_v49 = vld [vmem:[#allocation9 + $0x2c58] sm:$0xff] }
 0x29d   : > { %3687 = vmatpush.msrb.mxu3 %v1852_v44  ;;  %3702 = vmatpush.msrb.mxu0 %v1996_v46  ;;  %7905 = vst [vmem:[#allocation54_spill] sm:$0xff] %v7027_v24  ;;  %v1978_v44 = vld [vmem:[#allocation9 + $0x2568] sm:$0xff]  ;;  %v1936_v28 = vld [vmem:[#allocation9 + $0x2418] sm:$0xff] }
 0x29e   : > { %3725 = vmatpush.msrb.mxu1 %v2092_v53  ;;  %3665 = vmatpush.msrb.mxu2 %v1750_v56  ;;  %v2074_v46 = vld [vmem:[#allocation9 + $0x2868] sm:$0xff]  ;;  %v2212_v53 = vld [vmem:[#allocation9 + $0x2cb8] sm:$0xff] }
 0x29f   : > { %3688 = vmatpush.msrb.mxu3 %v1846_v58  ;;  %3703 = vmatpush.msrb.mxu0 %v1990_v25  ;;  %v2308_v56 = vld [vmem:[#allocation9 + $0x2fb8] sm:$0xff]  ;;  %v2062_v24 = vld [vmem:[#allocation9 + $0x2808] sm:$0xff] }
 0x2a0   : > { %3726 = vmatpush.msrb.mxu1 %v2086_v60  ;;  %3666 = vmatpush.msrb.mxu2 %v1744_v33  ;;  %v1972_v58 = vld [vmem:[#allocation9 + $0x2538] sm:$0xff]  ;;  %v2206_v60 = vld [vmem:[#allocation9 + $0x2c88] sm:$0xff] }
 0x2a1   : > { %3689 = vmatpush.msrb.mxu3 %v1840_v11  ;;  %3667 = vmatmul.f32.vlgmr.msrb.gmra.mxu2 %v6850_v37  ;;  %v2068_v25 = vld [vmem:[#allocation9 + $0x2838] sm:$0xff]  ;;  %v2302_v33 = vld [vmem:[#allocation9 + $0x2f88] sm:$0xff] }
 0x2a2   : > { %3690 = vmatmul.f32.vlgmr.msrb.gmra.mxu3 %v6853_v41  ;;  %3704 = vmatpush.msrb.mxu0 %v1984_v18  ;;  %v1966_v11 = vld [vmem:[#allocation9 + $0x2508] sm:$0xff]  ;;  %v2296_v18 = vld [vmem:[#allocation9 + $0x2f58] sm:$0xff] }
 0x2a3   : > { %3727 = vmatpush.msrb.mxu1 %v2080_v22  ;;  %3743 = vmatpush.msra.mxu2 %v2218_v20  ;;  %v1960_v20 = vld [vmem:[#allocation9 + $0x24d8] sm:$0xff] }
 0x2a4   : > { %3766 = vmatpush.msra.mxu3 %v2314_v31  ;;  %3705 = vmatpush.msrb.mxu0 %v1978_v44  ;;  %v2056_v22 = vld [vmem:[#allocation9 + $0x27d8] sm:$0xff]  ;;  %v2194_v31 = vld [vmem:[#allocation9 + $0x2c28] sm:$0xff]  ;;  %v7031_v44 = vpop.f32.mrf.mxu2 }
 0x2a5   : > { %3728 = vmatpush.msrb.mxu1 %v2074_v46  ;;  %3744 = vmatpush.msra.mxu2 %v2212_v53  ;;  %7906 = vst [vmem:[#allocation55_spill] sm:$0xff] %v7031_v44  ;;  %v2290_v46 = vld [vmem:[#allocation9 + $0x2f28] sm:$0xff]  ;;  %v2176_v44 = vld [vmem:[#allocation9 + $0x2b98] sm:$0xff] }
 0x2a6   : > { %3767 = vmatpush.msra.mxu3 %v2308_v56  ;;  %3706 = vmatpush.msrb.mxu0 %v1972_v58  ;;  %v1954_v53 = vld [vmem:[#allocation9 + $0x24a8] sm:$0xff]  ;;  %v7034_v56 = vpop.f32.mrf.mxu3 }
 0x2a7   : > { %3729 = vmatpush.msrb.mxu1 %v2068_v25  ;;  %3745 = vmatpush.msra.mxu2 %v2206_v60  ;;  %7907 = vst [vmem:[#allocation56_spill] sm:$0xff] %v7034_v56  ;;  %v2050_v58 = vld [vmem:[#allocation9 + $0x27a8] sm:$0xff]  ;;  %v2188_v25 = vld [vmem:[#allocation9 + $0x2bf8] sm:$0xff] }
 0x2a8   : > { %3768 = vmatpush.msra.mxu3 %v2302_v33  ;;  %3707 = vmatpush.msrb.mxu0 %v1966_v11  ;;  %v2044_v60 = vld [vmem:[#allocation9 + $0x2778] sm:$0xff]  ;;  %v2182_v33 = vld [vmem:[#allocation9 + $0x2bc8] sm:$0xff] }
 0x2a9   : > { %3730 = vmatpush.msrb.mxu1 %v2062_v24  ;;  %3746 = vmatpush.msra.mxu2 %v2200_v49  ;;  %v2284_v24 = vld [vmem:[#allocation9 + $0x2ef8] sm:$0xff]  ;;  %v2278_v11 = vld [vmem:[#allocation9 + $0x2ec8] sm:$0xff] }
 0x2aa   : > { %3769 = vmatpush.msra.mxu3 %v2296_v18  ;;  %3670 = vmatmul.f32.gmra.mxu2 %v6858_v1  ;;  %v1948_v49 = vld [vmem:[#allocation9 + $0x2478] sm:$0xff]  ;;  %v1942_v18 = vld [vmem:[#allocation9 + $0x2448] sm:$0xff] }
 0x2ab   : > { %3693 = vmatmul.f32.gmra.mxu3 %v6861_v7  ;;  %3708 = vmatpush.msrb.mxu0 %v1960_v20  ;;  %v2038_v56 = vld [vmem:[#allocation9 + $0x2748] sm:$0xff]  ;;  %v2272_v20 = vld [vmem:[#allocation9 + $0x2e98] sm:$0xff] }
 0x2ac   : > { %3731 = vmatpush.msrb.mxu1 %v2056_v22  ;;  %3747 = vmatpush.msra.mxu2 %v2194_v31  ;;  %v2032_v22 = vld [vmem:[#allocation9 + $0x2718] sm:$0xff]  ;;  %v2170_v31 = vld [vmem:[#allocation9 + $0x2b68] sm:$0xff] }
 0x2ad   : > { %3770 = vmatpush.msra.mxu3 %v2290_v46  ;;  %3709 = vmatpush.msrb.mxu0 %v1954_v53  ;;  %v2266_v46 = vld [vmem:[#allocation9 + $0x2e68] sm:$0xff]  ;;  %v875_v53 = vld [vmem:[#allocation9 + $0x2f0] sm:$0xff] }
 0x2ae   : > { %3732 = vmatpush.msrb.mxu1 %v2050_v58  ;;  %3748 = vmatpush.msra.mxu2 %v2188_v25  ;;  %v7037_v58 = vpop.f32.mrf.mxu0  ;;  %v971_v25 = vld [vmem:[#allocation9 + $0x5f0] sm:$0xff] }
 0x2af   : > { %3771 = vmatpush.msra.mxu3 %v2284_v24  ;;  %3710 = vmatpush.msrb.mxu0 %v1948_v49  ;;  %7908 = vst [vmem:[#allocation57_spill] sm:$0xff] %v7037_v58  ;;  %v2164_v24 = vld [vmem:[#allocation9 + $0x2b38] sm:$0xff]  ;;  %v7039_v49 = vpop.f32.mrf.mxu1 }
 0x2b0   : > { %3733 = vmatpush.msrb.mxu1 %v2044_v60  ;;  %3749 = vmatpush.msra.mxu2 %v2182_v33  ;;  %7909 = vst [vmem:[#allocation58_spill] sm:$0xff] %v7039_v49  ;;  %v2260_v60 = vld [vmem:[#allocation9 + $0x2e38] sm:$0xff]  ;;  %v869_v33 = vld [vmem:[#allocation9 + $0x2c0] sm:$0xff] }
 0x2b1   : > { %3772 = vmatpush.msra.mxu3 %v2278_v11  ;;  %3711 = vmatpush.msrb.mxu0 %v1942_v18  ;;  %v863_v11 = vld [vmem:[#allocation9 + $0x290] sm:$0xff]  ;;  %v953_v49 = vld [vmem:[#allocation9 + $0x560] sm:$0xff] }
 0x2b2   : > { %3734 = vmatpush.msrb.mxu1 %v2038_v56  ;;  %3750 = vmatpush.msra.mxu2 %v2176_v44  ;;  %v965_v44 = vld [vmem:[#allocation9 + $0x5c0] sm:$0xff]  ;;  %v2158_v56 = vld [vmem:[#allocation9 + $0x2b08] sm:$0xff]  ;;  %v959_v18 = vld [vmem:[#allocation9 + $0x590] sm:$0xff] }
 0x2b3   : > { %3773 = vmatpush.msra.mxu3 %v2272_v20  ;;  %3712 = vmatpush.msrb.mxu0 %v1936_v28  ;;  %v2254_v28 = vld [vmem:[#allocation9 + $0x2e08] sm:$0xff]  ;;  %v2152_v20 = vld [vmem:[#allocation9 + $0x2ad8] sm:$0xff] }
 0x2b4   : > { %3735 = vmatpush.msrb.mxu1 %v2032_v22  ;;  %3751 = vmatpush.msra.mxu2 %v2170_v31  ;;  %v2248_v22 = vld [vmem:[#allocation9 + $0x2dd8] sm:$0xff]  ;;  %v857_v31 = vld [vmem:[#allocation9 + $0x260] sm:$0xff] }
 0x2b5   : > { %3774 = vmatpush.msra.mxu3 %v2266_v46  ;;  %3713 = vmatmul.f32.vlgmr.msrb.gmra.mxu0 %v6866_v40  ;;  %v7043_v46 = vpop.f32.mrf.mxu2 }
 0x2b6   : > { %3736 = vmatmul.f32.vlgmr.msrb.gmra.mxu1 %v6869_v43  ;;  %3789 = vmatpush.msra.mxu0 %v875_v53  ;;  %7910 = vst [vmem:[#allocation59_spill] sm:$0xff] %v7043_v46  ;;  %v2146_v53 = vld [vmem:[#allocation9 + $0x2aa8] sm:$0xff]  ;;  %v2224_v46 = vld [vmem:[#allocation9 + $0x2d18] sm:$0xff] }
 0x2b7   : > { %3812 = vmatpush.msra.mxu1 %v971_v25  ;;  %3752 = vmatpush.msra.mxu2 %v2164_v24  ;;  %v2242_v25 = vld [vmem:[#allocation9 + $0x2da8] sm:$0xff]  ;;  %v851_v24 = vld [vmem:[#allocation9 + $0x230] sm:$0xff] }
 0x2b8   : > { %3775 = vmatpush.msra.mxu3 %v2260_v60  ;;  %3790 = vmatpush.msra.mxu0 %v869_v33  ;;  %v947_v60 = vld [vmem:[#allocation9 + $0x530] sm:$0xff]  ;;  %v2140_v33 = vld [vmem:[#allocation9 + $0x2a78] sm:$0xff] }
 0x2b9   : > { %3813 = vmatpush.msra.mxu1 %v965_v44  ;;  %3753 = vmatpush.msra.mxu2 %v2158_v56  ;;  %v7045_v44 = vpop.f32.mrf.mxu0  ;;  %v2236_v56 = vld [vmem:[#allocation9 + $0x2d78] sm:$0xff] }
 0x2ba   : > { %3776 = vmatpush.msra.mxu3 %v2254_v28  ;;  %3791 = vmatpush.msra.mxu0 %v863_v11  ;;  %7911 = vst [vmem:[#allocation60_spill] sm:$0xff] %v7045_v44  ;;  %v845_v28 = vld [vmem:[#allocation9 + $0x200] sm:$0xff]  ;;  %v7048_v11 = vpop.f32.mrf.mxu1 }
 0x2bb   : > { %3814 = vmatpush.msra.mxu1 %v959_v18  ;;  %3754 = vmatpush.msra.mxu2 %v2152_v20  ;;  %7912 = vst [vmem:[#allocation61_spill] sm:$0xff] %v7048_v11  ;;  %v941_v18 = vld [vmem:[#allocation9 + $0x500] sm:$0xff]  ;;  %v2134_v20 = vld [vmem:[#allocation9 + $0x2a48] sm:$0xff] }
 0x2bc   : > { %3777 = vmatpush.msra.mxu3 %v2248_v22  ;;  %3792 = vmatpush.msra.mxu0 %v857_v31  ;;  %v7051_v22 = vpop.f32.mrf.mxu3  ;;  %v839_v31 = vld [vmem:[#allocation9 + $0x1d0] sm:$0xff]  ;;  %v833_v11 = vld [vmem:[#allocation9 + $0x1a0] sm:$0xff] }
 0x2bd   : > { %3815 = vmatpush.msra.mxu1 %v953_v49  ;;  %3755 = vmatpush.msra.mxu2 %v2146_v53  ;;  %7913 = vst [vmem:[#allocation62_spill] sm:$0xff] %v7051_v22  ;;  %v2230_v49 = vld [vmem:[#allocation9 + $0x2d48] sm:$0xff]  ;;  %v935_v53 = vld [vmem:[#allocation9 + $0x4d0] sm:$0xff]  ;;  %v7053_v58 = vpop.f32.mrf.mxu2 }
 0x2be   : > { %3778 = vmatpush.msra.mxu3 %v2242_v25  ;;  %3716 = vmatmul.f32.gmra.mxu0 %v6874_v10  ;;  %v2128_v25 = vld [vmem:[#allocation9 + $0x2a18] sm:$0xff]  ;;  %7914 = vst [vmem:[#allocation63_spill] sm:$0xff] %v7053_v58  ;;  %v1067_v22 = vld [vmem:[#allocation9 + $0x8f0] sm:$0xff] }
 0x2bf   : > { %3739 = vmatmul.f32.gmra.mxu1 %v6877_v12  ;;  %3793 = vmatpush.msra.mxu0 %v851_v24  ;;  %v929_v24 = vld [vmem:[#allocation9 + $0x4a0] sm:$0xff] }
 0x2c0   : > { %3816 = vmatpush.msra.mxu1 %v947_v60  ;;  %3756 = vmatpush.msra.mxu2 %v2140_v33  ;;  %v1163_v60 = vld [vmem:[#allocation9 + $0xbf0] sm:$0xff] }
 0x2c1   : > { %3779 = vmatpush.msra.mxu3 %v2236_v56  ;;  %3794 = vmatpush.msra.mxu0 %v845_v28  ;;  %v827_v33 = vld [vmem:[#allocation9 + $0x170] sm:$0xff]  ;;  %v7056_v56 = vpop.f32.mrf.mxu0 }
 0x2c2   : > { %3817 = vmatpush.msra.mxu1 %v941_v18  ;;  %3757 = vmatpush.msra.mxu2 %v2134_v20  ;;  %7915 = vst [vmem:[#allocation64_spill] sm:$0xff] %v7056_v56  ;;  %v923_v28 = vld [vmem:[#allocation9 + $0x470] sm:$0xff]  ;;  %v1061_v18 = vld [vmem:[#allocation9 + $0x8c0] sm:$0xff] }
 0x2c3   : > { %3780 = vmatpush.msra.mxu3 %v2230_v49  ;;  %3795 = vmatpush.msra.mxu0 %v839_v31  ;;  %v1157_v20 = vld [vmem:[#allocation9 + $0xbc0] sm:$0xff]  ;;  %v911_v56 = vld [vmem:[#allocation9 + $0x410] sm:$0xff] }
 0x2c4   : > { %3818 = vmatpush.msra.mxu1 %v935_v53  ;;  %3758 = vmatpush.msra.mxu2 %v2128_v25  ;;  %v821_v49 = vld [vmem:[#allocation9 + $0x140] sm:$0xff]  ;;  %v1055_v53 = vld [vmem:[#allocation9 + $0x890] sm:$0xff]  ;;  %v7059_v58 = vpop.f32.mrf.mxu3 }
 0x2c5   : > { %3781 = vmatpush.msra.mxu3 %v2224_v46  ;;  %3759 = vmatmul.f32.vlgmr.msra.gmra.mxu2 %v6882_v34  ;;  %v917_v31 = vld [vmem:[#allocation9 + $0x440] sm:$0xff]  ;;  %v1151_v46 = vld [vmem:[#allocation9 + $0xb90] sm:$0xff]  ;;  %7916 = vst [vmem:[#allocation65_spill] sm:$0xff] %v7059_v58  ;;  %v7063_v44 = vpop.f32.mrf.mxu2 }
 0x2c6   : > { %3782 = vmatmul.f32.vlgmr.msra.gmra.mxu3 %v6885_v42  ;;  %3796 = vmatpush.msra.mxu0 %v833_v11  ;;  %v815_v25 = vld [vmem:[#allocation9 + $0x110] sm:$0xff]  ;;  %v1049_v11 = vld [vmem:[#allocation9 + $0x860] sm:$0xff]  ;;  %7918 = vst [vmem:[#allocation67_spill] sm:$0xff] %v7063_v44 }
 0x2c7   : > { %3819 = vmatpush.msra.mxu1 %v929_v24  ;;  %3835 = vmatpush.msrb.mxu2 %v1067_v22  ;;  %v1145_v24 = vld [vmem:[#allocation9 + $0xb60] sm:$0xff]  ;;  %v7061_v22 = vpop.f32.mrf.mxu1  ;;  %v1127_v44 = vld [vmem:[#allocation9 + $0xad0] sm:$0xff] }
 0x2c8   : > { %3858 = vmatpush.msrb.mxu3 %v1163_v60  ;;  %3797 = vmatpush.msra.mxu0 %v827_v33  ;;  %7917 = vst [vmem:[#allocation66_spill] sm:$0xff] %v7061_v22  ;;  %v809_v60 = vld [vmem:[#allocation9 + $0xe0] sm:$0xff]  ;;  %v791_v22 = vld [vmem:[#allocation9 + $0x50] sm:$0xff] }
 0x2c9   : > { %3820 = vmatpush.msra.mxu1 %v923_v28  ;;  %3836 = vmatpush.msrb.mxu2 %v1061_v18  ;;  %v905_v33 = vld [vmem:[#allocation9 + $0x3e0] sm:$0xff]  ;;  %v1043_v28 = vld [vmem:[#allocation9 + $0x830] sm:$0xff] }
 0x2ca   : > { %3859 = vmatpush.msrb.mxu3 %v1157_v20  ;;  %3798 = vmatpush.msra.mxu0 %v821_v49  ;;  %v1139_v18 = vld [vmem:[#allocation9 + $0xb30] sm:$0xff]  ;;  %v1025_v58 = vld [vmem:[#allocation9 + $0x7a0] sm:$0xff] }
 0x2cb   : > { %3821 = vmatpush.msra.mxu1 %v917_v31  ;;  %3837 = vmatpush.msrb.mxu2 %v1055_v53  ;;  %v803_v20 = vld [vmem:[#allocation9 + $0xb0] sm:$0xff]  ;;  %v1037_v31 = vld [vmem:[#allocation9 + $0x800] sm:$0xff]  ;;  %v7067_v53 = vpop.f32.mrf.mxu0 }
 0x2cc   : > { %3860 = vmatpush.msrb.mxu3 %v1151_v46  ;;  %3799 = vmatpush.msra.mxu0 %v815_v25  ;;  %v899_v49 = vld [vmem:[#allocation9 + $0x3b0] sm:$0xff]  ;;  %7919 = vst [vmem:[#allocation68_spill] sm:$0xff] %v7067_v53  ;;  %v1133_v46 = vld [vmem:[#allocation9 + $0xb00] sm:$0xff] }
 0x2cd   : > { %3822 = vmatpush.msra.mxu1 %v911_v56  ;;  %3838 = vmatpush.msrb.mxu2 %v1049_v11  ;;  %v797_v25 = vld [vmem:[#allocation9 + $0x80] sm:$0xff]  ;;  %v1031_v11 = vld [vmem:[#allocation9 + $0x7d0] sm:$0xff]  ;;  %v7073_v15 = vpop.f32.mrf.mxu2 }
 0x2ce   : > { %3861 = vmatpush.msrb.mxu3 %v1145_v24  ;;  %3762 = vmatmul.f32.gmra.mxu2 %v6890_v9  ;;  %v893_v56 = vld [vmem:[#allocation9 + $0x380] sm:$0xff]  ;;  %v7069_v24 = vpop.f32.mrf.mxu3  ;;  %7922 = vst [vmem:[#allocation71_spill] sm:$0xff] %v7073_v15 }
 0x2cf   : > { %3785 = vmatmul.f32.gmra.mxu3 %v6893_v13  ;;  %3800 = vmatpush.msra.mxu0 %v809_v60  ;;  %7920 = vst [vmem:[#allocation69_spill] sm:$0xff] %v7069_v24  ;;  %v887_v60 = vld [vmem:[#allocation9 + $0x350] sm:$0xff]  ;;  %v7071_v53 = vpop.f32.mrf.mxu1 }
 0x2d0   : > { %3823 = vmatpush.msra.mxu1 %v905_v33  ;;  %3839 = vmatpush.msrb.mxu2 %v1043_v28  ;;  %v1121_v33 = vld [vmem:[#allocation9 + $0xaa0] sm:$0xff]  ;;  %7921 = vst [vmem:[#allocation70_spill] sm:$0xff] %v7071_v53 }
 0x2d1   : > { %3862 = vmatpush.msrb.mxu3 %v1139_v18  ;;  %3801 = vmatpush.msra.mxu0 %v803_v20  ;;  %v785_v28 = vld [vmem:[#allocation9 + $0x20] sm:$0xff]  ;;  %v1019_v20 = vld [vmem:[#allocation9 + $0x770] sm:$0xff] }
 0x2d2   : > { %3824 = vmatpush.msra.mxu1 %v899_v49  ;;  %3840 = vmatpush.msrb.mxu2 %v1037_v31  ;;  %v881_v18 = vld [vmem:[#allocation9 + $0x320] sm:$0xff]  ;;  %v1115_v49 = vld [vmem:[#allocation9 + $0xa70] sm:$0xff] }
 0x2d3   : > { %3863 = vmatpush.msrb.mxu3 %v1133_v46  ;;  %3802 = vmatpush.msra.mxu0 %v797_v25  ;;  %v1259_v31 = vld [vmem:[#allocation9 + $0xef0] sm:$0xff]  ;;  %v7075_v46 = vpop.f32.mrf.mxu0 }
 0x2d4   : > { %3825 = vmatpush.msra.mxu1 %v893_v56  ;;  %3841 = vmatpush.msrb.mxu2 %v1031_v11  ;;  %7923 = vst [vmem:[#allocation72_spill] sm:$0xff] %v7075_v46  ;;  %v1355_v25 = vld [vmem:[#allocation9 + $0x11f0] sm:$0xff]  ;;  %v1013_v56 = vld [vmem:[#allocation9 + $0x740] sm:$0xff] }
 0x2d5   : > { %3864 = vmatpush.msrb.mxu3 %v1127_v44  ;;  %3803 = vmatpush.msra.mxu0 %v791_v22  ;;  %v1109_v44 = vld [vmem:[#allocation9 + $0xa40] sm:$0xff]  ;;  %v7083_v15 = vpop.f32.mrf.mxu2 }
 0x2d6   : > { %3826 = vmatpush.msra.mxu1 %v887_v60  ;;  %3842 = vmatpush.msrb.mxu2 %v1025_v58  ;;  %v1253_v22 = vld [vmem:[#allocation9 + $0xec0] sm:$0xff]  ;;  %v1007_v58 = vld [vmem:[#allocation9 + $0x710] sm:$0xff]  ;;  %7926 = vst [vmem:[#allocation75_spill] sm:$0xff] %v7083_v15 }
 0x2d7   : > { %3865 = vmatpush.msrb.mxu3 %v1121_v33  ;;  %3804 = vmatpush.msra.mxu0 %v785_v28  ;;  %v1349_v11 = vld [vmem:[#allocation9 + $0x11c0] sm:$0xff]  ;;  %v1103_v60 = vld [vmem:[#allocation9 + $0xa10] sm:$0xff]  ;;  %v7079_v28 = vpop.f32.mrf.mxu3  ;;  %v7081_v24 = vpop.f32.mrf.mxu1 }
 0x2d8   : > { %3827 = vmatpush.msra.mxu1 %v881_v18  ;;  %3843 = vmatpush.msrb.mxu2 %v1019_v20  ;;  %v1247_v33 = vld [vmem:[#allocation9 + $0xe90] sm:$0xff]  ;;  %7924 = vst [vmem:[#allocation73_spill] sm:$0xff] %v7079_v28  ;;  %v1001_v20 = vld [vmem:[#allocation9 + $0x6e0] sm:$0xff] }
 0x2d9   : > { %3866 = vmatpush.msrb.mxu3 %v1115_v49  ;;  %3805 = vmatmul.f32.vlgmr.msra.gmra.mxu0 %v6768_v23  ;;  %v1343_v18 = vld [vmem:[#allocation9 + $0x1190] sm:$0xff]  ;;  %v1097_v49 = vld [vmem:[#allocation9 + $0x9e0] sm:$0xff]  ;;  %7925 = vst [vmem:[#allocation74_spill] sm:$0xff] %v7081_v24 }
 0x2da   : > { %3828 = vmatmul.f32.vlgmr.msra.gmra.mxu1 %v6771_v26  ;;  %3881 = vmatpush.msrb.mxu0 %v1259_v31  ;;  %v1241_v46 = vld [vmem:[#allocation9 + $0xe60] sm:$0xff] }
 0x2db   : > { %3904 = vmatpush.msrb.mxu1 %v1355_v25  ;;  %3844 = vmatpush.msrb.mxu2 %v1013_v56  ;;  %v1337_v31 = vld [vmem:[#allocation9 + $0x1160] sm:$0xff]  ;;  %v995_v25 = vld [vmem:[#allocation9 + $0x6b0] sm:$0xff] }
 0x2dc   : > { %3867 = vmatpush.msrb.mxu3 %v1109_v44  ;;  %3882 = vmatpush.msrb.mxu0 %v1253_v22  ;;  %v1091_v56 = vld [vmem:[#allocation9 + $0x9b0] sm:$0xff]  ;;  %v1085_v15 = vld [vmem:[#allocation9 + $0x980] sm:$0xff] }
 0x2dd   : > { %3905 = vmatpush.msrb.mxu1 %v1349_v11  ;;  %3845 = vmatpush.msrb.mxu2 %v1007_v58  ;;  %v1235_v44 = vld [vmem:[#allocation9 + $0xe30] sm:$0xff]  ;;  %v989_v11 = vld [vmem:[#allocation9 + $0x680] sm:$0xff]  ;;  %v7085_v58 = vpop.f32.mrf.mxu0 }
 0x2de   : > { %3868 = vmatpush.msrb.mxu3 %v1103_v60  ;;  %3883 = vmatpush.msrb.mxu0 %v1247_v33  ;;  %v1331_v22 = vld [vmem:[#allocation9 + $0x1130] sm:$0xff]  ;;  %7927 = vst [vmem:[#allocation76_spill] sm:$0xff] %v7085_v58  ;;  %v1229_v60 = vld [vmem:[#allocation9 + $0xe00] sm:$0xff] }
 0x2df   : > { %3906 = vmatpush.msrb.mxu1 %v1343_v18  ;;  %3846 = vmatpush.msrb.mxu2 %v1001_v20  ;;  %v1325_v33 = vld [vmem:[#allocation9 + $0x1100] sm:$0xff]  ;;  %v983_v18 = vld [vmem:[#allocation9 + $0x650] sm:$0xff]  ;;  %v7089_v20 = vpop.f32.mrf.mxu3  ;;  %v7091_v58 = vpop.f32.mrf.mxu1 }
 0x2e0   : > { %3869 = vmatpush.msrb.mxu3 %v1097_v49  ;;  %3884 = vmatpush.msrb.mxu0 %v1241_v46  ;;  %7928 = vst [vmem:[#allocation77_spill] sm:$0xff] %v7089_v20  ;;  %v1079_v46 = vld [vmem:[#allocation9 + $0x950] sm:$0xff]  ;;  %v1217_v24 = vld [vmem:[#allocation9 + $0xda0] sm:$0xff] }
 0x2e1   : > { %3907 = vmatpush.msrb.mxu1 %v1337_v31  ;;  %3847 = vmatpush.msrb.mxu2 %v995_v25  ;;  %v1223_v49 = vld [vmem:[#allocation9 + $0xdd0] sm:$0xff]  ;;  %v977_v25 = vld [vmem:[#allocation9 + $0x620] sm:$0xff]  ;;  %7929 = vst [vmem:[#allocation78_spill] sm:$0xff] %v7091_v58 }
 0x2e2   : > { %3870 = vmatpush.msrb.mxu3 %v1091_v56  ;;  %3808 = vmatmul.f32.gmra.mxu0 %v6781_v38  ;;  %v1319_v31 = vld [vmem:[#allocation9 + $0x10d0] sm:$0xff]  ;;  %v1073_v56 = vld [vmem:[#allocation9 + $0x920] sm:$0xff] }
 0x2e3   : > { %3831 = vmatmul.f32.gmra.mxu1 %v6778_v36  ;;  %3885 = vmatpush.msrb.mxu0 %v1235_v44  ;;  %v7093_v44 = vpop.f32.mrf.mxu2 }
 0x2e4   : > { %3908 = vmatpush.msrb.mxu1 %v1331_v22  ;;  %3848 = vmatpush.msrb.mxu2 %v989_v11  ;;  %7930 = vst [vmem:[#allocation79_spill] sm:$0xff] %v7093_v44  ;;  %v1313_v22 = vld [vmem:[#allocation9 + $0x10a0] sm:$0xff]  ;;  %v1451_v11 = vld [vmem:[#allocation9 + $0x14f0] sm:$0xff] }
 0x2e5   : > { %3871 = vmatpush.msrb.mxu3 %v1085_v15  ;;  %3886 = vmatpush.msrb.mxu0 %v1229_v60  ;;  %v1547_v15 = vld [vmem:[#allocation9 + $0x17f0] sm:$0xff]  ;;  %v7096_v20 = vpop.f32.mrf.mxu0 }
 0x2e6   : > { %3909 = vmatpush.msrb.mxu1 %v1325_v33  ;;  %3849 = vmatpush.msrb.mxu2 %v983_v18  ;;  %v1211_v60 = vld [vmem:[#allocation9 + $0xd70] sm:$0xff]  ;;  %7931 = vst [vmem:[#allocation80_spill] sm:$0xff] %v7096_v20  ;;  %v1445_v18 = vld [vmem:[#allocation9 + $0x14c0] sm:$0xff] }
 0x2e7   : > { %3872 = vmatpush.msrb.mxu3 %v1079_v46  ;;  %3887 = vmatpush.msrb.mxu0 %v1223_v49  ;;  %v1307_v33 = vld [vmem:[#allocation9 + $0x1070] sm:$0xff]  ;;  %v1541_v46 = vld [vmem:[#allocation9 + $0x17c0] sm:$0xff]  ;;  %v7099_v58 = vpop.f32.mrf.mxu3 }
 0x2e8   : > { %3910 = vmatpush.msrb.mxu1 %v1319_v31  ;;  %3850 = vmatpush.msrb.mxu2 %v977_v25  ;;  %v1205_v49 = vld [vmem:[#allocation9 + $0xd40] sm:$0xff]  ;;  %v1439_v25 = vld [vmem:[#allocation9 + $0x1490] sm:$0xff]  ;;  %7932 = vst [vmem:[#allocation81_spill] sm:$0xff] %v7099_v58 }
 0x2e9   : > { %3873 = vmatpush.msrb.mxu3 %v1073_v56  ;;  %3851 = vmatmul.f32.vlgmr.msrb.gmra.mxu2 %v6786_v47  ;;  %v1301_v31 = vld [vmem:[#allocation9 + $0x1040] sm:$0xff]  ;;  %v1535_v56 = vld [vmem:[#allocation9 + $0x1790] sm:$0xff] }
 0x2ea   : > { %3874 = vmatmul.f32.vlgmr.msrb.gmra.mxu3 %v6789_v51  ;;  %3888 = vmatpush.msrb.mxu0 %v1217_v24  ;;  %v1199_v44 = vld [vmem:[#allocation9 + $0xd10] sm:$0xff]  ;;  %v1433_v24 = vld [vmem:[#allocation9 + $0x1460] sm:$0xff] }
 0x2eb   : > { %3911 = vmatpush.msrb.mxu1 %v1313_v22  ;;  %3927 = vmatpush.msra.mxu2 %v1451_v11  ;;  %v1295_v20 = vld [vmem:[#allocation9 + $0x1010] sm:$0xff]  ;;  %v1529_v22 = vld [vmem:[#allocation9 + $0x1760] sm:$0xff]  ;;  %v7101_v11 = vpop.f32.mrf.mxu1  ;;  %v7103_v28 = vpop.f32.mrf.mxu2 }
 0x2ec   : > { %3950 = vmatpush.msra.mxu3 %v1547_v15  ;;  %3889 = vmatpush.msrb.mxu0 %v1211_v60  ;;  %7933 = vst [vmem:[#allocation82_spill] sm:$0xff] %v7101_v11  ;;  %v1193_v15 = vld [vmem:[#allocation9 + $0xce0] sm:$0xff]  ;;  %v1175_v11 = vld [vmem:[#allocation9 + $0xc50] sm:$0xff] }
 0x2ed   : > { %3912 = vmatpush.msrb.mxu1 %v1307_v33  ;;  %3928 = vmatpush.msra.mxu2 %v1445_v18  ;;  %7934 = vst [vmem:[#allocation83_spill] sm:$0xff] %v7103_v28  ;;  %v1289_v60 = vld [vmem:[#allocation9 + $0xfe0] sm:$0xff]  ;;  %v1427_v33 = vld [vmem:[#allocation9 + $0x1430] sm:$0xff] }
 0x2ee   : > { %3951 = vmatpush.msra.mxu3 %v1541_v46  ;;  %3890 = vmatpush.msrb.mxu0 %v1205_v49  ;;  %v1523_v18 = vld [vmem:[#allocation9 + $0x1730] sm:$0xff]  ;;  %v1409_v58 = vld [vmem:[#allocation9 + $0x13a0] sm:$0xff] }
 0x2ef   : > { %3913 = vmatpush.msrb.mxu1 %v1301_v31  ;;  %3929 = vmatpush.msra.mxu2 %v1439_v25  ;;  %v1187_v46 = vld [vmem:[#allocation9 + $0xcb0] sm:$0xff]  ;;  %v1421_v31 = vld [vmem:[#allocation9 + $0x1400] sm:$0xff]  ;;  %v7107_v25 = vpop.f32.mrf.mxu0 }
 0x2f0   : > { %3952 = vmatpush.msra.mxu3 %v1535_v56  ;;  %3891 = vmatpush.msrb.mxu0 %v1199_v44  ;;  %v1283_v49 = vld [vmem:[#allocation9 + $0xfb0] sm:$0xff]  ;;  %7935 = vst [vmem:[#allocation84_spill] sm:$0xff] %v7107_v25  ;;  %v1517_v44 = vld [vmem:[#allocation9 + $0x1700] sm:$0xff] }
 0x2f1   : > { %3914 = vmatpush.msrb.mxu1 %v1295_v20  ;;  %3930 = vmatpush.msra.mxu2 %v1433_v24  ;;  %v1181_v56 = vld [vmem:[#allocation9 + $0xc80] sm:$0xff]  ;;  %v1415_v24 = vld [vmem:[#allocation9 + $0x13d0] sm:$0xff] }
 0x2f2   : > { %3953 = vmatpush.msra.mxu3 %v1529_v22  ;;  %3854 = vmatmul.f32.gmra.mxu2 %v6802_v3  ;;  %v1277_v20 = vld [vmem:[#allocation9 + $0xf80] sm:$0xff]  ;;  %v7109_v22 = vpop.f32.mrf.mxu3  ;;  %v1511_v28 = vld [vmem:[#allocation9 + $0x16d0] sm:$0xff] }
 0x2f3   : > { %3877 = vmatmul.f32.gmra.mxu3 %v6805_v8  ;;  %3892 = vmatpush.msrb.mxu0 %v1193_v15  ;;  %7936 = vst [vmem:[#allocation85_spill] sm:$0xff] %v7109_v22  ;;  %v1271_v15 = vld [vmem:[#allocation9 + $0xf50] sm:$0xff]  ;;  %v7111_v25 = vpop.f32.mrf.mxu1  ;;  %v7113_v53 = vpop.f32.mrf.mxu2 }
 0x2f4   : > { %3915 = vmatpush.msrb.mxu1 %v1289_v60  ;;  %3931 = vmatpush.msra.mxu2 %v1427_v33  ;;  %v1505_v60 = vld [vmem:[#allocation9 + $0x16a0] sm:$0xff]  ;;  %7937 = vst [vmem:[#allocation86_spill] sm:$0xff] %v7111_v25 }
 0x2f5   : > { %3954 = vmatpush.msra.mxu3 %v1523_v18  ;;  %3893 = vmatpush.msrb.mxu0 %v1187_v46  ;;  %v1169_v33 = vld [vmem:[#allocation9 + $0xc20] sm:$0xff]  ;;  %v1403_v46 = vld [vmem:[#allocation9 + $0x1370] sm:$0xff]  ;;  %7938 = vst [vmem:[#allocation87_spill] sm:$0xff] %v7113_v53 }
 0x2f6   : > { %3916 = vmatpush.msrb.mxu1 %v1283_v49  ;;  %3932 = vmatpush.msra.mxu2 %v1421_v31  ;;  %v1265_v18 = vld [vmem:[#allocation9 + $0xf20] sm:$0xff]  ;;  %v1499_v49 = vld [vmem:[#allocation9 + $0x1670] sm:$0xff] }
 0x2f7   : > { %3955 = vmatpush.msra.mxu3 %v1517_v44  ;;  %3894 = vmatpush.msrb.mxu0 %v1181_v56  ;;  %v1643_v31 = vld [vmem:[#allocation9 + $0x1af0] sm:$0xff]  ;;  %v7115_v44 = vpop.f32.mrf.mxu0 }
 0x2f8   : > { %3917 = vmatpush.msrb.mxu1 %v1277_v20  ;;  %3933 = vmatpush.msra.mxu2 %v1415_v24  ;;  %7939 = vst [vmem:[#allocation88_spill] sm:$0xff] %v7115_v44  ;;  %v1739_v56 = vld [vmem:[#allocation9 + $0x1df0] sm:$0xff]  ;;  %v1397_v20 = vld [vmem:[#allocation9 + $0x1340] sm:$0xff] }
 0x2f9   : > { %3956 = vmatpush.msra.mxu3 %v1511_v28  ;;  %3895 = vmatpush.msrb.mxu0 %v1175_v11  ;;  %v1493_v28 = vld [vmem:[#allocation9 + $0x1640] sm:$0xff] }
 0x2fa   : > { %3918 = vmatpush.msrb.mxu1 %v1271_v15  ;;  %3934 = vmatpush.msra.mxu2 %v1409_v58  ;;  %v1637_v11 = vld [vmem:[#allocation9 + $0x1ac0] sm:$0xff]  ;;  %v1391_v58 = vld [vmem:[#allocation9 + $0x1310] sm:$0xff] }
 0x2fb   : > { %3957 = vmatpush.msra.mxu3 %v1505_v60  ;;  %3896 = vmatpush.msrb.mxu0 %v1169_v33  ;;  %v1733_v24 = vld [vmem:[#allocation9 + $0x1dc0] sm:$0xff]  ;;  %v1487_v15 = vld [vmem:[#allocation9 + $0x1610] sm:$0xff]  ;;  %v7119_v33 = vpop.f32.mrf.mxu3  ;;  %v7121_v22 = vpop.f32.mrf.mxu1 }
 0x2fc   : > { %3919 = vmatpush.msrb.mxu1 %v1265_v18  ;;  %3935 = vmatpush.msra.mxu2 %v1403_v46  ;;  %v1631_v60 = vld [vmem:[#allocation9 + $0x1a90] sm:$0xff]  ;;  %7940 = vst [vmem:[#allocation89_spill] sm:$0xff] %v7119_v33  ;;  %v1385_v46 = vld [vmem:[#allocation9 + $0x12e0] sm:$0xff]  ;;  %v7123_v53 = vpop.f32.mrf.mxu2 }
 0x2fd   : > { %3958 = vmatpush.msra.mxu3 %v1499_v49  ;;  %3897 = vmatmul.f32.vlgmr.msrb.gmra.mxu0 %v6793_v55  ;;  %v1727_v18 = vld [vmem:[#allocation9 + $0x1d90] sm:$0xff]  ;;  %v1481_v49 = vld [vmem:[#allocation9 + $0x15e0] sm:$0xff]  ;;  %7941 = vst [vmem:[#allocation90_spill] sm:$0xff] %v7121_v22 }
 0x2fe   : > { %3920 = vmatmul.f32.vlgmr.msrb.gmra.mxu1 %v6797_v57  ;;  %3973 = vmatpush.msra.mxu0 %v1643_v31  ;;  %v1625_v44 = vld [vmem:[#allocation9 + $0x1a60] sm:$0xff]  ;;  %7942 = vst [vmem:[#allocation91_spill] sm:$0xff] %v7123_v53  ;;  %v1679_v33 = vld [vmem:[#allocation9 + $0x1c10] sm:$0xff] }
 0x2ff   : > { %3996 = vmatpush.msra.mxu1 %v1739_v56  ;;  %3936 = vmatpush.msra.mxu2 %v1397_v20  ;;  %v1721_v31 = vld [vmem:[#allocation9 + $0x1d60] sm:$0xff]  ;;  %v1379_v56 = vld [vmem:[#allocation9 + $0x12b0] sm:$0xff] }
 0x300   : > { %3959 = vmatpush.msra.mxu3 %v1493_v28  ;;  %3974 = vmatpush.msra.mxu0 %v1637_v11  ;;  %v1475_v20 = vld [vmem:[#allocation9 + $0x15b0] sm:$0xff]  ;;  %v1469_v53 = vld [vmem:[#allocation9 + $0x1580] sm:$0xff] }
 0x301   : > { %3997 = vmatpush.msra.mxu1 %v1733_v24  ;;  %3937 = vmatpush.msra.mxu2 %v1391_v58  ;;  %v1619_v28 = vld [vmem:[#allocation9 + $0x1a30] sm:$0xff]  ;;  %v1373_v24 = vld [vmem:[#allocation9 + $0x1280] sm:$0xff]  ;;  %v7125_v58 = vpop.f32.mrf.mxu0 }
 0x302   : > { %3960 = vmatpush.msra.mxu3 %v1487_v15  ;;  %3975 = vmatpush.msra.mxu0 %v1631_v60  ;;  %v1715_v11 = vld [vmem:[#allocation9 + $0x1d30] sm:$0xff]  ;;  %7943 = vst [vmem:[#allocation92_spill] sm:$0xff] %v7125_v58  ;;  %v1613_v15 = vld [vmem:[#allocation9 + $0x1a00] sm:$0xff] }
 0x303   : > { %3998 = vmatpush.msra.mxu1 %v1727_v18  ;;  %3938 = vmatpush.msra.mxu2 %v1385_v46  ;;  %v1709_v60 = vld [vmem:[#allocation9 + $0x1d00] sm:$0xff]  ;;  %v1367_v18 = vld [vmem:[#allocation9 + $0x1250] sm:$0xff]  ;;  %v7129_v46 = vpop.f32.mrf.mxu3  ;;  %v7131_v58 = vpop.f32.mrf.mxu1 }
 0x304   : > { %3961 = vmatpush.msra.mxu3 %v1481_v49  ;;  %3976 = vmatpush.msra.mxu0 %v1625_v44  ;;  %7944 = vst [vmem:[#allocation93_spill] sm:$0xff] %v7129_v46  ;;  %v1463_v44 = vld [vmem:[#allocation9 + $0x1550] sm:$0xff]  ;;  %v1601_v22 = vld [vmem:[#allocation9 + $0x19a0] sm:$0xff] }
 0x305   : > { %3999 = vmatpush.msra.mxu1 %v1721_v31  ;;  %3939 = vmatpush.msra.mxu2 %v1379_v56  ;;  %v1607_v49 = vld [vmem:[#allocation9 + $0x19d0] sm:$0xff]  ;;  %v1361_v56 = vld [vmem:[#allocation9 + $0x1220] sm:$0xff]  ;;  %7945 = vst [vmem:[#allocation94_spill] sm:$0xff] %v7131_v58 }
 0x306   : > { %3962 = vmatpush.msra.mxu3 %v1475_v20  ;;  %3900 = vmatmul.f32.gmra.mxu0 %v6809_v16  ;;  %v1703_v31 = vld [vmem:[#allocation9 + $0x1cd0] sm:$0xff]  ;;  %v1457_v20 = vld [vmem:[#allocation9 + $0x1520] sm:$0xff] }
 0x307   : > { %3923 = vmatmul.f32.gmra.mxu1 %v6813_v4  ;;  %3977 = vmatpush.msra.mxu0 %v1619_v28  ;;  %v7133_v28 = vpop.f32.mrf.mxu2 }
 0x308   : > { %4000 = vmatpush.msra.mxu1 %v1715_v11  ;;  %3940 = vmatpush.msra.mxu2 %v1373_v24  ;;  %7946 = vst [vmem:[#allocation95_spill] sm:$0xff] %v7133_v28  ;;  %v1697_v11 = vld [vmem:[#allocation9 + $0x1ca0] sm:$0xff]  ;;  %v1835_v24 = vld [vmem:[#allocation9 + $0x20f0] sm:$0xff] }
 0x309   : > { %3963 = vmatpush.msra.mxu3 %v1469_v53  ;;  %3978 = vmatpush.msra.mxu0 %v1613_v15  ;;  %v1931_v53 = vld [vmem:[#allocation9 + $0x23f0] sm:$0xff]  ;;  %v7136_v46 = vpop.f32.mrf.mxu0 }
 0x30a   : > { %4001 = vmatpush.msra.mxu1 %v1709_v60  ;;  %3941 = vmatpush.msra.mxu2 %v1367_v18  ;;  %v1595_v15 = vld [vmem:[#allocation9 + $0x1970] sm:$0xff]  ;;  %v1829_v18 = vld [vmem:[#allocation9 + $0x20c0] sm:$0xff] }
 0x30b   : > { %3964 = vmatpush.msra.mxu3 %v1463_v44  ;;  %3979 = vmatpush.msra.mxu0 %v1607_v49  ;;  %v1691_v60 = vld [vmem:[#allocation9 + $0x1c70] sm:$0xff]  ;;  %v1925_v44 = vld [vmem:[#allocation9 + $0x23c0] sm:$0xff]  ;;  %v7139_v58 = vpop.f32.mrf.mxu3 }
 0x30c   : > { %4002 = vmatpush.msra.mxu1 %v1703_v31  ;;  %3942 = vmatpush.msra.mxu2 %v1361_v56  ;;  %v1589_v49 = vld [vmem:[#allocation9 + $0x1940] sm:$0xff]  ;;  %v1823_v56 = vld [vmem:[#allocation9 + $0x2090] sm:$0xff]  ;;  %7947 = vst [vmem:[#allocation96_spill] sm:$0xff] %v7139_v58 }
 0x30d   : > { %3965 = vmatpush.msra.mxu3 %v1457_v20  ;;  %3943 = vmatmul.f32.vlgmr.msra.gmra.mxu2 %v6818_v32  ;;  %v1685_v31 = vld [vmem:[#allocation9 + $0x1c40] sm:$0xff]  ;;  %v1919_v20 = vld [vmem:[#allocation9 + $0x2390] sm:$0xff] }
 0x30e   : > { %3966 = vmatmul.f32.vlgmr.msra.gmra.mxu3 %v6821_v35  ;;  %3980 = vmatpush.msra.mxu0 %v1601_v22  ;;  %v1583_v28 = vld [vmem:[#allocation9 + $0x1910] sm:$0xff]  ;;  %v1817_v22 = vld [vmem:[#allocation9 + $0x2060] sm:$0xff] }
 0x30f   : > { %4003 = vmatpush.msra.mxu1 %v1697_v11  ;;  %4019 = vmatpush.msrb.mxu2 %v1835_v24  ;;  %v1913_v11 = vld [vmem:[#allocation9 + $0x2360] sm:$0xff]  ;;  %v7141_v24 = vpop.f32.mrf.mxu1  ;;  %v7143_v25 = vpop.f32.mrf.mxu2  ;;  %v1895_v58 = vld [vmem:[#allocation9 + $0x22d0] sm:$0xff] }
 0x310   : > { %4042 = vmatpush.msrb.mxu3 %v1931_v53  ;;  %3981 = vmatpush.msra.mxu0 %v1595_v15  ;;  %v1577_v53 = vld [vmem:[#allocation9 + $0x18e0] sm:$0xff] }
 0x311   : > { %4004 = vmatpush.msra.mxu1 %v1691_v60  ;;  %4020 = vmatpush.msrb.mxu2 %v1829_v18  ;;  %v1673_v15 = vld [vmem:[#allocation9 + $0x1be0] sm:$0xff]  ;;  %v1811_v60 = vld [vmem:[#allocation9 + $0x2030] sm:$0xff] }
 0x312   : > { %4043 = vmatpush.msrb.mxu3 %v1925_v44  ;;  %3982 = vmatpush.msra.mxu0 %v1589_v49  ;;  %v1907_v18 = vld [vmem:[#allocation9 + $0x2330] sm:$0xff] }
 0x313   : > { %4005 = vmatpush.msra.mxu1 %v1685_v31  ;;  %4021 = vmatpush.msrb.mxu2 %v1823_v56  ;;  %v1571_v44 = vld [vmem:[#allocation9 + $0x18b0] sm:$0xff]  ;;  %v1805_v31 = vld [vmem:[#allocation9 + $0x2000] sm:$0xff]  ;;  %v7147_v56 = vpop.f32.mrf.mxu0 }
 0x314   : > { %4044 = vmatpush.msrb.mxu3 %v1919_v20  ;;  %3983 = vmatpush.msra.mxu0 %v1583_v28  ;;  %v1667_v49 = vld [vmem:[#allocation9 + $0x1bb0] sm:$0xff]  ;;  %v1901_v28 = vld [vmem:[#allocation9 + $0x2300] sm:$0xff] }
 0x315   : > { %4006 = vmatpush.msra.mxu1 %v1679_v33  ;;  %4022 = vmatpush.msrb.mxu2 %v1817_v22  ;;  %v1565_v20 = vld [vmem:[#allocation9 + $0x1880] sm:$0xff]  ;;  %v1799_v22 = vld [vmem:[#allocation9 + $0x1fd0] sm:$0xff] }
 0x316   : > { %4045 = vmatpush.msrb.mxu3 %v1913_v11  ;;  %3946 = vmatmul.f32.gmra.mxu2 %v6834_v0  ;;  %v1661_v33 = vld [vmem:[#allocation9 + $0x1b80] sm:$0xff]  ;;  %v7149_v11 = vpop.f32.mrf.mxu3 }
 0x317   : > { %3969 = vmatmul.f32.gmra.mxu3 %v6837_v5  ;;  %3984 = vmatpush.msra.mxu0 %v1577_v53  ;;  %7948 = vst [vmem:[#allocation97_spill] sm:$0xff] %v7149_v11  ;;  %v1655_v53 = vld [vmem:[#allocation9 + $0x1b50] sm:$0xff]  ;;  %v7151_v2 = vpop.f32.mrf.mxu1  ;;  %v7153_v54 = vpop.f32.mrf.mxu2 }
 0x318   : > { %4007 = vmatpush.msra.mxu1 %v1673_v15  ;;  %4023 = vmatpush.msrb.mxu2 %v1811_v60  ;;  %v1889_v15 = vld [vmem:[#allocation9 + $0x22a0] sm:$0xff] }
 0x319   : > { %4046 = vmatpush.msrb.mxu3 %v1907_v18  ;;  %3985 = vmatpush.msra.mxu0 %v1571_v44  ;;  %v1553_v60 = vld [vmem:[#allocation9 + $0x1820] sm:$0xff]  ;;  %v1787_v44 = vld [vmem:[#allocation9 + $0x1f70] sm:$0xff] }
 0x31a   : > { %4008 = vmatpush.msra.mxu1 %v1667_v49  ;;  %4024 = vmatpush.msrb.mxu2 %v1805_v31  ;;  %v1649_v18 = vld [vmem:[#allocation9 + $0x1b20] sm:$0xff]  ;;  %v1883_v49 = vld [vmem:[#allocation9 + $0x2270] sm:$0xff] }
 0x31b   : > { %4047 = vmatpush.msrb.mxu3 %v1901_v28  ;;  %3986 = vmatpush.msra.mxu0 %v1565_v20  ;;  %v2027_v31 = vld [vmem:[#allocation9 + $0x26f0] sm:$0xff]  ;;  %v7155_v28 = vpop.f32.mrf.mxu0 }
 0x31c   : > { %4009 = vmatpush.msra.mxu1 %v1661_v33  ;;  %4025 = vmatpush.msrb.mxu2 %v1799_v22  ;;  %7949 = vst [vmem:[#allocation98_spill] sm:$0xff] %v7155_v28  ;;  %v2123_v20 = vld [vmem:[#allocation9 + $0x29f0] sm:$0xff]  ;;  %v1781_v33 = vld [vmem:[#allocation9 + $0x1f40] sm:$0xff] }
 0x31d   : > { %4048 = vmatpush.msrb.mxu3 %v1895_v58  ;;  %3987 = vmatpush.msra.mxu0 %v1559_v19  ;;  %v1877_v19 = vld [vmem:[#allocation9 + $0x2240] sm:$0xff] }
 0x31e   : > { %4010 = vmatpush.msra.mxu1 %v1655_v53  ;;  %4026 = vmatpush.msrb.mxu2 %v1793_v63  ;;  %v2021_v58 = vld [vmem:[#allocation9 + $0x26c0] sm:$0xff]  ;;  %v1775_v63 = vld [vmem:[#allocation9 + $0x1f10] sm:$0xff] }
 0x31f   : > { %4049 = vmatpush.msrb.mxu3 %v1889_v15  ;;  %3988 = vmatpush.msra.mxu0 %v1553_v60  ;;  %v2117_v22 = vld [vmem:[#allocation9 + $0x29c0] sm:$0xff]  ;;  %v1871_v53 = vld [vmem:[#allocation9 + $0x2210] sm:$0xff]  ;;  %v7159_v60 = vpop.f32.mrf.mxu3  ;;  %v7161_v28 = vpop.f32.mrf.mxu1 }
 0x320   : > { %4011 = vmatpush.msra.mxu1 %v1649_v18  ;;  %4027 = vmatpush.msrb.mxu2 %v1787_v44  ;;  %v2015_v15 = vld [vmem:[#allocation9 + $0x2690] sm:$0xff]  ;;  %v1769_v44 = vld [vmem:[#allocation9 + $0x1ee0] sm:$0xff]  ;;  %7950 = vst [vmem:[#allocation99_spill] sm:$0xff] %v7161_v28  ;;  %v7163_v39 = vpop.f32.mrf.mxu2 }
 0x321   : > { %4050 = vmatpush.msrb.mxu3 %v1883_v49  ;;  %3989 = vmatmul.f32.vlgmr.msra.gmra.mxu0 %v6826_v48  ;;  %v2111_v18 = vld [vmem:[#allocation9 + $0x2990] sm:$0xff]  ;;  %v1865_v49 = vld [vmem:[#allocation9 + $0x21e0] sm:$0xff]  ;;  %7951 = vst [vmem:[#allocation100_spill] sm:$0xff] %v7163_v39 }
 0x322   : > { %4012 = vmatmul.f32.vlgmr.msra.gmra.mxu1 %v6829_v50  ;;  %4065 = vmatpush.msrb.mxu0 %v2027_v31  ;;  %v2105_v31 = vld [vmem:[#allocation9 + $0x2960] sm:$0xff] }
 0x323   : > { %4088 = vmatpush.msrb.mxu1 %v2123_v20  ;;  %4028 = vmatpush.msrb.mxu2 %v1781_v33  ;;  %v1763_v20 = vld [vmem:[#allocation9 + $0x1eb0] sm:$0xff]  ;;  %v1853_v39 = vld [vmem:[#allocation9 + $0x2180] sm:$0xff] }
 0x324   : > { %4051 = vmatpush.msrb.mxu3 %v1877_v19  ;;  %4066 = vmatpush.msrb.mxu0 %v2021_v58  ;;  %v1859_v33 = vld [vmem:[#allocation9 + $0x21b0] sm:$0xff]  ;;  %v1985_v28 = vld [vmem:[#allocation9 + $0x25a0] sm:$0xff] }
 0x325   : > { %4089 = vmatpush.msrb.mxu1 %v2117_v22  ;;  %4029 = vmatpush.msrb.mxu2 %v1775_v63  ;;  %v2003_v19 = vld [vmem:[#allocation9 + $0x2630] sm:$0xff]  ;;  %v1757_v22 = vld [vmem:[#allocation9 + $0x1e80] sm:$0xff]  ;;  %v7165_v63 = vpop.f32.mrf.mxu0 }
 0x326   : > { %4052 = vmatpush.msrb.mxu3 %v1871_v53  ;;  %4067 = vmatpush.msrb.mxu0 %v2015_v15  ;;  %v2099_v58 = vld [vmem:[#allocation9 + $0x2930] sm:$0xff]  ;;  %7952 = vst [vmem:[#allocation101_spill] sm:$0xff] %v7165_v63  ;;  %v1997_v53 = vld [vmem:[#allocation9 + $0x2600] sm:$0xff] }
 0x327   : > { %4090 = vmatpush.msrb.mxu1 %v2111_v18  ;;  %4030 = vmatpush.msrb.mxu2 %v1769_v44  ;;  %v2093_v15 = vld [vmem:[#allocation9 + $0x2900] sm:$0xff]  ;;  %v1751_v18 = vld [vmem:[#allocation9 + $0x1e50] sm:$0xff]  ;;  %v7169_v44 = vpop.f32.mrf.mxu3  ;;  %v7171_v63 = vpop.f32.mrf.mxu1 }
 0x328   : > { %4053 = vmatpush.msrb.mxu3 %v1865_v49  ;;  %4068 = vmatpush.msrb.mxu0 %v2009_v29  ;;  %7953 = vst [vmem:[#allocation102_spill] sm:$0xff] %v7169_v44  ;;  %v1847_v29 = vld [vmem:[#allocation9 + $0x2150] sm:$0xff] }
 0x329   : > { %4091 = vmatpush.msrb.mxu1 %v2105_v31  ;;  %4031 = vmatpush.msrb.mxu2 %v1763_v20  ;;  %v1991_v49 = vld [vmem:[#allocation9 + $0x25d0] sm:$0xff]  ;;  %v1745_v20 = vld [vmem:[#allocation9 + $0x1e20] sm:$0xff]  ;;  %7954 = vst [vmem:[#allocation103_spill] sm:$0xff] %v7171_v63 }
 0x32a   : > { %4054 = vmatpush.msrb.mxu3 %v1859_v33  ;;  %3992 = vmatmul.f32.gmra.mxu0 %v6841_v14  ;;  %v2087_v31 = vld [vmem:[#allocation9 + $0x28d0] sm:$0xff]  ;;  %v1841_v33 = vld [vmem:[#allocation9 + $0x2120] sm:$0xff] }
 0x32b   : > { %4015 = vmatmul.f32.gmra.mxu1 %v6845_v17  ;;  %4069 = vmatpush.msrb.mxu0 %v2003_v19  ;;  %v7173_v19 = vpop.f32.mrf.mxu2 }
 0x32c   : > { %4092 = vmatpush.msrb.mxu1 %v2099_v58  ;;  %4032 = vmatpush.msrb.mxu2 %v1757_v22  ;;  %7955 = vst [vmem:[#allocation104_spill] sm:$0xff] %v7173_v19  ;;  %v2081_v58 = vld [vmem:[#allocation9 + $0x28a0] sm:$0xff]  ;;  %v2219_v22 = vld [vmem:[#allocation9 + $0x2cf0] sm:$0xff] }
 0x32d   : > { %4055 = vmatpush.msrb.mxu3 %v1853_v39  ;;  %4070 = vmatpush.msrb.mxu0 %v1997_v53  ;;  %v2315_v39 = vld [vmem:[#allocation9 + $0x2ff0] sm:$0xff]  ;;  %v7176_v44 = vpop.f32.mrf.mxu0 }
 0x32e   : > { %4093 = vmatpush.msrb.mxu1 %v2093_v15  ;;  %4033 = vmatpush.msrb.mxu2 %v1751_v18  ;;  %v1979_v53 = vld [vmem:[#allocation9 + $0x2570] sm:$0xff]  ;;  %7956 = vst [vmem:[#allocation105_spill] sm:$0xff] %v7176_v44  ;;  %v2213_v18 = vld [vmem:[#allocation9 + $0x2cc0] sm:$0xff] }
 0x32f   : > { %4056 = vmatpush.msrb.mxu3 %v1847_v29  ;;  %4071 = vmatpush.msrb.mxu0 %v1991_v49  ;;  %v2075_v15 = vld [vmem:[#allocation9 + $0x2870] sm:$0xff]  ;;  %v2309_v29 = vld [vmem:[#allocation9 + $0x2fc0] sm:$0xff]  ;;  %v7179_v63 = vpop.f32.mrf.mxu3 }
 0x330   : > { %4094 = vmatpush.msrb.mxu1 %v2087_v31  ;;  %4034 = vmatpush.msrb.mxu2 %v1745_v20  ;;  %v1973_v49 = vld [vmem:[#allocation9 + $0x2540] sm:$0xff]  ;;  %v2207_v20 = vld [vmem:[#allocation9 + $0x2c90] sm:$0xff]  ;;  %7957 = vst [vmem:[#allocation106_spill] sm:$0xff] %v7179_v63 }
 0x331   : > { %4057 = vmatpush.msrb.mxu3 %v1841_v33  ;;  %4035 = vmatmul.f32.vlgmr.msrb.gmra.mxu2 %v6850_v37  ;;  %v2069_v31 = vld [vmem:[#allocation9 + $0x2840] sm:$0xff]  ;;  %v2303_v33 = vld [vmem:[#allocation9 + $0x2f90] sm:$0xff] }
 0x332   : > { %4058 = vmatmul.f32.vlgmr.msrb.gmra.mxu3 %v6853_v41  ;;  %4072 = vmatpush.msrb.mxu0 %v1985_v28  ;;  %v1967_v19 = vld [vmem:[#allocation9 + $0x2510] sm:$0xff]  ;;  %v2201_v28 = vld [vmem:[#allocation9 + $0x2c60] sm:$0xff] }
 0x333   : > { %4095 = vmatpush.msrb.mxu1 %v2081_v58  ;;  %4111 = vmatpush.msra.mxu2 %v2219_v22  ;;  %v2063_v44 = vld [vmem:[#allocation9 + $0x2810] sm:$0xff]  ;;  %v2297_v58 = vld [vmem:[#allocation9 + $0x2f60] sm:$0xff]  ;;  %v7181_v22 = vpop.f32.mrf.mxu1  ;;  %v7183_v11 = vpop.f32.mrf.mxu2 }
 0x334   : > { %4134 = vmatpush.msra.mxu3 %v2315_v39  ;;  %4073 = vmatpush.msrb.mxu0 %v1979_v53  ;;  %7958 = vst [vmem:[#allocation107_spill] sm:$0xff] %v7181_v22  ;;  %v1961_v39 = vld [vmem:[#allocation9 + $0x24e0] sm:$0xff]  ;;  %v1943_v22 = vld [vmem:[#allocation9 + $0x2450] sm:$0xff] }
 0x335   : > { %4096 = vmatpush.msrb.mxu1 %v2075_v15  ;;  %4112 = vmatpush.msra.mxu2 %v2213_v18  ;;  %7959 = vst [vmem:[#allocation108_spill] sm:$0xff] %v7183_v11  ;;  %v2057_v53 = vld [vmem:[#allocation9 + $0x27e0] sm:$0xff]  ;;  %v2195_v15 = vld [vmem:[#allocation9 + $0x2c30] sm:$0xff] }
 0x336   : > { %4135 = vmatpush.msra.mxu3 %v2309_v29  ;;  %4074 = vmatpush.msrb.mxu0 %v1973_v49  ;;  %v2291_v18 = vld [vmem:[#allocation9 + $0x2f30] sm:$0xff]  ;;  %v2177_v63 = vld [vmem:[#allocation9 + $0x2ba0] sm:$0xff] }
 0x337   : > { %4097 = vmatpush.msrb.mxu1 %v2069_v31  ;;  %4113 = vmatpush.msra.mxu2 %v2207_v20  ;;  %v1955_v29 = vld [vmem:[#allocation9 + $0x24b0] sm:$0xff]  ;;  %v2189_v31 = vld [vmem:[#allocation9 + $0x2c00] sm:$0xff]  ;;  %v7187_v20 = vpop.f32.mrf.mxu0 }
 0x338   : > { %4136 = vmatpush.msra.mxu3 %v2303_v33  ;;  %4075 = vmatpush.msrb.mxu0 %v1967_v19  ;;  %v2051_v49 = vld [vmem:[#allocation9 + $0x27b0] sm:$0xff]  ;;  %7960 = vst [vmem:[#allocation109_spill] sm:$0xff] %v7187_v20  ;;  %v2285_v19 = vld [vmem:[#allocation9 + $0x2f00] sm:$0xff] }
 0x339   : > { %4098 = vmatpush.msrb.mxu1 %v2063_v44  ;;  %4114 = vmatpush.msra.mxu2 %v2201_v28  ;;  %v1949_v33 = vld [vmem:[#allocation9 + $0x2480] sm:$0xff]  ;;  %v2183_v28 = vld [vmem:[#allocation9 + $0x2bd0] sm:$0xff] }
 0x33a   : > { %4137 = vmatpush.msra.mxu3 %v2297_v58  ;;  %4038 = vmatmul.f32.gmra.mxu2 %v6858_v1  ;;  %v2045_v44 = vld [vmem:[#allocation9 + $0x2780] sm:$0xff]  ;;  %v7189_v58 = vpop.f32.mrf.mxu3  ;;  %v2279_v11 = vld [vmem:[#allocation9 + $0x2ed0] sm:$0xff] }
 0x33b   : > { %4061 = vmatmul.f32.gmra.mxu3 %v6861_v7  ;;  %4076 = vmatpush.msrb.mxu0 %v1961_v39  ;;  %7961 = vst [vmem:[#allocation110_spill] sm:$0xff] %v7189_v58  ;;  %v2039_v39 = vld [vmem:[#allocation9 + $0x2750] sm:$0xff]  ;;  %v7191_v20 = vpop.f32.mrf.mxu1  ;;  %v7193_v7 = vpop.f32.mrf.mxu2 }
 0x33c   : > { %4099 = vmatpush.msrb.mxu1 %v2057_v53  ;;  %4115 = vmatpush.msra.mxu2 %v2195_v15  ;;  %v2273_v53 = vld [vmem:[#allocation9 + $0x2ea0] sm:$0xff] }
 0x33d   : > { %4138 = vmatpush.msra.mxu3 %v2291_v18  ;;  %4077 = vmatpush.msrb.mxu0 %v1955_v29  ;;  %v1937_v15 = vld [vmem:[#allocation9 + $0x2420] sm:$0xff]  ;;  %v2171_v29 = vld [vmem:[#allocation9 + $0x2b70] sm:$0xff] }
 0x33e   : > { %4100 = vmatpush.msrb.mxu1 %v2051_v49  ;;  %4116 = vmatpush.msra.mxu2 %v2189_v31  ;;  %v2033_v18 = vld [vmem:[#allocation9 + $0x2720] sm:$0xff]  ;;  %v2267_v49 = vld [vmem:[#allocation9 + $0x2e70] sm:$0xff]  ;;  %v876_v31 = vld [vmem:[#allocation9 + $0x2f8] sm:$0xff] }
 0x33f   : > { %4139 = vmatpush.msra.mxu3 %v2285_v19  ;;  %4078 = vmatpush.msrb.mxu0 %v1949_v33  ;;  %v7195_v19 = vpop.f32.mrf.mxu0  ;;  %v972_v33 = vld [vmem:[#allocation9 + $0x5f8] sm:$0xff] }
 0x340   : > { %4101 = vmatpush.msrb.mxu1 %v2045_v44  ;;  %4117 = vmatpush.msra.mxu2 %v2183_v28  ;;  %7962 = vst [vmem:[#allocation111_spill] sm:$0xff] %v7195_v19  ;;  %v2165_v44 = vld [vmem:[#allocation9 + $0x2b40] sm:$0xff]  ;;  %v966_v28 = vld [vmem:[#allocation9 + $0x5c8] sm:$0xff] }
 0x341   : > { %4140 = vmatpush.msra.mxu3 %v2279_v11  ;;  %4079 = vmatpush.msrb.mxu0 %v1943_v22  ;;  %v2261_v11 = vld [vmem:[#allocation9 + $0x2e40] sm:$0xff]  ;;  %v870_v22 = vld [vmem:[#allocation9 + $0x2c8] sm:$0xff] }
 0x342   : > { %4102 = vmatpush.msrb.mxu1 %v2039_v39  ;;  %4118 = vmatpush.msra.mxu2 %v2177_v63  ;;  %v2159_v63 = vld [vmem:[#allocation9 + $0x2b10] sm:$0xff]  ;;  %v858_v19 = vld [vmem:[#allocation9 + $0x268] sm:$0xff] }
 0x343   : > { %4141 = vmatpush.msra.mxu3 %v2273_v53  ;;  %4080 = vmatpush.msrb.mxu0 %v1937_v15  ;;  %v2255_v39 = vld [vmem:[#allocation9 + $0x2e10] sm:$0xff]  ;;  %v864_v53 = vld [vmem:[#allocation9 + $0x298] sm:$0xff]  ;;  %v7199_v15 = vpop.f32.mrf.mxu3  ;;  %v7201_v58 = vpop.f32.mrf.mxu1 }
 0x344   : > { %4103 = vmatpush.msrb.mxu1 %v2033_v18  ;;  %4119 = vmatpush.msra.mxu2 %v2171_v29  ;;  %v960_v18 = vld [vmem:[#allocation9 + $0x598] sm:$0xff]  ;;  %v2153_v29 = vld [vmem:[#allocation9 + $0x2ae0] sm:$0xff]  ;;  %7963 = vst [vmem:[#allocation112_spill] sm:$0xff] %v7201_v58  ;;  %v834_v58 = vld [vmem:[#allocation9 + $0x1a8] sm:$0xff] }
 0x345   : > { %4142 = vmatpush.msra.mxu3 %v2267_v49  ;;  %4081 = vmatmul.f32.vlgmr.msrb.gmra.mxu0 %v6866_v40  ;;  %v2249_v49 = vld [vmem:[#allocation9 + $0x2de0] sm:$0xff] }
 0x346   : > { %4104 = vmatmul.f32.vlgmr.msrb.gmra.mxu1 %v6869_v43  ;;  %4157 = vmatpush.msra.mxu0 %v876_v31  ;;  %v7203_v43 = vpop.f32.mrf.mxu2  ;;  %v954_v31 = vld [vmem:[#allocation9 + $0x568] sm:$0xff] }
 0x347   : > { %4180 = vmatpush.msra.mxu1 %v972_v33  ;;  %4120 = vmatpush.msra.mxu2 %v2165_v44  ;;  %7964 = vst [vmem:[#allocation113_spill] sm:$0xff] %v7203_v43  ;;  %v2147_v33 = vld [vmem:[#allocation9 + $0x2ab0] sm:$0xff]  ;;  %v2237_v43 = vld [vmem:[#allocation9 + $0x2d80] sm:$0xff] }
 0x348   : > { %4143 = vmatpush.msra.mxu3 %v2261_v11  ;;  %4158 = vmatpush.msra.mxu0 %v870_v22  ;;  %v2243_v44 = vld [vmem:[#allocation9 + $0x2db0] sm:$0xff]  ;;  %v852_v11 = vld [vmem:[#allocation9 + $0x238] sm:$0xff] }
 0x349   : > { %4181 = vmatpush.msra.mxu1 %v966_v28  ;;  %4121 = vmatpush.msra.mxu2 %v2159_v63  ;;  %v948_v22 = vld [vmem:[#allocation9 + $0x538] sm:$0xff]  ;;  %v2141_v28 = vld [vmem:[#allocation9 + $0x2a80] sm:$0xff]  ;;  %v7205_v63 = vpop.f32.mrf.mxu0 }
 0x34a   : > { %4144 = vmatpush.msra.mxu3 %v2255_v39  ;;  %4159 = vmatpush.msra.mxu0 %v864_v53  ;;  %v846_v39 = vld [vmem:[#allocation9 + $0x208] sm:$0xff] }
 0x34b   : > { %4182 = vmatpush.msra.mxu1 %v960_v18  ;;  %4122 = vmatpush.msra.mxu2 %v2153_v29  ;;  %v942_v53 = vld [vmem:[#allocation9 + $0x508] sm:$0xff]  ;;  %v2135_v18 = vld [vmem:[#allocation9 + $0x2a50] sm:$0xff]  ;;  %v7209_v29 = vpop.f32.mrf.mxu3 }
 0x34c   : > { %4145 = vmatpush.msra.mxu3 %v2249_v49  ;;  %4160 = vmatpush.msra.mxu0 %v858_v19  ;;  %7965 = vst [vmem:[#allocation114_spill] sm:$0xff] %v7209_v29  ;;  %v2231_v19 = vld [vmem:[#allocation9 + $0x2d50] sm:$0xff]  ;;  %v840_v49 = vld [vmem:[#allocation9 + $0x1d8] sm:$0xff] }
 0x34d   : > { %4183 = vmatpush.msra.mxu1 %v954_v31  ;;  %4123 = vmatpush.msra.mxu2 %v2147_v33  ;;  %v936_v31 = vld [vmem:[#allocation9 + $0x4d8] sm:$0xff]  ;;  %v2129_v33 = vld [vmem:[#allocation9 + $0x2a20] sm:$0xff] }
 0x34e   : > { %4146 = vmatpush.msra.mxu3 %v2243_v44  ;;  %4084 = vmatmul.f32.gmra.mxu0 %v6874_v10  ;;  %v2225_v44 = vld [vmem:[#allocation9 + $0x2d20] sm:$0xff] }
 0x34f   : > { %4107 = vmatmul.f32.gmra.mxu1 %v6877_v12  ;;  %4161 = vmatpush.msra.mxu0 %v852_v11  ;;  %v7211_v12 = vpop.f32.mrf.mxu1  ;;  %v7213_v11 = vpop.f32.mrf.mxu2 }
 0x350   : > { %4184 = vmatpush.msra.mxu1 %v948_v22  ;;  %4124 = vmatpush.msra.mxu2 %v2141_v28  ;;  %7966 = vst [vmem:[#allocation115_spill] sm:$0xff] %v7213_v11  ;;  %v930_v22 = vld [vmem:[#allocation9 + $0x4a8] sm:$0xff]  ;;  %v1068_v28 = vld [vmem:[#allocation9 + $0x8f8] sm:$0xff] }
 0x351   : > { %4147 = vmatpush.msra.mxu3 %v2237_v43  ;;  %4162 = vmatpush.msra.mxu0 %v846_v39  ;;  %v1164_v43 = vld [vmem:[#allocation9 + $0xbf8] sm:$0xff]  ;;  %v7216_v29 = vpop.f32.mrf.mxu0 }
 0x352   : > { %4185 = vmatpush.msra.mxu1 %v942_v53  ;;  %4125 = vmatpush.msra.mxu2 %v2135_v18  ;;  %v828_v39 = vld [vmem:[#allocation9 + $0x178] sm:$0xff]  ;;  %7967 = vst [vmem:[#allocation116_spill] sm:$0xff] %v7216_v29  ;;  %v1062_v18 = vld [vmem:[#allocation9 + $0x8c8] sm:$0xff] }
 0x353   : > { %4148 = vmatpush.msra.mxu3 %v2231_v19  ;;  %4163 = vmatpush.msra.mxu0 %v840_v49  ;;  %v924_v53 = vld [vmem:[#allocation9 + $0x478] sm:$0xff]  ;;  %v1158_v19 = vld [vmem:[#allocation9 + $0xbc8] sm:$0xff]  ;;  %v7219_v11 = vpop.f32.mrf.mxu3 }
 0x354   : > { %4186 = vmatpush.msra.mxu1 %v936_v31  ;;  %4126 = vmatpush.msra.mxu2 %v2129_v33  ;;  %v822_v49 = vld [vmem:[#allocation9 + $0x148] sm:$0xff]  ;;  %v1056_v33 = vld [vmem:[#allocation9 + $0x898] sm:$0xff] }
 0x355   : > { %4149 = vmatpush.msra.mxu3 %v2225_v44  ;;  %4127 = vmatmul.f32.vlgmr.msra.gmra.mxu2 %v6882_v34  ;;  %v918_v31 = vld [vmem:[#allocation9 + $0x448] sm:$0xff]  ;;  %v1152_v44 = vld [vmem:[#allocation9 + $0xb98] sm:$0xff] }
 0x356   : > { %4150 = vmatmul.f32.vlgmr.msra.gmra.mxu3 %v6885_v42  ;;  %4164 = vmatpush.msra.mxu0 %v834_v58  ;;  %v816_v34 = vld [vmem:[#allocation9 + $0x118] sm:$0xff]  ;;  %v1050_v58 = vld [vmem:[#allocation9 + $0x868] sm:$0xff] }
 0x357   : > { %4187 = vmatpush.msra.mxu1 %v930_v22  ;;  %4203 = vmatpush.msrb.mxu2 %v1068_v28  ;;  %v912_v29 = vld [vmem:[#allocation9 + $0x418] sm:$0xff]  ;;  %v1146_v22 = vld [vmem:[#allocation9 + $0xb68] sm:$0xff]  ;;  %v7221_v28 = vpop.f32.mrf.mxu1  ;;  %v7223_v42 = vpop.f32.mrf.mxu2 }
 0x358   : > { %4226 = vmatpush.msrb.mxu3 %v1164_v43  ;;  %4165 = vmatpush.msra.mxu0 %v828_v39  ;;  %7968 = vst [vmem:[#allocation117_spill] sm:$0xff] %v7221_v28  ;;  %v810_v43 = vld [vmem:[#allocation9 + $0xe8] sm:$0xff]  ;;  %v792_v28 = vld [vmem:[#allocation9 + $0x58] sm:$0xff] }
 0x359   : > { %4188 = vmatpush.msra.mxu1 %v924_v53  ;;  %4204 = vmatpush.msrb.mxu2 %v1062_v18  ;;  %7969 = vst [vmem:[#allocation118_spill] sm:$0xff] %v7223_v42  ;;  %v906_v39 = vld [vmem:[#allocation9 + $0x3e8] sm:$0xff]  ;;  %v1044_v53 = vld [vmem:[#allocation9 + $0x838] sm:$0xff] }
 0x35a   : > { %4227 = vmatpush.msrb.mxu3 %v1158_v19  ;;  %4166 = vmatpush.msra.mxu0 %v822_v49  ;;  %v1140_v18 = vld [vmem:[#allocation9 + $0xb38] sm:$0xff] }
 0x35b   : > { %4189 = vmatpush.msra.mxu1 %v918_v31  ;;  %4205 = vmatpush.msrb.mxu2 %v1056_v33  ;;  %v804_v19 = vld [vmem:[#allocation9 + $0xb8] sm:$0xff]  ;;  %v1038_v31 = vld [vmem:[#allocation9 + $0x808] sm:$0xff]  ;;  %v7227_v33 = vpop.f32.mrf.mxu0 }
 0x35c   : > { %4228 = vmatpush.msrb.mxu3 %v1152_v44  ;;  %4167 = vmatpush.msra.mxu0 %v816_v34  ;;  %v900_v49 = vld [vmem:[#allocation9 + $0x3b8] sm:$0xff]  ;;  %v1134_v34 = vld [vmem:[#allocation9 + $0xb08] sm:$0xff] }
 0x35d   : > { %4190 = vmatpush.msra.mxu1 %v912_v29  ;;  %4206 = vmatpush.msrb.mxu2 %v1050_v58  ;;  %v798_v44 = vld [vmem:[#allocation9 + $0x88] sm:$0xff]  ;;  %v1032_v58 = vld [vmem:[#allocation9 + $0x7d8] sm:$0xff] }
 0x35e   : > { %4229 = vmatpush.msrb.mxu3 %v1146_v22  ;;  %4130 = vmatmul.f32.gmra.mxu2 %v6890_v9  ;;  %v894_v29 = vld [vmem:[#allocation9 + $0x388] sm:$0xff]  ;;  %v7229_v22 = vpop.f32.mrf.mxu3  ;;  %v1128_v42 = vld [vmem:[#allocation9 + $0xad8] sm:$0xff] }
 0x35f   : > { %4153 = vmatmul.f32.gmra.mxu3 %v6893_v13  ;;  %4168 = vmatpush.msra.mxu0 %v810_v43  ;;  %7970 = vst [vmem:[#allocation119_spill] sm:$0xff] %v7229_v22  ;;  %v888_v43 = vld [vmem:[#allocation9 + $0x358] sm:$0xff]  ;;  %v1026_v13 = vld [vmem:[#allocation9 + $0x7a8] sm:$0xff]  ;;  %v7841_v22 = vmov 3  }
 0x360   : > { %4191 = vmatpush.msra.mxu1 %v906_v39  ;;  %4207 = vmatpush.msrb.mxu2 %v1044_v53  ;;  %v1122_v39 = vld [vmem:[#allocation9 + $0xaa8] sm:$0xff] }
 0x361   : > { %4230 = vmatpush.msrb.mxu3 %v1140_v18  ;;  %4169 = vmatpush.msra.mxu0 %v804_v19  ;;  %v786_v53 = vld [vmem:[#allocation9 + $0x28] sm:$0xff]  ;;  %v7231_v18 = vpop.f32.mrf.mxu1  ;;  %v7233_v19 = vpop.f32.mrf.mxu2 }
 0x362   : > { %4192 = vmatpush.msra.mxu1 %v900_v49  ;;  %4208 = vmatpush.msrb.mxu2 %v1038_v31  ;;  %7971 = vst [vmem:[#allocation120_spill] sm:$0xff] %v7231_v18  ;;  %v882_v49 = vld [vmem:[#allocation9 + $0x328] sm:$0xff]  ;;  %v1020_v31 = vld [vmem:[#allocation9 + $0x778] sm:$0xff] }
 0x363   : > { %4231 = vmatpush.msrb.mxu3 %v1134_v34  ;;  %4170 = vmatpush.msra.mxu0 %v798_v44  ;;  %7972 = vst [vmem:[#allocation121_spill] sm:$0xff] %v7233_v19  ;;  %v1116_v34 = vld [vmem:[#allocation9 + $0xa78] sm:$0xff]  ;;  %v7236_v44 = vpop.f32.mrf.mxu0  ;;  %v1338_v18 = vld [vmem:[#allocation9 + $0x1168] sm:$0xff] }
 0x364   : > { %4193 = vmatpush.msra.mxu1 %v894_v29  ;;  %4209 = vmatpush.msrb.mxu2 %v1032_v58  ;;  %7973 = vst [vmem:[#allocation122_spill] sm:$0xff] %v7236_v44  ;;  %v6298_v29 = vld [vmem:[#allocation4] sm:$0xff]  ;;  %v1014_v58 = vld [vmem:[#allocation9 + $0x748] sm:$0xff]  ;;  %v1248_v44 = vld [vmem:[#allocation9 + $0xe98] sm:$0xff] }
 0x365   : > { %4232 = vmatpush.msrb.mxu3 %v1128_v42  ;;  %4171 = vmatpush.msra.mxu0 %v792_v28  ;;  %v1260_v42 = vld [vmem:[#allocation9 + $0xef8] sm:$0xff] }
 0x366   : > { %4194 = vmatpush.msra.mxu1 %v888_v43  ;;  %4210 = vmatpush.msrb.mxu2 %v1026_v13  ;;  %v1356_v28 = vld [vmem:[#allocation9 + $0x11f8] sm:$0xff]  ;;  %v1110_v13 = vld [vmem:[#allocation9 + $0xa48] sm:$0xff]  ;;  %v7240_v19 = vpop.f32.mrf.mxu3 }
 0x367   : > { %4233 = vmatpush.msrb.mxu3 %v1122_v39  ;;  %6290 = vset.pattern.permute.xlu1 %v7841_v22  ;;  %v1254_v43 = vld [vmem:[#allocation9 + $0xec8] sm:$0xff]  ;;  %v1008_v22 = vld [vmem:[#allocation9 + $0x718] sm:$0xff] }
 0x368   : > { %4554 = vperm.xlu1 %6290, %v6298_v29   ;;  %4172 = vmatpush.msra.mxu0 %v786_v53  ;;  %v1350_v39 = vld [vmem:[#allocation9 + $0x11c8] sm:$0xff]  ;;  %v1104_v53 = vld [vmem:[#allocation9 + $0xa18] sm:$0xff] }
 0x369   : > { %4195 = vmatpush.msra.mxu1 %v882_v49  ;;  %4211 = vmatpush.msrb.mxu2 %v1020_v31  ;;  %v1344_v49 = vld [vmem:[#allocation9 + $0x1198] sm:$0xff]  ;;  %v1002_v31 = vld [vmem:[#allocation9 + $0x6e8] sm:$0xff] }
 0x36a   : > { %4234 = vmatpush.msrb.mxu3 %v1116_v34  ;;  %4173 = vmatmul.f32.vlgmr.msra.gmra.mxu0 %v6768_v23  ;;  %v7242_v34 = vpop.f32.mrf.mxu1  ;;  %v7244_v23 = vpop.f32.mrf.mxu2 }
 0x36b   : > { %4196 = vmatmul.f32.vlgmr.msra.gmra.mxu1 %v6771_v26  ;;  %4249 = vmatpush.msrb.mxu0 %v1260_v42  ;;  %7974 = vst [vmem:[#allocation123_spill] sm:$0xff] %v7244_v23  ;;  %v1098_v26 = vld [vmem:[#allocation9 + $0x9e8] sm:$0xff]  ;;  %v1236_v23 = vld [vmem:[#allocation9 + $0xe38] sm:$0xff] }
 0x36c   : > { %4272 = vmatpush.msrb.mxu1 %v1356_v28  ;;  %4212 = vmatpush.msrb.mxu2 %v1014_v58  ;;  %v1242_v42 = vld [vmem:[#allocation9 + $0xe68] sm:$0xff]  ;;  %v996_v28 = vld [vmem:[#allocation9 + $0x6b8] sm:$0xff] }
 0x36d   : > { %4235 = vmatpush.msrb.mxu3 %v1110_v13  ;;  %4250 = vmatpush.msrb.mxu0 %v1254_v43  ;;  %v1092_v58 = vld [vmem:[#allocation9 + $0x9b8] sm:$0xff]  ;;  %v7246_v13 = vpop.f32.mrf.mxu0  ;;  %v7844_v43 = vmov 4  }
 0x36e   : > { %4273 = vmatpush.msrb.mxu1 %v1350_v39  ;;  %4213 = vmatpush.msrb.mxu2 %v1008_v22  ;;  %v1332_v22 = vld [vmem:[#allocation9 + $0x1138] sm:$0xff]  ;;  %v990_v39 = vld [vmem:[#allocation9 + $0x688] sm:$0xff] }
 0x36f   : > { %4236 = vmatpush.msrb.mxu3 %v1104_v53  ;;  %4251 = vmatpush.msrb.mxu0 %v1248_v44  ;;  %v7249_v53 = vpop.f32.mrf.mxu3  ;;  %v1086_v44 = vld [vmem:[#allocation9 + $0x988] sm:$0xff] }
 0x370   : > { %4274 = vmatpush.msrb.mxu1 %v1344_v49  ;;  %4214 = vmatpush.msrb.mxu2 %v1002_v31  ;;  %7975 = vst [vmem:[#allocation124_spill] sm:$0xff] %v7249_v53  ;;  %v1230_v49 = vld [vmem:[#allocation9 + $0xe08] sm:$0xff]  ;;  %v1080_v31 = vld [vmem:[#allocation9 + $0x958] sm:$0xff] }
 0x371   : > { %4237 = vmatpush.msrb.mxu3 %v1098_v26  ;;  %4252 = vmatpush.msrb.mxu0 %v1242_v42  ;;  %v1326_v26 = vld [vmem:[#allocation9 + $0x1108] sm:$0xff]  ;;  %v1224_v42 = vld [vmem:[#allocation9 + $0xdd8] sm:$0xff] }
 0x372   : > { %4275 = vmatpush.msrb.mxu1 %v1338_v18  ;;  %6292 = vset.pattern.permute.xlu1 %v7844_v43  ;;  %v984_v18 = vld [vmem:[#allocation9 + $0x658] sm:$0xff]  ;;  %v1206_v53 = vld [vmem:[#allocation9 + $0xd48] sm:$0xff] }
 0x373   : > { %4215 = vmatpush.msrb.mxu2 %v996_v28  ;;  %4238 = vmatpush.msrb.mxu3 %v1092_v58  ;;  %v7253_v28 = vpop.f32.mrf.mxu1  ;;  %v7255_v58 = vpop.f32.mrf.mxu2  ;;  %v1320_v43 = vld [vmem:[#allocation9 + $0x10d8] sm:$0xff] }
 0x374   : > { %4570 = vperm.xlu1 %6292, %v6298_v29   ;;  %4176 = vmatmul.f32.gmra.mxu0 %v6781_v38  ;;  %7976 = vst [vmem:[#allocation125_spill] sm:$0xff] %v7255_v58  ;;  %v7977_v29 = vmov 3   ;;  %v978_v38 = vld [vmem:[#allocation9 + $0x628] sm:$0xff]  ;;  %v1296_v58 = vld [vmem:[#allocation9 + $0x1018] sm:$0xff] }
 0x375   : > { %4199 = vmatmul.f32.gmra.mxu1 %v6778_v36  ;;  %4253 = vmatpush.msrb.mxu0 %v1236_v23  ;;  %v1074_v23 = vld [vmem:[#allocation9 + $0x928] sm:$0xff]  ;;  %v7258_v36 = vpop.f32.mrf.mxu0 }
 0x376   : > { %4276 = vmatpush.msrb.mxu1 %v1332_v22  ;;  %4216 = vmatpush.msrb.mxu2 %v990_v39  ;;  %7978 = vst [vmem:[#allocation126_spill] sm:$0xff] %v7258_v36  ;;  %v7260_v22 = vld [vmem:[#allocation4 + $0x8] sm:$0xff] }
 0x377   : > { %4239 = vmatpush.msrb.mxu3 %v1086_v44  ;;  %4254 = vmatpush.msrb.mxu0 %v1230_v49  ;;  %v1218_v39 = vld [vmem:[#allocation9 + $0xda8] sm:$0xff]  ;;  %v1452_v49 = vld [vmem:[#allocation9 + $0x14f8] sm:$0xff]  ;;  %v7265_v36 = vpop.f32.mrf.mxu3 }
 0x378   : > { %4277 = vmatpush.msrb.mxu1 %v1326_v26  ;;  %6289 = vset.pattern.permute.xlu0 %v7977_v29  ;;  %v1314_v44 = vld [vmem:[#allocation9 + $0x10a8] sm:$0xff]  ;;  %v1548_v26 = vld [vmem:[#allocation9 + $0x17f8] sm:$0xff]  ;;  %7979 = vst [vmem:[#allocation127_spill] sm:$0xff] %v7265_v36 }
 0x379   : > { %4217 = vmatpush.msrb.mxu2 %v984_v18  ;;  %4240 = vmatpush.msrb.mxu3 %v1080_v31  ;;  %v1212_v29 = vld [vmem:[#allocation9 + $0xd78] sm:$0xff]  ;;  %v1446_v31 = vld [vmem:[#allocation9 + $0x14c8] sm:$0xff] }
 0x37a   : > { %4558 = vperm.xlu0 %6289, %v7260_v22   ;;  %4255 = vmatpush.msrb.mxu0 %v1224_v42  ;;  %v1308_v18 = vld [vmem:[#allocation9 + $0x1078] sm:$0xff]  ;;  %v1542_v42 = vld [vmem:[#allocation9 + $0x17c8] sm:$0xff] }
 0x37b   : > { %4278 = vmatpush.msrb.mxu1 %v1320_v43  ;;  %4218 = vmatpush.msrb.mxu2 %v978_v38  ;;  %v1302_v38 = vld [vmem:[#allocation9 + $0x1048] sm:$0xff]  ;;  %v1440_v43 = vld [vmem:[#allocation9 + $0x1498] sm:$0xff] }
 0x37c   : > { %4241 = vmatpush.msrb.mxu3 %v1074_v23  ;;  %4219 = vmatmul.f32.vlgmr.msrb.gmra.mxu2 %v6786_v47  ;;  %v7267_v23 = vpop.f32.mrf.mxu1  ;;  %v7269_v47 = vpop.f32.mrf.mxu2  ;;  %v1434_v36 = vld [vmem:[#allocation9 + $0x1468] sm:$0xff] }
 0x37d   : > { %4242 = vmatmul.f32.vlgmr.msrb.gmra.mxu3 %v6789_v51  ;;  %4256 = vmatpush.msrb.mxu0 %v1218_v39  ;;  %7980 = vst [vmem:[#allocation128_spill] sm:$0xff] %v7269_v47  ;;  %v1536_v51 = vld [vmem:[#allocation9 + $0x1798] sm:$0xff] }
 0x37e   : > { %4279 = vmatpush.msrb.mxu1 %v1314_v44  ;;  %4295 = vmatpush.msra.mxu2 %v1452_v49  ;;  %v1200_v39 = vld [vmem:[#allocation9 + $0xd18] sm:$0xff]  ;;  %v1530_v44 = vld [vmem:[#allocation9 + $0x1768] sm:$0xff] }
 0x37f   : > { %4318 = vmatpush.msra.mxu3 %v1548_v26  ;;  %4257 = vmatpush.msrb.mxu0 %v1212_v29  ;;  %v1194_v49 = vld [vmem:[#allocation9 + $0xce8] sm:$0xff]  ;;  %v7271_v26 = vpop.f32.mrf.mxu0  ;;  %v1428_v47 = vld [vmem:[#allocation9 + $0x1438] sm:$0xff] }
 0x380   : > { %4280 = vmatpush.msrb.mxu1 %v1308_v18  ;;  %4296 = vmatpush.msra.mxu2 %v1446_v31  ;;  %v1290_v29 = vld [vmem:[#allocation9 + $0xfe8] sm:$0xff]  ;;  %v1524_v18 = vld [vmem:[#allocation9 + $0x1738] sm:$0xff] }
 0x381   : > { %4319 = vmatpush.msra.mxu3 %v1542_v42  ;;  %4258 = vmatpush.msrb.mxu0 %v1206_v53  ;;  %v1188_v31 = vld [vmem:[#allocation9 + $0xcb8] sm:$0xff]  ;;  %v7274_v53 = vpop.f32.mrf.mxu3 }
 0x382   : > { %4281 = vmatpush.msrb.mxu1 %v1302_v38  ;;  %4297 = vmatpush.msra.mxu2 %v1440_v43  ;;  %7981 = vst [vmem:[#allocation129_spill] sm:$0xff] %v7274_v53  ;;  %v1284_v42 = vld [vmem:[#allocation9 + $0xfb8] sm:$0xff]  ;;  %v1518_v38 = vld [vmem:[#allocation9 + $0x1708] sm:$0xff] }
 0x383   : > { %4320 = vmatpush.msra.mxu3 %v1536_v51  ;;  %4259 = vmatpush.msrb.mxu0 %v1200_v39  ;;  %v1422_v51 = vld [vmem:[#allocation9 + $0x1408] sm:$0xff]  ;;  %v1512_v39 = vld [vmem:[#allocation9 + $0x16d8] sm:$0xff] }
 0x384   : > { %4282 = vmatpush.msrb.mxu1 %v1296_v58  ;;  %4298 = vmatpush.msra.mxu2 %v1434_v36  ;;  %v1182_v43 = vld [vmem:[#allocation9 + $0xc88] sm:$0xff]  ;;  %v1416_v58 = vld [vmem:[#allocation9 + $0x13d8] sm:$0xff]  ;;  %v7279_v53 = vpop.f32.mrf.mxu2 }
 0x385   : > { %4321 = vmatpush.msra.mxu3 %v1530_v44  ;;  %4222 = vmatmul.f32.gmra.mxu2 %v6802_v3  ;;  %v1278_v36 = vld [vmem:[#allocation9 + $0xf88] sm:$0xff]  ;;  %v1176_v44 = vld [vmem:[#allocation9 + $0xc58] sm:$0xff]  ;;  %v7277_v3 = vpop.f32.mrf.mxu1  ;;  %7983 = vst [vmem:[#allocation131_spill] sm:$0xff] %v7279_v53 }
 0x386   : > { %4245 = vmatmul.f32.gmra.mxu3 %v6805_v8  ;;  %4260 = vmatpush.msrb.mxu0 %v1194_v49  ;;  %7982 = vst [vmem:[#allocation130_spill] sm:$0xff] %v7277_v3  ;;  %v1272_v49 = vld [vmem:[#allocation9 + $0xf58] sm:$0xff]  ;;  %v1410_v8 = vld [vmem:[#allocation9 + $0x13a8] sm:$0xff] }
 0x387   : > { %4283 = vmatpush.msrb.mxu1 %v1290_v29  ;;  %4299 = vmatpush.msra.mxu2 %v1428_v47  ;;  %v1506_v47 = vld [vmem:[#allocation9 + $0x16a8] sm:$0xff]  ;;  %v1644_v53 = vld [vmem:[#allocation9 + $0x1af8] sm:$0xff] }
 0x388   : > { %4322 = vmatpush.msra.mxu3 %v1524_v18  ;;  %4261 = vmatpush.msrb.mxu0 %v1188_v31  ;;  %v1170_v29 = vld [vmem:[#allocation9 + $0xc28] sm:$0xff]  ;;  %v7281_v18 = vpop.f32.mrf.mxu0 }
 0x389   : > { %4284 = vmatpush.msrb.mxu1 %v1284_v42  ;;  %4300 = vmatpush.msra.mxu2 %v1422_v51  ;;  %7984 = vst [vmem:[#allocation132_spill] sm:$0xff] %v7281_v18  ;;  %v1266_v31 = vld [vmem:[#allocation9 + $0xf28] sm:$0xff]  ;;  %v1404_v42 = vld [vmem:[#allocation9 + $0x1378] sm:$0xff] }
 0x38a   : > { %4323 = vmatpush.msra.mxu3 %v1518_v38  ;;  %4262 = vmatpush.msrb.mxu0 %v1182_v43  ;;  %v1500_v51 = vld [vmem:[#allocation9 + $0x1678] sm:$0xff]  ;;  %v1398_v43 = vld [vmem:[#allocation9 + $0x1348] sm:$0xff] }
 0x38b   : > { %4285 = vmatpush.msrb.mxu1 %v1278_v36  ;;  %4301 = vmatpush.msra.mxu2 %v1416_v58  ;;  %v1740_v38 = vld [vmem:[#allocation9 + $0x1df8] sm:$0xff]  ;;  %v7283_v36 = vpop.f32.mrf.mxu3  ;;  %v1494_v58 = vld [vmem:[#allocation9 + $0x1648] sm:$0xff] }
 0x38c   : > { %4324 = vmatpush.msra.mxu3 %v1512_v39  ;;  %4263 = vmatpush.msrb.mxu0 %v1176_v44  ;;  %7985 = vst [vmem:[#allocation133_spill] sm:$0xff] %v7283_v36  ;;  %v1638_v39 = vld [vmem:[#allocation9 + $0x1ac8] sm:$0xff] }
 0x38d   : > { %4286 = vmatpush.msrb.mxu1 %v1272_v49  ;;  %4302 = vmatpush.msra.mxu2 %v1410_v8  ;;  %v1734_v44 = vld [vmem:[#allocation9 + $0x1dc8] sm:$0xff]  ;;  %v1392_v8 = vld [vmem:[#allocation9 + $0x1318] sm:$0xff]  ;;  %v7287_v49 = vpop.f32.mrf.mxu1 }
 0x38e   : > { %4325 = vmatpush.msra.mxu3 %v1506_v47  ;;  %4264 = vmatpush.msrb.mxu0 %v1170_v29  ;;  %7986 = vst [vmem:[#allocation134_spill] sm:$0xff] %v7287_v49  ;;  %v7289_v47 = vpop.f32.mrf.mxu2  ;;  %v1488_v29 = vld [vmem:[#allocation9 + $0x1618] sm:$0xff]  ;;  %v1626_v18 = vld [vmem:[#allocation9 + $0x1a68] sm:$0xff] }
 0x38f   : > { %4287 = vmatpush.msrb.mxu1 %v1266_v31  ;;  %4303 = vmatpush.msra.mxu2 %v1404_v42  ;;  %7987 = vst [vmem:[#allocation135_spill] sm:$0xff] %v7289_v47  ;;  %v1632_v31 = vld [vmem:[#allocation9 + $0x1a98] sm:$0xff]  ;;  %v1578_v47 = vld [vmem:[#allocation9 + $0x18e8] sm:$0xff] }
 0x390   : > { %4326 = vmatpush.msra.mxu3 %v1500_v51  ;;  %4265 = vmatmul.f32.vlgmr.msrb.gmra.mxu0 %v6793_v55  ;;  %v1728_v42 = vld [vmem:[#allocation9 + $0x1d98] sm:$0xff]  ;;  %v1386_v51 = vld [vmem:[#allocation9 + $0x12e8] sm:$0xff]  ;;  %v7291_v36 = vpop.f32.mrf.mxu0 }
 0x391   : > { %4288 = vmatmul.f32.vlgmr.msrb.gmra.mxu1 %v6797_v57  ;;  %4341 = vmatpush.msra.mxu0 %v1644_v53  ;;  %v1482_v55 = vld [vmem:[#allocation9 + $0x15e8] sm:$0xff]  ;;  %v1380_v57 = vld [vmem:[#allocation9 + $0x12b8] sm:$0xff]  ;;  %7988 = vst [vmem:[#allocation136_spill] sm:$0xff] %v7291_v36 }
 0x392   : > { %4364 = vmatpush.msra.mxu1 %v1740_v38  ;;  %4304 = vmatpush.msra.mxu2 %v1398_v43  ;;  %v1722_v53 = vld [vmem:[#allocation9 + $0x1d68] sm:$0xff]  ;;  %v1476_v38 = vld [vmem:[#allocation9 + $0x15b8] sm:$0xff] }
 0x393   : > { %4327 = vmatpush.msra.mxu3 %v1494_v58  ;;  %4342 = vmatpush.msra.mxu0 %v1638_v39  ;;  %v7293_v43 = vpop.f32.mrf.mxu3  ;;  %v1620_v58 = vld [vmem:[#allocation9 + $0x1a38] sm:$0xff]  ;;  %v1782_v36 = vld [vmem:[#allocation9 + $0x1f48] sm:$0xff] }
 0x394   : > { %4365 = vmatpush.msra.mxu1 %v1734_v44  ;;  %4305 = vmatpush.msra.mxu2 %v1392_v8  ;;  %7989 = vst [vmem:[#allocation137_spill] sm:$0xff] %v7293_v43  ;;  %v1716_v39 = vld [vmem:[#allocation9 + $0x1d38] sm:$0xff]  ;;  %v7990_v44 = vmov 4   ;;  %v1374_v8 = vld [vmem:[#allocation9 + $0x1288] sm:$0xff] }
 0x395   : > { %4328 = vmatpush.msra.mxu3 %v1488_v29  ;;  %4343 = vmatpush.msra.mxu0 %v1632_v31  ;;  %v1470_v29 = vld [vmem:[#allocation9 + $0x1588] sm:$0xff]  ;;  %v1788_v49 = vld [vmem:[#allocation9 + $0x1f78] sm:$0xff] }
 0x396   : > { %4366 = vmatpush.msra.mxu1 %v1728_v42  ;;  %4306 = vmatpush.msra.mxu2 %v1386_v51  ;;  %v1614_v31 = vld [vmem:[#allocation9 + $0x1a08] sm:$0xff]  ;;  %v7298_v42 = vpop.f32.mrf.mxu1  ;;  %v7300_v51 = vpop.f32.mrf.mxu2 }
 0x397   : > { %4329 = vmatpush.msra.mxu3 %v1482_v55  ;;  %4344 = vmatpush.msra.mxu0 %v1626_v18  ;;  %v1710_v55 = vld [vmem:[#allocation9 + $0x1d08] sm:$0xff]  ;;  %v1368_v18 = vld [vmem:[#allocation9 + $0x1258] sm:$0xff]  ;;  %7991 = vst [vmem:[#allocation138_spill] sm:$0xff] %v7298_v42 }
 0x398   : > { %4367 = vmatpush.msra.mxu1 %v1722_v53  ;;  %4307 = vmatpush.msra.mxu2 %v1380_v57  ;;  %7992 = vst [vmem:[#allocation139_spill] sm:$0xff] %v7300_v51  ;;  %v1464_v57 = vld [vmem:[#allocation9 + $0x1558] sm:$0xff]  ;;  %v1698_v43 = vld [vmem:[#allocation9 + $0x1ca8] sm:$0xff] }
 0x399   : > { %4330 = vmatpush.msra.mxu3 %v1476_v38  ;;  %6291 = vset.pattern.permute.xlu2 %v7990_v44  ;;  %v1608_v53 = vld [vmem:[#allocation9 + $0x19d8] sm:$0xff] }
 0x39a   : > { %4268 = vmatmul.f32.gmra.mxu0 %v6809_v16  ;;  %4291 = vmatmul.f32.gmra.mxu1 %v6813_v4  ;;  %v1704_v38 = vld [vmem:[#allocation9 + $0x1cd8] sm:$0xff]  ;;  %v1362_v16 = vld [vmem:[#allocation9 + $0x1228] sm:$0xff]  ;;  %v7303_v4 = vpop.f32.mrf.mxu0 }
 0x39b   : > { %4345 = vmatpush.msra.mxu0 %v1620_v58  ;;  %4368 = vmatpush.msra.mxu1 %v1716_v39  ;;  %v1458_v58 = vld [vmem:[#allocation9 + $0x1528] sm:$0xff]  ;;  %v1836_v51 = vld [vmem:[#allocation9 + $0x20f8] sm:$0xff] }
 0x39c   : > { %4574 = vperm.xlu2 %6291, %v7260_v22   ;;  %4308 = vmatpush.msra.mxu2 %v1374_v8  ;;  %v1602_v39 = vld [vmem:[#allocation9 + $0x19a8] sm:$0xff]  ;;  %v1932_v22 = vld [vmem:[#allocation9 + $0x23f8] sm:$0xff] }
 0x39d   : > { %4331 = vmatpush.msra.mxu3 %v1470_v29  ;;  %4346 = vmatpush.msra.mxu0 %v1614_v31  ;;  %v1596_v8 = vld [vmem:[#allocation9 + $0x1978] sm:$0xff]  ;;  %v7306_v29 = vpop.f32.mrf.mxu3 }
 0x39e   : > { %4369 = vmatpush.msra.mxu1 %v1710_v55  ;;  %4309 = vmatpush.msra.mxu2 %v1368_v18  ;;  %7993 = vst [vmem:[#allocation140_spill] sm:$0xff] %v7306_v29  ;;  %v1692_v31 = vld [vmem:[#allocation9 + $0x1c78] sm:$0xff]  ;;  %v1830_v55 = vld [vmem:[#allocation9 + $0x20c8] sm:$0xff] }
 0x39f   : > { %4332 = vmatpush.msra.mxu3 %v1464_v57  ;;  %4347 = vmatpush.msra.mxu0 %v1608_v53  ;;  %v1926_v18 = vld [vmem:[#allocation9 + $0x23c8] sm:$0xff]  ;;  %v7309_v53 = vpop.f32.mrf.mxu1  ;;  %v1584_v29 = vld [vmem:[#allocation9 + $0x1918] sm:$0xff] }
 0x3a0   : > { %4370 = vmatpush.msra.mxu1 %v1704_v38  ;;  %4310 = vmatpush.msra.mxu2 %v1362_v16  ;;  %v1590_v57 = vld [vmem:[#allocation9 + $0x1948] sm:$0xff]  ;;  %v7311_v16 = vpop.f32.mrf.mxu2  ;;  %v1560_v42 = vld [vmem:[#allocation9 + $0x1858] sm:$0xff] }
 0x3a1   : > { %4333 = vmatpush.msra.mxu3 %v1458_v58  ;;  %4311 = vmatmul.f32.vlgmr.msra.gmra.mxu2 %v6818_v32  ;;  %v1686_v38 = vld [vmem:[#allocation9 + $0x1c48] sm:$0xff]  ;;  %v1824_v58 = vld [vmem:[#allocation9 + $0x2098] sm:$0xff] }
 0x3a2   : > { %4334 = vmatmul.f32.vlgmr.msra.gmra.mxu3 %v6821_v35  ;;  %4348 = vmatpush.msra.mxu0 %v1602_v39  ;;  %v1920_v32 = vld [vmem:[#allocation9 + $0x2398] sm:$0xff]  ;;  %v1818_v35 = vld [vmem:[#allocation9 + $0x2068] sm:$0xff] }
 0x3a3   : > { %4371 = vmatpush.msra.mxu1 %v1698_v43  ;;  %4387 = vmatpush.msrb.mxu2 %v1836_v51  ;;  %v1680_v39 = vld [vmem:[#allocation9 + $0x1c18] sm:$0xff]  ;;  %v1914_v43 = vld [vmem:[#allocation9 + $0x2368] sm:$0xff]  ;;  %v7313_v51 = vpop.f32.mrf.mxu0 }
 0x3a4   : > { %4410 = vmatpush.msrb.mxu3 %v1932_v22  ;;  %4349 = vmatpush.msra.mxu0 %v1596_v8  ;;  %v1674_v22 = vld [vmem:[#allocation9 + $0x1be8] sm:$0xff]  ;;  %v1812_v8 = vld [vmem:[#allocation9 + $0x2038] sm:$0xff] }
 0x3a5   : > { %4372 = vmatpush.msra.mxu1 %v1692_v31  ;;  %4388 = vmatpush.msrb.mxu2 %v1830_v55  ;;  %v7315_v31 = vpop.f32.mrf.mxu3  ;;  %v1908_v55 = vld [vmem:[#allocation9 + $0x2338] sm:$0xff] }
 0x3a6   : > { %4411 = vmatpush.msrb.mxu3 %v1926_v18  ;;  %4350 = vmatpush.msra.mxu0 %v1590_v57  ;;  %v1572_v18 = vld [vmem:[#allocation9 + $0x18b8] sm:$0xff] }
 0x3a7   : > { %4373 = vmatpush.msra.mxu1 %v1686_v38  ;;  %4389 = vmatpush.msrb.mxu2 %v1824_v58  ;;  %v1668_v57 = vld [vmem:[#allocation9 + $0x1bb8] sm:$0xff]  ;;  %v1806_v38 = vld [vmem:[#allocation9 + $0x2008] sm:$0xff] }
 0x3a8   : > { %4412 = vmatpush.msrb.mxu3 %v1920_v32  ;;  %4351 = vmatpush.msra.mxu0 %v1584_v29  ;;  %v1902_v32 = vld [vmem:[#allocation9 + $0x2308] sm:$0xff]  ;;  %v1800_v58 = vld [vmem:[#allocation9 + $0x1fd8] sm:$0xff] }
 0x3a9   : > { %4374 = vmatpush.msra.mxu1 %v1680_v39  ;;  %4390 = vmatpush.msrb.mxu2 %v1818_v35  ;;  %v1566_v29 = vld [vmem:[#allocation9 + $0x1888] sm:$0xff]  ;;  %v7319_v39 = vpop.f32.mrf.mxu1 }
 0x3aa   : > { %4413 = vmatpush.msrb.mxu3 %v1914_v43  ;;  %4314 = vmatmul.f32.gmra.mxu2 %v6834_v0  ;;  %v1662_v35 = vld [vmem:[#allocation9 + $0x1b88] sm:$0xff]  ;;  %v7321_v43 = vpop.f32.mrf.mxu2  ;;  %v1896_v0 = vld [vmem:[#allocation9 + $0x22d8] sm:$0xff] }
 0x3ab   : > { %4337 = vmatmul.f32.gmra.mxu3 %v6837_v5  ;;  %4352 = vmatpush.msra.mxu0 %v1578_v47  ;;  %v1656_v47 = vld [vmem:[#allocation9 + $0x1b58] sm:$0xff]  ;;  %v1794_v5 = vld [vmem:[#allocation9 + $0x1fa8] sm:$0xff] }
 0x3ac   : > { %4375 = vmatpush.msra.mxu1 %v1674_v22  ;;  %4391 = vmatpush.msrb.mxu2 %v1812_v8  ;;  %v7323_v22 = vpop.f32.mrf.mxu0  ;;  %v1890_v8 = vld [vmem:[#allocation9 + $0x22a8] sm:$0xff] }
 0x3ad   : > { %4414 = vmatpush.msrb.mxu3 %v1908_v55  ;;  %4353 = vmatpush.msra.mxu0 %v1572_v18  ;;  %v1554_v55 = vld [vmem:[#allocation9 + $0x1828] sm:$0xff] }
 0x3ae   : > { %4376 = vmatpush.msra.mxu1 %v1668_v57  ;;  %4392 = vmatpush.msrb.mxu2 %v1806_v38  ;;  %v1650_v18 = vld [vmem:[#allocation9 + $0x1b28] sm:$0xff]  ;;  %v1884_v57 = vld [vmem:[#allocation9 + $0x2278] sm:$0xff] }
 0x3af   : > { %4415 = vmatpush.msrb.mxu3 %v1902_v32  ;;  %4354 = vmatpush.msra.mxu0 %v1566_v29  ;;  %v2028_v38 = vld [vmem:[#allocation9 + $0x26f8] sm:$0xff]  ;;  %v7325_v32 = vpop.f32.mrf.mxu3 }
 0x3b0   : > { %4377 = vmatpush.msra.mxu1 %v1662_v35  ;;  %4393 = vmatpush.msrb.mxu2 %v1800_v58  ;;  %v2124_v29 = vld [vmem:[#allocation9 + $0x29f8] sm:$0xff]  ;;  %v1878_v35 = vld [vmem:[#allocation9 + $0x2248] sm:$0xff] }
 0x3b1   : > { %4416 = vmatpush.msrb.mxu3 %v1896_v0  ;;  %4355 = vmatpush.msra.mxu0 %v1560_v42  ;;  %v2022_v0 = vld [vmem:[#allocation9 + $0x26c8] sm:$0xff]  ;;  %v7328_v42 = vpop.f32.mrf.mxu1 }
 0x3b2   : > { %4378 = vmatpush.msra.mxu1 %v1656_v47  ;;  %4394 = vmatpush.msrb.mxu2 %v1794_v5  ;;  %v7330_v58 = vpop.f32.mrf.mxu2  ;;  %v2118_v5 = vld [vmem:[#allocation9 + $0x29c8] sm:$0xff]  ;;  %v1776_v47 = vld [vmem:[#allocation9 + $0x1f18] sm:$0xff] }
 0x3b3   : > { %4417 = vmatpush.msrb.mxu3 %v1890_v8  ;;  %4356 = vmatpush.msra.mxu0 %v1554_v55  ;;  %v1872_v8 = vld [vmem:[#allocation9 + $0x2218] sm:$0xff] }
 0x3b4   : > { %4379 = vmatpush.msra.mxu1 %v1650_v18  ;;  %4395 = vmatpush.msrb.mxu2 %v1788_v49  ;;  %v2016_v49 = vld [vmem:[#allocation9 + $0x2698] sm:$0xff]  ;;  %v1770_v18 = vld [vmem:[#allocation9 + $0x1ee8] sm:$0xff]  ;;  %v7333_v3 = vpop.f32.mrf.mxu0 }
 0x3b5   : > { %4418 = vmatpush.msrb.mxu3 %v1884_v57  ;;  %4357 = vmatmul.f32.vlgmr.msra.gmra.mxu0 %v6826_v48  ;;  %v2112_v55 = vld [vmem:[#allocation9 + $0x2998] sm:$0xff]  ;;  %v1866_v57 = vld [vmem:[#allocation9 + $0x21e8] sm:$0xff] }
 0x3b6   : > { %4380 = vmatmul.f32.vlgmr.msra.gmra.mxu1 %v6829_v50  ;;  %4433 = vmatpush.msrb.mxu0 %v2028_v38  ;;  %v2010_v48 = vld [vmem:[#allocation9 + $0x2668] sm:$0xff]  ;;  %v1764_v38 = vld [vmem:[#allocation9 + $0x1eb8] sm:$0xff] }
 0x3b7   : > { %4456 = vmatpush.msrb.mxu1 %v2124_v29  ;;  %4396 = vmatpush.msrb.mxu2 %v1782_v36  ;;  %v2106_v50 = vld [vmem:[#allocation9 + $0x2968] sm:$0xff]  ;;  %v1860_v29 = vld [vmem:[#allocation9 + $0x21b8] sm:$0xff]  ;;  %v2361_v36 = vadd.f32 %v6972_v45, %v6969_v30  ;;  %v3097_v30 = vadd.f32 %v7151_v2, %v7147_v56  ;;  %v3833_v56 = vadd.f32 %v7319_v39, %v7313_v51 }
 0x3b8   : > { %4419 = vmatpush.msrb.mxu3 %v1878_v35  ;;  %4434 = vmatpush.msrb.mxu0 %v2022_v0  ;;  %v7337_v35 = vpop.f32.mrf.mxu3  ;;  %v2004_v0 = vld [vmem:[#allocation9 + $0x2638] sm:$0xff] }
 0x3b9   : > { %4457 = vmatpush.msrb.mxu1 %v2118_v5  ;;  %4397 = vmatpush.msrb.mxu2 %v1776_v47  ;;  %v2100_v5 = vld [vmem:[#allocation9 + $0x2938] sm:$0xff]  ;;  %v1758_v47 = vld [vmem:[#allocation9 + $0x1e88] sm:$0xff]  ;;  %v3120_v2 = vadd.f32 %v7153_v54, %v3097_v30  ;;  %v3856_v54 = vadd.f32 %v7321_v43, %v3833_v56 }
 0x3ba   : > { %4420 = vmatpush.msrb.mxu3 %v1872_v8  ;;  %4435 = vmatpush.msrb.mxu0 %v2016_v49  ;;  %v2358_v8 = vadd.f32 %v6965_v61, %v6963_v59  ;;  %v2384_v49 = vadd.f32 %v6982_v52, %v2361_v36  ;;  %v7349_v59 = vpop.f32.mrf.mxu2  ;;  %v1848_v61 = vld [vmem:[#allocation9 + $0x2158] sm:$0xff] }
 0x3bb   : > { %4458 = vmatpush.msrb.mxu1 %v2112_v55  ;;  %4398 = vmatpush.msrb.mxu2 %v1770_v18  ;;  %v1854_v55 = vld [vmem:[#allocation9 + $0x2188] sm:$0xff]  ;;  %v1992_v52 = vld [vmem:[#allocation9 + $0x25d8] sm:$0xff] }
 0x3bc   : > { %4421 = vmatpush.msrb.mxu3 %v1866_v57  ;;  %4436 = vmatpush.msrb.mxu0 %v2010_v48  ;;  %v1998_v18 = vld [vmem:[#allocation9 + $0x2608] sm:$0xff]  ;;  %v2381_v45 = vadd.f32 %v6976_v62, %v2358_v8  ;;  %v7347_v57 = vpop.f32.mrf.mxu1  ;;  %v2407_v36 = vadd.f32 %v6985_v21, %v2384_v49  ;;  %v2220_v39 = vld [vmem:[#allocation9 + $0x2cf8] sm:$0xff]  ;;  %v3143_v8 = vadd.f32 %v7159_v60, %v3120_v2 }
 0x3bd   : > { %4459 = vmatpush.msrb.mxu1 %v2106_v50  ;;  %4399 = vmatpush.msrb.mxu2 %v1764_v38  ;;  %v2094_v48 = vld [vmem:[#allocation9 + $0x2908] sm:$0xff]  ;;  %v1752_v50 = vld [vmem:[#allocation9 + $0x1e58] sm:$0xff]  ;;  %v3094_v38 = vadd.f32 %v7141_v24, %v7136_v46  ;;  %v3830_v46 = vadd.f32 %v7309_v53, %v7303_v4 }
 0x3be   : > { %4422 = vmatpush.msrb.mxu3 %v1860_v29  ;;  %4360 = vmatmul.f32.gmra.mxu0 %v6841_v14  ;;  %v2088_v29 = vld [vmem:[#allocation9 + $0x28d8] sm:$0xff]  ;;  %v1746_v62 = vld [vmem:[#allocation9 + $0x1e28] sm:$0xff]  ;;  %v2404_v51 = vadd.f32 %v6978_v6, %v2381_v45  ;;  %v2430_v53 = vadd.f32 %v6995_v27, %v2407_v36 }
 0x3bf   : > { %4383 = vmatmul.f32.gmra.mxu1 %v6845_v17  ;;  %4437 = vmatpush.msrb.mxu0 %v2004_v0  ;;  %v7357_v0 = vpop.f32.mrf.mxu0  ;;  %v1986_v24 = vld [vmem:[#allocation9 + $0x25a8] sm:$0xff]  ;;  %v3853_v49 = vadd.f32 %v7311_v16, %v3830_v46  ;;  %v1980_v4 = vld [vmem:[#allocation9 + $0x2578] sm:$0xff]  ;;  %v3879_v16 = vadd.f32 %v7325_v32, %v3856_v54 }
 0x3c0   : > { %4460 = vmatpush.msrb.mxu1 %v2100_v5  ;;  %4400 = vmatpush.msrb.mxu2 %v1758_v47  ;;  %v1842_v5 = vld [vmem:[#allocation9 + $0x2128] sm:$0xff]  ;;  %v3117_v47 = vadd.f32 %v7143_v25, %v3094_v38  ;;  %v2316_v25 = vld [vmem:[#allocation9 + $0x2ff8] sm:$0xff]  ;;  %v7368_v43 = vpop.f32.mrf.mxu3 }
 0x3c1   : > { %4423 = vmatpush.msrb.mxu3 %v1854_v55  ;;  %4438 = vmatpush.msrb.mxu0 %v1998_v18  ;;  %v2082_v21 = vld [vmem:[#allocation9 + $0x28a8] sm:$0xff]  ;;  %v2076_v6 = vld [vmem:[#allocation9 + $0x2878] sm:$0xff]  ;;  %v7994_v18 = vld [vmem:[#allocation97_spill] sm:$0xff]  ;;  %v3876_v36 = vadd.f32 %v7315_v31, %v3853_v49  ;;  %v3902_v32 = vadd.f32 %v7333_v3, %v3879_v16 }
 0x3c2   : > { %4461 = vmatpush.msrb.mxu1 %v2094_v48  ;;  %4401 = vmatpush.msrb.mxu2 %v1752_v50  ;;  %v2214_v55 = vld [vmem:[#allocation9 + $0x2cc8] sm:$0xff]  ;;  %v3140_v30 = vadd.f32 %v7994_v18, %v3117_v47  ;;  %v7995_v48 = vld [vmem:[#allocation101_spill] sm:$0xff]  ;;  %v2208_v2 = vld [vmem:[#allocation9 + $0x2c98] sm:$0xff]  ;;  %v7377_v56 = vpop.f32.mrf.mxu2 }
 0x3c3   : > { %4424 = vmatpush.msrb.mxu3 %v1848_v61  ;;  %4439 = vmatpush.msrb.mxu0 %v1992_v52  ;;  %v3166_v60 = vadd.f32 %v7995_v48, %v3143_v8  ;;  %v2310_v50 = vld [vmem:[#allocation9 + $0x2fc8] sm:$0xff]  ;;  %v1968_v47 = vld [vmem:[#allocation9 + $0x2518] sm:$0xff]  ;;  %v3899_v8 = vadd.f32 %v7323_v22, %v3876_v36  ;;  %v8000_v31 = vld [vmem:[#allocation43_spill] sm:$0xff]  ;;  %v3925_v16 = vadd.f32 %v7347_v57, %v3902_v32 }
 0x3c4   : > { %4462 = vmatpush.msrb.mxu1 %v2088_v29  ;;  %4402 = vmatpush.msrb.mxu2 %v1746_v62  ;;  %v1974_v45 = vld [vmem:[#allocation9 + $0x2548] sm:$0xff]  ;;  %v7375_v27 = vpop.f32.mrf.mxu1  ;;  %v7998_v46 = vld [vmem:[#allocation44_spill] sm:$0xff]  ;;  %v8001_v3 = vld [vmem:[#allocation47_spill] sm:$0xff] }
 0x3c5   : > { %4425 = vmatpush.msrb.mxu3 %v1842_v5  ;;  %4403 = vmatmul.f32.vlgmr.msrb.gmra.mxu2 %v6850_v37  ;;  %v7996_v61 = vld [vmem:[#allocation42_spill] sm:$0xff]  ;;  %v2304_v5 = vld [vmem:[#allocation9 + $0x2f98] sm:$0xff]  ;;  %v2453_v54 = vadd.f32 %v7998_v46, %v2430_v53  ;;  %v8002_v53 = vld [vmem:[#allocation99_spill] sm:$0xff]  ;;  %v3948_v36 = vadd.f32 %v7349_v59, %v3925_v16 }
 0x3c6   : > { %4426 = vmatmul.f32.vlgmr.msrb.gmra.mxu3 %v6853_v41  ;;  %4440 = vmatpush.msrb.mxu0 %v1986_v24  ;;  %v2427_v52 = vadd.f32 %v7996_v61, %v2404_v51  ;;  %v2070_v38 = vld [vmem:[#allocation9 + $0x2848] sm:$0xff]  ;;  %v2064_v24 = vld [vmem:[#allocation9 + $0x2818] sm:$0xff]  ;;  %v8006_v57 = vld [vmem:[#allocation35_spill] sm:$0xff] }
 0x3c7   : > { %4463 = vmatpush.msrb.mxu1 %v2082_v21  ;;  %4479 = vmatpush.msra.mxu2 %v2220_v39  ;;  %v7997_v29 = vld [vmem:[#allocation98_spill] sm:$0xff]  ;;  %v7999_v21 = vld [vmem:[#allocation103_spill] sm:$0xff]  ;;  %v2052_v32 = vld [vmem:[#allocation9 + $0x27b8] sm:$0xff] }
 0x3c8   : > { %4502 = vmatpush.msra.mxu3 %v2316_v25  ;;  %4441 = vmatpush.msrb.mxu0 %v1980_v4  ;;  %v3163_v62 = vadd.f32 %v7997_v29, %v3140_v30  ;;  %v2202_v51 = vld [vmem:[#allocation9 + $0x2c68] sm:$0xff]  ;;  %v3189_v39 = vadd.f32 %v7999_v21, %v3166_v60  ;;  %v2450_v49 = vadd.f32 %v8000_v31, %v2427_v52  ;;  %v8003_v30 = vld [vmem:[#allocation104_spill] sm:$0xff]  ;;  %v7391_v61 = vpop.f32.mrf.mxu3 }
 0x3c9   : > { %4464 = vmatpush.msrb.mxu1 %v2076_v6  ;;  %4480 = vmatpush.msra.mxu2 %v2214_v55  ;;  %v2298_v25 = vld [vmem:[#allocation9 + $0x2f68] sm:$0xff]  ;;  %v2476_v4 = vadd.f32 %v8001_v3, %v2453_v54  ;;  %v3993_v6 = vpop.f32.mrf.mxu0  ;;  %v2196_v60 = vld [vmem:[#allocation9 + $0x2c38] sm:$0xff] }
 0x3ca   : > { %4503 = vmatpush.msra.mxu3 %v2310_v50  ;;  %4442 = vmatpush.msrb.mxu0 %v1974_v45  ;;  %v1962_v55 = vld [vmem:[#allocation9 + $0x24e8] sm:$0xff]  ;;  %v3186_v18 = vadd.f32 %v8002_v53, %v3163_v62  ;;  %v3212_v48 = vadd.f32 %v8003_v30, %v3189_v39  ;;  %v8004_v50 = vld [vmem:[#allocation45_spill] sm:$0xff]  ;;  %v2292_v52 = vld [vmem:[#allocation9 + $0x2f38] sm:$0xff]  ;;  %v3922_v62 = vadd.f32 %v7328_v42, %v3899_v8 }
 0x3cb   : > { %4465 = vmatpush.msrb.mxu1 %v2070_v38  ;;  %4481 = vmatpush.msra.mxu2 %v2208_v2  ;;  %v2058_v22 = vld [vmem:[#allocation9 + $0x27e8] sm:$0xff]  ;;  %v2473_v45 = vadd.f32 %v8004_v50, %v2450_v49  ;;  %v1956_v38 = vld [vmem:[#allocation9 + $0x24b8] sm:$0xff] }
 0x3cc   : > { %4504 = vmatpush.msra.mxu3 %v2304_v5  ;;  %4443 = vmatpush.msrb.mxu0 %v1968_v47  ;;  %v8005_v2 = vld [vmem:[#allocation100_spill] sm:$0xff]  ;;  %v2190_v5 = vld [vmem:[#allocation9 + $0x2c08] sm:$0xff]  ;;  %v3945_v39 = vadd.f32 %v7330_v58, %v3922_v62  ;;  %v4016_v31 = vpop.f32.mrf.mxu1 }
 0x3cd   : > { %4466 = vmatpush.msrb.mxu1 %v2064_v24  ;;  %4482 = vmatpush.msra.mxu2 %v2202_v51  ;;  %v3209_v29 = vadd.f32 %v8005_v2, %v3186_v18  ;;  %v8007_v47 = vld [vmem:[#allocation48_spill] sm:$0xff]  ;;  %v2286_v54 = vld [vmem:[#allocation9 + $0x2f08] sm:$0xff]  ;;  %v8011_v18 = vld [vmem:[#allocation109_spill] sm:$0xff] }
 0x3ce   : > { %4505 = vmatpush.msra.mxu3 %v2298_v25  ;;  %4406 = vmatmul.f32.gmra.mxu2 %v6858_v1  ;;  %v2499_v46 = vadd.f32 %v8007_v47, %v2476_v4  ;;  %v1950_v24 = vld [vmem:[#allocation9 + $0x2488] sm:$0xff]  ;;  %v2184_v8 = vld [vmem:[#allocation9 + $0x2bd8] sm:$0xff]  ;;  %v4039_v4 = vpop.f32.mrf.mxu2 }
 0x3cf   : > { %4429 = vmatmul.f32.gmra.mxu3 %v8006_v57  ;;  %4444 = vmatpush.msrb.mxu0 %v1962_v55  ;;  %v8008_v51 = vld [vmem:[#allocation106_spill] sm:$0xff]  ;;  %v2280_v49 = vld [vmem:[#allocation9 + $0x2ed8] sm:$0xff] }
 0x3d0   : > { %4467 = vmatpush.msrb.mxu1 %v2058_v22  ;;  %4483 = vmatpush.msra.mxu2 %v2196_v60  ;;  %v3235_v21 = vadd.f32 %v8008_v51, %v3212_v48  ;;  %v2046_v42 = vld [vmem:[#allocation9 + $0x2788] sm:$0xff]  ;;  %v1944_v3 = vld [vmem:[#allocation9 + $0x2458] sm:$0xff]  ;;  %v3971_v48 = vadd.f32 %v7368_v43, %v3948_v36  ;;  %v8012_v22 = vld [vmem:[#allocation51_spill] sm:$0xff] }
 0x3d1   : > { %4506 = vmatpush.msra.mxu3 %v2292_v52  ;;  %4445 = vmatpush.msrb.mxu0 %v1956_v38  ;;  %v8009_v59 = vld [vmem:[#allocation46_spill] sm:$0xff]  ;;  %v2040_v58 = vld [vmem:[#allocation9 + $0x2758] sm:$0xff]  ;;  %v2522_v60 = vadd.f32 %v8012_v22, %v2499_v46  ;;  %v7406_v52 = vpop.f32.mrf.mxu0  ;;  %v8013_v38 = vld [vmem:[#allocation105_spill] sm:$0xff] }
 0x3d2   : > { %v2496_v25 = vadd.f32 %v8009_v59, %v2473_v45  ;;  %4468 = vmatpush.msrb.mxu1 %v2052_v32  ;;  %4484 = vmatpush.msra.mxu2 %v2190_v5  ;;  %v8010_v55 = vld [vmem:[#allocation102_spill] sm:$0xff]  ;;  %v3258_v30 = vadd.f32 %v8011_v18, %v3235_v21  ;;  %v3994_v62 = vadd.f32 %v3993_v6, %v3971_v48  ;;  %v2172_v36 = vld [vmem:[#allocation9 + $0x2b78] sm:$0xff]  ;;  %v8014_v32 = vld [vmem:[#allocation49_spill] sm:$0xff]  ;;  %v7422_v48 = vpop.permute.xlu1 %4530 }
 0x3d3   : > { %v3232_v53 = vadd.f32 %v8010_v55, %v3209_v29  ;;  %4507 = vmatpush.msra.mxu3 %v2286_v54  ;;  %4446 = vmatpush.msrb.mxu0 %v1950_v24  ;;  %v2178_v16 = vld [vmem:[#allocation9 + $0x2ba8] sm:$0xff]  ;;  %v3968_v29 = vadd.f32 %v7337_v35, %v3945_v39  ;;  %v2268_v47 = vld [vmem:[#allocation9 + $0x2e78] sm:$0xff]  ;;  %v4062_v35 = vpop.f32.mrf.mxu3  ;;  %v8016_v39 = vld [vmem:[#allocation107_spill] sm:$0xff] }
 0x3d4   : > { %4469 = vmatpush.msrb.mxu1 %v2046_v42  ;;  %4485 = vmatpush.msra.mxu2 %v2184_v8  ;;  %v2274_v50 = vld [vmem:[#allocation9 + $0x2ea8] sm:$0xff]  ;;  %v2519_v5 = vadd.f32 %v8014_v32, %v2496_v25  ;;  %v3281_v46 = vadd.f32 %v7191_v20, %v3258_v30  ;;  %v8015_v51 = vld [vmem:[#allocation52_spill] sm:$0xff]  ;;  %v4017_v59 = vadd.f32 %v4016_v31, %v3994_v62 }
 0x3d5   : > { %v1938_v45 = vld [vmem:[#allocation9 + $0x2428] sm:$0xff]  ;;  %v3255_v2 = vadd.f32 %v8013_v38, %v3232_v53  ;;  %4508 = vmatpush.msra.mxu3 %v2280_v49  ;;  %4447 = vmatpush.msrb.mxu0 %v1944_v3  ;;  %v3991_v54 = vadd.f32 %v7357_v0, %v3968_v29  ;;  %v2545_v21 = vadd.f32 %v8015_v51, %v2522_v60  ;;  %v2160_v20 = vld [vmem:[#allocation9 + $0x2b18] sm:$0xff]  ;;  %v8018_v49 = vld [vmem:[#allocation55_spill] sm:$0xff]  ;;  %v4105_v53 = vpop.f32.mrf.mxu1 }
 0x3d6   : > { %v2034_v43 = vld [vmem:[#allocation9 + $0x2728] sm:$0xff]  ;;  %4470 = vmatpush.msrb.mxu1 %v2040_v58  ;;  %4486 = vmatpush.msra.mxu2 %v2178_v16  ;;  %v3304_v8 = vadd.f32 %v7193_v7, %v3281_v46  ;;  %v8019_v55 = vld [vmem:[#allocation36_spill] sm:$0xff]  ;;  %v4040_v16 = vadd.f32 %v4039_v4, %v4017_v59  ;;  %v8021_v60 = vld [vmem:[#allocation53_spill] sm:$0xff] }
 0x3d7   : > { %4509 = vmatpush.msra.mxu3 %v2274_v50  ;;  %4448 = vmatpush.msrb.mxu0 %v1938_v45  ;;  %v2166_v24 = vld [vmem:[#allocation9 + $0x2b48] sm:$0xff]  ;;  %v3278_v42 = vadd.f32 %v8016_v39, %v3255_v2  ;;  %v2568_v3 = vadd.f32 %v8018_v49, %v2545_v21  ;;  %v2256_v18 = vld [vmem:[#allocation9 + $0x2e18] sm:$0xff]  ;;  %v4014_v31 = vadd.f32 %v7375_v27, %v3991_v54  ;;  %v8026_v21 = vld [vmem:[#allocation111_spill] sm:$0xff] }
 0x3d8   : > { %4471 = vmatpush.msrb.mxu1 %v2034_v43  ;;  %4487 = vmatpush.msra.mxu2 %v2172_v36  ;;  %v2262_v6 = vld [vmem:[#allocation9 + $0x2e48] sm:$0xff]  ;;  %v7420_v30 = vpop.f32.mrf.mxu2  ;;  %v8020_v58 = vld [vmem:[#allocation108_spill] sm:$0xff]  ;;  %v3327_v38 = vadd.f32 %v7199_v15, %v3304_v8  ;;  %v8028_v59 = vld [vmem:[#allocation37_spill] sm:$0xff] }
 0x3d9   : > { %4510 = vmatpush.msra.mxu3 %v2268_v47  ;;  %4449 = vmatmul.f32.vlgmr.msrb.gmra.mxu0 %v6866_v40  ;;  %v8017_v25 = vld [vmem:[#allocation50_spill] sm:$0xff]  ;;  %v3301_v7 = vadd.f32 %v8020_v58, %v3278_v42  ;;  %v4037_v2 = vadd.f32 %v7377_v56, %v4014_v31  ;;  %v2148_v29 = vld [vmem:[#allocation9 + $0x2ab8] sm:$0xff]  ;;  %v4085_v27 = vpop.f32.mrf.mxu0 }
 0x3da   : > { %v2542_v0 = vadd.f32 %v8017_v25, %v2519_v5  ;;  %4472 = vmatmul.f32.vlgmr.msrb.gmra.mxu1 %v8019_v55  ;;  %4488 = vmatpush.msra.mxu2 %v2166_v24  ;;  %v2154_v22 = vld [vmem:[#allocation9 + $0x2ae8] sm:$0xff]  ;;  %v8022_v62 = vld [vmem:[#allocation56_spill] sm:$0xff]  ;;  %v3350_v5 = vadd.f32 %v7205_v63, %v3327_v38  ;;  %v8027_v63 = vld [vmem:[#allocation57_spill] sm:$0xff]  ;;  %v7440_v25 = vpop.permute.xlu2 %4526  ;;  %v7443_v49 = vpop.permute.xlu1 %4542 }
 0x3db   : > { %4511 = vmatpush.msra.mxu3 %v2262_v6  ;;  %6293 = vset.pattern.permute.xlu0 %v7990_v44  ;;  %v2250_v45 = vld [vmem:[#allocation9 + $0x2de8] sm:$0xff]  ;;  %v2591_v43 = vadd.f32 %v8022_v62, %v2568_v3  ;;  %v2244_v36 = vld [vmem:[#allocation9 + $0x2db8] sm:$0xff]  ;;  %v4063_v44 = vadd.f32 %v4062_v35, %v4040_v16  ;;  %v4151_v51 = vpop.f32.mrf.mxu3  ;;  %v4060_v39 = vadd.f32 %v7391_v61, %v4037_v2 }
 0x3dc   : > { %v2565_v50 = vadd.f32 %v8021_v60, %v2542_v0  ;;  %4489 = vmatpush.msra.mxu2 %v2160_v20  ;;  %v8023_v4 = vld [vmem:[#allocation110_spill] sm:$0xff]  ;;  %v8025_v24 = vld [vmem:[#allocation60_spill] sm:$0xff]  ;;  %v3373_v0 = vadd.f32 %v7211_v12, %v3350_v5  ;;  %v8037_v5 = vld [vmem:[#allocation59_spill] sm:$0xff] }
 0x3dd   : > { %4512 = vmatpush.msra.mxu3 %v2256_v18  ;;  %v3324_v32 = vadd.f32 %v8023_v4, %v3301_v7  ;;  %v2142_v47 = vld [vmem:[#allocation9 + $0x2a88] sm:$0xff]  ;;  %v2614_v15 = vadd.f32 %v8025_v24, %v2591_v43  ;;  %v4086_v42 = vadd.f32 %v4085_v27, %v4063_v44  ;;  %v2136_v8 = vld [vmem:[#allocation9 + $0x2a58] sm:$0xff]  ;;  %v4083_v3 = vadd.f32 %v7406_v52, %v4060_v39  ;;  %v8029_v18 = vld [vmem:[#allocation61_spill] sm:$0xff]  ;;  %v4108_v7 = vpop.f32.mrf.mxu1 }
 0x3de   : > { %4490 = vmatpush.msra.mxu2 %v2154_v22  ;;  %v8024_v46 = vld [vmem:[#allocation54_spill] sm:$0xff]  ;;  %v2232_v20 = vld [vmem:[#allocation9 + $0x2d58] sm:$0xff]  ;;  %v8034_v52 = vld [vmem:[#allocation113_spill] sm:$0xff] }
 0x3df   : > { %4513 = vmatpush.msra.mxu3 %v2250_v45  ;;  %v2588_v54 = vadd.f32 %v8024_v46, %v2565_v50  ;;  %v2238_v56 = vld [vmem:[#allocation9 + $0x2d88] sm:$0xff]  ;;  %v3347_v6 = vadd.f32 %v8026_v21, %v3324_v32  ;;  %v2637_v58 = vadd.f32 %v8029_v18, %v2614_v15  ;;  %v8030_v22 = vld [vmem:[#allocation112_spill] sm:$0xff]  ;;  %v8031_v50 = vld [vmem:[#allocation115_spill] sm:$0xff]  ;;  %v4109_v38 = vadd.f32 %v4108_v7, %v4086_v42 }
 0x3e0   : > { %4491 = vmatpush.msra.mxu2 %v2148_v29  ;;  %v2130_v61 = vld [vmem:[#allocation9 + $0x2a28] sm:$0xff]  ;;  %v3396_v45 = vadd.f32 %v8031_v50, %v3373_v0  ;;  %v8033_v29 = vld [vmem:[#allocation63_spill] sm:$0xff]  ;;  %v8038_v24 = vld [vmem:[#allocation65_spill] sm:$0xff] }
 0x3e1   : > { %4514 = vmatpush.msra.mxu3 %v2244_v36  ;;  %4452 = vmatmul.f32.gmra.mxu0 %v6874_v10  ;;  %v2611_v35 = vadd.f32 %v8027_v63, %v2588_v54  ;;  %v2226_v31 = vld [vmem:[#allocation9 + $0x2d28] sm:$0xff]  ;;  %v4131_v16 = vpop.f32.mrf.mxu2  ;;  %v3370_v60 = vadd.f32 %v8030_v22, %v3347_v6  ;;  %v2660_v62 = vadd.f32 %v8033_v29, %v2637_v58  ;;  %v8036_v32 = vld [vmem:[#allocation39_spill] sm:$0xff]  ;;  %v4868_v29 = vld [vmem:[#allocation10 + $0x700] sm:$0xff] }
 0x3e2   : > { %4475 = vmatmul.f32.gmra.mxu1 %v8028_v59  ;;  %4492 = vmatpush.msra.mxu2 %v2142_v47  ;;  %v8032_v2 = vld [vmem:[#allocation58_spill] sm:$0xff]  ;;  %v4106_v36 = vadd.f32 %v4105_v53, %v4083_v3  ;;  %v4132_v4 = vadd.f32 %v4131_v16, %v4109_v38  ;;  %v3419_v47 = vadd.f32 %v7219_v11, %v3396_v45  ;;  %v7459_v6 = vpop.permute.xlu2 %4538  ;;  %v7461_v39 = vpop.permute.xlu1 %4554  ;;  %v8041_v3 = vld [vmem:[#allocation41_spill] sm:$0xff]  ;;  %v7480_v45 = vld [vmem:[#allocation6] sm:$0xff] }
 0x3e3   : > { %4515 = vmatpush.msra.mxu3 %v2238_v56  ;;  %v2634_v12 = vadd.f32 %v8032_v2, %v2611_v35  ;;  %v3393_v43 = vadd.f32 %v8034_v52, %v3370_v60  ;;  %v8035_v27 = vld [vmem:[#allocation38_spill] sm:$0xff]  ;;  %v4154_v54 = vpop.f32.mrf.mxu3  ;;  %v2683_v15 = vadd.f32 %v8038_v24, %v2660_v62  ;;  %v7484_v38 = vld [vmem:[#allocation6 + $0x8] sm:$0xff]  ;;  %v4884_v2 = vld [vmem:[#allocation10 + $0x780] sm:$0xff] }
 0x3e4   : > { %4493 = vmatpush.msra.mxu2 %v2136_v8  ;;  %v4129_v46 = vadd.f32 %v7420_v30, %v4106_v36  ;;  %v8039_v56 = vld [vmem:[#allocation114_spill] sm:$0xff]  ;;  %v4155_v53 = vadd.f32 %v4154_v54, %v4132_v4  ;;  %v4547_v35 = vmul.f32 %v7443_v49, %v3419_v47  ;;  %v4836_v4 = vld [vmem:[#allocation10 + $0x600] sm:$0xff] }
 0x3e5   : > { %4516 = vmatpush.msra.mxu3 %v2232_v20  ;;  %v2657_v44 = vadd.f32 %v8037_v5, %v2634_v12  ;;  %v3416_v21 = vadd.f32 %v8039_v56, %v3393_v43  ;;  %v8040_v8 = vld [vmem:[#allocation62_spill] sm:$0xff]  ;;  %v4535_v11 = vmul.f32 %v7422_v48, %v2683_v15  ;;  %v4852_v43 = vld [vmem:[#allocation10 + $0x680] sm:$0xff] }
 0x3e6   : > { %4494 = vmatpush.msra.mxu2 %v2130_v61  ;;  %v4152_v20 = vadd.f32 %v4151_v51, %v4129_v46  ;;  %v4885_v12 = vld [vmem:[#allocation10 + $0x788] sm:$0xff]  ;;  %v4804_v46 = vld [vmem:[#allocation10 + $0x500] sm:$0xff] }
 0x3e7   : > { %4517 = vmatpush.msra.mxu3 %v2226_v31  ;;  %4495 = vmatmul.f32.vlgmr.msra.gmra.mxu2 %v8035_v27  ;;  %v2680_v63 = vadd.f32 %v8040_v8, %v2657_v44  ;;  %v4545_v30 = vmul.f32 %v7459_v6, %v3416_v21  ;;  %v4551_v18 = vadd.f32 %v4547_v35, %v4535_v11  ;;  %v4869_v62 = vld [vmem:[#allocation10 + $0x708] sm:$0xff]  ;;  %v7488_v52 = vpop.f32.mrf.mxu0  ;;  %v4820_v44 = vld [vmem:[#allocation10 + $0x580] sm:$0xff] }
 0x3e8   : > { %4518 = vmatmul.f32.vlgmr.msra.gmra.mxu3 %v8036_v32  ;;  %v4561_v58 = vmul.f32 %v7461_v39, %v4152_v20  ;;  %5156 = vmatpush.msrb.mxu2 %v4884_v2  ;;  %v4853_v36 = vld [vmem:[#allocation10 + $0x688] sm:$0xff]  ;;  %v4197_v24 = vpop.f32.mrf.mxu1  ;;  %v4788_v21 = vld [vmem:[#allocation10 + $0x480] sm:$0xff] }
 0x3e9   : > { %v4533_v61 = vmul.f32 %v7440_v25, %v2680_v63  ;;  %v4837_v5 = vld [vmem:[#allocation10 + $0x608] sm:$0xff]  ;;  %v4772_v63 = vld [vmem:[#allocation10 + $0x400] sm:$0xff] }
 0x3ea   : > { %v7474_v22 = vpop.permute.xlu1 %4570  ;;  %5157 = vmatpush.msrb.mxu2 %v4868_v29  ;;  %v4821_v47 = vld [vmem:[#allocation10 + $0x588] sm:$0xff]  ;;  %v4756_v20 = vld [vmem:[#allocation10 + $0x380] sm:$0xff] }
 0x3eb   : > { %v4549_v7 = vadd.f32 %v4545_v30, %v4533_v61  ;;  %v4805_v54 = vld [vmem:[#allocation10 + $0x508] sm:$0xff]  ;;  %v4740_v30 = vld [vmem:[#allocation10 + $0x300] sm:$0xff] }
 0x3ec   : > { %v7463_v42 = vpop.permute.xlu0 %4558  ;;  %5158 = vmatpush.msrb.mxu2 %v4852_v43  ;;  %v4773_v35 = vld [vmem:[#allocation10 + $0x408] sm:$0xff]  ;;  %v4692_v2 = vld [vmem:[#allocation10 + $0x180] sm:$0xff] }
 0x3ed   : > { %v4563_v0 = vmul.f32 %v7463_v42, %v4155_v53  ;;  %v4565_v16 = vadd.f32 %v4561_v58, %v4549_v7  ;;  %v4789_v53 = vld [vmem:[#allocation10 + $0x488] sm:$0xff]  ;;  %v4676_v29 = vld [vmem:[#allocation10 + $0x100] sm:$0xff] }
 0x3ee   : > { %5159 = vmatpush.msrb.mxu2 %v4836_v4  ;;  %v4757_v11 = vld [vmem:[#allocation10 + $0x388] sm:$0xff] }
 0x3ef   : > { %4498 = vmatmul.f32.gmra.mxu2 %v6890_v9  ;;  %v4567_v31 = vadd.f32 %v4563_v0, %v4551_v18  ;;  %v4577_v50 = vadd.f32 %v7474_v22, %v4565_v16  ;;  %v4741_v0 = vld [vmem:[#allocation10 + $0x308] sm:$0xff]  ;;  %v4724_v18 = vld [vmem:[#allocation10 + $0x280] sm:$0xff] }
 0x3f0   : > { %4521 = vmatmul.f32.gmra.mxu3 %v8041_v3  ;;  %5160 = vmatpush.msrb.mxu2 %v4820_v44  ;;  %v4725_v58 = vld [vmem:[#allocation10 + $0x288] sm:$0xff]  ;;  %v4708_v16 = vld [vmem:[#allocation10 + $0x200] sm:$0xff] }
 0x3f1   : > { %v7490_v15 = vpop.f32.mrf.mxu0  ;;  %v4661_v4 = vld [vmem:[#allocation10 + $0x88] sm:$0xff] }
 0x3f2   : > { %5161 = vmatpush.msrb.mxu2 %v4804_v46  ;;  %v7496_v61 = vpop.f32.mrf.mxu1  ;;  %v4645_v44 = vld [vmem:[#allocation10 + $0x8] sm:$0xff]  ;;  %v8043_v46 = vld [vmem:[#allocation117_spill] sm:$0xff] }
 0x3f4   : > { %5162 = vmatpush.msrb.mxu2 %v4788_v21  ;;  %v8044_v21 = vld [vmem:[#allocation120_spill] sm:$0xff] }
 0x3f6   : > { %v7476_v51 = vpop.permute.xlu2 %4574  ;;  %5163 = vmatpush.msrb.mxu2 %v4772_v63  ;;  %v4886_v63 = vld [vmem:[#allocation10 + $0x790] sm:$0xff] }
 0x3f7   : > { %v4579_v60 = vadd.f32 %v7476_v51, %v4567_v31 }
 0x3f8   : > { %5164 = vmatpush.msrb.mxu2 %v4756_v20  ;;  %v8045_v20 = vld [vmem:[#allocation64_spill] sm:$0xff] }
 0x3f9   : > { %4608 = vmatpush.msra.mxu0 %v4579_v60  ;;  %v4709_v60 = vld [vmem:[#allocation10 + $0x208] sm:$0xff] }
 0x3fa   : > { %5165 = vmatpush.msrb.mxu2 %v4740_v30 }
 0x3fb   : > { %4609 = vmatpush.msra.mxu0 %v4577_v50 }
 0x3fc   : > { %6175 = vmatmul.msk.f32.vlgmr.msra.gmra.mxu0 %vm4587_vm1, %v7480_v45  ;;  %5166 = vmatpush.msrb.mxu2 %v4724_v18  ;;  %v8048_v18 = vld [vmem:[#allocation70_spill] sm:$0xff] }
 0x3fd   : > { %5202 = vmatpush.msrb.mxu0 %v4885_v12  ;;  %v4693_v12 = vld [vmem:[#allocation10 + $0x188] sm:$0xff] }
 0x3fe   : > { %5167 = vmatpush.msrb.mxu2 %v4708_v16 }
 0x3ff   : > { %5203 = vmatpush.msrb.mxu0 %v4869_v62  ;;  %v7492_v56 = vpop.f32.mrf.mxu2  ;;  %v4677_v62 = vld [vmem:[#allocation10 + $0x108] sm:$0xff] }
 0x400   : > { %v7494_v8 = vpop.f32.mrf.mxu3  ;;  %5168 = vmatpush.msrb.mxu2 %v4692_v2  ;;  %v8049_v2 = vld [vmem:[#allocation118_spill] sm:$0xff] }
 0x401   : > { %5204 = vmatpush.msrb.mxu0 %v4853_v36  ;;  %v4660_v36 = vld [vmem:[#allocation10 + $0x80] sm:$0xff] }
 0x402   : > { %5169 = vmatpush.msrb.mxu2 %v4676_v29  ;;  %v8050_v29 = vld [vmem:[#allocation121_spill] sm:$0xff] }
 0x403   : > { %5205 = vmatpush.msrb.mxu0 %v4837_v5  ;;  %v4644_v5 = vld [vmem:[#allocation10] sm:$0xff] }
 0x404   : > { %6176 = vmatmul.msk.f32.gmra.mxu0 %vm4587_vm1, %v7484_v38  ;;  %5170 = vmatpush.msrb.mxu2 %v4660_v36 }
 0x405   : > { %5206 = vmatpush.msrb.mxu0 %v4821_v47  ;;  %v8042_v47 = vld [vmem:[#allocation116_spill] sm:$0xff] }
 0x406   : > { %5171 = vmatpush.msrb.mxu2 %v4644_v5  ;;  %v8054_v5 = vld [vmem:[#allocation69_spill] sm:$0xff] }
 0x407   : > { %5207 = vmatpush.msrb.mxu0 %v4805_v54  ;;  %v3462_v54 = vadd.f32 %v8043_v46, %v8042_v47  ;;  %v4871_v47 = vld [vmem:[#allocation10 + $0x718] sm:$0xff]  ;;  %v8051_v46 = vld [vmem:[#allocation67_spill] sm:$0xff] }
 0x408   : > { %v7500_v31 = vpop.f32.mrf.mxu2  ;;  %5248 = vmatpush.msra.mxu2 %v4886_v63 }
 0x409   : > { %5208 = vmatpush.msrb.mxu0 %v4789_v53  ;;  %v7502_v50 = vpop.f32.mrf.mxu3  ;;  %v3465_v53 = vadd.f32 %v8044_v21, %v7227_v33  ;;  %v4198_v33 = vadd.f32 %v4197_v24, %v7488_v52  ;;  %v4854_v24 = vld [vmem:[#allocation10 + $0x690] sm:$0xff] }
 0x40b   : > { %5209 = vmatpush.msrb.mxu0 %v4773_v35  ;;  %v4887_v35 = vld [vmem:[#allocation10 + $0x798] sm:$0xff] }
 0x40d   : > { %5210 = vmatpush.msrb.mxu0 %v4757_v11  ;;  %v7498_v7 = vpop.f32.mrf.mxu0  ;;  %v8046_v11 = vld [vmem:[#allocation66_spill] sm:$0xff] }
 0x40e   : > { %v7504_v43 = vpop.f32.mrf.mxu1  ;;  %v2726_v30 = vadd.f32 %v8046_v11, %v8045_v20  ;;  %v8052_v20 = vld [vmem:[#allocation71_spill] sm:$0xff] }
 0x40f   : > { %5211 = vmatpush.msrb.mxu0 %v4741_v0  ;;  %v8047_v0 = vld [vmem:[#allocation68_spill] sm:$0xff] }
 0x410   : > { %v2749_v21 = vadd.f32 %v8051_v46, %v2726_v30  ;;  %v8056_v30 = vld [vmem:[#allocation122_spill] sm:$0xff] }
 0x411   : > { %5212 = vmatpush.msrb.mxu0 %v4725_v58  ;;  %v2729_v58 = vadd.f32 %v8048_v18, %v8047_v0  ;;  %v4221_v0 = vadd.f32 %v7492_v56, %v4198_v33  ;;  %v4855_v18 = vld [vmem:[#allocation10 + $0x698] sm:$0xff]  ;;  %v4201_v56 = vadd.f32 %v7496_v61, %v7490_v15 }
 0x413   : > { %5213 = vmatpush.msrb.mxu0 %v4709_v60  ;;  %v2752_v11 = vadd.f32 %v8052_v20, %v2729_v58  ;;  %v4244_v58 = vadd.f32 %v7494_v8, %v4221_v0  ;;  %v4806_v0 = vld [vmem:[#allocation10 + $0x510] sm:$0xff] }
 0x415   : > { %5214 = vmatpush.msrb.mxu0 %v4693_v12  ;;  %v3485_v12 = vadd.f32 %v8049_v2, %v3462_v54  ;;  %v8053_v54 = vld [vmem:[#allocation119_spill] sm:$0xff]  ;;  %v8055_v2 = vld [vmem:[#allocation73_spill] sm:$0xff]  ;;  %v4267_v20 = vadd.f32 %v7498_v7, %v4244_v58 }
 0x417   : > { %5215 = vmatpush.msrb.mxu0 %v4677_v62  ;;  %v7514_v16 = vpop.f32.mrf.mxu0  ;;  %v3488_v62 = vadd.f32 %v8050_v29, %v3465_v53  ;;  %v3508_v53 = vadd.f32 %v8053_v54, %v3485_v12  ;;  %v2775_v29 = vadd.f32 %v8055_v2, %v2752_v11  ;;  %v4292_v9 = vpop.f32.mrf.mxu1  ;;  %v4838_v12 = vld [vmem:[#allocation10 + $0x610] sm:$0xff] }
 0x418   : > { %v4822_v11 = vld [vmem:[#allocation10 + $0x590] sm:$0xff] }
 0x419   : > { %5216 = vmatpush.msrb.mxu0 %v4661_v4  ;;  %v4870_v4 = vld [vmem:[#allocation10 + $0x710] sm:$0xff]  ;;  %v3511_v52 = vadd.f32 %v7240_v19, %v3488_v62  ;;  %v3531_v63 = vadd.f32 %v8056_v30, %v3508_v53  ;;  %v4839_v19 = vld [vmem:[#allocation10 + $0x618] sm:$0xff]  ;;  %v4290_v30 = vadd.f32 %v7504_v43, %v4267_v20 }
 0x41a   : > { %5249 = vmatpush.msra.mxu2 %v4870_v4  ;;  %v8057_v62 = vld [vmem:[#allocation72_spill] sm:$0xff]  ;;  %v8066_v43 = vld [vmem:[#allocation127_spill] sm:$0xff] }
 0x41b   : > { %5217 = vmatpush.msrb.mxu0 %v4645_v44  ;;  %v2772_v44 = vadd.f32 %v8054_v5, %v2749_v21  ;;  %v8058_v4 = vld [vmem:[#allocation76_spill] sm:$0xff]  ;;  %v4224_v21 = vadd.f32 %v7500_v31, %v4201_v56  ;;  %v3554_v15 = vadd.f32 %v7242_v34, %v3531_v63  ;;  %v8061_v31 = vld [vmem:[#allocation123_spill] sm:$0xff] }
 0x41c   : > { %5250 = vmatpush.msra.mxu2 %v4854_v24  ;;  %v4807_v53 = vld [vmem:[#allocation10 + $0x518] sm:$0xff]  ;;  %v4790_v34 = vld [vmem:[#allocation10 + $0x490] sm:$0xff] }
 0x41d   : > { %5294 = vmatpush.msra.mxu0 %v4887_v35  ;;  %v3534_v35 = vadd.f32 %v7246_v13, %v3511_v52  ;;  %v2795_v33 = vadd.f32 %v8057_v62, %v2772_v44  ;;  %v4823_v13 = vld [vmem:[#allocation10 + $0x598] sm:$0xff]  ;;  %v8059_v52 = vld [vmem:[#allocation74_spill] sm:$0xff]  ;;  %v3577_v7 = vadd.f32 %v8061_v31, %v3554_v15  ;;  %v8062_v44 = vld [vmem:[#allocation125_spill] sm:$0xff] }
 0x41e   : > { %5251 = vmatpush.msra.mxu2 %v4838_v12  ;;  %v4791_v63 = vld [vmem:[#allocation10 + $0x498] sm:$0xff]  ;;  %v8064_v56 = vld [vmem:[#allocation79_spill] sm:$0xff] }
 0x41f   : > { %5295 = vmatpush.msra.mxu0 %v4871_v47  ;;  %v2798_v47 = vadd.f32 %v8058_v4, %v2775_v29  ;;  %v3557_v8 = vadd.f32 %v7253_v28, %v3534_v35  ;;  %v2818_v24 = vadd.f32 %v8059_v52, %v2795_v33  ;;  %v4247_v29 = vadd.f32 %v7502_v50, %v4224_v21  ;;  %v8063_v28 = vld [vmem:[#allocation75_spill] sm:$0xff]  ;;  %v4775_v4 = vld [vmem:[#allocation10 + $0x418] sm:$0xff] }
 0x420   : > { %5252 = vmatpush.msra.mxu2 %v4822_v11  ;;  %v4774_v33 = vld [vmem:[#allocation10 + $0x410] sm:$0xff]  ;;  %v8065_v50 = vld [vmem:[#allocation124_spill] sm:$0xff] }
 0x421   : > { %5296 = vmatpush.msra.mxu0 %v4855_v18  ;;  %v8060_v18 = vld [vmem:[#allocation78_spill] sm:$0xff]  ;;  %v3580_v2 = vadd.f32 %v8062_v44, %v3557_v8  ;;  %v2841_v35 = vadd.f32 %v8063_v28, %v2818_v24  ;;  %v4758_v20 = vld [vmem:[#allocation10 + $0x390] sm:$0xff]  ;;  %v4759_v11 = vld [vmem:[#allocation10 + $0x398] sm:$0xff] }
 0x422   : > { %v2821_v5 = vadd.f32 %v8060_v18, %v2798_v47  ;;  %5253 = vmatpush.msra.mxu2 %v4806_v0  ;;  %v3600_v47 = vadd.f32 %v8065_v50, %v3577_v7  ;;  %v8068_v8 = vld [vmem:[#allocation81_spill] sm:$0xff]  ;;  %v4742_v7 = vld [vmem:[#allocation10 + $0x310] sm:$0xff]  ;;  %v4743_v44 = vld [vmem:[#allocation10 + $0x318] sm:$0xff] }
 0x423   : > { %5297 = vmatpush.msra.mxu0 %v4839_v19  ;;  %v4270_v19 = vadd.f32 %v7514_v16, %v4247_v29  ;;  %v3603_v21 = vadd.f32 %v8066_v43, %v3580_v2  ;;  %v8069_v16 = vld [vmem:[#allocation126_spill] sm:$0xff]  ;;  %v8070_v2 = vld [vmem:[#allocation80_spill] sm:$0xff] }
 0x424   : > { %v7516_v60 = vpop.f32.mrf.mxu2  ;;  %v2844_v58 = vadd.f32 %v8064_v56, %v2821_v5  ;;  %5254 = vmatpush.msra.mxu2 %v4790_v34  ;;  %v4727_v56 = vld [vmem:[#allocation10 + $0x298] sm:$0xff] }
 0x425   : > { %v7521_v36 = vpop.f32.mrf.mxu3  ;;  %5298 = vmatpush.msra.mxu0 %v4823_v13  ;;  %v4313_v62 = vadd.f32 %v7516_v60, %v4290_v30  ;;  %v8067_v13 = vld [vmem:[#allocation77_spill] sm:$0xff]  ;;  %v3623_v60 = vadd.f32 %v8069_v16, %v3600_v47  ;;  %v3626_v24 = vadd.f32 %v7271_v26, %v3603_v21  ;;  %v4293_v18 = vadd.f32 %v4292_v9, %v4270_v19  ;;  %v8071_v30 = vld [vmem:[#allocation84_spill] sm:$0xff]  ;;  %v8072_v9 = vld [vmem:[#allocation130_spill] sm:$0xff] }
 0x426   : > { %5255 = vmatpush.msra.mxu2 %v4774_v33  ;;  %v2864_v15 = vadd.f32 %v8067_v13, %v2841_v35  ;;  %v2867_v0 = vadd.f32 %v8068_v8, %v2844_v58  ;;  %v4726_v35 = vld [vmem:[#allocation10 + $0x290] sm:$0xff]  ;;  %v4711_v19 = vld [vmem:[#allocation10 + $0x218] sm:$0xff] }
 0x427   : > { %5299 = vmatpush.msra.mxu0 %v4807_v53  ;;  %v4336_v5 = vadd.f32 %v7521_v36, %v4313_v62  ;;  %v3646_v26 = vadd.f32 %v7267_v23, %v3623_v60  ;;  %v3649_v58 = vadd.f32 %v8072_v9, %v3626_v24  ;;  %v4710_v36 = vld [vmem:[#allocation10 + $0x210] sm:$0xff]  ;;  %v8073_v62 = vld [vmem:[#allocation82_spill] sm:$0xff]  ;;  %v8075_v43 = vld [vmem:[#allocation128_spill] sm:$0xff] }
 0x428   : > { %5256 = vmatpush.msra.mxu2 %v4758_v20  ;;  %v2887_v29 = vadd.f32 %v8070_v2, %v2864_v15  ;;  %v2890_v34 = vadd.f32 %v8071_v30, %v2867_v0  ;;  %v4694_v13 = vld [vmem:[#allocation10 + $0x190] sm:$0xff]  ;;  %v4695_v15 = vld [vmem:[#allocation10 + $0x198] sm:$0xff]  ;;  %v8080_v30 = vld [vmem:[#allocation133_spill] sm:$0xff] }
 0x429   : > { %5300 = vmatpush.msra.mxu0 %v4791_v63  ;;  %v8077_v23 = vld [vmem:[#allocation83_spill] sm:$0xff]  ;;  %v4663_v2 = vld [vmem:[#allocation10 + $0x98] sm:$0xff]  ;;  %v8082_v9 = vld [vmem:[#allocation89_spill] sm:$0xff] }
 0x42a   : > { %5257 = vmatpush.msra.mxu2 %v4742_v7  ;;  %v2910_v33 = vadd.f32 %v8073_v62, %v2887_v29  ;;  %v8078_v0 = vld [vmem:[#allocation87_spill] sm:$0xff] }
 0x42b   : > { %5301 = vmatpush.msra.mxu0 %v4775_v4  ;;  %v8074_v4 = vld [vmem:[#allocation86_spill] sm:$0xff]  ;;  %v4678_v24 = vld [vmem:[#allocation10 + $0x110] sm:$0xff] }
 0x42c   : > { %5258 = vmatpush.msra.mxu2 %v4726_v35  ;;  %v2913_v50 = vadd.f32 %v8074_v4, %v2890_v34  ;;  %v2933_v8 = vadd.f32 %v8077_v23, %v2910_v33  ;;  %v4647_v35 = vld [vmem:[#allocation10 + $0x18] sm:$0xff] }
 0x42d   : > { %v4315_v54 = vpop.f32.mrf.mxu2  ;;  %5302 = vmatpush.msra.mxu0 %v4759_v11  ;;  %v8085_v4 = vld [vmem:[#allocation88_spill] sm:$0xff] }
 0x42e   : > { %v4338_v61 = vpop.f32.mrf.mxu3  ;;  %v4316_v63 = vadd.f32 %v4315_v54, %v4293_v18  ;;  %5259 = vmatpush.msra.mxu2 %v4710_v36  ;;  %v3669_v54 = vadd.f32 %v8075_v43, %v3646_v26  ;;  %v2936_v16 = vadd.f32 %v8078_v0, %v2913_v50  ;;  %v4679_v18 = vld [vmem:[#allocation10 + $0x118] sm:$0xff] }
 0x42f   : > { %5303 = vmatpush.msra.mxu0 %v4743_v44  ;;  %v4662_v44 = vld [vmem:[#allocation10 + $0x90] sm:$0xff]  ;;  %v8084_v36 = vld [vmem:[#allocation136_spill] sm:$0xff] }
 0x430   : > { %v4339_v20 = vadd.f32 %v4338_v61, %v4316_v63  ;;  %5260 = vmatpush.msra.mxu2 %v4694_v13  ;;  %v8079_v61 = vld [vmem:[#allocation129_spill] sm:$0xff]  ;;  %v8086_v43 = vld [vmem:[#allocation92_spill] sm:$0xff] }
 0x431   : > { %5304 = vmatpush.msra.mxu0 %v4727_v56  ;;  %v8081_v56 = vld [vmem:[#allocation85_spill] sm:$0xff] }
 0x432   : > { %v4358_v46 = vpop.f32.mrf.mxu0  ;;  %5261 = vmatpush.msra.mxu2 %v4678_v24  ;;  %v2956_v26 = vadd.f32 %v8081_v56, %v2933_v8  ;;  %v8089_v8 = vld [vmem:[#allocation90_spill] sm:$0xff]  ;;  %v8095_v56 = vld [vmem:[#allocation137_spill] sm:$0xff] }
 0x433   : > { %v4381_v12 = vpop.f32.mrf.mxu1  ;;  %v4359_v28 = vadd.f32 %v4358_v46, %v4336_v5  ;;  %5305 = vmatpush.msra.mxu0 %v4711_v19  ;;  %v8076_v46 = vld [vmem:[#allocation131_spill] sm:$0xff] }
 0x434   : > { %v3672_v21 = vadd.f32 %v8076_v46, %v3649_v58  ;;  %v2959_v58 = vadd.f32 %v8082_v9, %v2936_v16  ;;  %5262 = vmatpush.msra.mxu2 %v4662_v44  ;;  %v2979_v50 = vadd.f32 %v8085_v4, %v2956_v26  ;;  %v8090_v16 = vld [vmem:[#allocation94_spill] sm:$0xff]  ;;  %v8096_v9 = vld [vmem:[#allocation140_spill] sm:$0xff] }
 0x435   : > { %v4382_v11 = vadd.f32 %v4381_v12, %v4359_v28  ;;  %5306 = vmatpush.msra.mxu0 %v4695_v15  ;;  %v3692_v12 = vadd.f32 %v8079_v61, %v3669_v54  ;;  %v4646_v28 = vld [vmem:[#allocation10 + $0x10] sm:$0xff]  ;;  %v8088_v15 = vld [vmem:[#allocation138_spill] sm:$0xff] }
 0x436   : > { %v3695_v34 = vadd.f32 %v8080_v30, %v3672_v21  ;;  %v2982_v54 = vadd.f32 %v8086_v43, %v2959_v58  ;;  %5263 = vmatpush.msra.mxu2 %v4646_v28  ;;  %v3002_v0 = vadd.f32 %v8089_v8, %v2979_v50  ;;  %v8093_v30 = vld [vmem:[#allocation91_spill] sm:$0xff] }
 0x437   : > { %5307 = vmatpush.msra.mxu0 %v4679_v18 }
 0x438   : > { %v3718_v19 = vadd.f32 %v8084_v36, %v3695_v34  ;;  %v3005_v24 = vadd.f32 %v8090_v16, %v2982_v54 }
 0x439   : > { %5308 = vmatpush.msra.mxu0 %v4663_v2 }
 0x43a   : > { %v3741_v23 = vadd.f32 %v8088_v15, %v3718_v19  ;;  %v8098_v19 = vld [vmem:[#allocation96_spill] sm:$0xff] }
 0x43b   : > { %v4361_v53 = vpop.f32.mrf.mxu0  ;;  %5309 = vmatpush.msra.mxu0 %v4647_v35 }
 0x43c   : > { %v4384_v47 = vpop.f32.mrf.mxu1  ;;  %v4362_v5 = vadd.f32 %v4361_v53, %v4339_v20  ;;  %v8083_v53 = vld [vmem:[#allocation132_spill] sm:$0xff] }
 0x43e   : > { %v4385_v62 = vadd.f32 %v4384_v47, %v4362_v5 }
 0x448   : > { %v4404_v52 = vpop.f32.mrf.mxu2 }
 0x449   : > { %v4427_v31 = vpop.f32.mrf.mxu3  ;;  %v4405_v7 = vadd.f32 %v4404_v52, %v4382_v11  ;;  %v3715_v52 = vadd.f32 %v8083_v53, %v3692_v12  ;;  %v8087_v11 = vld [vmem:[#allocation134_spill] sm:$0xff] }
 0x44b   : > { %v4428_v33 = vadd.f32 %v4427_v31, %v4405_v7  ;;  %v3738_v13 = vadd.f32 %v8087_v11, %v3715_v52  ;;  %v8091_v31 = vld [vmem:[#allocation135_spill] sm:$0xff]  ;;  %v8097_v52 = vld [vmem:[#allocation93_spill] sm:$0xff] }
 0x44c   : > { %v8092_v7 = vld [vmem:[#allocation139_spill] sm:$0xff] }
 0x44d   : > { %v3761_v5 = vadd.f32 %v8091_v31, %v3738_v13  ;;  %v3764_v44 = vadd.f32 %v8092_v7, %v3741_v23  ;;  %v4888_v31 = vld [vmem:[#allocation10 + $0x7a0] sm:$0xff] }
 0x44f   : > { %v3784_v26 = vadd.f32 %v8095_v56, %v3761_v5  ;;  %v3787_v58 = vadd.f32 %v8096_v9, %v3764_v44  ;;  %v4585_v5 = vld [vmem:[#allocation7 + $0x10] sm:$0xff]  ;;  %v4857_v44 = vld [vmem:[#allocation10 + $0x6a8] sm:$0xff] }
 0x450   : > { %v4777_v56 = vld [vmem:[#allocation10 + $0x428] sm:$0xff] }
 0x451   : > { %v4407_v29 = vpop.f32.mrf.mxu2  ;;  %v4546_v50 = vmul.f32 %v7459_v6, %v3784_v26  ;;  %v4548_v43 = vmul.f32 %v7443_v49, %v3787_v58  ;;  %v4760_v26 = vld [vmem:[#allocation10 + $0x3a0] sm:$0xff]  ;;  %v4761_v9 = vld [vmem:[#allocation10 + $0x3a8] sm:$0xff] }
 0x452   : > { %v4430_v63 = vpop.f32.mrf.mxu3  ;;  %v4408_v21 = vadd.f32 %v4407_v29, %v4385_v62  ;;  %v3025_v29 = vadd.f32 %v8093_v30, %v3002_v0  ;;  %v4583_v0 = vld [vmem:[#allocation7] sm:$0xff] }
 0x453   : > { %v4824_v30 = vld [vmem:[#allocation10 + $0x5a0] sm:$0xff] }
 0x454   : > { %v4431_v2 = vadd.f32 %v4430_v63, %v4408_v21  ;;  %v3048_v36 = vadd.f32 %v8097_v52, %v3025_v29  ;;  %v4825_v29 = vld [vmem:[#allocation10 + $0x5a8] sm:$0xff]  ;;  %v4744_v58 = vld [vmem:[#allocation10 + $0x320] sm:$0xff] }
 0x455   : > { %v4729_v52 = vld [vmem:[#allocation10 + $0x2a8] sm:$0xff] }
 0x456   : > { %v4450_v60 = vpop.f32.mrf.mxu0  ;;  %v4534_v21 = vmul.f32 %v7440_v25, %v3048_v36  ;;  %v4889_v25 = vld [vmem:[#allocation10 + $0x7a8] sm:$0xff]  ;;  %v4712_v36 = vld [vmem:[#allocation10 + $0x220] sm:$0xff] }
 0x457   : > { %v4473_v46 = vpop.f32.mrf.mxu1  ;;  %v4451_v20 = vadd.f32 %v4450_v60, %v4428_v33  ;;  %v8094_v60 = vld [vmem:[#allocation95_spill] sm:$0xff] }
 0x458   : > { %v3028_v34 = vadd.f32 %v8094_v60, %v3005_v24  ;;  %v4550_v15 = vadd.f32 %v4546_v50, %v4534_v21  ;;  %v4809_v60 = vld [vmem:[#allocation10 + $0x528] sm:$0xff]  ;;  %v4664_v50 = vld [vmem:[#allocation10 + $0xa0] sm:$0xff]  ;;  %v4890_v21 = vld [vmem:[#allocation10 + $0x7b0] sm:$0xff] }
 0x459   : > { %v4474_v61 = vadd.f32 %v4473_v46, %v4451_v20 }
 0x45a   : > { %v3051_v62 = vadd.f32 %v8098_v19, %v3028_v34  ;;  %v4792_v34 = vld [vmem:[#allocation10 + $0x4a0] sm:$0xff]  ;;  %v4713_v19 = vld [vmem:[#allocation10 + $0x228] sm:$0xff] }
 0x45c   : > { %v4536_v20 = vmul.f32 %v7422_v48, %v3051_v62  ;;  %v4696_v62 = vld [vmem:[#allocation10 + $0x1a0] sm:$0xff] }
 0x45e   : > { %v4453_v18 = vpop.f32.mrf.mxu0  ;;  %v4552_v23 = vadd.f32 %v4548_v43, %v4536_v20  ;;  %v4665_v43 = vld [vmem:[#allocation10 + $0xa8] sm:$0xff]  ;;  %v4891_v20 = vld [vmem:[#allocation10 + $0x7b8] sm:$0xff] }
 0x45f   : > { %v4454_v28 = vadd.f32 %v4453_v18, %v4431_v2  ;;  %v4476_v53 = vpop.f32.mrf.mxu1  ;;  %v4840_v2 = vld [vmem:[#allocation10 + $0x620] sm:$0xff] }
 0x461   : > { %v4477_v33 = vadd.f32 %v4476_v53, %v4454_v28  ;;  %v4793_v28 = vld [vmem:[#allocation10 + $0x4a8] sm:$0xff]  ;;  %v4728_v53 = vld [vmem:[#allocation10 + $0x2a0] sm:$0xff] }
 0x46a   : > { %v4496_v47 = vpop.f32.mrf.mxu2 }
 0x46b   : > { %v4519_v12 = vpop.f32.mrf.mxu3  ;;  %v4497_v35 = vadd.f32 %v4496_v47, %v4474_v61  ;;  %v4841_v61 = vld [vmem:[#allocation10 + $0x628] sm:$0xff] }
 0x46d   : > { %v4520_v4 = vadd.f32 %v4519_v12, %v4497_v35  ;;  %v4776_v35 = vld [vmem:[#allocation10 + $0x420] sm:$0xff] }
 0x46f   : > { %v4562_v11 = vmul.f32 %v7461_v39, %v4520_v4  ;;  %v4872_v39 = vld [vmem:[#allocation10 + $0x720] sm:$0xff] }
 0x470   : > { %v4680_v4 = vld [vmem:[#allocation10 + $0x120] sm:$0xff] }
 0x471   : > { %v4566_v16 = vadd.f32 %v4562_v11, %v4550_v15  ;;  %v4874_v11 = vld [vmem:[#allocation10 + $0x730] sm:$0xff]  ;;  %v5140_v15 = vld [vmem:[#allocation10 + $0xf80] sm:$0xff] }
 0x472   : > { %v4499_v63 = vpop.f32.mrf.mxu2  ;;  %5179 = vmatpush.msrb.mxu3 %v5140_v15  ;;  %v4667_v15 = vld [vmem:[#allocation10 + $0xb8] sm:$0xff] }
 0x473   : > { %v4500_v54 = vadd.f32 %v4499_v63, %v4477_v33  ;;  %v4522_v46 = vpop.f32.mrf.mxu3  ;;  %v4578_v48 = vadd.f32 %v7474_v22, %v4566_v16  ;;  %v4697_v33 = vld [vmem:[#allocation10 + $0x1a8] sm:$0xff]  ;;  %v5124_v16 = vld [vmem:[#allocation10 + $0xf00] sm:$0xff] }
 0x474   : > { %v4681_v63 = vld [vmem:[#allocation10 + $0x128] sm:$0xff]  ;;  %5180 = vmatpush.msrb.mxu3 %v5124_v16  ;;  %v4651_v16 = vld [vmem:[#allocation10 + $0x38] sm:$0xff] }
 0x475   : > { %v4523_v13 = vadd.f32 %v4522_v46, %v4500_v54  ;;  %v4648_v54 = vld [vmem:[#allocation10 + $0x20] sm:$0xff]  ;;  %v4649_v46 = vld [vmem:[#allocation10 + $0x28] sm:$0xff] }
 0x477   : > { %v4564_v8 = vmul.f32 %v7463_v42, %v4523_v13  ;;  %v4873_v42 = vld [vmem:[#allocation10 + $0x728] sm:$0xff]  ;;  %v4875_v13 = vld [vmem:[#allocation10 + $0x738] sm:$0xff] }
 0x479   : > { %v4568_v24 = vadd.f32 %v4564_v8, %v4552_v23  ;;  %v4611_v18 = vpop.f32.mrf.mxu0  ;;  %v4858_v23 = vld [vmem:[#allocation10 + $0x6b0] sm:$0xff]  ;;  %v5141_v8 = vld [vmem:[#allocation10 + $0xf88] sm:$0xff] }
 0x47a   : > { %v4612_v6 = vadd.f32 %v4611_v18, %v4583_v0  ;;  %v4859_v0 = vld [vmem:[#allocation10 + $0x6b8] sm:$0xff]  ;;  %v5125_v18 = vld [vmem:[#allocation10 + $0xf08] sm:$0xff] }
 0x47b   : > { %v4580_v49 = vadd.f32 %v7476_v51, %v4568_v24  ;;  %v4856_v51 = vld [vmem:[#allocation10 + $0x6a0] sm:$0xff]  ;;  %v4842_v24 = vld [vmem:[#allocation10 + $0x630] sm:$0xff] }
 0x47c   : > { %v7595_v47 = vmax.f32 %v4612_v6, 0.0  ;;  %v4843_v6 = vld [vmem:[#allocation10 + $0x638] sm:$0xff] }
 0x47d   : > { %4631 = vmatpush.msra.mxu1 %v4580_v49  ;;  %v5108_v49 = vld [vmem:[#allocation10 + $0xe80] sm:$0xff] }
 0x47e   : > { %5172 = vmatmul.f32.vlgmr.msrb.gmra.mxu2 %v7595_v47  ;;  %5218 = vmatmul.f32.vlgmr.msrb.gmra.mxu0 %v7595_v47 }
 0x47f   : > { %4632 = vmatpush.msra.mxu1 %v4578_v48  ;;  %5340 = vmatpush.msrb.mxu2 %v4888_v31  ;;  %v4826_v31 = vld [vmem:[#allocation10 + $0x5b0] sm:$0xff]  ;;  %v5109_v48 = vld [vmem:[#allocation10 + $0xe88] sm:$0xff] }
 0x480   : > { %6177 = vmatmul.msk.f32.vlgmr.msra.gmra.mxu1 %vm4587_vm1, %v7480_v45  ;;  %5386 = vmatpush.msrb.mxu0 %v4889_v25  ;;  %v4808_v45 = vld [vmem:[#allocation10 + $0x520] sm:$0xff]  ;;  %v4827_v25 = vld [vmem:[#allocation10 + $0x5b8] sm:$0xff] }
 0x481   : > { %5341 = vmatpush.msrb.mxu2 %v4872_v39  ;;  %v4614_v7 = vpop.f32.mrf.mxu0  ;;  %5225 = vmatpush.msrb.mxu1 %v5141_v8  ;;  %v4810_v39 = vld [vmem:[#allocation10 + $0x530] sm:$0xff] }
 0x482   : > { %5387 = vmatpush.msrb.mxu0 %v4873_v42  ;;  %v4615_v22 = vadd.f32 %v4614_v7, %v4585_v5  ;;  %5181 = vmatpush.msrb.mxu3 %v5108_v49  ;;  %v4811_v42 = vld [vmem:[#allocation10 + $0x538] sm:$0xff]  ;;  %v5092_v5 = vld [vmem:[#allocation10 + $0xe00] sm:$0xff]  ;;  %v5093_v7 = vld [vmem:[#allocation10 + $0xe08] sm:$0xff] }
 0x483   : > { %5342 = vmatpush.msrb.mxu2 %v4856_v51  ;;  %5226 = vmatpush.msrb.mxu1 %v5125_v18  ;;  %v4794_v51 = vld [vmem:[#allocation10 + $0x4b0] sm:$0xff]  ;;  %v4893_v18 = vld [vmem:[#allocation10 + $0x7c8] sm:$0xff]  ;;  %v4876_v49 = vld [vmem:[#allocation10 + $0x740] sm:$0xff] }
 0x484   : > { %v7602_v12 = vmax.f32 %v4615_v22, 0.0  ;;  %5388 = vmatpush.msrb.mxu0 %v4857_v44  ;;  %v4795_v44 = vld [vmem:[#allocation10 + $0x4b8] sm:$0xff]  ;;  %v5076_v22 = vld [vmem:[#allocation10 + $0xd80] sm:$0xff]  ;;  %5182 = vmatpush.msrb.mxu3 %v5092_v5  ;;  %v4650_v8 = vld [vmem:[#allocation10 + $0x30] sm:$0xff] }
 0x485   : > { %5343 = vmatpush.msrb.mxu2 %v4840_v2  ;;  %5227 = vmatpush.msrb.mxu1 %v5109_v48  ;;  %v4778_v2 = vld [vmem:[#allocation10 + $0x430] sm:$0xff]  ;;  %v4877_v48 = vld [vmem:[#allocation10 + $0x748] sm:$0xff] }
 0x486   : > { %5389 = vmatpush.msrb.mxu0 %v4841_v61  ;;  %5175 = vmatmul.f32.gmra.mxu2 %v7602_v12  ;;  %v5077_v61 = vld [vmem:[#allocation10 + $0xd88] sm:$0xff] }
 0x487   : > { %5221 = vmatmul.f32.gmra.mxu0 %v7602_v12  ;;  %5344 = vmatpush.msrb.mxu2 %v4824_v30  ;;  %v4779_v30 = vld [vmem:[#allocation10 + $0x438] sm:$0xff]  ;;  %v4861_v5 = vld [vmem:[#allocation10 + $0x6c8] sm:$0xff] }
 0x488   : > { %6178 = vmatmul.msk.f32.gmra.mxu1 %vm4587_vm1, %v7484_v38  ;;  %5390 = vmatpush.msrb.mxu0 %v4825_v29  ;;  %v4745_v38 = vld [vmem:[#allocation10 + $0x328] sm:$0xff]  ;;  %v5060_v29 = vld [vmem:[#allocation10 + $0xd00] sm:$0xff] }
 0x489   : > { %5345 = vmatpush.msrb.mxu2 %v4808_v45  ;;  %5228 = vmatpush.msrb.mxu1 %v5093_v7  ;;  %v4762_v45 = vld [vmem:[#allocation10 + $0x3b0] sm:$0xff]  ;;  %v4844_v7 = vld [vmem:[#allocation10 + $0x640] sm:$0xff] }
 0x48a   : > { %5391 = vmatpush.msrb.mxu0 %v4809_v60  ;;  %5183 = vmatpush.msrb.mxu3 %v5076_v22  ;;  %v5061_v60 = vld [vmem:[#allocation10 + $0xd08] sm:$0xff] }
 0x48b   : > { %5346 = vmatpush.msrb.mxu2 %v4792_v34  ;;  %v4763_v34 = vld [vmem:[#allocation10 + $0x3b8] sm:$0xff]  ;;  %5229 = vmatpush.msrb.mxu1 %v5077_v61  ;;  %v4845_v22 = vld [vmem:[#allocation10 + $0x648] sm:$0xff] }
 0x48c   : > { %5392 = vmatpush.msrb.mxu0 %v4793_v28  ;;  %v5044_v28 = vld [vmem:[#allocation10 + $0xc80] sm:$0xff]  ;;  %5184 = vmatpush.msrb.mxu3 %v5060_v29  ;;  %v4829_v61 = vld [vmem:[#allocation10 + $0x5c8] sm:$0xff] }
 0x48d   : > { %5347 = vmatpush.msrb.mxu2 %v4776_v35  ;;  %v4746_v35 = vld [vmem:[#allocation10 + $0x330] sm:$0xff]  ;;  %5230 = vmatpush.msrb.mxu1 %v5061_v60  ;;  %v4812_v29 = vld [vmem:[#allocation10 + $0x540] sm:$0xff]  ;;  %v4813_v60 = vld [vmem:[#allocation10 + $0x548] sm:$0xff] }
 0x48e   : > { %5393 = vmatpush.msrb.mxu0 %v4777_v56  ;;  %5264 = vmatmul.f32.vlgmr.msra.gmra.mxu2 %v7595_v47  ;;  %v5045_v56 = vld [vmem:[#allocation10 + $0xc88] sm:$0xff] }
 0x48f   : > { %5310 = vmatmul.f32.vlgmr.msra.gmra.mxu0 %v7595_v47  ;;  %5348 = vmatpush.msrb.mxu2 %v4760_v26  ;;  %v4747_v26 = vld [vmem:[#allocation10 + $0x338] sm:$0xff] }
 0x490   : > { %5394 = vmatpush.msrb.mxu0 %v4761_v9  ;;  %v5028_v9 = vld [vmem:[#allocation10 + $0xc00] sm:$0xff]  ;;  %5185 = vmatpush.msrb.mxu3 %v5044_v28 }
 0x491   : > { %5349 = vmatpush.msrb.mxu2 %v4744_v58  ;;  %v4730_v58 = vld [vmem:[#allocation10 + $0x2b0] sm:$0xff]  ;;  %5231 = vmatpush.msrb.mxu1 %v5045_v56  ;;  %v4796_v28 = vld [vmem:[#allocation10 + $0x4c0] sm:$0xff]  ;;  %v4797_v56 = vld [vmem:[#allocation10 + $0x4c8] sm:$0xff] }
 0x492   : > { %5395 = vmatpush.msrb.mxu0 %v4745_v38  ;;  %v5029_v38 = vld [vmem:[#allocation10 + $0xc08] sm:$0xff]  ;;  %5186 = vmatpush.msrb.mxu3 %v5028_v9  ;;  %v4780_v9 = vld [vmem:[#allocation10 + $0x440] sm:$0xff] }
 0x493   : > { %5350 = vmatpush.msrb.mxu2 %v4728_v53  ;;  %v4731_v53 = vld [vmem:[#allocation10 + $0x2b8] sm:$0xff]  ;;  %5232 = vmatpush.msrb.mxu1 %v5029_v38  ;;  %v4781_v38 = vld [vmem:[#allocation10 + $0x448] sm:$0xff] }
 0x494   : > { %5396 = vmatpush.msrb.mxu0 %v4729_v52  ;;  %v5012_v52 = vld [vmem:[#allocation10 + $0xb80] sm:$0xff] }
 0x495   : > { %5351 = vmatpush.msrb.mxu2 %v4712_v36  ;;  %v4714_v36 = vld [vmem:[#allocation10 + $0x230] sm:$0xff]  ;;  %5187 = vmatpush.msrb.mxu3 %v5012_v52  ;;  %v4764_v52 = vld [vmem:[#allocation10 + $0x3c0] sm:$0xff] }
 0x496   : > { %5397 = vmatpush.msrb.mxu0 %v4713_v19  ;;  %5267 = vmatmul.f32.gmra.mxu2 %v7602_v12  ;;  %v5013_v19 = vld [vmem:[#allocation10 + $0xb88] sm:$0xff] }
 0x497   : > { %5313 = vmatmul.f32.gmra.mxu0 %v7602_v12  ;;  %5352 = vmatpush.msrb.mxu2 %v4696_v62  ;;  %v4715_v62 = vld [vmem:[#allocation10 + $0x238] sm:$0xff] }
 0x498   : > { %5398 = vmatpush.msrb.mxu0 %v4697_v33  ;;  %v4996_v33 = vld [vmem:[#allocation10 + $0xb00] sm:$0xff]  ;;  %5233 = vmatpush.msrb.mxu1 %v5013_v19  ;;  %v4765_v19 = vld [vmem:[#allocation10 + $0x3c8] sm:$0xff] }
 0x499   : > { %5353 = vmatpush.msrb.mxu2 %v4680_v4  ;;  %v4698_v4 = vld [vmem:[#allocation10 + $0x1b0] sm:$0xff]  ;;  %5188 = vmatpush.msrb.mxu3 %v4996_v33  ;;  %v4748_v33 = vld [vmem:[#allocation10 + $0x340] sm:$0xff] }
 0x49a   : > { %5399 = vmatpush.msrb.mxu0 %v4681_v63  ;;  %v4997_v63 = vld [vmem:[#allocation10 + $0xb08] sm:$0xff] }
 0x49b   : > { %5354 = vmatpush.msrb.mxu2 %v4664_v50  ;;  %v4699_v50 = vld [vmem:[#allocation10 + $0x1b8] sm:$0xff]  ;;  %5234 = vmatpush.msrb.mxu1 %v4997_v63  ;;  %v4749_v63 = vld [vmem:[#allocation10 + $0x348] sm:$0xff] }
 0x49c   : > { %5400 = vmatpush.msrb.mxu0 %v4665_v43  ;;  %v4980_v43 = vld [vmem:[#allocation10 + $0xa80] sm:$0xff] }
 0x49d   : > { %5355 = vmatpush.msrb.mxu2 %v4648_v54  ;;  %v4682_v54 = vld [vmem:[#allocation10 + $0x130] sm:$0xff]  ;;  %5189 = vmatpush.msrb.mxu3 %v4980_v43  ;;  %v4732_v43 = vld [vmem:[#allocation10 + $0x2c0] sm:$0xff] }
 0x49e   : > { %5401 = vmatpush.msrb.mxu0 %v4649_v46  ;;  %5356 = vmatmul.f32.vlgmr.msrb.gmra.mxu2 %v7595_v47  ;;  %v4981_v46 = vld [vmem:[#allocation10 + $0xa88] sm:$0xff] }
 0x49f   : > { %5432 = vmatpush.msra.mxu2 %v4890_v21  ;;  %5402 = vmatmul.f32.vlgmr.msrb.gmra.mxu0 %v7595_v47  ;;  %v4683_v21 = vld [vmem:[#allocation10 + $0x138] sm:$0xff] }
 0x4a0   : > { %5478 = vmatpush.msra.mxu0 %v4891_v20  ;;  %v4964_v20 = vld [vmem:[#allocation10 + $0xa00] sm:$0xff]  ;;  %5235 = vmatpush.msrb.mxu1 %v4981_v46  ;;  %v4733_v46 = vld [vmem:[#allocation10 + $0x2c8] sm:$0xff] }
 0x4a1   : > { %5433 = vmatpush.msra.mxu2 %v4874_v11  ;;  %v4666_v11 = vld [vmem:[#allocation10 + $0xb0] sm:$0xff]  ;;  %5190 = vmatpush.msrb.mxu3 %v4964_v20  ;;  %v4716_v20 = vld [vmem:[#allocation10 + $0x240] sm:$0xff] }
 0x4a2   : > { %5479 = vmatpush.msra.mxu0 %v4875_v13  ;;  %v4965_v13 = vld [vmem:[#allocation10 + $0xa08] sm:$0xff] }
 0x4a3   : > { %5434 = vmatpush.msra.mxu2 %v4858_v23  ;;  %v4948_v23 = vld [vmem:[#allocation10 + $0x980] sm:$0xff]  ;;  %5236 = vmatpush.msrb.mxu1 %v4965_v13  ;;  %v4717_v13 = vld [vmem:[#allocation10 + $0x248] sm:$0xff] }
 0x4a4   : > { %5480 = vmatpush.msra.mxu0 %v4859_v0  ;;  %v4949_v0 = vld [vmem:[#allocation10 + $0x988] sm:$0xff]  ;;  %5191 = vmatpush.msrb.mxu3 %v4948_v23  ;;  %v4700_v23 = vld [vmem:[#allocation10 + $0x1c0] sm:$0xff] }
 0x4a5   : > { %5435 = vmatpush.msra.mxu2 %v4842_v24  ;;  %v4892_v24 = vld [vmem:[#allocation10 + $0x7c0] sm:$0xff]  ;;  %5237 = vmatpush.msrb.mxu1 %v4949_v0  ;;  %v4701_v0 = vld [vmem:[#allocation10 + $0x1c8] sm:$0xff] }
 0x4a6   : > { %5481 = vmatpush.msra.mxu0 %v4843_v6  ;;  %5359 = vmatmul.f32.gmra.mxu2 %v7602_v12  ;;  %v4932_v6 = vld [vmem:[#allocation10 + $0x900] sm:$0xff] }
 0x4a7   : > { %5436 = vmatpush.msra.mxu2 %v4826_v31  ;;  %5405 = vmatmul.f32.gmra.mxu0 %v7602_v12  ;;  %v4933_v31 = vld [vmem:[#allocation10 + $0x908] sm:$0xff] }
 0x4a8   : > { %5482 = vmatpush.msra.mxu0 %v4827_v25  ;;  %v4916_v25 = vld [vmem:[#allocation10 + $0x880] sm:$0xff]  ;;  %5192 = vmatpush.msrb.mxu3 %v4932_v6  ;;  %v4685_v6 = vld [vmem:[#allocation10 + $0x148] sm:$0xff] }
 0x4a9   : > { %5437 = vmatpush.msra.mxu2 %v4810_v39  ;;  %v4860_v39 = vld [vmem:[#allocation10 + $0x6c0] sm:$0xff]  ;;  %5238 = vmatpush.msrb.mxu1 %v4933_v31 }
 0x4aa   : > { %5483 = vmatpush.msra.mxu0 %v4811_v42  ;;  %v4917_v42 = vld [vmem:[#allocation10 + $0x888] sm:$0xff]  ;;  %5193 = vmatpush.msrb.mxu3 %v4916_v25  ;;  %v4668_v31 = vld [vmem:[#allocation10 + $0xc0] sm:$0xff] }
 0x4ab   : > { %5438 = vmatpush.msra.mxu2 %v4794_v51  ;;  %v4900_v51 = vld [vmem:[#allocation10 + $0x800] sm:$0xff]  ;;  %5239 = vmatpush.msrb.mxu1 %v4917_v42  ;;  %v4669_v25 = vld [vmem:[#allocation10 + $0xc8] sm:$0xff] }
 0x4ac   : > { %5484 = vmatpush.msra.mxu0 %v4795_v44  ;;  %v4901_v44 = vld [vmem:[#allocation10 + $0x808] sm:$0xff]  ;;  %5194 = vmatpush.msrb.mxu3 %v4900_v51  ;;  %v4652_v42 = vld [vmem:[#allocation10 + $0x40] sm:$0xff] }
 0x4ad   : > { %5439 = vmatpush.msra.mxu2 %v4778_v2  ;;  %v4828_v2 = vld [vmem:[#allocation10 + $0x5c0] sm:$0xff]  ;;  %5240 = vmatpush.msrb.mxu1 %v4901_v44  ;;  %v4653_v51 = vld [vmem:[#allocation10 + $0x48] sm:$0xff]  ;;  %v4895_v44 = vld [vmem:[#allocation10 + $0x7d8] sm:$0xff] }
 0x4ae   : > { %5485 = vmatpush.msra.mxu0 %v4779_v30  ;;  %v5142_v30 = vld [vmem:[#allocation10 + $0xf90] sm:$0xff] }
 0x4af   : > { %5440 = vmatpush.msra.mxu2 %v4762_v45  ;;  %v5143_v45 = vld [vmem:[#allocation10 + $0xf98] sm:$0xff]  ;;  %5271 = vmatpush.msra.mxu3 %v5142_v30 }
 0x4b0   : > { %5486 = vmatpush.msra.mxu0 %v4763_v34  ;;  %v5126_v34 = vld [vmem:[#allocation10 + $0xf10] sm:$0xff]  ;;  %5317 = vmatpush.msra.mxu1 %v5143_v45  ;;  %v4879_v30 = vld [vmem:[#allocation10 + $0x758] sm:$0xff] }
 0x4b1   : > { %5441 = vmatpush.msra.mxu2 %v4746_v35  ;;  %v5127_v35 = vld [vmem:[#allocation10 + $0xf18] sm:$0xff]  ;;  %5272 = vmatpush.msra.mxu3 %v5126_v34  ;;  %v4862_v45 = vld [vmem:[#allocation10 + $0x6d0] sm:$0xff] }
 0x4b2   : > { %5487 = vmatpush.msra.mxu0 %v4747_v26  ;;  %v5110_v26 = vld [vmem:[#allocation10 + $0xe90] sm:$0xff]  ;;  %5318 = vmatpush.msra.mxu1 %v5127_v35  ;;  %v4863_v34 = vld [vmem:[#allocation10 + $0x6d8] sm:$0xff] }
 0x4b3   : > { %5442 = vmatpush.msra.mxu2 %v4730_v58  ;;  %v5111_v58 = vld [vmem:[#allocation10 + $0xe98] sm:$0xff]  ;;  %5273 = vmatpush.msra.mxu3 %v5110_v26  ;;  %v4846_v35 = vld [vmem:[#allocation10 + $0x650] sm:$0xff] }
 0x4b4   : > { %5488 = vmatpush.msra.mxu0 %v4731_v53  ;;  %v5094_v53 = vld [vmem:[#allocation10 + $0xe10] sm:$0xff]  ;;  %5319 = vmatpush.msra.mxu1 %v5111_v58  ;;  %v4847_v26 = vld [vmem:[#allocation10 + $0x658] sm:$0xff] }
 0x4b5   : > { %5443 = vmatpush.msra.mxu2 %v4714_v36  ;;  %v5095_v36 = vld [vmem:[#allocation10 + $0xe18] sm:$0xff]  ;;  %5274 = vmatpush.msra.mxu3 %v5094_v53  ;;  %v4814_v53 = vld [vmem:[#allocation10 + $0x550] sm:$0xff] }
 0x4b6   : > { %5489 = vmatpush.msra.mxu0 %v4715_v62  ;;  %v5078_v62 = vld [vmem:[#allocation10 + $0xd90] sm:$0xff]  ;;  %5320 = vmatpush.msra.mxu1 %v5095_v36  ;;  %v4831_v58 = vld [vmem:[#allocation10 + $0x5d8] sm:$0xff] }
 0x4b7   : > { %5444 = vmatpush.msra.mxu2 %v4698_v4  ;;  %v5079_v4 = vld [vmem:[#allocation10 + $0xd98] sm:$0xff]  ;;  %5275 = vmatpush.msra.mxu3 %v5078_v62  ;;  %v4798_v62 = vld [vmem:[#allocation10 + $0x4d0] sm:$0xff] }
 0x4b8   : > { %5490 = vmatpush.msra.mxu0 %v4699_v50  ;;  %v5062_v50 = vld [vmem:[#allocation10 + $0xd10] sm:$0xff]  ;;  %5321 = vmatpush.msra.mxu1 %v5079_v4  ;;  %v4815_v36 = vld [vmem:[#allocation10 + $0x558] sm:$0xff] }
 0x4b9   : > { %5445 = vmatpush.msra.mxu2 %v4682_v54  ;;  %v5063_v54 = vld [vmem:[#allocation10 + $0xd18] sm:$0xff]  ;;  %5276 = vmatpush.msra.mxu3 %v5062_v50 }
 0x4ba   : > { %5491 = vmatpush.msra.mxu0 %v4683_v21  ;;  %v5046_v21 = vld [vmem:[#allocation10 + $0xc90] sm:$0xff]  ;;  %5322 = vmatpush.msra.mxu1 %v5063_v54  ;;  %v4799_v4 = vld [vmem:[#allocation10 + $0x4d8] sm:$0xff] }
 0x4bb   : > { %5446 = vmatpush.msra.mxu2 %v4666_v11  ;;  %v5047_v11 = vld [vmem:[#allocation10 + $0xc98] sm:$0xff]  ;;  %5277 = vmatpush.msra.mxu3 %v5046_v21 }
 0x4bc   : > { %5492 = vmatpush.msra.mxu0 %v4667_v15  ;;  %v5030_v15 = vld [vmem:[#allocation10 + $0xc10] sm:$0xff]  ;;  %5323 = vmatpush.msra.mxu1 %v5047_v11  ;;  %v4783_v50 = vld [vmem:[#allocation10 + $0x458] sm:$0xff] }
 0x4bd   : > { %5447 = vmatpush.msra.mxu2 %v4650_v8  ;;  %v5031_v8 = vld [vmem:[#allocation10 + $0xc18] sm:$0xff]  ;;  %5278 = vmatpush.msra.mxu3 %v5030_v15 }
 0x4be   : > { %5493 = vmatpush.msra.mxu0 %v4651_v16  ;;  %5448 = vmatmul.f32.vlgmr.msra.gmra.mxu2 %v7595_v47  ;;  %v5014_v16 = vld [vmem:[#allocation10 + $0xb90] sm:$0xff]  ;;  %v4767_v54 = vld [vmem:[#allocation10 + $0x3d8] sm:$0xff] }
 0x4bf   : > { %5494 = vmatmul.f32.vlgmr.msra.gmra.mxu0 %v7595_v47  ;;  %5524 = vmatpush.msrb.mxu2 %v4892_v24  ;;  %v4684_v24 = vld [vmem:[#allocation10 + $0x140] sm:$0xff]  ;;  %v4751_v21 = vld [vmem:[#allocation10 + $0x358] sm:$0xff] }
 0x4c0   : > { %5570 = vmatpush.msrb.mxu0 %v4893_v18  ;;  %v5015_v18 = vld [vmem:[#allocation10 + $0xb98] sm:$0xff]  ;;  %5324 = vmatpush.msra.mxu1 %v5031_v8 }
 0x4c1   : > { %5525 = vmatpush.msrb.mxu2 %v4876_v49  ;;  %v4998_v49 = vld [vmem:[#allocation10 + $0xb10] sm:$0xff]  ;;  %5279 = vmatpush.msra.mxu3 %v5014_v16  ;;  %v4735_v11 = vld [vmem:[#allocation10 + $0x2d8] sm:$0xff] }
 0x4c2   : > { %5571 = vmatpush.msrb.mxu0 %v4877_v48  ;;  %v4999_v48 = vld [vmem:[#allocation10 + $0xb18] sm:$0xff]  ;;  %5325 = vmatpush.msra.mxu1 %v5015_v18 }
 0x4c3   : > { %5526 = vmatpush.msrb.mxu2 %v4860_v39  ;;  %v4982_v39 = vld [vmem:[#allocation10 + $0xa90] sm:$0xff]  ;;  %5280 = vmatpush.msra.mxu3 %v4998_v49  ;;  %v4719_v15 = vld [vmem:[#allocation10 + $0x258] sm:$0xff] }
 0x4c4   : > { %5572 = vmatpush.msrb.mxu0 %v4861_v5  ;;  %v4983_v5 = vld [vmem:[#allocation10 + $0xa98] sm:$0xff]  ;;  %5326 = vmatpush.msra.mxu1 %v4999_v48  ;;  %v4896_v48 = vld [vmem:[#allocation10 + $0x7e0] sm:$0xff] }
 0x4c5   : > { %5527 = vmatpush.msrb.mxu2 %v4844_v7  ;;  %v4894_v7 = vld [vmem:[#allocation10 + $0x7d0] sm:$0xff]  ;;  %5281 = vmatpush.msra.mxu3 %v4982_v39  ;;  %v4703_v8 = vld [vmem:[#allocation10 + $0x1d8] sm:$0xff] }
 0x4c6   : > { %5573 = vmatpush.msrb.mxu0 %v4845_v22  ;;  %5451 = vmatmul.f32.gmra.mxu2 %v7602_v12  ;;  %v4966_v22 = vld [vmem:[#allocation10 + $0xa10] sm:$0xff]  ;;  %v4687_v16 = vld [vmem:[#allocation10 + $0x158] sm:$0xff] }
 0x4c7   : > { %5497 = vmatmul.f32.gmra.mxu0 %v7602_v12  ;;  %5528 = vmatpush.msrb.mxu2 %v4828_v2  ;;  %v4878_v2 = vld [vmem:[#allocation10 + $0x750] sm:$0xff]  ;;  %v4671_v18 = vld [vmem:[#allocation10 + $0xd8] sm:$0xff] }
 0x4c8   : > { %5574 = vmatpush.msrb.mxu0 %v4829_v61  ;;  %5327 = vmatpush.msra.mxu1 %v4983_v5  ;;  %v4967_v61 = vld [vmem:[#allocation10 + $0xa18] sm:$0xff] }
 0x4c9   : > { %5529 = vmatpush.msrb.mxu2 %v4812_v29  ;;  %v4950_v29 = vld [vmem:[#allocation10 + $0x990] sm:$0xff]  ;;  %5282 = vmatpush.msra.mxu3 %v4966_v22  ;;  %v4655_v49 = vld [vmem:[#allocation10 + $0x58] sm:$0xff]  ;;  %v5145_v22 = vld [vmem:[#allocation10 + $0xfa8] sm:$0xff] }
 0x4ca   : > { %5575 = vmatpush.msrb.mxu0 %v4813_v60  ;;  %v4951_v60 = vld [vmem:[#allocation10 + $0x998] sm:$0xff]  ;;  %5328 = vmatpush.msra.mxu1 %v4967_v61  ;;  %v4865_v61 = vld [vmem:[#allocation10 + $0x6e8] sm:$0xff] }
 0x4cb   : > { %5530 = vmatpush.msrb.mxu2 %v4796_v28  ;;  %v4934_v28 = vld [vmem:[#allocation10 + $0x910] sm:$0xff]  ;;  %5283 = vmatpush.msra.mxu3 %v4950_v29  ;;  %v5129_v29 = vld [vmem:[#allocation10 + $0xf28] sm:$0xff] }
 0x4cc   : > { %5576 = vmatpush.msrb.mxu0 %v4797_v56  ;;  %v4935_v56 = vld [vmem:[#allocation10 + $0x918] sm:$0xff]  ;;  %5329 = vmatpush.msra.mxu1 %v4951_v60  ;;  %v4848_v60 = vld [vmem:[#allocation10 + $0x660] sm:$0xff] }
 0x4cd   : > { %5531 = vmatpush.msrb.mxu2 %v4780_v9  ;;  %v4830_v9 = vld [vmem:[#allocation10 + $0x5d0] sm:$0xff]  ;;  %5284 = vmatpush.msra.mxu3 %v4934_v28  ;;  %v5112_v28 = vld [vmem:[#allocation10 + $0xea0] sm:$0xff] }
 0x4ce   : > { %5577 = vmatpush.msrb.mxu0 %v4781_v38  ;;  %5330 = vmatpush.msra.mxu1 %v4935_v56  ;;  %v4918_v38 = vld [vmem:[#allocation10 + $0x890] sm:$0xff] }
 0x4cf   : > { %5532 = vmatpush.msrb.mxu2 %v4764_v52  ;;  %v4919_v52 = vld [vmem:[#allocation10 + $0x898] sm:$0xff]  ;;  %5285 = vmatpush.msra.mxu3 %v4918_v38 }
 0x4d0   : > { %5578 = vmatpush.msrb.mxu0 %v4765_v19  ;;  %v4902_v19 = vld [vmem:[#allocation10 + $0x810] sm:$0xff]  ;;  %5331 = vmatpush.msra.mxu1 %v4919_v52  ;;  %v5081_v52 = vld [vmem:[#allocation10 + $0xda8] sm:$0xff] }
 0x4d1   : > { %5533 = vmatpush.msrb.mxu2 %v4748_v33  ;;  %v4903_v33 = vld [vmem:[#allocation10 + $0x818] sm:$0xff]  ;;  %5286 = vmatpush.msra.mxu3 %v4902_v19  ;;  %v4833_v19 = vld [vmem:[#allocation10 + $0x5e8] sm:$0xff] }
 0x4d2   : > { %5579 = vmatpush.msrb.mxu0 %v4749_v63  ;;  %v4782_v63 = vld [vmem:[#allocation10 + $0x450] sm:$0xff]  ;;  %5332 = vmatpush.msra.mxu1 %v4903_v33  ;;  %v5065_v33 = vld [vmem:[#allocation10 + $0xd28] sm:$0xff] }
 0x4d3   : > { %5534 = vmatpush.msrb.mxu2 %v4732_v43  ;;  %v4766_v43 = vld [vmem:[#allocation10 + $0x3d0] sm:$0xff] }
 0x4d4   : > { %5580 = vmatpush.msrb.mxu0 %v4733_v46  ;;  %v4750_v46 = vld [vmem:[#allocation10 + $0x350] sm:$0xff] }
 0x4d5   : > { %5535 = vmatpush.msrb.mxu2 %v4716_v20  ;;  %v4734_v20 = vld [vmem:[#allocation10 + $0x2d0] sm:$0xff] }
 0x4d6   : > { %5581 = vmatpush.msrb.mxu0 %v4717_v13  ;;  %v4718_v13 = vld [vmem:[#allocation10 + $0x250] sm:$0xff] }
 0x4d7   : > { %5536 = vmatpush.msrb.mxu2 %v4700_v23  ;;  %v4702_v23 = vld [vmem:[#allocation10 + $0x1d0] sm:$0xff] }
 0x4d8   : > { %5582 = vmatpush.msrb.mxu0 %v4701_v0  ;;  %v4686_v0 = vld [vmem:[#allocation10 + $0x150] sm:$0xff] }
 0x4d9   : > { %5537 = vmatpush.msrb.mxu2 %v4684_v24  ;;  %v4670_v24 = vld [vmem:[#allocation10 + $0xd0] sm:$0xff] }
 0x4da   : > { %5583 = vmatpush.msrb.mxu0 %v4685_v6  ;;  %v4654_v6 = vld [vmem:[#allocation10 + $0x50] sm:$0xff] }
 0x4db   : > { %5538 = vmatpush.msrb.mxu2 %v4668_v31  ;;  %v4584_v31 = vld [vmem:[#allocation7 + $0x8] sm:$0xff] }
 0x4dc   : > { %5584 = vmatpush.msrb.mxu0 %v4669_v25  ;;  %v4897_v25 = vld [vmem:[#allocation10 + $0x7e8] sm:$0xff] }
 0x4dd   : > { %5539 = vmatpush.msrb.mxu2 %v4652_v42  ;;  %v4880_v42 = vld [vmem:[#allocation10 + $0x760] sm:$0xff] }
 0x4de   : > { %5585 = vmatpush.msrb.mxu0 %v4653_v51  ;;  %5540 = vmatmul.f32.vlgmr.msrb.gmra.mxu2 %v7595_v47  ;;  %v4881_v51 = vld [vmem:[#allocation10 + $0x768] sm:$0xff] }
 0x4df   : > { %5586 = vmatmul.f32.vlgmr.msrb.gmra.mxu0 %v7595_v47  ;;  %5616 = vmatpush.msra.mxu2 %v4894_v7 }
 0x4e0   : > { %5662 = vmatpush.msra.mxu0 %v4895_v44  ;;  %v5144_v44 = vld [vmem:[#allocation10 + $0xfa0] sm:$0xff] }
 0x4e1   : > { %5617 = vmatpush.msra.mxu2 %v4878_v2  ;;  %v4864_v2 = vld [vmem:[#allocation10 + $0x6e0] sm:$0xff] }
 0x4e2   : > { %5663 = vmatpush.msra.mxu0 %v4879_v30  ;;  %v5128_v30 = vld [vmem:[#allocation10 + $0xf20] sm:$0xff] }
 0x4e3   : > { %5618 = vmatpush.msra.mxu2 %v4862_v45  ;;  %v4586_v45 = vld [vmem:[#allocation7 + $0x18] sm:$0xff] }
 0x4e4   : > { %5664 = vmatpush.msra.mxu0 %v4863_v34  ;;  %v4849_v34 = vld [vmem:[#allocation10 + $0x668] sm:$0xff] }
 0x4e5   : > { %5619 = vmatpush.msra.mxu2 %v4846_v35  ;;  %v5113_v35 = vld [vmem:[#allocation10 + $0xea8] sm:$0xff] }
 0x4e6   : > { %5665 = vmatpush.msra.mxu0 %v4847_v26  ;;  %5543 = vmatmul.f32.gmra.mxu2 %v7602_v12 }
 0x4e7   : > { %5589 = vmatmul.f32.gmra.mxu0 %v7602_v12  ;;  %5620 = vmatpush.msra.mxu2 %v4830_v9  ;;  %v5096_v9 = vld [vmem:[#allocation10 + $0xe20] sm:$0xff] }
 0x4e8   : > { %5666 = vmatpush.msra.mxu0 %v4831_v58  ;;  %v5097_v58 = vld [vmem:[#allocation10 + $0xe28] sm:$0xff] }
 0x4e9   : > { %5621 = vmatpush.msra.mxu2 %v4814_v53  ;;  %v5080_v53 = vld [vmem:[#allocation10 + $0xda0] sm:$0xff] }
 0x4ea   : > { %5667 = vmatpush.msra.mxu0 %v4815_v36  ;;  %v4832_v36 = vld [vmem:[#allocation10 + $0x5e0] sm:$0xff] }
 0x4eb   : > { %5622 = vmatpush.msra.mxu2 %v4798_v62  ;;  %v5064_v62 = vld [vmem:[#allocation10 + $0xd20] sm:$0xff] }
 0x4ec   : > { %5668 = vmatpush.msra.mxu0 %v4799_v4  ;;  %v4816_v4 = vld [vmem:[#allocation10 + $0x560] sm:$0xff] }
 0x4ed   : > { %5623 = vmatpush.msra.mxu2 %v4782_v63  ;;  %v4817_v63 = vld [vmem:[#allocation10 + $0x568] sm:$0xff] }
 0x4ee   : > { %5669 = vmatpush.msra.mxu0 %v4783_v50  ;;  %v5048_v50 = vld [vmem:[#allocation10 + $0xca0] sm:$0xff] }
 0x4ef   : > { %5624 = vmatpush.msra.mxu2 %v4766_v43  ;;  %v5049_v43 = vld [vmem:[#allocation10 + $0xca8] sm:$0xff] }
 0x4f0   : > { %5670 = vmatpush.msra.mxu0 %v4767_v54  ;;  %v4800_v54 = vld [vmem:[#allocation10 + $0x4e0] sm:$0xff] }
 0x4f1   : > { %5625 = vmatpush.msra.mxu2 %v4750_v46  ;;  %v4801_v46 = vld [vmem:[#allocation10 + $0x4e8] sm:$0xff] }
 0x4f2   : > { %5671 = vmatpush.msra.mxu0 %v4751_v21  ;;  %v5032_v21 = vld [vmem:[#allocation10 + $0xc20] sm:$0xff] }
 0x4f3   : > { %5626 = vmatpush.msra.mxu2 %v4734_v20  ;;  %v5033_v20 = vld [vmem:[#allocation10 + $0xc28] sm:$0xff] }
 0x4f4   : > { %5672 = vmatpush.msra.mxu0 %v4735_v11  ;;  %v4784_v11 = vld [vmem:[#allocation10 + $0x460] sm:$0xff] }
 0x4f5   : > { %5627 = vmatpush.msra.mxu2 %v4718_v13  ;;  %v4785_v13 = vld [vmem:[#allocation10 + $0x468] sm:$0xff] }
 0x4f6   : > { %5673 = vmatpush.msra.mxu0 %v4719_v15  ;;  %v5016_v15 = vld [vmem:[#allocation10 + $0xba0] sm:$0xff] }
 0x4f7   : > { %5628 = vmatpush.msra.mxu2 %v4702_v23  ;;  %v5017_v23 = vld [vmem:[#allocation10 + $0xba8] sm:$0xff] }
 0x4f8   : > { %5674 = vmatpush.msra.mxu0 %v4703_v8  ;;  %v4768_v8 = vld [vmem:[#allocation10 + $0x3e0] sm:$0xff] }
 0x4f9   : > { %5629 = vmatpush.msra.mxu2 %v4686_v0  ;;  %v4769_v0 = vld [vmem:[#allocation10 + $0x3e8] sm:$0xff] }
 0x4fa   : > { %5675 = vmatpush.msra.mxu0 %v4687_v16  ;;  %v5000_v16 = vld [vmem:[#allocation10 + $0xb20] sm:$0xff] }
 0x4fb   : > { %5630 = vmatpush.msra.mxu2 %v4670_v24  ;;  %v5001_v24 = vld [vmem:[#allocation10 + $0xb28] sm:$0xff] }
 0x4fc   : > { %5676 = vmatpush.msra.mxu0 %v4671_v18  ;;  %v4752_v18 = vld [vmem:[#allocation10 + $0x360] sm:$0xff] }
 0x4fd   : > { %5631 = vmatpush.msra.mxu2 %v4654_v6  ;;  %v4634_v39 = vpop.f32.mrf.mxu1  ;;  %v4753_v6 = vld [vmem:[#allocation10 + $0x368] sm:$0xff] }
 0x4fe   : > { %5677 = vmatpush.msra.mxu0 %v4655_v49  ;;  %5632 = vmatmul.f32.vlgmr.msra.gmra.mxu2 %v7595_v47  ;;  %v4635_v5 = vadd.f32 %v4634_v39, %v4584_v31  ;;  %v4984_v49 = vld [vmem:[#allocation10 + $0xaa0] sm:$0xff]  ;;  %v4985_v31 = vld [vmem:[#allocation10 + $0xaa8] sm:$0xff] }
 0x4ff   : > { %5678 = vmatmul.f32.vlgmr.msra.gmra.mxu0 %v7595_v47  ;;  %5708 = vmatpush.msrb.mxu2 %v4896_v48  ;;  %v4736_v48 = vld [vmem:[#allocation10 + $0x2e0] sm:$0xff] }
 0x500   : > { %5754 = vmatpush.msrb.mxu0 %v4897_v25  ;;  %v7626_v7 = vmax.f32 %v4635_v5, 0.0  ;;  %v4737_v25 = vld [vmem:[#allocation10 + $0x2e8] sm:$0xff]  ;;  %v4968_v39 = vld [vmem:[#allocation10 + $0xa20] sm:$0xff] }
 0x501   : > { %5709 = vmatpush.msrb.mxu2 %v4880_v42  ;;  %v4969_v42 = vld [vmem:[#allocation10 + $0xa28] sm:$0xff]  ;;  %v4720_v5 = vld [vmem:[#allocation10 + $0x260] sm:$0xff] }
 0x502   : > { %5755 = vmatpush.msrb.mxu0 %v4881_v51  ;;  %5195 = vmatmul.f32.vlgmr.msrb.gmra.mxu3 %v7626_v7  ;;  %v4721_v51 = vld [vmem:[#allocation10 + $0x268] sm:$0xff] }
 0x503   : > { %5241 = vmatmul.f32.vlgmr.msrb.gmra.mxu1 %v7626_v7  ;;  %5363 = vmatpush.msrb.mxu3 %v5144_v44  ;;  %v4952_v44 = vld [vmem:[#allocation10 + $0x9a0] sm:$0xff] }
 0x504   : > { %5409 = vmatpush.msrb.mxu1 %v5145_v22  ;;  %5710 = vmatpush.msrb.mxu2 %v4864_v2  ;;  %v4953_v22 = vld [vmem:[#allocation10 + $0x9a8] sm:$0xff]  ;;  %v4704_v2 = vld [vmem:[#allocation10 + $0x1e0] sm:$0xff] }
 0x505   : > { %5756 = vmatpush.msrb.mxu0 %v4865_v61  ;;  %5364 = vmatpush.msrb.mxu3 %v5128_v30  ;;  %v4637_v56 = vpop.f32.mrf.mxu1  ;;  %v4705_v61 = vld [vmem:[#allocation10 + $0x1e8] sm:$0xff]  ;;  %v4936_v30 = vld [vmem:[#allocation10 + $0x920] sm:$0xff] }
 0x506   : > { %5410 = vmatpush.msrb.mxu1 %v5129_v29  ;;  %v4638_v26 = vadd.f32 %v4637_v56, %v4586_v45  ;;  %5711 = vmatpush.msrb.mxu2 %v4848_v60  ;;  %v4937_v29 = vld [vmem:[#allocation10 + $0x928] sm:$0xff]  ;;  %v4688_v45 = vld [vmem:[#allocation10 + $0x160] sm:$0xff] }
 0x507   : > { %5757 = vmatpush.msrb.mxu0 %v4849_v34  ;;  %5365 = vmatpush.msrb.mxu3 %v5112_v28  ;;  %v4689_v60 = vld [vmem:[#allocation10 + $0x168] sm:$0xff]  ;;  %v4920_v34 = vld [vmem:[#allocation10 + $0x8a0] sm:$0xff] }
 0x508   : > { %5411 = vmatpush.msrb.mxu1 %v5113_v35  ;;  %v7630_v38 = vmax.f32 %v4638_v26, 0.0  ;;  %5635 = vmatmul.f32.gmra.mxu2 %v7602_v12  ;;  %v4921_v28 = vld [vmem:[#allocation10 + $0x8a8] sm:$0xff]  ;;  %v4672_v35 = vld [vmem:[#allocation10 + $0xe0] sm:$0xff] }
 0x509   : > { %5681 = vmatmul.f32.gmra.mxu0 %v7602_v12  ;;  %5366 = vmatpush.msrb.mxu3 %v5096_v9  ;;  %v4673_v56 = vld [vmem:[#allocation10 + $0xe8] sm:$0xff]  ;;  %v4904_v26 = vld [vmem:[#allocation10 + $0x820] sm:$0xff] }
 0x50a   : > { %5412 = vmatpush.msrb.mxu1 %v5097_v58  ;;  %5198 = vmatmul.f32.gmra.mxu3 %v7630_v38  ;;  %v4905_v9 = vld [vmem:[#allocation10 + $0x828] sm:$0xff]  ;;  %v4656_v58 = vld [vmem:[#allocation10 + $0x60] sm:$0xff] }
 0x50b   : > { %5244 = vmatmul.f32.gmra.mxu1 %v7630_v38  ;;  %5367 = vmatpush.msrb.mxu3 %v5080_v53  ;;  %v4657_v53 = vld [vmem:[#allocation10 + $0x68] sm:$0xff] }
 0x50c   : > { %5413 = vmatpush.msrb.mxu1 %v5081_v52  ;;  %5712 = vmatpush.msrb.mxu2 %v4832_v36  ;;  %v5146_v52 = vld [vmem:[#allocation10 + $0xfb0] sm:$0xff]  ;;  %v5147_v36 = vld [vmem:[#allocation10 + $0xfb8] sm:$0xff] }
 0x50d   : > { %5758 = vmatpush.msrb.mxu0 %v4833_v19  ;;  %5368 = vmatpush.msrb.mxu3 %v5064_v62  ;;  %v4898_v19 = vld [vmem:[#allocation10 + $0x7f0] sm:$0xff]  ;;  %v4899_v62 = vld [vmem:[#allocation10 + $0x7f8] sm:$0xff] }
 0x50e   : > { %5414 = vmatpush.msrb.mxu1 %v5065_v33  ;;  %5713 = vmatpush.msrb.mxu2 %v4816_v4  ;;  %v5130_v33 = vld [vmem:[#allocation10 + $0xf30] sm:$0xff]  ;;  %v5131_v4 = vld [vmem:[#allocation10 + $0xf38] sm:$0xff] }
 0x50f   : > { %5759 = vmatpush.msrb.mxu0 %v4817_v63  ;;  %5369 = vmatpush.msrb.mxu3 %v5048_v50  ;;  %v4882_v63 = vld [vmem:[#allocation10 + $0x770] sm:$0xff]  ;;  %v4883_v50 = vld [vmem:[#allocation10 + $0x778] sm:$0xff] }
 0x510   : > { %5415 = vmatpush.msrb.mxu1 %v5049_v43  ;;  %5714 = vmatpush.msrb.mxu2 %v4800_v54  ;;  %v5114_v43 = vld [vmem:[#allocation10 + $0xeb0] sm:$0xff]  ;;  %v5115_v54 = vld [vmem:[#allocation10 + $0xeb8] sm:$0xff] }
 0x511   : > { %5760 = vmatpush.msrb.mxu0 %v4801_v46  ;;  %5370 = vmatpush.msrb.mxu3 %v5032_v21  ;;  %v4866_v46 = vld [vmem:[#allocation10 + $0x6f0] sm:$0xff]  ;;  %v4867_v21 = vld [vmem:[#allocation10 + $0x6f8] sm:$0xff] }
 0x512   : > { %5416 = vmatpush.msrb.mxu1 %v5033_v20  ;;  %5715 = vmatpush.msrb.mxu2 %v4784_v11  ;;  %v5098_v20 = vld [vmem:[#allocation10 + $0xe30] sm:$0xff]  ;;  %v5099_v11 = vld [vmem:[#allocation10 + $0xe38] sm:$0xff] }
 0x513   : > { %5761 = vmatpush.msrb.mxu0 %v4785_v13  ;;  %5287 = vmatmul.f32.vlgmr.msra.gmra.mxu3 %v7626_v7  ;;  %v4850_v13 = vld [vmem:[#allocation10 + $0x670] sm:$0xff] }
 0x514   : > { %5333 = vmatmul.f32.vlgmr.msra.gmra.mxu1 %v7626_v7  ;;  %5371 = vmatpush.msrb.mxu3 %v5016_v15  ;;  %v4851_v15 = vld [vmem:[#allocation10 + $0x678] sm:$0xff] }
 0x515   : > { %5417 = vmatpush.msrb.mxu1 %v5017_v23  ;;  %5716 = vmatpush.msrb.mxu2 %v4768_v8  ;;  %v5082_v23 = vld [vmem:[#allocation10 + $0xdb0] sm:$0xff]  ;;  %v5083_v8 = vld [vmem:[#allocation10 + $0xdb8] sm:$0xff] }
 0x516   : > { %5762 = vmatpush.msrb.mxu0 %v4769_v0  ;;  %5372 = vmatpush.msrb.mxu3 %v5000_v16  ;;  %v4834_v0 = vld [vmem:[#allocation10 + $0x5f0] sm:$0xff]  ;;  %v4835_v16 = vld [vmem:[#allocation10 + $0x5f8] sm:$0xff] }
 0x517   : > { %5418 = vmatpush.msrb.mxu1 %v5001_v24  ;;  %5717 = vmatpush.msrb.mxu2 %v4752_v18  ;;  %v5066_v24 = vld [vmem:[#allocation10 + $0xd30] sm:$0xff]  ;;  %v5067_v18 = vld [vmem:[#allocation10 + $0xd38] sm:$0xff] }
 0x518   : > { %5763 = vmatpush.msrb.mxu0 %v4753_v6  ;;  %5373 = vmatpush.msrb.mxu3 %v4984_v49  ;;  %v4818_v6 = vld [vmem:[#allocation10 + $0x570] sm:$0xff]  ;;  %v4819_v49 = vld [vmem:[#allocation10 + $0x578] sm:$0xff] }
 0x519   : > { %5419 = vmatpush.msrb.mxu1 %v4985_v31  ;;  %5718 = vmatpush.msrb.mxu2 %v4736_v48  ;;  %v5050_v31 = vld [vmem:[#allocation10 + $0xcb0] sm:$0xff]  ;;  %v5051_v48 = vld [vmem:[#allocation10 + $0xcb8] sm:$0xff] }
 0x51a   : > { %5764 = vmatpush.msrb.mxu0 %v4737_v25  ;;  %5374 = vmatpush.msrb.mxu3 %v4968_v39  ;;  %v4802_v25 = vld [vmem:[#allocation10 + $0x4f0] sm:$0xff]  ;;  %v4803_v39 = vld [vmem:[#allocation10 + $0x4f8] sm:$0xff] }
 0x51b   : > { %5420 = vmatpush.msrb.mxu1 %v4969_v42  ;;  %5719 = vmatpush.msrb.mxu2 %v4720_v5  ;;  %v5034_v42 = vld [vmem:[#allocation10 + $0xc30] sm:$0xff]  ;;  %v5035_v5 = vld [vmem:[#allocation10 + $0xc38] sm:$0xff] }
 0x51c   : > { %5765 = vmatpush.msrb.mxu0 %v4721_v51  ;;  %5290 = vmatmul.f32.gmra.mxu3 %v7630_v38  ;;  %v4786_v51 = vld [vmem:[#allocation10 + $0x470] sm:$0xff] }
 0x51d   : > { %5336 = vmatmul.f32.gmra.mxu1 %v7630_v38  ;;  %5375 = vmatpush.msrb.mxu3 %v4952_v44  ;;  %v4787_v44 = vld [vmem:[#allocation10 + $0x478] sm:$0xff] }
 0x51e   : > { %5421 = vmatpush.msrb.mxu1 %v4953_v22  ;;  %5720 = vmatpush.msrb.mxu2 %v4704_v2  ;;  %v5018_v22 = vld [vmem:[#allocation10 + $0xbb0] sm:$0xff]  ;;  %v5019_v2 = vld [vmem:[#allocation10 + $0xbb8] sm:$0xff] }
 0x51f   : > { %5766 = vmatpush.msrb.mxu0 %v4705_v61  ;;  %5376 = vmatpush.msrb.mxu3 %v4936_v30  ;;  %v4770_v61 = vld [vmem:[#allocation10 + $0x3f0] sm:$0xff]  ;;  %v4771_v30 = vld [vmem:[#allocation10 + $0x3f8] sm:$0xff] }
 0x520   : > { %5422 = vmatpush.msrb.mxu1 %v4937_v29  ;;  %5721 = vmatpush.msrb.mxu2 %v4688_v45  ;;  %v5002_v29 = vld [vmem:[#allocation10 + $0xb30] sm:$0xff]  ;;  %v5003_v45 = vld [vmem:[#allocation10 + $0xb38] sm:$0xff] }
 0x521   : > { %5767 = vmatpush.msrb.mxu0 %v4689_v60  ;;  %5377 = vmatpush.msrb.mxu3 %v4920_v34  ;;  %v4754_v60 = vld [vmem:[#allocation10 + $0x370] sm:$0xff]  ;;  %v4755_v34 = vld [vmem:[#allocation10 + $0x378] sm:$0xff] }
 0x522   : > { %5423 = vmatpush.msrb.mxu1 %v4921_v28  ;;  %5722 = vmatpush.msrb.mxu2 %v4672_v35  ;;  %v4986_v28 = vld [vmem:[#allocation10 + $0xab0] sm:$0xff]  ;;  %v4987_v35 = vld [vmem:[#allocation10 + $0xab8] sm:$0xff] }
 0x523   : > { %5768 = vmatpush.msrb.mxu0 %v4673_v56  ;;  %5378 = vmatpush.msrb.mxu3 %v4904_v26  ;;  %v4738_v56 = vld [vmem:[#allocation10 + $0x2f0] sm:$0xff]  ;;  %v4739_v26 = vld [vmem:[#allocation10 + $0x2f8] sm:$0xff] }
 0x524   : > { %5424 = vmatpush.msrb.mxu1 %v4905_v9  ;;  %5723 = vmatpush.msrb.mxu2 %v4656_v58  ;;  %v4970_v9 = vld [vmem:[#allocation10 + $0xa30] sm:$0xff]  ;;  %v4971_v58 = vld [vmem:[#allocation10 + $0xa38] sm:$0xff] }
 0x525   : > { %5769 = vmatpush.msrb.mxu0 %v4657_v53  ;;  %5455 = vmatpush.msra.mxu3 %v5146_v52  ;;  %v4722_v53 = vld [vmem:[#allocation10 + $0x270] sm:$0xff]  ;;  %v4723_v52 = vld [vmem:[#allocation10 + $0x278] sm:$0xff] }
 0x526   : > { %5501 = vmatpush.msra.mxu1 %v5147_v36  ;;  %5724 = vmatmul.f32.vlgmr.msrb.gmra.mxu2 %v7595_v47  ;;  %v4954_v36 = vld [vmem:[#allocation10 + $0x9b0] sm:$0xff] }
 0x527   : > { %5770 = vmatmul.f32.vlgmr.msrb.gmra.mxu0 %v7595_v47  ;;  %5800 = vmatpush.msra.mxu2 %v4898_v19  ;;  %v4955_v19 = vld [vmem:[#allocation10 + $0x9b8] sm:$0xff] }
 0x528   : > { %5846 = vmatpush.msra.mxu0 %v4899_v62  ;;  %5379 = vmatmul.f32.vlgmr.msrb.gmra.mxu3 %v7626_v7  ;;  %v4706_v62 = vld [vmem:[#allocation10 + $0x1f0] sm:$0xff] }
 0x529   : > { %5425 = vmatmul.f32.vlgmr.msrb.gmra.mxu1 %v7626_v7  ;;  %5456 = vmatpush.msra.mxu3 %v5130_v33  ;;  %v4707_v33 = vld [vmem:[#allocation10 + $0x1f8] sm:$0xff] }
 0x52a   : > { %5502 = vmatpush.msra.mxu1 %v5131_v4  ;;  %5801 = vmatpush.msra.mxu2 %v4882_v63  ;;  %v4938_v4 = vld [vmem:[#allocation10 + $0x930] sm:$0xff]  ;;  %v4939_v63 = vld [vmem:[#allocation10 + $0x938] sm:$0xff] }
 0x52b   : > { %5847 = vmatpush.msra.mxu0 %v4883_v50  ;;  %5457 = vmatpush.msra.mxu3 %v5114_v43  ;;  %v4690_v50 = vld [vmem:[#allocation10 + $0x170] sm:$0xff]  ;;  %v4691_v43 = vld [vmem:[#allocation10 + $0x178] sm:$0xff] }
 0x52c   : > { %5503 = vmatpush.msra.mxu1 %v5115_v54  ;;  %5802 = vmatpush.msra.mxu2 %v4866_v46  ;;  %v4922_v54 = vld [vmem:[#allocation10 + $0x8b0] sm:$0xff]  ;;  %v4923_v46 = vld [vmem:[#allocation10 + $0x8b8] sm:$0xff] }
 0x52d   : > { %5848 = vmatpush.msra.mxu0 %v4867_v21  ;;  %5458 = vmatpush.msra.mxu3 %v5098_v20  ;;  %v4674_v21 = vld [vmem:[#allocation10 + $0xf0] sm:$0xff]  ;;  %v4675_v20 = vld [vmem:[#allocation10 + $0xf8] sm:$0xff] }
 0x52e   : > { %5504 = vmatpush.msra.mxu1 %v5099_v11  ;;  %5803 = vmatpush.msra.mxu2 %v4850_v13  ;;  %v4906_v11 = vld [vmem:[#allocation10 + $0x830] sm:$0xff]  ;;  %v4907_v13 = vld [vmem:[#allocation10 + $0x838] sm:$0xff] }
 0x52f   : > { %5849 = vmatpush.msra.mxu0 %v4851_v15  ;;  %5459 = vmatpush.msra.mxu3 %v5082_v23  ;;  %v4658_v15 = vld [vmem:[#allocation10 + $0x70] sm:$0xff]  ;;  %v4659_v23 = vld [vmem:[#allocation10 + $0x78] sm:$0xff] }
 0x530   : > { %5505 = vmatpush.msra.mxu1 %v5083_v8  ;;  %5727 = vmatmul.f32.gmra.mxu2 %v7602_v12  ;;  %v5148_v8 = vld [vmem:[#allocation10 + $0xfc0] sm:$0xff] }
 0x531   : > { %5773 = vmatmul.f32.gmra.mxu0 %v7602_v12  ;;  %5804 = vmatpush.msra.mxu2 %v4834_v0  ;;  %v5149_v0 = vld [vmem:[#allocation10 + $0xfc8] sm:$0xff] }
 0x532   : > { %5850 = vmatpush.msra.mxu0 %v4835_v16  ;;  %5382 = vmatmul.f32.gmra.mxu3 %v7630_v38  ;;  %v5132_v16 = vld [vmem:[#allocation10 + $0xf40] sm:$0xff] }
 0x533   : > { %5428 = vmatmul.f32.gmra.mxu1 %v7630_v38  ;;  %5460 = vmatpush.msra.mxu3 %v5066_v24  ;;  %v5133_v24 = vld [vmem:[#allocation10 + $0xf48] sm:$0xff] }
 0x534   : > { %5506 = vmatpush.msra.mxu1 %v5067_v18  ;;  %5805 = vmatpush.msra.mxu2 %v4818_v6  ;;  %v5116_v18 = vld [vmem:[#allocation10 + $0xec0] sm:$0xff]  ;;  %v5117_v6 = vld [vmem:[#allocation10 + $0xec8] sm:$0xff] }
 0x535   : > { %5851 = vmatpush.msra.mxu0 %v4819_v49  ;;  %5461 = vmatpush.msra.mxu3 %v5050_v31  ;;  %v5100_v49 = vld [vmem:[#allocation10 + $0xe40] sm:$0xff]  ;;  %v5101_v31 = vld [vmem:[#allocation10 + $0xe48] sm:$0xff] }
 0x536   : > { %5507 = vmatpush.msra.mxu1 %v5051_v48  ;;  %5806 = vmatpush.msra.mxu2 %v4802_v25  ;;  %v5084_v48 = vld [vmem:[#allocation10 + $0xdc0] sm:$0xff]  ;;  %v5085_v25 = vld [vmem:[#allocation10 + $0xdc8] sm:$0xff] }
 0x537   : > { %5852 = vmatpush.msra.mxu0 %v4803_v39  ;;  %5462 = vmatpush.msra.mxu3 %v5034_v42  ;;  %v5068_v39 = vld [vmem:[#allocation10 + $0xd40] sm:$0xff]  ;;  %v5069_v42 = vld [vmem:[#allocation10 + $0xd48] sm:$0xff] }
 0x538   : > { %5508 = vmatpush.msra.mxu1 %v5035_v5  ;;  %5807 = vmatpush.msra.mxu2 %v4786_v51  ;;  %v5053_v5 = vld [vmem:[#allocation10 + $0xcc8] sm:$0xff]  ;;  %v5036_v51 = vld [vmem:[#allocation10 + $0xc40] sm:$0xff] }
 0x539   : > { %5853 = vmatpush.msra.mxu0 %v4787_v44  ;;  %5463 = vmatpush.msra.mxu3 %v5018_v22  ;;  %v5037_v44 = vld [vmem:[#allocation10 + $0xc48] sm:$0xff]  ;;  %v5020_v22 = vld [vmem:[#allocation10 + $0xbc0] sm:$0xff] }
 0x53a   : > { %5509 = vmatpush.msra.mxu1 %v5019_v2  ;;  %5808 = vmatpush.msra.mxu2 %v4770_v61  ;;  %v5021_v2 = vld [vmem:[#allocation10 + $0xbc8] sm:$0xff]  ;;  %v5004_v61 = vld [vmem:[#allocation10 + $0xb40] sm:$0xff] }
 0x53b   : > { %5854 = vmatpush.msra.mxu0 %v4771_v30  ;;  %5464 = vmatpush.msra.mxu3 %v5002_v29  ;;  %v5005_v30 = vld [vmem:[#allocation10 + $0xb48] sm:$0xff]  ;;  %v4988_v29 = vld [vmem:[#allocation10 + $0xac0] sm:$0xff] }
 0x53c   : > { %5510 = vmatpush.msra.mxu1 %v5003_v45  ;;  %5809 = vmatpush.msra.mxu2 %v4754_v60  ;;  %v4989_v45 = vld [vmem:[#allocation10 + $0xac8] sm:$0xff] }
 0x53d   : > { %5855 = vmatpush.msra.mxu0 %v4755_v34  ;;  %5465 = vmatpush.msra.mxu3 %v4986_v28  ;;  %v4973_v60 = vld [vmem:[#allocation10 + $0xa48] sm:$0xff]  ;;  %v4956_v34 = vld [vmem:[#allocation10 + $0x9c0] sm:$0xff] }
 0x53e   : > { %5511 = vmatpush.msra.mxu1 %v4987_v35  ;;  %5810 = vmatpush.msra.mxu2 %v4738_v56  ;;  %v4957_v28 = vld [vmem:[#allocation10 + $0x9c8] sm:$0xff]  ;;  %v4940_v35 = vld [vmem:[#allocation10 + $0x940] sm:$0xff] }
 0x53f   : > { %5856 = vmatpush.msra.mxu0 %v4739_v26  ;;  %5466 = vmatpush.msra.mxu3 %v4970_v9  ;;  %v4941_v56 = vld [vmem:[#allocation10 + $0x948] sm:$0xff]  ;;  %v4924_v26 = vld [vmem:[#allocation10 + $0x8c0] sm:$0xff] }
 0x540   : > { %5512 = vmatpush.msra.mxu1 %v4971_v58  ;;  %5811 = vmatpush.msra.mxu2 %v4722_v53  ;;  %v4925_v9 = vld [vmem:[#allocation10 + $0x8c8] sm:$0xff]  ;;  %v4908_v58 = vld [vmem:[#allocation10 + $0x840] sm:$0xff] }
 0x541   : > { %5857 = vmatpush.msra.mxu0 %v4723_v52  ;;  %5467 = vmatpush.msra.mxu3 %v4954_v36  ;;  %v4909_v53 = vld [vmem:[#allocation10 + $0x848] sm:$0xff]  ;;  %v5150_v52 = vld [vmem:[#allocation10 + $0xfd0] sm:$0xff]  ;;  %v5151_v36 = vld [vmem:[#allocation10 + $0xfd8] sm:$0xff] }
 0x542   : > { %5513 = vmatpush.msra.mxu1 %v4955_v19  ;;  %5812 = vmatpush.msra.mxu2 %v4706_v62  ;;  %v5134_v19 = vld [vmem:[#allocation10 + $0xf50] sm:$0xff]  ;;  %v5135_v62 = vld [vmem:[#allocation10 + $0xf58] sm:$0xff] }
 0x543   : > { %5858 = vmatpush.msra.mxu0 %v4707_v33  ;;  %5468 = vmatpush.msra.mxu3 %v4938_v4  ;;  %v5118_v33 = vld [vmem:[#allocation10 + $0xed0] sm:$0xff]  ;;  %v5119_v4 = vld [vmem:[#allocation10 + $0xed8] sm:$0xff] }
 0x544   : > { %5514 = vmatpush.msra.mxu1 %v4939_v63  ;;  %5813 = vmatpush.msra.mxu2 %v4690_v50  ;;  %v5102_v63 = vld [vmem:[#allocation10 + $0xe50] sm:$0xff]  ;;  %v5103_v50 = vld [vmem:[#allocation10 + $0xe58] sm:$0xff] }
 0x545   : > { %5859 = vmatpush.msra.mxu0 %v4691_v43  ;;  %5469 = vmatpush.msra.mxu3 %v4922_v54  ;;  %v5086_v43 = vld [vmem:[#allocation10 + $0xdd0] sm:$0xff]  ;;  %v5087_v54 = vld [vmem:[#allocation10 + $0xdd8] sm:$0xff] }
 0x546   : > { %5515 = vmatpush.msra.mxu1 %v4923_v46  ;;  %5814 = vmatpush.msra.mxu2 %v4674_v21  ;;  %v5070_v46 = vld [vmem:[#allocation10 + $0xd50] sm:$0xff]  ;;  %v5071_v21 = vld [vmem:[#allocation10 + $0xd58] sm:$0xff] }
 0x547   : > { %5860 = vmatpush.msra.mxu0 %v4675_v20  ;;  %5470 = vmatpush.msra.mxu3 %v4906_v11  ;;  %v5054_v20 = vld [vmem:[#allocation10 + $0xcd0] sm:$0xff]  ;;  %v5055_v11 = vld [vmem:[#allocation10 + $0xcd8] sm:$0xff] }
 0x548   : > { %5516 = vmatpush.msra.mxu1 %v4907_v13  ;;  %5815 = vmatpush.msra.mxu2 %v4658_v15  ;;  %v5038_v13 = vld [vmem:[#allocation10 + $0xc50] sm:$0xff]  ;;  %v5039_v15 = vld [vmem:[#allocation10 + $0xc58] sm:$0xff] }
 0x549   : > { %5861 = vmatpush.msra.mxu0 %v4659_v23  ;;  %5471 = vmatmul.f32.vlgmr.msra.gmra.mxu3 %v7626_v7  ;;  %v5219_v23 = vpop.f32.mrf.mxu0 }
 0x54a   : > { %5517 = vmatmul.f32.vlgmr.msra.gmra.mxu1 %v7626_v7  ;;  %5547 = vmatpush.msrb.mxu3 %v5148_v8  ;;  %v5022_v8 = vld [vmem:[#allocation10 + $0xbd0] sm:$0xff] }
 0x54b   : > { %5593 = vmatpush.msrb.mxu1 %v5149_v0  ;;  %5816 = vmatmul.f32.vlgmr.msra.gmra.mxu2 %v7595_v47  ;;  %v5023_v0 = vld [vmem:[#allocation10 + $0xbd8] sm:$0xff] }
 0x54c   : > { %5862 = vmatmul.f32.vlgmr.msra.gmra.mxu0 %v7595_v47  ;;  %5548 = vmatpush.msrb.mxu3 %v5132_v16  ;;  %v5052_v47 = vld [vmem:[#allocation10 + $0xcc0] sm:$0xff]  ;;  %v5006_v16 = vld [vmem:[#allocation10 + $0xb50] sm:$0xff] }
 0x54d   : > { %5594 = vmatpush.msrb.mxu1 %v5133_v24  ;;  %v5007_v24 = vld [vmem:[#allocation10 + $0xb58] sm:$0xff] }
 0x54e   : > { %5549 = vmatpush.msrb.mxu3 %v5116_v18  ;;  %v4990_v18 = vld [vmem:[#allocation10 + $0xad0] sm:$0xff] }
 0x54f   : > { %5595 = vmatpush.msrb.mxu1 %v5117_v6  ;;  %v4991_v6 = vld [vmem:[#allocation10 + $0xad8] sm:$0xff] }
 0x550   : > { %5550 = vmatpush.msrb.mxu3 %v5100_v49  ;;  %v5173_v49 = vpop.f32.mrf.mxu2 }
 0x551   : > { %5596 = vmatpush.msrb.mxu1 %v5101_v31  ;;  %5474 = vmatmul.f32.gmra.mxu3 %v7630_v38  ;;  %v4974_v31 = vld [vmem:[#allocation10 + $0xa50] sm:$0xff] }
 0x552   : > { %5520 = vmatmul.f32.gmra.mxu1 %v7630_v38  ;;  %5551 = vmatpush.msrb.mxu3 %v5084_v48  ;;  %v4975_v48 = vld [vmem:[#allocation10 + $0xa58] sm:$0xff] }
 0x553   : > { %5597 = vmatpush.msrb.mxu1 %v5085_v25  ;;  %5819 = vmatmul.f32.gmra.mxu2 %v7602_v12  ;;  %v8099_v25 = vld [vmem:[#allocation18_spill] sm:$0xff] }
 0x554   : > { %5865 = vmatmul.f32.gmra.mxu0 %v7602_v12  ;;  %5552 = vmatpush.msrb.mxu3 %v5068_v39  ;;  %v4972_v12 = vld [vmem:[#allocation10 + $0xa40] sm:$0xff]  ;;  %v5220_v39 = vadd.f32 %v5219_v23, %v8099_v25 }
 0x555   : > { %5598 = vmatpush.msrb.mxu1 %v5069_v42  ;;  %v4958_v42 = vld [vmem:[#allocation10 + $0x9d0] sm:$0xff]  ;;  %v5040_v25 = vld [vmem:[#allocation10 + $0xc60] sm:$0xff] }
 0x556   : > { %5553 = vmatpush.msrb.mxu3 %v5052_v47  ;;  %v4959_v47 = vld [vmem:[#allocation10 + $0x9d8] sm:$0xff] }
 0x557   : > { %5599 = vmatpush.msrb.mxu1 %v5053_v5 }
 0x558   : > { %5554 = vmatpush.msrb.mxu3 %v5036_v51 }
 0x559   : > { %5600 = vmatpush.msrb.mxu1 %v5037_v44  ;;  %v5222_v44 = vpop.f32.mrf.mxu0 }
 0x55a   : > { %5555 = vmatpush.msrb.mxu3 %v5020_v22  ;;  %v4942_v22 = vld [vmem:[#allocation10 + $0x950] sm:$0xff] }
 0x55b   : > { %5601 = vmatpush.msrb.mxu1 %v5021_v2  ;;  %v4943_v2 = vld [vmem:[#allocation10 + $0x958] sm:$0xff] }
 0x55c   : > { %5556 = vmatpush.msrb.mxu3 %v5004_v61  ;;  %v4926_v61 = vld [vmem:[#allocation10 + $0x8d0] sm:$0xff] }
 0x55d   : > { %5602 = vmatpush.msrb.mxu1 %v5005_v30  ;;  %v4927_v30 = vld [vmem:[#allocation10 + $0x8d8] sm:$0xff] }
 0x55e   : > { %5557 = vmatpush.msrb.mxu3 %v4988_v29  ;;  %v8100_v29 = vld [vmem:[#allocation17_spill] sm:$0xff] }
 0x55f   : > { %5603 = vmatpush.msrb.mxu1 %v4989_v45  ;;  %v5174_v45 = vadd.f32 %v5173_v49, %v8100_v29  ;;  %v8104_v49 = vld [vmem:[#allocation21_spill] sm:$0xff] }
 0x560   : > { %5558 = vmatpush.msrb.mxu3 %v4972_v12  ;;  %v4910_v12 = vld [vmem:[#allocation10 + $0x850] sm:$0xff] }
 0x561   : > { %5604 = vmatpush.msrb.mxu1 %v4973_v60  ;;  %v4911_v60 = vld [vmem:[#allocation10 + $0x858] sm:$0xff] }
 0x562   : > { %5559 = vmatpush.msrb.mxu3 %v4956_v34 }
 0x563   : > { %5605 = vmatpush.msrb.mxu1 %v4957_v28  ;;  %v8101_v28 = vld [vmem:[#allocation19_spill] sm:$0xff] }
 0x564   : > { %5560 = vmatpush.msrb.mxu3 %v4940_v35  ;;  %v5223_v35 = vadd.f32 %v5222_v44, %v8101_v28  ;;  %v8105_v44 = vld [vmem:[#allocation26_spill] sm:$0xff] }
 0x565   : > { %5606 = vmatpush.msrb.mxu1 %v4941_v56  ;;  %v4977_v28 = vld [vmem:[#allocation10 + $0xa68] sm:$0xff] }
 0x566   : > { %5561 = vmatpush.msrb.mxu3 %v4924_v26  ;;  %v5176_v26 = vpop.f32.mrf.mxu2 }
 0x567   : > { %5607 = vmatpush.msrb.mxu1 %v4925_v9  ;;  %v5152_v9 = vld [vmem:[#allocation10 + $0xfe0] sm:$0xff] }
 0x568   : > { %5562 = vmatpush.msrb.mxu3 %v4908_v58  ;;  %v5153_v58 = vld [vmem:[#allocation10 + $0xfe8] sm:$0xff] }
 0x569   : > { %5608 = vmatpush.msrb.mxu1 %v4909_v53  ;;  %5563 = vmatmul.f32.vlgmr.msrb.gmra.mxu3 %v7626_v7 }
 0x56a   : > { %5609 = vmatmul.f32.vlgmr.msrb.gmra.mxu1 %v7626_v7  ;;  %5639 = vmatpush.msra.mxu3 %v5150_v52 }
 0x56b   : > { %5685 = vmatpush.msra.mxu1 %v5151_v36  ;;  %v5136_v36 = vld [vmem:[#allocation10 + $0xf60] sm:$0xff] }
 0x56c   : > { %5640 = vmatpush.msra.mxu3 %v5134_v19  ;;  %v5137_v19 = vld [vmem:[#allocation10 + $0xf68] sm:$0xff] }
 0x56d   : > { %5686 = vmatpush.msra.mxu1 %v5135_v62  ;;  %v5311_v62 = vpop.f32.mrf.mxu0 }
 0x56e   : > { %5641 = vmatpush.msra.mxu3 %v5118_v33  ;;  %v5120_v33 = vld [vmem:[#allocation10 + $0xee0] sm:$0xff] }
 0x56f   : > { %5687 = vmatpush.msra.mxu1 %v5119_v4  ;;  %v5121_v4 = vld [vmem:[#allocation10 + $0xee8] sm:$0xff] }
 0x570   : > { %5642 = vmatpush.msra.mxu3 %v5102_v63  ;;  %v8102_v63 = vld [vmem:[#allocation20_spill] sm:$0xff] }
 0x571   : > { %5688 = vmatpush.msra.mxu1 %v5103_v50  ;;  %5566 = vmatmul.f32.gmra.mxu3 %v7630_v38  ;;  %v5177_v50 = vadd.f32 %v5176_v26, %v8102_v63  ;;  %v4960_v26 = vld [vmem:[#allocation10 + $0x9e0] sm:$0xff] }
 0x572   : > { %5612 = vmatmul.f32.gmra.mxu1 %v7630_v38  ;;  %5643 = vmatpush.msra.mxu3 %v5086_v43  ;;  %v5104_v43 = vld [vmem:[#allocation10 + $0xe60] sm:$0xff] }
 0x573   : > { %5689 = vmatpush.msra.mxu1 %v5087_v54  ;;  %v5105_v54 = vld [vmem:[#allocation10 + $0xe68] sm:$0xff] }
 0x574   : > { %5644 = vmatpush.msra.mxu3 %v5070_v46 }
 0x575   : > { %5690 = vmatpush.msra.mxu1 %v5071_v21 }
 0x576   : > { %5645 = vmatpush.msra.mxu3 %v5054_v20  ;;  %v8103_v20 = vld [vmem:[#allocation22_spill] sm:$0xff] }
 0x577   : > { %5691 = vmatpush.msra.mxu1 %v5055_v11  ;;  %v5312_v11 = vadd.f32 %v5311_v62, %v8103_v20  ;;  %v4928_v62 = vld [vmem:[#allocation10 + $0x8e0] sm:$0xff]  ;;  %v5154_v20 = vld [vmem:[#allocation10 + $0xff0] sm:$0xff] }
 0x578   : > { %5646 = vmatpush.msra.mxu3 %v5038_v13  ;;  %v5088_v13 = vld [vmem:[#allocation10 + $0xde0] sm:$0xff] }
 0x579   : > { %5692 = vmatpush.msra.mxu1 %v5039_v15  ;;  %v5089_v15 = vld [vmem:[#allocation10 + $0xde8] sm:$0xff] }
 0x57a   : > { %5647 = vmatpush.msra.mxu3 %v5022_v8  ;;  %v5265_v8 = vpop.f32.mrf.mxu2 }
 0x57b   : > { %5693 = vmatpush.msra.mxu1 %v5023_v0  ;;  %v5072_v0 = vld [vmem:[#allocation10 + $0xd60] sm:$0xff] }
 0x57c   : > { %5648 = vmatpush.msra.mxu3 %v5006_v16  ;;  %v5073_v16 = vld [vmem:[#allocation10 + $0xd68] sm:$0xff] }
 0x57d   : > { %5694 = vmatpush.msra.mxu1 %v5007_v24 }
 0x57e   : > { %5649 = vmatpush.msra.mxu3 %v4990_v18  ;;  %v5056_v18 = vld [vmem:[#allocation10 + $0xce0] sm:$0xff] }
 0x57f   : > { %5695 = vmatpush.msra.mxu1 %v4991_v6  ;;  %v5057_v6 = vld [vmem:[#allocation10 + $0xce8] sm:$0xff] }
 0x580   : > { %v5242_v5 = vpop.f32.mrf.mxu1  ;;  %5650 = vmatpush.msra.mxu3 %v4974_v31  ;;  %v5266_v31 = vadd.f32 %v5265_v8, %v8104_v49  ;;  %v5106_v49 = vld [vmem:[#allocation10 + $0xe70] sm:$0xff] }
 0x581   : > { %5696 = vmatpush.msra.mxu1 %v4975_v48  ;;  %v5243_v51 = vadd.f32 %v5242_v5, %v5220_v39  ;;  %v5314_v48 = vpop.f32.mrf.mxu0  ;;  %v5041_v39 = vld [vmem:[#allocation10 + $0xc68] sm:$0xff] }
 0x582   : > { %5651 = vmatpush.msra.mxu3 %v4958_v42  ;;  %v5025_v5 = vld [vmem:[#allocation10 + $0xbe8] sm:$0xff] }
 0x583   : > { %5697 = vmatpush.msra.mxu1 %v4959_v47  ;;  %5893 = vst [vmem:[%s7662_s24 + $0x8] sm:$0xff] %v5243_v51  ;;  %v5024_v47 = vld [vmem:[#allocation10 + $0xbe0] sm:$0xff] }
 0x584   : > { %5652 = vmatpush.msra.mxu3 %v4942_v22  ;;  %v5315_v22 = vadd.f32 %v5314_v48, %v8105_v44  ;;  %v8109_v48 = vld [vmem:[#allocation28_spill] sm:$0xff]  ;;  %v5074_v44 = vld [vmem:[#allocation10 + $0xd70] sm:$0xff] }
 0x585   : > { %5698 = vmatpush.msra.mxu1 %v4943_v2  ;;  %v5196_v34 = vpop.f32.mrf.mxu3  ;;  %v5008_v2 = vld [vmem:[#allocation10 + $0xb60] sm:$0xff] }
 0x586   : > { %5653 = vmatpush.msra.mxu3 %v4926_v61  ;;  %v5197_v56 = vadd.f32 %v5196_v34, %v5174_v45  ;;  %v5009_v61 = vld [vmem:[#allocation10 + $0xb68] sm:$0xff]  ;;  %v5268_v45 = vpop.f32.mrf.mxu2  ;;  %v4976_v34 = vld [vmem:[#allocation10 + $0xa60] sm:$0xff] }
 0x587   : > { %5699 = vmatpush.msra.mxu1 %v4927_v30 }
 0x588   : > { %v5245_v53 = vpop.f32.mrf.mxu1  ;;  %5654 = vmatpush.msra.mxu3 %v4910_v12  ;;  %5892 = vst [vmem:[%s7662_s24] sm:$0xff] %v5197_v56  ;;  %v4992_v12 = vld [vmem:[#allocation10 + $0xae0] sm:$0xff] }
 0x589   : > { %5700 = vmatpush.msra.mxu1 %v4911_v60  ;;  %v5246_v52 = vadd.f32 %v5245_v53, %v5223_v35  ;;  %5655 = vmatmul.f32.vlgmr.msra.gmra.mxu3 %v7626_v7  ;;  %v4993_v60 = vld [vmem:[#allocation10 + $0xae8] sm:$0xff]  ;;  %v8106_v35 = vld [vmem:[#allocation25_spill] sm:$0xff] }
 0x58a   : > { %5701 = vmatmul.f32.vlgmr.msra.gmra.mxu1 %v7626_v7  ;;  %5731 = vmatpush.msrb.mxu3 %v5152_v9  ;;  %v5269_v56 = vadd.f32 %v5268_v45, %v8106_v35  ;;  %v4961_v9 = vld [vmem:[#allocation10 + $0x9e8] sm:$0xff]  ;;  %v5042_v45 = vld [vmem:[#allocation10 + $0xc70] sm:$0xff]  ;;  %v5027_v35 = vld [vmem:[#allocation10 + $0xbf8] sm:$0xff] }
 0x58b   : > { %5777 = vmatpush.msrb.mxu1 %v5153_v58  ;;  %5909 = vst [vmem:[%s7662_s24 + $0x88] sm:$0xff] %v5246_v52  ;;  %v5403_v52 = vpop.f32.mrf.mxu0 }
 0x58c   : > { %5732 = vmatpush.msrb.mxu3 %v5136_v36  ;;  %v4944_v36 = vld [vmem:[#allocation10 + $0x960] sm:$0xff] }
 0x58d   : > { %5778 = vmatpush.msrb.mxu1 %v5137_v19  ;;  %v5199_v46 = vpop.f32.mrf.mxu3  ;;  %v4945_v19 = vld [vmem:[#allocation10 + $0x968] sm:$0xff] }
 0x58e   : > { %5733 = vmatpush.msrb.mxu3 %v5120_v33  ;;  %v5200_v21 = vadd.f32 %v5199_v46, %v5177_v50  ;;  %v4929_v33 = vld [vmem:[#allocation10 + $0x8e8] sm:$0xff]  ;;  %v4912_v50 = vld [vmem:[#allocation10 + $0x860] sm:$0xff] }
 0x58f   : > { %5779 = vmatpush.msrb.mxu1 %v5121_v4  ;;  %v8107_v4 = vld [vmem:[#allocation24_spill] sm:$0xff] }
 0x590   : > { %5734 = vmatpush.msrb.mxu3 %v5104_v43  ;;  %5908 = vst [vmem:[%s7662_s24 + $0x80] sm:$0xff] %v5200_v21  ;;  %v5404_v63 = vadd.f32 %v5403_v52, %v8107_v4  ;;  %v4913_v43 = vld [vmem:[#allocation10 + $0x868] sm:$0xff]  ;;  %v5357_v21 = vpop.f32.mrf.mxu2  ;;  %v4979_v52 = vld [vmem:[#allocation10 + $0xa78] sm:$0xff] }
 0x591   : > { %5780 = vmatpush.msrb.mxu1 %v5105_v54  ;;  %v5334_v23 = vpop.f32.mrf.mxu1  ;;  %5658 = vmatmul.f32.gmra.mxu3 %v7630_v38  ;;  %v4947_v4 = vld [vmem:[#allocation10 + $0x978] sm:$0xff] }
 0x592   : > { %5704 = vmatmul.f32.gmra.mxu1 %v7630_v38  ;;  %v5335_v24 = vadd.f32 %v5334_v23, %v5312_v11  ;;  %5735 = vmatpush.msrb.mxu3 %v5088_v13  ;;  %v5155_v11 = vld [vmem:[#allocation10 + $0xff8] sm:$0xff]  ;;  %v5138_v13 = vld [vmem:[#allocation10 + $0xf70] sm:$0xff] }
 0x593   : > { %5781 = vmatpush.msrb.mxu1 %v5089_v15  ;;  %v5139_v15 = vld [vmem:[#allocation10 + $0xf78] sm:$0xff]  ;;  %v8108_v23 = vld [vmem:[#allocation23_spill] sm:$0xff] }
 0x594   : > { %5895 = vst [vmem:[%s7662_s24 + $0x18] sm:$0xff] %v5335_v24  ;;  %5736 = vmatpush.msrb.mxu3 %v5072_v0  ;;  %v5358_v8 = vadd.f32 %v5357_v21, %v8108_v23  ;;  %v5406_v0 = vpop.f32.mrf.mxu0  ;;  %v5123_v24 = vld [vmem:[#allocation10 + $0xef8] sm:$0xff]  ;;  %v8112_v23 = vld [vmem:[#allocation29_spill] sm:$0xff] }
 0x595   : > { %5782 = vmatpush.msrb.mxu1 %v5073_v16  ;;  %v5122_v16 = vld [vmem:[#allocation10 + $0xef0] sm:$0xff]  ;;  %v4915_v21 = vld [vmem:[#allocation10 + $0x878] sm:$0xff] }
 0x596   : > { %5737 = vmatpush.msrb.mxu3 %v5056_v18  ;;  %v5288_v42 = vpop.f32.mrf.mxu3 }
 0x597   : > { %5783 = vmatpush.msrb.mxu1 %v5057_v6  ;;  %v5289_v51 = vadd.f32 %v5288_v42, %v5266_v31  ;;  %v5107_v31 = vld [vmem:[#allocation10 + $0xe78] sm:$0xff] }
 0x598   : > { %5738 = vmatpush.msrb.mxu3 %v5040_v25  ;;  %v5407_v25 = vadd.f32 %v5406_v0, %v8109_v48  ;;  %v5091_v42 = vld [vmem:[#allocation10 + $0xdf8] sm:$0xff] }
 0x599   : > { %5784 = vmatpush.msrb.mxu1 %v5041_v39  ;;  %5894 = vst [vmem:[%s7662_s24 + $0x10] sm:$0xff] %v5289_v51  ;;  %v5090_v39 = vld [vmem:[#allocation10 + $0xdf0] sm:$0xff]  ;;  %v5360_v51 = vpop.f32.mrf.mxu2 }
 0x59a   : > { %v5337_v30 = vpop.f32.mrf.mxu1  ;;  %5739 = vmatpush.msrb.mxu3 %v5024_v47 }
 0x59b   : > { %5785 = vmatpush.msrb.mxu1 %v5025_v5  ;;  %v5338_v29 = vadd.f32 %v5337_v30, %v5315_v22  ;;  %v5075_v22 = vld [vmem:[#allocation10 + $0xd78] sm:$0xff]  ;;  %v8110_v30 = vld [vmem:[#allocation27_spill] sm:$0xff] }
 0x59c   : > { %5740 = vmatpush.msrb.mxu3 %v5008_v2  ;;  %v5058_v2 = vld [vmem:[#allocation10 + $0xcf0] sm:$0xff] }
 0x59d   : > { %5786 = vmatpush.msrb.mxu1 %v5009_v61  ;;  %5911 = vst [vmem:[%s7662_s24 + $0x98] sm:$0xff] %v5338_v29  ;;  %v5059_v61 = vld [vmem:[#allocation10 + $0xcf8] sm:$0xff]  ;;  %v5361_v29 = vadd.f32 %v5360_v51, %v8110_v30 }
 0x59e   : > { %5741 = vmatpush.msrb.mxu3 %v4992_v12  ;;  %v5043_v12 = vld [vmem:[#allocation10 + $0xc78] sm:$0xff] }
 0x59f   : > { %5787 = vmatpush.msrb.mxu1 %v4993_v60  ;;  %v5291_v58 = vpop.f32.mrf.mxu3 }
 0x5a0   : > { %5742 = vmatpush.msrb.mxu3 %v4976_v34  ;;  %v5292_v53 = vadd.f32 %v5291_v58, %v5269_v56  ;;  %v5010_v56 = vld [vmem:[#allocation10 + $0xb70] sm:$0xff]  ;;  %v4995_v58 = vld [vmem:[#allocation10 + $0xaf8] sm:$0xff] }
 0x5a1   : > { %5788 = vmatpush.msrb.mxu1 %v4977_v28  ;;  %v5026_v28 = vld [vmem:[#allocation10 + $0xbf0] sm:$0xff] }
 0x5a2   : > { %5743 = vmatpush.msrb.mxu3 %v4960_v26  ;;  %5910 = vst [vmem:[%s7662_s24 + $0x90] sm:$0xff] %v5292_v53  ;;  %v5011_v26 = vld [vmem:[#allocation10 + $0xb78] sm:$0xff]  ;;  %v4978_v53 = vld [vmem:[#allocation10 + $0xa70] sm:$0xff] }
 0x5a3   : > { %5789 = vmatpush.msrb.mxu1 %v4961_v9  ;;  %v4994_v9 = vld [vmem:[#allocation10 + $0xaf0] sm:$0xff] }
 0x5a4   : > { %5744 = vmatpush.msrb.mxu3 %v4944_v36  ;;  %v4962_v36 = vld [vmem:[#allocation10 + $0x9f0] sm:$0xff] }
 0x5a5   : > { %5790 = vmatpush.msrb.mxu1 %v4945_v19  ;;  %v4963_v19 = vld [vmem:[#allocation10 + $0x9f8] sm:$0xff] }
 0x5a6   : > { %v5426_v54 = vpop.f32.mrf.mxu1  ;;  %5745 = vmatpush.msrb.mxu3 %v4928_v62  ;;  %v5495_v62 = vpop.f32.mrf.mxu0 }
 0x5a7   : > { %5791 = vmatpush.msrb.mxu1 %v4929_v33  ;;  %v5427_v46 = vadd.f32 %v5426_v54, %v5404_v63  ;;  %v4946_v33 = vld [vmem:[#allocation10 + $0x970] sm:$0xff] }
 0x5a8   : > { %5746 = vmatpush.msrb.mxu3 %v4912_v50  ;;  %v4930_v63 = vld [vmem:[#allocation10 + $0x8f0] sm:$0xff]  ;;  %v4931_v50 = vld [vmem:[#allocation10 + $0x8f8] sm:$0xff] }
 0x5a9   : > { %5792 = vmatpush.msrb.mxu1 %v4913_v43  ;;  %5897 = vst [vmem:[%s7662_s24 + $0x28] sm:$0xff] %v5427_v46  ;;  %5747 = vmatmul.f32.vlgmr.msrb.gmra.mxu3 %v7626_v7  ;;  %v8111_v43 = vld [vmem:[#allocation30_spill] sm:$0xff]  ;;  %v4914_v46 = vld [vmem:[#allocation10 + $0x870] sm:$0xff] }
 0x5aa   : > { %5793 = vmatmul.f32.vlgmr.msrb.gmra.mxu1 %v7626_v7  ;;  %5823 = vmatpush.msra.mxu3 %v5154_v20  ;;  %v5496_v54 = vadd.f32 %v5495_v62, %v8111_v43  ;;  %v5449_v20 = vpop.f32.mrf.mxu2 }
 0x5ab   : > { %5869 = vmatpush.msra.mxu1 %v5155_v11  ;;  %v5380_v18 = vpop.f32.mrf.mxu3 }
 0x5ac   : > { %5824 = vmatpush.msra.mxu3 %v5138_v13  ;;  %v5381_v6 = vadd.f32 %v5380_v18, %v5358_v8  ;;  %v5450_v8 = vadd.f32 %v5449_v20, %v8112_v23 }
 0x5ad   : > { %5870 = vmatpush.msra.mxu1 %v5139_v15 }
 0x5ae   : > { %5825 = vmatpush.msra.mxu3 %v5122_v16  ;;  %5896 = vst [vmem:[%s7662_s24 + $0x20] sm:$0xff] %v5381_v6  ;;  %v5498_v15 = vpop.f32.mrf.mxu0  ;;  %v8113_v16 = vld [vmem:[#allocation34_spill] sm:$0xff] }
 0x5af   : > { %5871 = vmatpush.msra.mxu1 %v5123_v24  ;;  %v5499_v24 = vadd.f32 %v5498_v15, %v8113_v16 }
 0x5b0   : > { %v5429_v47 = vpop.f32.mrf.mxu1  ;;  %5826 = vmatpush.msra.mxu3 %v5106_v49 }
 0x5b1   : > { %5872 = vmatpush.msra.mxu1 %v5107_v31  ;;  %v5430_v5 = vadd.f32 %v5429_v47, %v5407_v25  ;;  %5750 = vmatmul.f32.gmra.mxu3 %v7630_v38  ;;  %v8115_v47 = vld [vmem:[#allocation32_spill] sm:$0xff] }
 0x5b2   : > { %5796 = vmatmul.f32.gmra.mxu1 %v7630_v38  ;;  %5827 = vmatpush.msra.mxu3 %v5090_v39  ;;  %v5452_v31 = vpop.f32.mrf.mxu2 }
 0x5b3   : > { %5873 = vmatpush.msra.mxu1 %v5091_v42  ;;  %5913 = vst [vmem:[%s7662_s24 + $0xa8] sm:$0xff] %v5430_v5 }
 0x5b4   : > { %5828 = vmatpush.msra.mxu3 %v5074_v44 }
 0x5b5   : > { %5874 = vmatpush.msra.mxu1 %v5075_v22  ;;  %v5383_v60 = vpop.f32.mrf.mxu3 }
 0x5b6   : > { %5829 = vmatpush.msra.mxu3 %v5058_v2  ;;  %v5384_v34 = vadd.f32 %v5383_v60, %v5361_v29  ;;  %v5587_v42 = vpop.f32.mrf.mxu0 }
 0x5b7   : > { %5875 = vmatpush.msra.mxu1 %v5059_v61  ;;  %v5588_v5 = vadd.f32 %v5587_v42, %v8115_v47  ;;  %v8116_v61 = vld [vmem:[#allocation31_spill] sm:$0xff] }
 0x5b8   : > { %5830 = vmatpush.msra.mxu3 %v5042_v45  ;;  %5912 = vst [vmem:[%s7662_s24 + $0xa0] sm:$0xff] %v5384_v34 }
 0x5b9   : > { %5876 = vmatpush.msra.mxu1 %v5043_v12 }
 0x5ba   : > { %5831 = vmatpush.msra.mxu3 %v5026_v28  ;;  %v5541_v51 = vpop.f32.mrf.mxu2 }
 0x5bb   : > { %5877 = vmatpush.msra.mxu1 %v5027_v35  ;;  %v5542_v30 = vadd.f32 %v5541_v51, %v8116_v61  ;;  %v5954_v61 = vld [vmem:[%s7662_s24 + $0x20] sm:$0xff] (%p6603_p4) }
 0x5bc   : > { %5832 = vmatpush.msra.mxu3 %v5010_v56  ;;  %5955 = vst [vmem:[%s7747_s30 + $0x20] sm:$0xff] (%p6603_p4), %v5954_v61 }
 0x5bd   : > { %5878 = vmatpush.msra.mxu1 %v5011_v26 }
 0x5be   : > { %5833 = vmatpush.msra.mxu3 %v4994_v9  ;;  %v5590_v2 = vpop.f32.mrf.mxu0 }
 0x5bf   : > { %5879 = vmatpush.msra.mxu1 %v4995_v58  ;;  %v5591_v29 = vadd.f32 %v5590_v2, %v6845_v17  ;;  %v5952_v2 = vld [vmem:[%s7662_s24 + $0x18] sm:$0xff] (%p6603_p4) }
 0x5c0   : > { %5834 = vmatpush.msra.mxu3 %v4978_v53  ;;  %5953 = vst [vmem:[%s7747_s30 + $0x18] sm:$0xff] (%p6603_p4), %v5952_v2 }
 0x5c1   : > { %5880 = vmatpush.msra.mxu1 %v4979_v52 }
 0x5c2   : > { %5835 = vmatpush.msra.mxu3 %v4962_v36  ;;  %v5544_v34 = vpop.f32.mrf.mxu2 }
 0x5c3   : > { %5881 = vmatpush.msra.mxu1 %v4963_v19  ;;  %v5545_v28 = vadd.f32 %v5544_v34, %v6841_v14 }
 0x5c4   : > { %5836 = vmatpush.msra.mxu3 %v4946_v33 }
 0x5c5   : > { %5882 = vmatpush.msra.mxu1 %v4947_v4 }
 0x5c6   : > { %5837 = vmatpush.msra.mxu3 %v4930_v63  ;;  %v5679_v26 = vpop.f32.mrf.mxu0 }
 0x5c7   : > { %5883 = vmatpush.msra.mxu1 %v4931_v50  ;;  %v5518_v11 = vpop.f32.mrf.mxu1  ;;  %v5680_v9 = vadd.f32 %v5679_v26, %v6853_v41 }
 0x5c8   : > { %v5519_v13 = vadd.f32 %v5518_v11, %v5496_v54  ;;  %5838 = vmatpush.msra.mxu3 %v4914_v46 }
 0x5c9   : > { %5884 = vmatpush.msra.mxu1 %v4915_v21  ;;  %5839 = vmatmul.f32.vlgmr.msra.gmra.mxu3 %v7626_v7 }
 0x5ca   : > { %5885 = vmatmul.f32.vlgmr.msra.gmra.mxu1 %v7626_v7  ;;  %5899 = vst [vmem:[%s7662_s24 + $0x38] sm:$0xff] %v5519_v13  ;;  %v8114_v7 = vld [vmem:[#allocation33_spill] sm:$0xff]  ;;  %v5633_v58 = vpop.f32.mrf.mxu2 }
 0x5cb   : > { %v5453_v48 = vadd.f32 %v5452_v31, %v8114_v7  ;;  %v5634_v36 = vadd.f32 %v5633_v58, %v6850_v37  ;;  %v5980_v58 = vld [vmem:[%s7662_s24 + $0x88] sm:$0xff] (%p6603_p4) }
 0x5cc   : > { %v5472_v0 = vpop.f32.mrf.mxu3  ;;  %5981 = vst [vmem:[%s7747_s30 + $0x108] sm:$0xff] (%p6603_p4), %v5980_v58 }
 0x5cd   : > { %v5473_v18 = vadd.f32 %v5472_v0, %v5450_v8 }
 0x5ce   : > { %v5682_v52 = vpop.f32.mrf.mxu0 }
 0x5cf   : > { %v5521_v6 = vpop.f32.mrf.mxu1  ;;  %5898 = vst [vmem:[%s7662_s24 + $0x30] sm:$0xff] %v5473_v18  ;;  %v5683_v62 = vadd.f32 %v5682_v52, %v8006_v57  ;;  %v5986_v52 = vld [vmem:[%s7662_s24 + $0xa0] sm:$0xff] (%p6603_p4) }
 0x5d0   : > { %v5522_v49 = vadd.f32 %v5521_v6, %v5499_v24  ;;  %5987 = vst [vmem:[%s7747_s30 + $0x120] sm:$0xff] (%p6603_p4), %v5986_v52 }
 0x5d1   : > { %5842 = vmatmul.f32.gmra.mxu3 %v7630_v38 }
 0x5d2   : > { %5888 = vmatmul.f32.gmra.mxu1 %v7630_v38  ;;  %5915 = vst [vmem:[%s7662_s24 + $0xb8] sm:$0xff] %v5522_v49  ;;  %v5636_v63 = vpop.f32.mrf.mxu2 }
 0x5d3   : > { %v5637_v41 = vadd.f32 %v5636_v63, %v6858_v1 }
 0x5d4   : > { %v5475_v25 = vpop.f32.mrf.mxu3 }
 0x5d5   : > { %v5476_v39 = vadd.f32 %v5475_v25, %v5453_v48 }
 0x5d6   : > { %v5771_v54 = vpop.f32.mrf.mxu0 }
 0x5d7   : > { %5914 = vst [vmem:[%s7662_s24 + $0xb0] sm:$0xff] %v5476_v39  ;;  %v5772_v37 = vadd.f32 %v5771_v54, %v8019_v55 }
 0x5da   : > { %v5725_v46 = vpop.f32.mrf.mxu2 }
 0x5db   : > { %v5726_v11 = vadd.f32 %v5725_v46, %v6866_v40 }
 0x5de   : > { %v5774_v20 = vpop.f32.mrf.mxu0 }
 0x5df   : > { %v5775_v15 = vadd.f32 %v5774_v20, %v8028_v59 }
 0x5e2   : > { %v5728_v0 = vpop.f32.mrf.mxu2 }
 0x5e3   : > { %v5729_v55 = vadd.f32 %v5728_v0, %v6874_v10 }
 0x5e6   : > { %v5863_v18 = vpop.f32.mrf.mxu0 }
 0x5e7   : > { %v5610_v44 = vpop.f32.mrf.mxu1  ;;  %v5864_v40 = vadd.f32 %v5863_v18, %v8036_v32 }
 0x5e8   : > { %v5611_v22 = vadd.f32 %v5610_v44, %v5588_v5  ;;  %v8117_v5 = vld [vmem:[#allocation40_spill] sm:$0xff] }
 0x5ea   : > { %5901 = vst [vmem:[%s7662_s24 + $0x48] sm:$0xff] %v5611_v22  ;;  %v5817_v6 = vpop.f32.mrf.mxu2  ;;  %v5950_v22 = vld [vmem:[%s7662_s24 + $0x10] sm:$0xff] (%p6603_p4) }
 0x5eb   : > { %v5818_v7 = vadd.f32 %v5817_v6, %v8035_v27  ;;  %v5946_v27 = vld [vmem:[%s7662_s24] sm:$0xff] (%p6603_p4)  ;;  %5951 = vst [vmem:[%s7747_s30 + $0x10] sm:$0xff] (%p6603_p4), %v5950_v22 }
 0x5ec   : > { %v5564_v38 = vpop.f32.mrf.mxu3  ;;  %5947 = vst [vmem:[%s7747_s30] sm:$0xff] (%p6603_p4), %v5946_v27 }
 0x5ed   : > { %v5565_v45 = vadd.f32 %v5564_v38, %v5542_v30  ;;  %v5956_v30 = vld [vmem:[%s7662_s24 + $0x28] sm:$0xff] (%p6603_p4)  ;;  %v5958_v38 = vld [vmem:[%s7662_s24 + $0x30] sm:$0xff] (%p6603_p4) }
 0x5ee   : > { %v5866_v31 = vpop.f32.mrf.mxu0  ;;  %5957 = vst [vmem:[%s7747_s30 + $0x28] sm:$0xff] (%p6603_p4), %v5956_v30 }
 0x5ef   : > { %v5613_v12 = vpop.f32.mrf.mxu1  ;;  %5900 = vst [vmem:[%s7662_s24 + $0x40] sm:$0xff] %v5565_v45  ;;  %v5867_v25 = vadd.f32 %v5866_v31, %v8041_v3  ;;  %v5948_v3 = vld [vmem:[%s7662_s24 + $0x8] sm:$0xff] (%p6603_p4) }
 0x5f0   : > { %v5614_v60 = vadd.f32 %v5613_v12, %v5591_v29  ;;  %5949 = vst [vmem:[%s7747_s30 + $0x8] sm:$0xff] (%p6603_p4), %v5948_v3  ;;  %v5960_v29 = vld [vmem:[%s7662_s24 + $0x38] sm:$0xff] (%p6603_p4) }
 0x5f1   : > { %5959 = vst [vmem:[%s7747_s30 + $0x30] sm:$0xff] (%p6603_p4), %v5958_v38  ;;  %v5964_v12 = vld [vmem:[%s7662_s24 + $0x48] sm:$0xff] (%p6603_p4) }
 0x5f2   : > { %5917 = vst [vmem:[%s7662_s24 + $0xc8] sm:$0xff] %v5614_v60  ;;  %v5820_v47 = vpop.f32.mrf.mxu2 }
 0x5f3   : > { %v5821_v51 = vadd.f32 %v5820_v47, %v8117_v5  ;;  %5961 = vst [vmem:[%s7747_s30 + $0x38] sm:$0xff] (%p6603_p4), %v5960_v29 }
 0x5f4   : > { %v5567_v35 = vpop.f32.mrf.mxu3  ;;  %5965 = vst [vmem:[%s7747_s30 + $0x48] sm:$0xff] (%p6603_p4), %v5964_v12 }
 0x5f5   : > { %v5568_v56 = vadd.f32 %v5567_v35, %v5545_v28 }
 0x5f6   : > { %v5962_v45 = vld [vmem:[%s7662_s24 + $0x40] sm:$0xff] (%p6603_p4) }
 0x5f7   : > { %5916 = vst [vmem:[%s7662_s24 + $0xc0] sm:$0xff] %v5568_v56 }
 0x5f8   : > { %5963 = vst [vmem:[%s7747_s30 + $0x40] sm:$0xff] (%p6603_p4), %v5962_v45 }
 0x607   : > { %v5702_v53 = vpop.f32.mrf.mxu1 }
 0x608   : > { %v5703_v17 = vadd.f32 %v5702_v53, %v5680_v9  ;;  %v5978_v9 = vld [vmem:[%s7662_s24 + $0x80] sm:$0xff] (%p6603_p4)  ;;  %v5982_v53 = vld [vmem:[%s7662_s24 + $0x90] sm:$0xff] (%p6603_p4) }
 0x609   : > { %5979 = vst [vmem:[%s7747_s30 + $0x100] sm:$0xff] (%p6603_p4), %v5978_v9 }
 0x60a   : > { %5903 = vst [vmem:[%s7662_s24 + $0x58] sm:$0xff] %v5703_v17  ;;  %v5984_v17 = vld [vmem:[%s7662_s24 + $0x98] sm:$0xff] (%p6603_p4) }
 0x60b   : > { %5983 = vst [vmem:[%s7747_s30 + $0x110] sm:$0xff] (%p6603_p4), %v5982_v53 }
 0x60c   : > { %v5656_v19 = vpop.f32.mrf.mxu3  ;;  %5985 = vst [vmem:[%s7747_s30 + $0x118] sm:$0xff] (%p6603_p4), %v5984_v17 }
 0x60d   : > { %v5657_v14 = vadd.f32 %v5656_v19, %v5634_v36  ;;  %v5988_v36 = vld [vmem:[%s7662_s24 + $0xa8] sm:$0xff] (%p6603_p4)  ;;  %v5990_v19 = vld [vmem:[%s7662_s24 + $0xb0] sm:$0xff] (%p6603_p4) }
 0x60e   : > { %5989 = vst [vmem:[%s7747_s30 + $0x128] sm:$0xff] (%p6603_p4), %v5988_v36 }
 0x60f   : > { %v5705_v33 = vpop.f32.mrf.mxu1  ;;  %5902 = vst [vmem:[%s7662_s24 + $0x50] sm:$0xff] %v5657_v14  ;;  %v5994_v14 = vld [vmem:[%s7662_s24 + $0xc0] sm:$0xff] (%p6603_p4) }
 0x610   : > { %v5706_v4 = vadd.f32 %v5705_v33, %v5683_v62  ;;  %v5992_v62 = vld [vmem:[%s7662_s24 + $0xb8] sm:$0xff] (%p6603_p4)  ;;  %5991 = vst [vmem:[%s7747_s30 + $0x130] sm:$0xff] (%p6603_p4), %v5990_v19  ;;  %v5996_v33 = vld [vmem:[%s7662_s24 + $0xc8] sm:$0xff] (%p6603_p4) }
 0x611   : > { %v5968_v34 = vld [vmem:[%s7662_s24 + $0x58] sm:$0xff] (%p6603_p4)  ;;  %5993 = vst [vmem:[%s7747_s30 + $0x138] sm:$0xff] (%p6603_p4), %v5992_v62 }
 0x612   : > { %5919 = vst [vmem:[%s7662_s24 + $0xd8] sm:$0xff] %v5706_v4 }
 0x613   : > { %5969 = vst [vmem:[%s7747_s30 + $0x58] sm:$0xff] (%p6603_p4), %v5968_v34 }
 0x614   : > { %v5659_v50 = vpop.f32.mrf.mxu3  ;;  %5995 = vst [vmem:[%s7747_s30 + $0x140] sm:$0xff] (%p6603_p4), %v5994_v14 }
 0x615   : > { %v5660_v43 = vadd.f32 %v5659_v50, %v5637_v41  ;;  %5997 = vst [vmem:[%s7747_s30 + $0x148] sm:$0xff] (%p6603_p4), %v5996_v33 }
 0x616   : > { %v5966_v60 = vld [vmem:[%s7662_s24 + $0x50] sm:$0xff] (%p6603_p4) }
 0x617   : > { %5918 = vst [vmem:[%s7662_s24 + $0xd0] sm:$0xff] %v5660_v43 }
 0x618   : > { %5967 = vst [vmem:[%s7747_s30 + $0x50] sm:$0xff] (%p6603_p4), %v5966_v60 }
 0x619   : > { %v6000_v63 = vld [vmem:[%s7662_s24 + $0xd8] sm:$0xff] (%p6603_p4) }
 0x61a   : > { %6001 = vst [vmem:[%s7747_s30 + $0x158] sm:$0xff] (%p6603_p4), %v6000_v63 }
 0x61e   : > { %v5998_v4 = vld [vmem:[%s7662_s24 + $0xd0] sm:$0xff] (%p6603_p4) }
 0x61f   : > { %5999 = vst [vmem:[%s7747_s30 + $0x150] sm:$0xff] (%p6603_p4), %v5998_v4 }
 0x627   : > { %v5794_v21 = vpop.f32.mrf.mxu1 }
 0x628   : > { %v5795_v57 = vadd.f32 %v5794_v21, %v5772_v37 }
 0x62a   : > { %5905 = vst [vmem:[%s7662_s24 + $0x68] sm:$0xff] %v5795_v57 }
 0x62c   : > { %v5748_v13 = vpop.f32.mrf.mxu3 }
 0x62d   : > { %v5749_v1 = vadd.f32 %v5748_v13, %v5726_v11 }
 0x62f   : > { %v5797_v23 = vpop.f32.mrf.mxu1  ;;  %5904 = vst [vmem:[%s7662_s24 + $0x60] sm:$0xff] %v5749_v1 }
 0x630   : > { %v5798_v8 = vadd.f32 %v5797_v23, %v5775_v15 }
 0x631   : > { %v5972_v35 = vld [vmem:[%s7662_s24 + $0x68] sm:$0xff] (%p6603_p4) }
 0x632   : > { %5921 = vst [vmem:[%s7662_s24 + $0xe8] sm:$0xff] %v5798_v8 }
 0x633   : > { %5973 = vst [vmem:[%s7747_s30 + $0x68] sm:$0xff] (%p6603_p4), %v5972_v35 }
 0x634   : > { %v5751_v16 = vpop.f32.mrf.mxu3 }
 0x635   : > { %v5752_v24 = vadd.f32 %v5751_v16, %v5729_v55 }
 0x636   : > { %v5970_v28 = vld [vmem:[%s7662_s24 + $0x60] sm:$0xff] (%p6603_p4) }
 0x637   : > { %5920 = vst [vmem:[%s7662_s24 + $0xe0] sm:$0xff] %v5752_v24 }
 0x638   : > { %5971 = vst [vmem:[%s7747_s30 + $0x60] sm:$0xff] (%p6603_p4), %v5970_v28 }
 0x639   : > { %v6004_v50 = vld [vmem:[%s7662_s24 + $0xe8] sm:$0xff] (%p6603_p4) }
 0x63a   : > { %6005 = vst [vmem:[%s7747_s30 + $0x168] sm:$0xff] (%p6603_p4), %v6004_v50 }
 0x63e   : > { %v6002_v41 = vld [vmem:[%s7662_s24 + $0xe0] sm:$0xff] (%p6603_p4) }
 0x63f   : > { %6003 = vst [vmem:[%s7747_s30 + $0x160] sm:$0xff] (%p6603_p4), %v6002_v41 }
 0x647   : > { %v5886_v49 = vpop.f32.mrf.mxu1 }
 0x648   : > { %v5887_v59 = vadd.f32 %v5886_v49, %v5864_v40 }
 0x64a   : > { %5907 = vst [vmem:[%s7662_s24 + $0x78] sm:$0xff] %v5887_v59 }
 0x64c   : > { %v5840_v48 = vpop.f32.mrf.mxu3 }
 0x64d   : > { %v5841_v10 = vadd.f32 %v5840_v48, %v5818_v7 }
 0x64f   : > { %v5889_v39 = vpop.f32.mrf.mxu1  ;;  %5906 = vst [vmem:[%s7662_s24 + $0x70] sm:$0xff] %v5841_v10 }
 0x650   : > { %v5890_v42 = vadd.f32 %v5889_v39, %v5867_v25 }
 0x651   : > { %v5976_v26 = vld [vmem:[%s7662_s24 + $0x78] sm:$0xff] (%p6603_p4) }
 0x652   : > { %5923 = vst [vmem:[%s7662_s24 + $0xf8] sm:$0xff] %v5890_v42 }
 0x653   : > { %5930 = sbr.rel (!%p6603_p4) target bundleno = 1632 (0x660), region = 76  ;;  %5977 = vst [vmem:[%s7747_s30 + $0x78] sm:$0xff] (%p6603_p4), %v5976_v26 }
 0x654   : > { %v5843_v32 = vpop.f32.mrf.mxu3 }
 0x655   : > { %v5844_v44 = vadd.f32 %v5843_v32, %v5821_v51 }
 0x656   : > { %v5974_v56 = vld [vmem:[%s7662_s24 + $0x70] sm:$0xff] (%p6603_p4) }
 0x657   : > { %5922 = vst [vmem:[%s7662_s24 + $0xf0] sm:$0xff] %v5844_v44 }
 0x658   : > { %5975 = vst [vmem:[%s7747_s30 + $0x70] sm:$0xff] %v5974_v56 }
 0x659   : > { %v6008_v54 = vld [vmem:[%s7662_s24 + $0xf8] sm:$0xff] }
 0x65a   : > { %6009 = vst [vmem:[%s7747_s30 + $0x178] sm:$0xff] %v6008_v54 }
 0x65e   : > { %v6006_v43 = vld [vmem:[%s7662_s24 + $0xf0] sm:$0xff] }
 0x65f   : > { %6007 = vst [vmem:[%s7747_s30 + $0x170] sm:$0xff] %v6006_v43 }
 0x660 PF: > { %p18_p11 = scmp.ge.s32.totalorder %s6593_s28, 4   ;;  %s8118_s24 = smov %s6514_s25 }
 0x661   : > { %s8119_s25 = smov %s6601_s8  ;;  %s8120_s26 = smov %s6593_s28 }
 0x662   :  { %20 = sbr.rel (!%p18_p11) target bundleno = 7 (0x7), region = 126 }
 0x667   :  { %6025 = vsyncpa [#allocation3], 1 }
 0x668   :  { %6027 = vsyncpa [#allocation3 + $0x1], 1 }
 0x669   :  { %6028 = vsyncpa [#allocation5], 1 }
 0x66a   :  { %6029 = vsyncpa [#allocation8], 1 }
 0x66b   :  { %6030 = vsyncpa [#allocation11], 1 }

</bundles_post_ra>
